<compile_context>
chip_gen: v7x
topology: tpu7x:2x2x1
jax: 0.10.0
libtpu: 0.0.40
codegen_flags: <defaults>
</compile_context>

<pallas_src>
import math
import functools

import jax
import jax.numpy as jnp
from jax import lax
from jax.experimental import pallas as pl
from jax.experimental.pallas import tpu as pltpu

LAYER_SIZES = [2, 256, 256, 256, 256, 1]
SEED = 42


def _supports_bf16_eup():
    """bf16 VPU/EUP path exists on v6e / v7x, not on v5e and older."""
    try:
        kind = jax.devices()[0].device_kind.lower()
    except Exception:
        return False
    return ("v6" in kind) or ("v7" in kind)


def mlp_kernel(bf16_act,
               xy_ref,
               w1a_ref, w1b_ref, b1_ref,
               w2_ref, b2_ref,
               w3_ref, b3_ref,
               w4_ref, b4_ref,
               w5t_ref, b5_ref,
               o_ref):
    def act(pre_f32):
        # tanh dominates the compute slots here; use the bf16 EUP path where
        # the chip has one (v6e/v7x), f32 otherwise (v5e).
        if bf16_act:
            return jnp.tanh(pre_f32.astype(jnp.bfloat16))
        return jnp.tanh(pre_f32)

    # ---- Layer 1 (in = 2): two rank-1 VPU broadcast updates, no MXU pass ----
    x_col = xy_ref[:, 0:1]                                 # (tn, 1) f32
    y_col = xy_ref[:, 1:2]                                 # (tn, 1) f32
    h = act(x_col * w1a_ref[...] + y_col * w1b_ref[...] + b1_ref[...])

    # ---- Hidden layers: bf16 MXU operands, f32 accumulation ----
    def dense_tanh(h, w_ref, b_ref):
        acc = jnp.dot(h.astype(jnp.bfloat16), w_ref[...],
                      preferred_element_type=jnp.float32)   # (tn, 256) f32
        return act(acc + b_ref[...])

    h = dense_tanh(h, w2_ref, b2_ref)
    h = dense_tanh(h, w3_ref, b3_ref)
    h = dense_tanh(h, w4_ref, b4_ref)

    # ---- Output layer, transposed: (1,256) . (tn,256)^T -> lane-dense (1,tn)
    out = lax.dot_general(
        w5t_ref[...], h.astype(jnp.bfloat16),
        dimension_numbers=(((1,), (1,)), ((), ())),
        preferred_element_type=jnp.float32) + b5_ref[...]   # (1, tn)
    o_ref[...] = out.astype(o_ref.dtype)


def init_params(key, layer_sizes=LAYER_SIZES):
    """Xavier-uniform weights stored as (in, out), zero biases (1, out)."""
    params = []
    for i in range(len(layer_sizes) - 1):
        fan_in, fan_out = layer_sizes[i], layer_sizes[i + 1]
        key, sub = jax.random.split(key)
        bound = math.sqrt(6.0 / (fan_in + fan_out))
        w = jax.random.uniform(sub, (fan_in, fan_out), jnp.float32,
                               minval=-bound, maxval=bound)
        b = jnp.zeros((1, fan_out), jnp.float32)
        params.append((w, b))
    return params


def prepare_params(params):
    """One-time, kernel-ready re-packing: split w1 rows, bf16 hidden weights,
    transposed bf16 output row.  Done OUTSIDE the jitted forward so no per-call
    cast/pad ops surround the kernel."""
    (w1, b1), (w2, b2), (w3, b3), (w4, b4), (w5, b5) = params
    return (
        w1[0:1, :],                        # (1,256) f32  (x row)
        w1[1:2, :],                        # (1,256) f32  (y row)
        b1,                                # (1,256) f32
        w2.astype(jnp.bfloat16), b2,       # (256,256) bf16, (1,256) f32
        w3.astype(jnp.bfloat16), b3,
        w4.astype(jnp.bfloat16), b4,
        jnp.transpose(w5).astype(jnp.bfloat16),   # (1,256) bf16 (row form)
        b5.reshape(1, 1),                  # (1,1) f32
    )


@functools.partial(jax.jit, static_argnames=("bf16_act",))
def model_forward(x, y, kparams, *, bf16_act=False):
    n = x.shape[0]
    n_pad = ((n + 127) // 128) * 128       # 801 -> 896 (7 * 128)
    tile_n = n_pad                         # single grid step (see header)
    pad = n_pad - n

    xy = jnp.concatenate(
        [x.astype(jnp.float32), y.astype(jnp.float32)], axis=1)  # (n, 2)
    xy = jnp.pad(xy, ((0, pad), (0, 0)))                         # (n_pad, 2)

    def whole(arr):  # whole array VMEM-resident for every (single) grid step
        return pl.BlockSpec(arr.shape, lambda i: (0,) * arr.ndim)

    hidden = LAYER_SIZES[1]
    flops = 2 * n_pad * (2 * hidden + 3 * hidden * hidden + hidden)
    transcendentals = 4 * n_pad * hidden
    bytes_accessed = (int(xy.size) * 4
                      + sum(int(a.size) * a.dtype.itemsize for a in kparams)
                      + n_pad * 4)

    out = pl.pallas_call(
        functools.partial(mlp_kernel, bf16_act),
        out_shape=jax.ShapeDtypeStruct((1, n_pad), jnp.float32),
        grid_spec=pl.GridSpec(
            grid=(n_pad // tile_n,),
            in_specs=[pl.BlockSpec((tile_n, 2), lambda i: (i, 0))]
                     + [whole(a) for a in kparams],
            out_specs=pl.BlockSpec((1, tile_n), lambda i: (0, i)),
        ),
        compiler_params=pltpu.CompilerParams(
            dimension_semantics=("parallel",)),
        cost_estimate=pl.CostEstimate(
            flops=int(flops),
            transcendentals=int(transcendentals),
            bytes_accessed=int(bytes_accessed)),
    )(xy, *kparams)

    # (1, n_pad) lane-dense row -> (n, 1) column; drop padded rows.
    return out[0, :n].reshape(n, 1)


def reference_forward_matched(x, y, params, bf16_act):
    """Pure-JAX reference with the SAME precision recipe as the kernel."""
    (w1, b1), (w2, b2), (w3, b3), (w4, b4), (w5, b5) = params

    def act(pre):
        return jnp.tanh(pre.astype(jnp.bfloat16) if bf16_act else pre)

    h = act(x * w1[0:1, :] + y * w1[1:2, :] + b1)
    for (w, b) in ((w2, b2), (w3, b3), (w4, b4)):
        h = act(jnp.dot(h.astype(jnp.bfloat16), w.astype(jnp.bfloat16),
                        preferred_element_type=jnp.float32) + b)
    return jnp.dot(h.astype(jnp.bfloat16), w5.astype(jnp.bfloat16),
                   preferred_element_type=jnp.float32) + b5


def reference_forward_f32(x, y, params):
    """Full-f32 reference matching the PyTorch module math."""
    h = jnp.concatenate([x, y], axis=1)
    for idx, (w, b) in enumerate(params):
        h = jnp.dot(h, w, precision=jax.lax.Precision.HIGHEST) + b
        if idx < len(params) - 1:
            h = jnp.tanh(h)
    return h


if __name__ == "__main__":
    key = jax.random.PRNGKey(0)
    _, ky = jax.random.split(key)

    # Original module: x = linspace(0, R=40, R/dx + 1) -> N = 801 rows.
    N = 801
    x = jnp.linspace(0.0, 40.0, N, dtype=jnp.float32).reshape(-1, 1)
    y = jax.random.uniform(ky, (N, 1), jnp.float32, minval=0.0, maxval=40.0)

    # TODO(synk): torch.manual_seed(42) nn.Linear init cannot be bit-reproduced
    # in JAX; same Xavier-uniform / zero-bias scheme with a JAX PRNG instead.
    params = init_params(jax.random.PRNGKey(SEED))
    kparams = prepare_params(params)          # one-time kernel-ready packing
    bf16_act = _supports_bf16_eup()

    out = model_forward(x, y, kparams, bf16_act=bf16_act)
    out = jax.block_until_ready(out)
    assert out.shape == (N, 1)
    assert bool(jnp.all(jnp.isfinite(out)))

    ref_matched = reference_forward_matched(x, y, params, bf16_act)
    ref_f32 = reference_forward_f32(x, y, params)

    # Same-recipe reference (allows for Mosaic-vs-XLA bf16 tanh differences).
    assert jnp.allclose(out, ref_matched, atol=5e-2, rtol=5e-2), \
        float(jnp.max(jnp.abs(out - ref_matched)))
    # Loose check vs full-f32 PyTorch-style math (bf16 MXU operands in kernel).
    assert jnp.allclose(out, ref_f32, atol=1.5e-1, rtol=1.5e-1), \
        float(jnp.max(jnp.abs(out - ref_f32)))

    print("KERNEL_OK")
</pallas_src>

<mosaic_0001>
module attributes {stable_mosaic.version = 11 : i64} {
  func.func @mlp_kernel(%arg0: i32, %arg1: memref<896x2xf32, #tpu.memory_space<vmem>>, %arg2: memref<1x256xf32, #tpu.memory_space<vmem>>, %arg3: memref<1x256xf32, #tpu.memory_space<vmem>>, %arg4: memref<1x256xf32, #tpu.memory_space<vmem>>, %arg5: memref<256x256xbf16, #tpu.memory_space<vmem>>, %arg6: memref<1x256xf32, #tpu.memory_space<vmem>>, %arg7: memref<256x256xbf16, #tpu.memory_space<vmem>>, %arg8: memref<1x256xf32, #tpu.memory_space<vmem>>, %arg9: memref<256x256xbf16, #tpu.memory_space<vmem>>, %arg10: memref<1x256xf32, #tpu.memory_space<vmem>>, %arg11: memref<1x256xbf16, #tpu.memory_space<vmem>>, %arg12: memref<1x1xf32, #tpu.memory_space<vmem>>, %arg13: memref<1x896xf32, #tpu.memory_space<vmem>>) attributes {dimension_semantics = [#tpu.dimension_semantics<parallel>], iteration_bounds = array<i64: 1>, scalar_prefetch = 0 : i64, scratch_operands = 0 : i64, tpu.core_type = #tpu.core_type<tc>, window_params = [{transform_indices = @transform_0, window_bounds = array<i64: 896, 2>}, {pipeline_mode = #tpu.pipeline_mode<synchronous>, transform_indices = @transform_1, window_bounds = array<i64: 1, 256>}, {pipeline_mode = #tpu.pipeline_mode<synchronous>, transform_indices = @transform_2, window_bounds = array<i64: 1, 256>}, {pipeline_mode = #tpu.pipeline_mode<synchronous>, transform_indices = @transform_3, window_bounds = array<i64: 1, 256>}, {pipeline_mode = #tpu.pipeline_mode<synchronous>, transform_indices = @transform_4, window_bounds = array<i64: 256, 256>}, {pipeline_mode = #tpu.pipeline_mode<synchronous>, transform_indices = @transform_5, window_bounds = array<i64: 1, 256>}, {pipeline_mode = #tpu.pipeline_mode<synchronous>, transform_indices = @transform_6, window_bounds = array<i64: 256, 256>}, {pipeline_mode = #tpu.pipeline_mode<synchronous>, transform_indices = @transform_7, window_bounds = array<i64: 1, 256>}, {pipeline_mode = #tpu.pipeline_mode<synchronous>, transform_indices = @transform_8, window_bounds = array<i64: 256, 256>}, {pipeline_mode = #tpu.pipeline_mode<synchronous>, transform_indices = @transform_9, window_bounds = array<i64: 1, 256>}, {pipeline_mode = #tpu.pipeline_mode<synchronous>, transform_indices = @transform_10, window_bounds = array<i64: 1, 256>}, {pipeline_mode = #tpu.pipeline_mode<synchronous>, transform_indices = @transform_11, window_bounds = array<i64: 1, 1>}, {transform_indices = @transform_12, window_bounds = array<i64: 1, 896>}]} {
    %c0 = arith.constant 0 : index
    %c0_0 = arith.constant 0 : index
    %0 = vector.load %arg1[%c0, %c0_0] : memref<896x2xf32, #tpu.memory_space<vmem>>, vector<896x1xf32>
    %c0_1 = arith.constant 0 : index
    %c1 = arith.constant 1 : index
    %1 = vector.load %arg1[%c0_1, %c1] : memref<896x2xf32, #tpu.memory_space<vmem>>, vector<896x1xf32>
    %c0_2 = arith.constant 0 : index
    %c0_3 = arith.constant 0 : index
    %2 = vector.load %arg2[%c0_2, %c0_3] : memref<1x256xf32, #tpu.memory_space<vmem>>, vector<1x256xf32>
    %3 = vector.broadcast %0 : vector<896x1xf32> to vector<896x256xf32>
    %4 = vector.broadcast %2 : vector<1x256xf32> to vector<896x256xf32>
    %5 = arith.mulf %3, %4 : vector<896x256xf32>
    %c0_4 = arith.constant 0 : index
    %c0_5 = arith.constant 0 : index
    %6 = vector.load %arg3[%c0_4, %c0_5] : memref<1x256xf32, #tpu.memory_space<vmem>>, vector<1x256xf32>
    %7 = vector.broadcast %1 : vector<896x1xf32> to vector<896x256xf32>
    %8 = vector.broadcast %6 : vector<1x256xf32> to vector<896x256xf32>
    %9 = arith.mulf %7, %8 : vector<896x256xf32>
    %10 = arith.addf %5, %9 : vector<896x256xf32>
    %c0_6 = arith.constant 0 : index
    %c0_7 = arith.constant 0 : index
    %11 = vector.load %arg4[%c0_6, %c0_7] : memref<1x256xf32, #tpu.memory_space<vmem>>, vector<1x256xf32>
    %12 = vector.broadcast %11 : vector<1x256xf32> to vector<896x256xf32>
    %13 = arith.addf %10, %12 : vector<896x256xf32>
    %14 = math.tanh %13 : vector<896x256xf32>
    %15 = arith.truncf %14 : vector<896x256xf32> to vector<896x256xbf16>
    %c0_8 = arith.constant 0 : index
    %c0_9 = arith.constant 0 : index
    %16 = vector.load %arg5[%c0_8, %c0_9] : memref<256x256xbf16, #tpu.memory_space<vmem>>, vector<256x256xbf16>
    %cst = arith.constant dense<0.000000e+00> : vector<896x256xf32>
    %17 = tpu.matmul %15, %16, %cst {dimension_numbers = #tpu.dot_dimension_numbers<[1], [0], [0], [1], [0, 0, 1, 1], [], []>} : vector<896x256xbf16>, vector<256x256xbf16>, vector<896x256xf32> -> vector<896x256xf32>
    %c0_10 = arith.constant 0 : index
    %c0_11 = arith.constant 0 : index
    %18 = vector.load %arg6[%c0_10, %c0_11] : memref<1x256xf32, #tpu.memory_space<vmem>>, vector<1x256xf32>
    %19 = vector.broadcast %18 : vector<1x256xf32> to vector<896x256xf32>
    %20 = arith.addf %17, %19 : vector<896x256xf32>
    %21 = math.tanh %20 : vector<896x256xf32>
    %22 = arith.truncf %21 : vector<896x256xf32> to vector<896x256xbf16>
    %c0_12 = arith.constant 0 : index
    %c0_13 = arith.constant 0 : index
    %23 = vector.load %arg7[%c0_12, %c0_13] : memref<256x256xbf16, #tpu.memory_space<vmem>>, vector<256x256xbf16>
    %cst_14 = arith.constant dense<0.000000e+00> : vector<896x256xf32>
    %24 = tpu.matmul %22, %23, %cst_14 {dimension_numbers = #tpu.dot_dimension_numbers<[1], [0], [0], [1], [0, 0, 1, 1], [], []>} : vector<896x256xbf16>, vector<256x256xbf16>, vector<896x256xf32> -> vector<896x256xf32>
    %c0_15 = arith.constant 0 : index
    %c0_16 = arith.constant 0 : index
    %25 = vector.load %arg8[%c0_15, %c0_16] : memref<1x256xf32, #tpu.memory_space<vmem>>, vector<1x256xf32>
    %26 = vector.broadcast %25 : vector<1x256xf32> to vector<896x256xf32>
    %27 = arith.addf %24, %26 : vector<896x256xf32>
    %28 = math.tanh %27 : vector<896x256xf32>
    %29 = arith.truncf %28 : vector<896x256xf32> to vector<896x256xbf16>
    %c0_17 = arith.constant 0 : index
    %c0_18 = arith.constant 0 : index
    %30 = vector.load %arg9[%c0_17, %c0_18] : memref<256x256xbf16, #tpu.memory_space<vmem>>, vector<256x256xbf16>
    %cst_19 = arith.constant dense<0.000000e+00> : vector<896x256xf32>
    %31 = tpu.matmul %29, %30, %cst_19 {dimension_numbers = #tpu.dot_dimension_numbers<[1], [0], [0], [1], [0, 0, 1, 1], [], []>} : vector<896x256xbf16>, vector<256x256xbf16>, vector<896x256xf32> -> vector<896x256xf32>
    %c0_20 = arith.constant 0 : index
    %c0_21 = arith.constant 0 : index
    %32 = vector.load %arg10[%c0_20, %c0_21] : memref<1x256xf32, #tpu.memory_space<vmem>>, vector<1x256xf32>
    %33 = vector.broadcast %32 : vector<1x256xf32> to vector<896x256xf32>
    %34 = arith.addf %31, %33 : vector<896x256xf32>
    %35 = math.tanh %34 : vector<896x256xf32>
    %c0_22 = arith.constant 0 : index
    %c0_23 = arith.constant 0 : index
    %36 = vector.load %arg11[%c0_22, %c0_23] : memref<1x256xbf16, #tpu.memory_space<vmem>>, vector<1x256xbf16>
    %37 = arith.truncf %35 : vector<896x256xf32> to vector<896x256xbf16>
    %cst_24 = arith.constant dense<0.000000e+00> : vector<1x896xf32>
    %38 = tpu.matmul %36, %37, %cst_24 {dimension_numbers = #tpu.dot_dimension_numbers<[1], [1], [0], [0], [0, 0, 1, 0], [], []>} : vector<1x256xbf16>, vector<896x256xbf16>, vector<1x896xf32> -> vector<1x896xf32>
    %c0_25 = arith.constant 0 : index
    %c0_26 = arith.constant 0 : index
    %39 = vector.load %arg12[%c0_25, %c0_26] : memref<1x1xf32, #tpu.memory_space<vmem>>, vector<1x1xf32>
    %40 = vector.broadcast %39 : vector<1x1xf32> to vector<1x896xf32>
    %41 = arith.addf %38, %40 : vector<1x896xf32>
    %c0_27 = arith.constant 0 : index
    %c0_28 = arith.constant 0 : index
    %42 = vector.load %arg13[%c0_27, %c0_28] : memref<1x896xf32, #tpu.memory_space<vmem>>, vector<1x896xf32>
    tpu.vector_store %arg13[%c0_27, %c0_28], %41 {strides = array<i32>} : memref<1x896xf32, #tpu.memory_space<vmem>>, vector<1x896xf32>,
    return
  }
  func.func @transform_0(%arg0: i32) -> (i32, i32) {
    %c0_i32 = arith.constant 0 : i32
    %c0_i32_0 = arith.constant 0 : i32
    return %arg0, %c0_i32 : i32, i32
  }
  func.func @transform_1(%arg0: i32) -> (i32, i32) {
    %c0_i32 = arith.constant 0 : i32
    %c0_i32_0 = arith.constant 0 : i32
    %c0_i32_1 = arith.constant 0 : i32
    return %c0_i32, %c0_i32_0 : i32, i32
  }
  func.func @transform_2(%arg0: i32) -> (i32, i32) {
    %c0_i32 = arith.constant 0 : i32
    %c0_i32_0 = arith.constant 0 : i32
    %c0_i32_1 = arith.constant 0 : i32
    return %c0_i32, %c0_i32_0 : i32, i32
  }
  func.func @transform_3(%arg0: i32) -> (i32, i32) {
    %c0_i32 = arith.constant 0 : i32
    %c0_i32_0 = arith.constant 0 : i32
    %c0_i32_1 = arith.constant 0 : i32
    return %c0_i32, %c0_i32_0 : i32, i32
  }
  func.func @transform_4(%arg0: i32) -> (i32, i32) {
    %c0_i32 = arith.constant 0 : i32
    %c0_i32_0 = arith.constant 0 : i32
    %c0_i32_1 = arith.constant 0 : i32
    return %c0_i32, %c0_i32_0 : i32, i32
  }
  func.func @transform_5(%arg0: i32) -> (i32, i32) {
    %c0_i32 = arith.constant 0 : i32
    %c0_i32_0 = arith.constant 0 : i32
    %c0_i32_1 = arith.constant 0 : i32
    return %c0_i32, %c0_i32_0 : i32, i32
  }
  func.func @transform_6(%arg0: i32) -> (i32, i32) {
    %c0_i32 = arith.constant 0 : i32
    %c0_i32_0 = arith.constant 0 : i32
    %c0_i32_1 = arith.constant 0 : i32
    return %c0_i32, %c0_i32_0 : i32, i32
  }
  func.func @transform_7(%arg0: i32) -> (i32, i32) {
    %c0_i32 = arith.constant 0 : i32
    %c0_i32_0 = arith.constant 0 : i32
    %c0_i32_1 = arith.constant 0 : i32
    return %c0_i32, %c0_i32_0 : i32, i32
  }
  func.func @transform_8(%arg0: i32) -> (i32, i32) {
    %c0_i32 = arith.constant 0 : i32
    %c0_i32_0 = arith.constant 0 : i32
    %c0_i32_1 = arith.constant 0 : i32
    return %c0_i32, %c0_i32_0 : i32, i32
  }
  func.func @transform_9(%arg0: i32) -> (i32, i32) {
    %c0_i32 = arith.constant 0 : i32
    %c0_i32_0 = arith.constant 0 : i32
    %c0_i32_1 = arith.constant 0 : i32
    return %c0_i32, %c0_i32_0 : i32, i32
  }
  func.func @transform_10(%arg0: i32) -> (i32, i32) {
    %c0_i32 = arith.constant 0 : i32
    %c0_i32_0 = arith.constant 0 : i32
    %c0_i32_1 = arith.constant 0 : i32
    return %c0_i32, %c0_i32_0 : i32, i32
  }
  func.func @transform_11(%arg0: i32) -> (i32, i32) {
    %c0_i32 = arith.constant 0 : i32
    %c0_i32_0 = arith.constant 0 : i32
    %c0_i32_1 = arith.constant 0 : i32
    return %c0_i32, %c0_i32_0 : i32, i32
  }
  func.func @transform_12(%arg0: i32) -> (i32, i32) {
    %c0_i32 = arith.constant 0 : i32
    %c0_i32_0 = arith.constant 0 : i32
    return %c0_i32, %arg0 : i32, i32
  }
}

</mosaic_0001>

<bundles_post_ra>
// kernel: model_forward.1
= control target key start
LH: loop header
LB: loop body
LE: loop exit
PB: predicated region body
PF: predicated region fallthrough
CT: control target
= control target key end

     0   :  { %v8287_v0 = vmov 1   ;;  %v8288_v1 = vmov 0   ;;  %v11733_v63 = vlaneseq  ;;  %s11720_s0 = inlined_call_operand.vmem [shape: f32[896,2], index: 0, kind: input, shape index: {}]   ;;  %s11721_s4 = inlined_call_operand.vmem [shape: bf16[256,256], index: 4, kind: input, shape index: {}]   ;;  %s11722_s2 = inlined_call_operand.vmem [shape: f32[1,256], index: 2, kind: input, shape index: {}]   ;;  %s11723_s1 = inlined_call_operand.vmem [shape: f32[1,256], index: 1, kind: input, shape index: {}]   ;;  %s11724_s3 = inlined_call_operand.vmem [shape: f32[1,256], index: 3, kind: input, shape index: {}]   ;;  %s11725_s6 = inlined_call_operand.vmem [shape: bf16[256,256], index: 6, kind: input, shape index: {}]   ;;  %s11726_s5 = inlined_call_operand.vmem [shape: f32[1,256], index: 5, kind: input, shape index: {}]   ;;  %s11727_s8 = inlined_call_operand.vmem [shape: bf16[256,256], index: 8, kind: input, shape index: {}]   ;;  %s11728_s7 = inlined_call_operand.vmem [shape: f32[1,256], index: 7, kind: input, shape index: {}]   ;;  %s11729_s9 = inlined_call_operand.vmem [shape: f32[1,256], index: 9, kind: input, shape index: {}]   ;;  %s11730_s10 = inlined_call_operand.vmem [shape: bf16[1,256], index: 10, kind: input, shape index: {}]   ;;  %s11731_s11 = inlined_call_operand.<no memory space> [shape: f32[1,1], index: 11, kind: input, shape index: {}]   ;;  %s11732_s12 = inlined_call_operand.vmem [shape: f32[1,896], index: 12, kind: output, shape index: {}]  }
   0x1   :  { %6196 = vset.pattern.permute.xlu1 %v8287_v0  ;;  %6195 = vset.pattern.permute.xlu0 %v8288_v1  ;;  %v44_v2 = vld [vmem:[%s11720_s0] sm:$0xff]  ;;  %v45_v3 = vld [vmem:[%s11720_s0 + $0x8] sm:$0xff]  ;;  %v47_v4 = vld [vmem:[%s11720_s0 + $0x18] sm:$0xff] }
   0x2   :  { %954 = vperm.xlu1 %6196, %v44_v2   ;;  %159 = vperm.xlu0 %6195, %v44_v2   ;;  %v46_v5 = vld [vmem:[%s11720_s0 + $0x10] sm:$0xff]  ;;  %v6338_v6 = vld [vmem:[%s11721_s4 + $0x4] ss:$8 sps:$4 sm:$0xff]   ;;  %v6340_v7 = vld [vmem:[%s11721_s4] ss:$8 sps:$4 sm:$0xff]   ;;  %v8577_v2 = vshrl.u32 %v11733_v63, 7 }
   0x3   :  { %v6341_v8 = vld [vmem:[%s11721_s4 + $0x14] ss:$8 sps:$4 sm:$0xff]   ;;  %2636 = vmatprep.subr.bf16.mxu0 %v6338_v6  ;;  %v6343_v9 = vld [vmem:[%s11721_s4 + $0x10] ss:$8 sps:$4 sm:$0xff]   ;;  %v6344_v10 = vld [vmem:[%s11721_s4 + $0x24] ss:$8 sps:$4 sm:$0xff]  }
   0x4   :  { %2637 = vmatpush1.bf16.msra.mxu0 %v6340_v7  ;;  %v50_v11 = vld [vmem:[%s11720_s0 + $0x30] sm:$0xff]  ;;  %v6346_v12 = vld [vmem:[%s11721_s4 + $0x20] ss:$8 sps:$4 sm:$0xff]   ;;  %v6350_v17 = vld [vmem:[%s11721_s4 + $0x44] ss:$8 sps:$4 sm:$0xff]   ;;  %11775 = vst [vmem:[#allocation3_spill] sm:$0xff] %v8577_v2 }
   0x5   :  { %2638 = vmatprep.subr.bf16.mxu0 %v6341_v8  ;;  %v6347_v13 = vld [vmem:[%s11721_s4 + $0x34] ss:$8 sps:$4 sm:$0xff]   ;;  %v48_v14 = vld [vmem:[%s11720_s0 + $0x20] sm:$0xff]  ;;  %v6349_v15 = vld [vmem:[%s11721_s4 + $0x30] ss:$8 sps:$4 sm:$0xff]  }
   0x6   :  { %958 = vperm.xlu1 %6196, %v45_v3   ;;  %164 = vperm.xlu0 %6195, %v45_v3   ;;  %v49_v16 = vld [vmem:[%s11720_s0 + $0x28] sm:$0xff]  ;;  %v6353_v19 = vld [vmem:[%s11721_s4 + $0x54] ss:$8 sps:$4 sm:$0xff]   ;;  %v6355_v21 = vld [vmem:[%s11721_s4 + $0x50] ss:$8 sps:$4 sm:$0xff]  }
   0x7   :  { %v6352_v18 = vld [vmem:[%s11721_s4 + $0x40] ss:$8 sps:$4 sm:$0xff]   ;;  %v6356_v22 = vld [vmem:[%s11721_s4 + $0x64] ss:$8 sps:$4 sm:$0xff]   ;;  %v51_v23 = vld [vmem:[%s11720_s0 + $0x38] sm:$0xff] }
   0x8   :  { %2639 = vmatpush1.bf16.msra.mxu0 %v6343_v9  ;;  %v53_v20 = vld [vmem:[%s11720_s0 + $0x48] sm:$0xff]  ;;  %v54_v25 = vld [vmem:[%s11720_s0 + $0x50] sm:$0xff]  ;;  %v52_v29 = vld [vmem:[%s11720_s0 + $0x40] sm:$0xff] }
   0x9   :  { %2640 = vmatprep.subr.bf16.mxu0 %v6344_v10  ;;  %v6358_v24 = vld [vmem:[%s11721_s4 + $0x60] ss:$8 sps:$4 sm:$0xff]   ;;  %v6359_v26 = vld [vmem:[%s11721_s4 + $0x74] ss:$8 sps:$4 sm:$0xff]   ;;  %v6361_v27 = vld [vmem:[%s11721_s4 + $0x70] ss:$8 sps:$4 sm:$0xff]  }
   0xa   :  { %6197 = vset.pattern.permute.xlu1 %v8288_v1  ;;  %169 = vperm.xlu0 %6195, %v46_v5   ;;  %v6362_v28 = vld [vmem:[%s11721_s4 + $0x84] ss:$8 sps:$4 sm:$0xff]   ;;  %v58_v30 = vld [vmem:[%s11720_s0 + $0x70] sm:$0xff]  ;;  %v6364_v31 = vld [vmem:[%s11721_s4 + $0x80] ss:$8 sps:$4 sm:$0xff]  }
   0xb   :  { %174 = vperm.xlu1 %6197, %v47_v4   ;;  %v6365_v32 = vld [vmem:[%s11721_s4 + $0x94] ss:$8 sps:$4 sm:$0xff]   ;;  %v57_v33 = vld [vmem:[%s11720_s0 + $0x68] sm:$0xff]  ;;  %v6367_v34 = vld [vmem:[%s11721_s4 + $0x90] ss:$8 sps:$4 sm:$0xff]  }
   0xc   :  { %2641 = vmatpush1.bf16.msra.mxu0 %v6346_v12  ;;  %v6368_v35 = vld [vmem:[%s11721_s4 + $0xa4] ss:$8 sps:$4 sm:$0xff]   ;;  %v6370_v36 = vld [vmem:[%s11721_s4 + $0xa0] ss:$8 sps:$4 sm:$0xff]   ;;  %v6371_v37 = vld [vmem:[%s11721_s4 + $0xb4] ss:$8 sps:$4 sm:$0xff]  }
   0xd   :  { %2642 = vmatprep.subr.bf16.mxu0 %v6347_v13  ;;  %v61_v38 = vld [vmem:[%s11720_s0 + $0x88] sm:$0xff]  ;;  %v6373_v39 = vld [vmem:[%s11721_s4 + $0xb0] ss:$8 sps:$4 sm:$0xff]   ;;  %v6377_v44 = vld [vmem:[%s11721_s4 + $0xd4] ss:$8 sps:$4 sm:$0xff]  }
   0xe   :  { %6198 = vset.pattern.permute.xlu0 %v8287_v0  ;;  %v55_v40 = vld [vmem:[%s11720_s0 + $0x58] sm:$0xff]  ;;  %v6374_v41 = vld [vmem:[%s11721_s4 + $0xc4] ss:$8 sps:$4 sm:$0xff]   ;;  %v62_v42 = vld [vmem:[%s11720_s0 + $0x90] sm:$0xff] }
   0xf   :  { %6199 = vset.pattern.permute.xlu1 %v8287_v0  ;;  %962 = vperm.xlu0 %6198, %v46_v5   ;;  %v6376_v43 = vld [vmem:[%s11721_s4 + $0xc0] ss:$8 sps:$4 sm:$0xff]   ;;  %v6379_v45 = vld [vmem:[%s11721_s4 + $0xd0] ss:$8 sps:$4 sm:$0xff]   ;;  %v6380_v46 = vld [vmem:[%s11721_s4 + $0xe4] ss:$8 sps:$4 sm:$0xff]  }
  0x10   :  { %966 = vperm.xlu1 %6199, %v47_v4   ;;  %2643 = vmatpush1.bf16.msra.mxu0 %v6349_v15  ;;  %v56_v47 = vld [vmem:[%s11720_s0 + $0x60] sm:$0xff]  ;;  %v66_v49 = vld [vmem:[%s11720_s0 + $0xb0] sm:$0xff]  ;;  %v65_v52 = vld [vmem:[%s11720_s0 + $0xa8] sm:$0xff]  ;;  %v8585_v4 = vsub.s32 0, %v8577_v2  ;;  %v8588_v5 = vsub.s32 1, %v8577_v2 }
  0x11   :  { %2644 = vmatprep.subr.bf16.mxu0 %v6350_v17  ;;  %v6382_v48 = vld [vmem:[%s11721_s4 + $0xe0] ss:$8 sps:$4 sm:$0xff]   ;;  %v6383_v50 = vld [vmem:[%s11721_s4 + $0xf4] ss:$8 sps:$4 sm:$0xff]   ;;  %v6385_v51 = vld [vmem:[%s11721_s4 + $0xf0] ss:$8 sps:$4 sm:$0xff]  }
  0x12   :  { %v59_v53 = vld [vmem:[%s11720_s0 + $0x78] sm:$0xff]  ;;  %v8534_v54 = vld [vmem:[%s11720_s0 + $0xc8] sm:$0xff]  ;;  %v70_v55 = vld [vmem:[%s11720_s0 + $0xd0] sm:$0xff]  ;;  %11776 = vst [vmem:[#allocation4_spill] sm:$0xff] %v8585_v4 }
  0x13   :  { %978 = vperm.xlu0 %6198, %v50_v11   ;;  %v60_v56 = vld [vmem:[%s11720_s0 + $0x80] sm:$0xff]  ;;  %v74_v57 = vld [vmem:[%s11720_s0 + $0xf0] sm:$0xff]  ;;  %v8554_v58 = vld [vmem:[%s11720_s0 + $0xe8] sm:$0xff]  ;;  %11777 = vst [vmem:[#allocation5_spill] sm:$0xff] %v8588_v5 }
  0x14   :  { %6200 = vset.pattern.permute.xlu1 %v8288_v1  ;;  %2645 = vmatpush1.bf16.msra.mxu0 %v6352_v18  ;;  %v63_v59 = vld [vmem:[%s11720_s0 + $0x98] sm:$0xff]  ;;  %v8565_v60 = vld [vmem:[%s11720_s0 + $0x108] sm:$0xff]  ;;  %v78_v61 = vld [vmem:[%s11720_s0 + $0x110] sm:$0xff] }
  0x15   :  { %179 = vperm.xlu1 %6200, %v48_v14   ;;  %2646 = vmatprep.subr.bf16.mxu0 %v6353_v19  ;;  %v64_v62 = vld [vmem:[%s11720_s0 + $0xa0] sm:$0xff]  ;;  %v82_v3 = vld [vmem:[%s11720_s0 + $0x130] sm:$0xff]  ;;  %v8599_v8 = vld [vmem:[%s11720_s0 + $0x128] sm:$0xff] }
  0x16   :  { %v952_v6 = vld [vmem:[%s11722_s2] sm:$0x3] }
  0x17   :  { %6203 = vset.pattern.permute.xlu0 %v8288_v1  ;;  %v156_v7 = vld [vmem:[%s11723_s1] sm:$0x3]  ;;  %v8602_v9 = vrot.slane %v952_v6, %v8585_v4  ;;  %v8605_v10 = vrot.slane %v952_v6, %v8588_v5 }
  0x18   :  { %184 = vperm.xlu0 %6203, %v49_v16   ;;  %2647 = vmatpush1.bf16.msra.mxu0 %v6355_v21  ;;  %v8611_v12 = vrot.slane %v156_v7, %v8588_v5  ;;  %v1860_v13 = vld [vmem:[%s11724_s3] sm:$0x3] }
  0x19   :  { %6201 = vset.pattern.permute.xlu1 %v8287_v0  ;;  %2648 = vmatprep.subr.bf16.mxu0 %v6356_v22  ;;  %v8627_v21 = vrot.slane %v1860_v13, %v8585_v4  ;;  %v8630_v22 = vrot.slane %v1860_v13, %v8588_v5 }
  0x1a   :  { %970 = vperm.xlu1 %6201, %v48_v14   ;;  %v67_v14 = vld [vmem:[%s11720_s0 + $0xb8] sm:$0xff] }
  0x1c   :  { %189 = vperm.xlu0 %6203, %v50_v11   ;;  %2649 = vmatpush1.bf16.msra.mxu0 %v6358_v24  ;;  %v8608_v11 = vrot.slane %v156_v7, %v8585_v4 }
  0x1d   :  { %2650 = vmatprep.subr.bf16.mxu0 %v6359_v26 }
  0x1e   :  { %974 = vperm.xlu1 %6201, %v49_v16  }
  0x20   :  { %204 = vperm.xlu0 %6203, %v53_v20   ;;  %2651 = vmatpush1.bf16.msra.mxu0 %v6361_v27  ;;  %v8635_v27 = vld [vmem:[%s11720_s0 + $0x148] sm:$0xff] }
  0x21   :  { %2652 = vmatprep.subr.bf16.mxu0 %v6362_v28 }
  0x22   :  { %6202 = vset.pattern.permute.xlu1 %v8288_v1 }
  0x23   :  { %194 = vperm.xlu1 %6202, %v51_v23  }
  0x24   :  { %209 = vperm.xlu0 %6203, %v54_v25   ;;  %2653 = vmatpush1.bf16.msra.mxu0 %v6364_v31 }
  0x25   :  { %2654 = vmatprep.subr.bf16.mxu0 %v6365_v32 }
  0x27   :  { %6204 = vset.pattern.permute.xlu1 %v8287_v0 }
  0x28   :  { %982 = vperm.xlu1 %6204, %v51_v23   ;;  %6208 = vset.pattern.permute.xlu0 %v8287_v0 }
  0x29   :  { %994 = vperm.xlu0 %6208, %v54_v25   ;;  %2655 = vmatpush1.bf16.msra.mxu0 %v6367_v34 }
  0x2a   :  { %2656 = vmatprep.subr.bf16.mxu0 %v6368_v35 }
  0x2c   :  { %6205 = vset.pattern.permute.xlu1 %v8288_v1 }
  0x2d   :  { %199 = vperm.xlu1 %6205, %v52_v29   ;;  %1010 = vperm.xlu0 %6208, %v58_v30  }
  0x2e   :  { %2657 = vmatpush1.bf16.msra.mxu0 %v6370_v36 }
  0x2f   :  { %2658 = vmatprep.subr.bf16.mxu0 %v6371_v37  ;;  %v86_v37 = vld [vmem:[%s11720_s0 + $0x150] sm:$0xff] }
  0x31   :  { %6206 = vset.pattern.permute.xlu1 %v8287_v0  ;;  %6213 = vset.pattern.permute.xlu0 %v8288_v1 }
  0x32   :  { %986 = vperm.xlu1 %6206, %v52_v29   ;;  %224 = vperm.xlu0 %6213, %v57_v33  }
  0x33   :  { %2659 = vmatpush1.bf16.msra.mxu0 %v6373_v39  ;;  %v68_v39 = vld [vmem:[%s11720_s0 + $0xc0] sm:$0xff] }
  0x34   :  { %2660 = vmatprep.subr.bf16.mxu0 %v6374_v41 }
  0x36   :  { %990 = vperm.xlu1 %6206, %v53_v20   ;;  %229 = vperm.xlu0 %6213, %v58_v30  }
  0x37   :  { %2661 = vmatpush1.bf16.msra.mxu0 %v6376_v43 }
  0x38   :  { %2662 = vmatprep.subr.bf16.mxu0 %v6377_v44 }
  0x3a   :  { %6207 = vset.pattern.permute.xlu1 %v8288_v1  ;;  %244 = vperm.xlu0 %6213, %v61_v38  }
  0x3b   :  { %214 = vperm.xlu1 %6207, %v55_v40   ;;  %2663 = vmatpush1.bf16.msra.mxu0 %v6379_v45 }
  0x3c   :  { %2664 = vmatprep.subr.bf16.mxu0 %v6380_v46 }
  0x3e   :  { %249 = vperm.xlu0 %6213, %v62_v42  }
  0x3f   :  { %6209 = vset.pattern.permute.xlu1 %v8287_v0  ;;  %2665 = vmatpush1.bf16.msra.mxu0 %v6382_v48 }
  0x40   :  { %998 = vperm.xlu1 %6209, %v55_v40   ;;  %2666 = vmatprep.subr.bf16.mxu0 %v6383_v50 }
  0x42   :  { %6218 = vset.pattern.permute.xlu0 %v8287_v0 }
  0x43   :  { %1026 = vperm.xlu0 %6218, %v62_v42   ;;  %2667 = vmatpush1.bf16.msra.mxu0 %v6385_v51 }
  0x44   :  { %6210 = vset.pattern.permute.xlu1 %v8288_v1 }
  0x45   :  { %219 = vperm.xlu1 %6210, %v56_v47  }
  0x47   :  { %1042 = vperm.xlu0 %6218, %v66_v49  }
  0x49   :  { %6211 = vset.pattern.permute.xlu1 %v8287_v0 }
  0x4a   :  { %1002 = vperm.xlu1 %6211, %v56_v47  }
  0x4b   :  { %6223 = vset.pattern.permute.xlu0 %v8288_v1 }
  0x4c   :  { %264 = vperm.xlu0 %6223, %v65_v52  }
  0x4e   :  { %1006 = vperm.xlu1 %6211, %v57_v33  }
  0x50   :  { %269 = vperm.xlu0 %6223, %v66_v49  }
  0x52   :  { %6212 = vset.pattern.permute.xlu1 %v8288_v1 }
  0x53   :  { %234 = vperm.xlu1 %6212, %v59_v53  }
  0x54   :  { %284 = vperm.xlu0 %6223, %v8534_v54  }
  0x57   :  { %6214 = vset.pattern.permute.xlu1 %v8287_v0 }
  0x58   :  { %1014 = vperm.xlu1 %6214, %v59_v53   ;;  %289 = vperm.xlu0 %6223, %v70_v55  }
  0x5c   :  { %6215 = vset.pattern.permute.xlu1 %v8288_v1  ;;  %6228 = vset.pattern.permute.xlu0 %v8287_v0 }
  0x5d   :  { %239 = vperm.xlu1 %6215, %v60_v56   ;;  %1058 = vperm.xlu0 %6228, %v70_v55  }
  0x61   :  { %6216 = vset.pattern.permute.xlu1 %v8287_v0  ;;  %1074 = vperm.xlu0 %6228, %v74_v57  }
  0x62   :  { %1018 = vperm.xlu1 %6216, %v60_v56  }
  0x65   :  { %6233 = vset.pattern.permute.xlu0 %v8288_v1 }
  0x66   :  { %1022 = vperm.xlu1 %6216, %v61_v38   ;;  %304 = vperm.xlu0 %6233, %v8554_v58  }
  0x6a   :  { %6217 = vset.pattern.permute.xlu1 %v8288_v1  ;;  %309 = vperm.xlu0 %6233, %v74_v57  }
  0x6b   :  { %254 = vperm.xlu1 %6217, %v63_v59  }
  0x6e   :  { %324 = vperm.xlu0 %6233, %v8565_v60  }
  0x6f   :  { %6219 = vset.pattern.permute.xlu1 %v8287_v0 }
  0x70   :  { %1030 = vperm.xlu1 %6219, %v63_v59   ;;  %v90_v59 = vld [vmem:[%s11720_s0 + $0x170] sm:$0xff] }
  0x72   :  { %329 = vperm.xlu0 %6233, %v78_v61  }
  0x74   :  { %6220 = vset.pattern.permute.xlu1 %v8288_v1 }
  0x75   :  { %259 = vperm.xlu1 %6220, %v64_v62  }
  0x76   :  { %6238 = vset.pattern.permute.xlu0 %v8287_v0 }
  0x77   :  { %1090 = vperm.xlu0 %6238, %v78_v61  }
  0x79   :  { %6221 = vset.pattern.permute.xlu1 %v8287_v0 }
  0x7a   :  { %1034 = vperm.xlu1 %6221, %v64_v62  }
  0x7b   :  { %1106 = vperm.xlu0 %6238, %v82_v3  }
  0x7e   :  { %1038 = vperm.xlu1 %6221, %v65_v52  }
  0x7f   :  { %6243 = vset.pattern.permute.xlu0 %v8288_v1 }
  0x80   :  { %344 = vperm.xlu0 %6243, %v8599_v8  }
  0x81   :  { %v955_v15 = vpop.permute.xlu1 %954  ;;  %v160_v16 = vpop.permute.xlu0 %159 }
  0x82   :  { %v1412_v17 = vmul.f32 %v8602_v9, %v955_v15  ;;  %v1413_v18 = vmul.f32 %v8605_v10, %v955_v15  ;;  %v728_v19 = vmul.f32 %v8608_v11, %v160_v16  ;;  %v729_v20 = vmul.f32 %v8611_v12, %v160_v16  ;;  %6222 = vset.pattern.permute.xlu1 %v8288_v1  ;;  %v8675_v16 = vld [vmem:[%s11720_s0 + $0x168] sm:$0xff] }
  0x83   :  { %274 = vperm.xlu1 %6222, %v67_v14  }
  0x84   :  { %v1636_v23 = vadd.f32 %v1412_v17, %v728_v19  ;;  %v1637_v24 = vadd.f32 %v1413_v18, %v729_v20  ;;  %349 = vperm.xlu0 %6243, %v82_v3   ;;  %v71_v19 = vld [vmem:[%s11720_s0 + $0xd8] sm:$0xff] }
  0x85   :  { %v959_v25 = vpop.permute.xlu1 %958  ;;  %v165_v26 = vpop.permute.xlu0 %164 }
  0x86   :  { %v1414_v28 = vmul.f32 %v8602_v9, %v959_v25  ;;  %v1415_v29 = vmul.f32 %v8605_v10, %v959_v25  ;;  %v1872_v30 = vadd.f32 %v8627_v21, %v1636_v23  ;;  %v730_v31 = vmul.f32 %v8608_v11, %v165_v26 }
  0x87   :  { %v731_v32 = vmul.f32 %v8611_v12, %v165_v26  ;;  %6224 = vset.pattern.permute.xlu1 %v8287_v0  ;;  %v1873_v33 = vadd.f32 %v8630_v22, %v1637_v24 }
  0x88   :  { %1046 = vperm.xlu1 %6224, %v67_v14   ;;  %364 = vperm.xlu0 %6243, %v8635_v27   ;;  %v1638_v34 = vadd.f32 %v1414_v28, %v730_v31  ;;  %6482 = vtanh.f32 %v1872_v30 }
  0x89   :  { %v1639_v35 = vadd.f32 %v1415_v29, %v731_v32  ;;  %v170_v36 = vpop.permute.xlu0 %169  ;;  %6484 = vtanh.f32 %v1873_v33 }
  0x8a   :  { %v175_v38 = vpop.permute.xlu1 %174  ;;  %v1874_v40 = vadd.f32 %v8627_v21, %v1638_v34  ;;  %v732_v42 = vmul.f32 %v8608_v11, %v170_v36  ;;  %v733_v43 = vmul.f32 %v8611_v12, %v170_v36 }
  0x8b   :  { %v1875_v41 = vadd.f32 %v8630_v22, %v1639_v35  ;;  %v734_v48 = vmul.f32 %v8608_v11, %v175_v38  ;;  %v735_v49 = vmul.f32 %v8611_v12, %v175_v38 }
  0x8c   :  { %6225 = vset.pattern.permute.xlu1 %v8288_v1  ;;  %369 = vperm.xlu0 %6243, %v86_v37   ;;  %6486 = vtanh.f32 %v1874_v40 }
  0x8d   :  { %279 = vperm.xlu1 %6225, %v68_v39   ;;  %6488 = vtanh.f32 %v1875_v41 }
  0x8e   :  { %v963_v44 = vpop.permute.xlu0 %962 }
  0x8f   :  { %v967_v45 = vpop.permute.xlu1 %966  ;;  %v1416_v46 = vmul.f32 %v8602_v9, %v963_v44  ;;  %v1417_v47 = vmul.f32 %v8605_v10, %v963_v44 }
  0x90   :  { %v1418_v50 = vmul.f32 %v8602_v9, %v967_v45  ;;  %v1419_v51 = vmul.f32 %v8605_v10, %v967_v45  ;;  %6248 = vset.pattern.permute.xlu0 %v8287_v0 }
  0x91   :  { %v1640_v52 = vadd.f32 %v1416_v46, %v732_v42  ;;  %v1641_v53 = vadd.f32 %v1417_v47, %v733_v43  ;;  %6226 = vset.pattern.permute.xlu1 %v8287_v0  ;;  %1122 = vperm.xlu0 %6248, %v86_v37  }
  0x92   :  { %v1642_v55 = vadd.f32 %v1418_v50, %v734_v48  ;;  %v1643_v56 = vadd.f32 %v1419_v51, %v735_v49  ;;  %1050 = vperm.xlu1 %6226, %v68_v39   ;;  %v979_v57 = vpop.permute.xlu0 %978  ;;  %v6483_v13 = vpop.eup %6482 }
  0x93   :  { %v1876_v61 = vadd.f32 %v8627_v21, %v1640_v52  ;;  %v1877_v6 = vadd.f32 %v8630_v22, %v1641_v53  ;;  %v6485_v14 = vpop.eup %6484  ;;  %v1424_v40 = vmul.f32 %v8602_v9, %v979_v57  ;;  %v1425_v46 = vmul.f32 %v8605_v10, %v979_v57  ;;  %v72_v53 = vld [vmem:[%s11720_s0 + $0xe0] sm:$0xff] }
  0x94   :  { %v1878_v62 = vadd.f32 %v8627_v21, %v1642_v55  ;;  %v1879_v3 = vadd.f32 %v8630_v22, %v1643_v56  ;;  %v180_v7 = vpop.permute.xlu1 %179 }
  0x95   :  { %6490 = vtanh.f32 %v1876_v61  ;;  %1138 = vperm.xlu0 %6248, %v90_v59   ;;  %v736_v23 = vmul.f32 %v8608_v11, %v180_v7 }
  0x96   :  { %6492 = vtanh.f32 %v1878_v62  ;;  %1054 = vperm.xlu1 %6226, %v8534_v54   ;;  %v6487_v15 = vpop.eup %6486  ;;  %v737_v54 = vmul.f32 %v8611_v12, %v180_v7  ;;  %v93_v62 = vld [vmem:[%s11720_s0 + $0x188] sm:$0xff] }
  0x97   :  { %6494 = vtanh.f32 %v1879_v3  ;;  %v6489_v17 = vpop.eup %6488  ;;  %v2320_v18 = vpack.c.bf16 %v6487_v15, %v6483_v13  ;;  %v185_v20 = vpop.permute.xlu0 %184 }
  0x98   :  { %6496 = vtanh.f32 %v1877_v6  ;;  %v2321_v25 = vpack.c.bf16 %v6489_v17, %v6485_v14  ;;  %v738_v31 = vmul.f32 %v8608_v11, %v185_v20  ;;  %v739_v32 = vmul.f32 %v8611_v12, %v185_v20 }
  0x99   :  { %v971_v24 = vpop.permute.xlu1 %970  ;;  %6253 = vset.pattern.permute.xlu0 %v8288_v1 }
  0x9a   :  { %v1420_v26 = vmul.f32 %v8602_v9, %v971_v24  ;;  %v1421_v28 = vmul.f32 %v8605_v10, %v971_v24  ;;  %6227 = vset.pattern.permute.xlu1 %v8288_v1  ;;  %384 = vperm.xlu0 %6253, %v8675_v16  }
  0x9b   :  { %2668 = vmatprep.mubr.bf16.mxu0 %v2321_v25  ;;  %294 = vperm.xlu1 %6227, %v71_v19   ;;  %v190_v33 = vpop.permute.xlu0 %189  ;;  %v94_v25 = vld [vmem:[%s11720_s0 + $0x190] sm:$0xff] }
  0x9c   :  { %v1644_v29 = vadd.f32 %v1420_v26, %v736_v23  ;;  %v1645_v30 = vadd.f32 %v1421_v28, %v737_v54  ;;  %2669 = vmatmul.mubr.bf16.vlgmr.msra.gmra.mrb[0].mxu0 %v2320_v18  ;;  %v740_v41 = vmul.f32 %v8608_v11, %v190_v33  ;;  %v741_v47 = vmul.f32 %v8611_v12, %v190_v33 }
  0x9d   :  { %v975_v34 = vpop.permute.xlu1 %974 }
  0x9e   :  { %v1880_v35 = vadd.f32 %v8627_v21, %v1644_v29  ;;  %v1422_v36 = vmul.f32 %v8602_v9, %v975_v34  ;;  %v1423_v37 = vmul.f32 %v8605_v10, %v975_v34  ;;  %389 = vperm.xlu0 %6253, %v90_v59   ;;  %v1881_v39 = vadd.f32 %v8630_v22, %v1645_v30 }
  0x9f   :  { %v6491_v38 = vpop.eup %6490  ;;  %6229 = vset.pattern.permute.xlu1 %v8287_v0  ;;  %v1648_v56 = vadd.f32 %v1424_v40, %v740_v41  ;;  %v1649_v57 = vadd.f32 %v1425_v46, %v741_v47  ;;  %v205_v18 = vpop.permute.xlu0 %204 }
  0xa0   :  { %v6493_v42 = vpop.eup %6492  ;;  %v1646_v43 = vadd.f32 %v1422_v36, %v738_v31  ;;  %v1647_v44 = vadd.f32 %v1423_v37, %v739_v32  ;;  %1062 = vperm.xlu1 %6229, %v71_v19   ;;  %6498 = vtanh.f32 %v1880_v35  ;;  %v75_v32 = vld [vmem:[%s11720_s0 + $0xf8] sm:$0xff]  ;;  %v747_v40 = vmul.f32 %v8611_v12, %v205_v18 }
  0xa1   :  { %v6495_v45 = vpop.eup %6494  ;;  %v2322_v52 = vpack.c.bf16 %v6493_v42, %v6491_v38  ;;  %6500 = vtanh.f32 %v1881_v39  ;;  %v1884_v61 = vadd.f32 %v8627_v21, %v1648_v56  ;;  %v1885_v14 = vadd.f32 %v8630_v22, %v1649_v57 }
  0xa2   :  { %v6497_v48 = vpop.eup %6496  ;;  %v1882_v49 = vadd.f32 %v8627_v21, %v1646_v43  ;;  %v1883_v50 = vadd.f32 %v8630_v22, %v1647_v44  ;;  %v195_v51 = vpop.permute.xlu1 %194  ;;  %404 = vperm.xlu0 %6253, %v93_v62   ;;  %v746_v39 = vmul.f32 %v8608_v11, %v205_v18 }
  0xa3   :  { %v2323_v55 = vpack.c.bf16 %v6495_v45, %v6497_v48  ;;  %v742_v3 = vmul.f32 %v8608_v11, %v195_v51  ;;  %v743_v6 = vmul.f32 %v8611_v12, %v195_v51  ;;  %v210_v28 = vpop.permute.xlu0 %209 }
  0xa4   :  { %6502 = vtanh.f32 %v1882_v49  ;;  %6230 = vset.pattern.permute.xlu1 %v8288_v1  ;;  %v748_v49 = vmul.f32 %v8608_v11, %v210_v28  ;;  %v749_v56 = vmul.f32 %v8611_v12, %v210_v28 }
  0xa5   :  { %6504 = vtanh.f32 %v1883_v50  ;;  %2678 = vmatprep.mubr.bf16.mxu0 %v2323_v55  ;;  %299 = vperm.xlu1 %6230, %v72_v53  }
  0xa6   :  { %2679 = vmatmul.mubr.bf16.gmra.mrb[4].mxu0 %v2322_v52  ;;  %6506 = vtanh.f32 %v1884_v61  ;;  %409 = vperm.xlu0 %6253, %v94_v25  }
  0xa7   :  { %v983_v59 = vpop.permute.xlu1 %982  ;;  %6508 = vtanh.f32 %v1885_v14 }
  0xa8   :  { %v1426_v7 = vmul.f32 %v8602_v9, %v983_v59  ;;  %v1427_v13 = vmul.f32 %v8605_v10, %v983_v59  ;;  %v995_v41 = vpop.permute.xlu0 %994 }
  0xa9   :  { %6231 = vset.pattern.permute.xlu1 %v8287_v0  ;;  %v1432_v50 = vmul.f32 %v8602_v9, %v995_v41  ;;  %v1433_v59 = vmul.f32 %v8605_v10, %v995_v41 }
  0xaa   :  { %v1650_v15 = vadd.f32 %v1426_v7, %v742_v3  ;;  %v1651_v17 = vadd.f32 %v1427_v13, %v743_v6  ;;  %1066 = vperm.xlu1 %6231, %v72_v53   ;;  %v6499_v19 = vpop.eup %6498  ;;  %6258 = vset.pattern.permute.xlu0 %v8287_v0  ;;  %v76_v7 = vld [vmem:[%s11720_s0 + $0x100] sm:$0xff]  ;;  %v98_v13 = vld [vmem:[%s11720_s0 + $0x1b0] sm:$0xff] }
  0xab   :  { %v6501_v54 = vpop.eup %6500  ;;  %1154 = vperm.xlu0 %6258, %v94_v25   ;;  %v1656_v14 = vadd.f32 %v1432_v50, %v748_v49  ;;  %v6394_v49 = vld [vmem:[%s11725_s6 + $0x20] ss:$8 sps:$4 sm:$0xff]  }
  0xac   :  { %v1886_v20 = vadd.f32 %v8627_v21, %v1650_v15  ;;  %v1887_v23 = vadd.f32 %v8630_v22, %v1651_v17  ;;  %v200_v24 = vpop.permute.xlu1 %199  ;;  %v1657_v15 = vadd.f32 %v1433_v59, %v749_v56  ;;  %v6397_v59 = vld [vmem:[%s11725_s6 + $0x30] ss:$8 sps:$4 sm:$0xff]  }
  0xad   :  { %v744_v33 = vmul.f32 %v8608_v11, %v200_v24  ;;  %v745_v35 = vmul.f32 %v8611_v12, %v200_v24  ;;  %v1892_v18 = vadd.f32 %v8627_v21, %v1656_v14 }
  0xae   :  { %v6503_v26 = vpop.eup %6502  ;;  %6510 = vtanh.f32 %v1886_v20  ;;  %1070 = vperm.xlu1 %6231, %v8554_v58  }
  0xaf   :  { %v6505_v29 = vpop.eup %6504  ;;  %6512 = vtanh.f32 %v1887_v23  ;;  %v2324_v30 = vpack.c.bf16 %v6503_v26, %v6499_v19  ;;  %1170 = vperm.xlu0 %6258, %v98_v13   ;;  %v97_v19 = vld [vmem:[%s11720_s0 + $0x1a8] sm:$0xff]  ;;  %v1893_v26 = vadd.f32 %v8630_v22, %v1657_v15 }
  0xb0   :  { %v2325_v31 = vpack.c.bf16 %v6505_v29, %v6501_v54  ;;  %v6507_v43 = vpop.eup %6506  ;;  %v6386_v54 = vld [vmem:[%s11725_s6 + $0x4] ss:$8 sps:$4 sm:$0xff]  }
  0xb1   :  { %v987_v34 = vpop.permute.xlu1 %986  ;;  %v6509_v47 = vpop.eup %6508  ;;  %3769 = vmatprep.subr.bf16.mxu1 %v6386_v54  ;;  %v6398_v54 = vld [vmem:[%s11725_s6 + $0x44] ss:$8 sps:$4 sm:$0xff]  }
  0xb2   :  { %v1428_v36 = vmul.f32 %v8602_v9, %v987_v34  ;;  %v1429_v58 = vmul.f32 %v8605_v10, %v987_v34  ;;  %2688 = vmatprep.mubr.bf16.mxu0 %v2325_v31  ;;  %6232 = vset.pattern.permute.xlu1 %v8288_v1  ;;  %v6388_v31 = vld [vmem:[%s11725_s6] ss:$8 sps:$4 sm:$0xff]  }
  0xb3   :  { %2689 = vmatmul.mubr.bf16.gmra.mrb[8].mxu0 %v2324_v30  ;;  %314 = vperm.xlu1 %6232, %v75_v32   ;;  %v1011_v30 = vpop.permute.xlu0 %1010 }
  0xb4   :  { %v1652_v37 = vadd.f32 %v1428_v36, %v744_v33  ;;  %v1653_v38 = vadd.f32 %v1429_v58, %v745_v35  ;;  %6263 = vset.pattern.permute.xlu0 %v8288_v1  ;;  %3770 = vmatpush1.bf16.msra.mxu1 %v6388_v31  ;;  %v6389_v58 = vld [vmem:[%s11725_s6 + $0x14] ss:$8 sps:$4 sm:$0xff]   ;;  %v1440_v14 = vmul.f32 %v8602_v9, %v1011_v30 }
  0xb5   :  { %v991_v42 = vpop.permute.xlu1 %990  ;;  %424 = vperm.xlu0 %6263, %v97_v19   ;;  %3771 = vmatprep.subr.bf16.mxu1 %v6389_v58 }
  0xb6   :  { %v1888_v44 = vadd.f32 %v8627_v21, %v1652_v37  ;;  %v1430_v45 = vmul.f32 %v8602_v9, %v991_v42  ;;  %v1431_v46 = vmul.f32 %v8605_v10, %v991_v42  ;;  %v1889_v48 = vadd.f32 %v8630_v22, %v1653_v38  ;;  %v79_v38 = vld [vmem:[%s11720_s0 + $0x118] sm:$0xff] }
  0xb7   :  { %6234 = vset.pattern.permute.xlu1 %v8287_v0 }
  0xb8   :  { %v6511_v51 = vpop.eup %6510  ;;  %v1654_v52 = vadd.f32 %v1430_v45, %v746_v39  ;;  %v1655_v53 = vadd.f32 %v1431_v46, %v747_v40  ;;  %1078 = vperm.xlu1 %6234, %v75_v32   ;;  %6514 = vtanh.f32 %v1888_v44  ;;  %v6391_v39 = vld [vmem:[%s11725_s6 + $0x10] ss:$8 sps:$4 sm:$0xff]  }
  0xb9   :  { %v6513_v55 = vpop.eup %6512  ;;  %v2326_v57 = vpack.c.bf16 %v6511_v51, %v6507_v43  ;;  %6516 = vtanh.f32 %v1889_v48  ;;  %429 = vperm.xlu0 %6263, %v98_v13   ;;  %v225_v43 = vpop.permute.xlu0 %224  ;;  %3772 = vmatpush1.bf16.msra.mxu1 %v6391_v39  ;;  %v6404_v39 = vld [vmem:[%s11725_s6 + $0x64] ss:$8 sps:$4 sm:$0xff]  }
  0xba   :  { %v1890_v61 = vadd.f32 %v8627_v21, %v1654_v52  ;;  %v1891_v62 = vadd.f32 %v8630_v22, %v1655_v53  ;;  %v215_v3 = vpop.permute.xlu1 %214  ;;  %v2327_v6 = vpack.c.bf16 %v6513_v55, %v6509_v47  ;;  %v754_v52 = vmul.f32 %v8608_v11, %v225_v43 }
  0xbb   :  { %v750_v20 = vmul.f32 %v8608_v11, %v215_v3  ;;  %v751_v23 = vmul.f32 %v8611_v12, %v215_v3  ;;  %v755_v53 = vmul.f32 %v8611_v12, %v225_v43 }
  0xbc   :  { %6518 = vtanh.f32 %v1890_v61  ;;  %2698 = vmatprep.mubr.bf16.mxu0 %v2327_v6  ;;  %6235 = vset.pattern.permute.xlu1 %v8288_v1 }
  0xbd   :  { %6520 = vtanh.f32 %v1891_v62  ;;  %2699 = vmatmul.mubr.bf16.gmra.mrb[12].mxu0 %v2326_v57  ;;  %319 = vperm.xlu1 %6235, %v76_v7   ;;  %v230_v55 = vpop.permute.xlu0 %229  ;;  %v6395_v57 = vld [vmem:[%s11725_s6 + $0x34] ss:$8 sps:$4 sm:$0xff]  }
  0xbe   :  { %6522 = vtanh.f32 %v1892_v18  ;;  %v756_v15 = vmul.f32 %v8608_v11, %v230_v55 }
  0xbf   :  { %v999_v17 = vpop.permute.xlu1 %998  ;;  %6524 = vtanh.f32 %v1893_v26 }
  0xc0   :  { %v1434_v24 = vmul.f32 %v8602_v9, %v999_v17  ;;  %v1435_v25 = vmul.f32 %v8605_v10, %v999_v17 }
  0xc1   :  { %6236 = vset.pattern.permute.xlu1 %v8287_v0 }
  0xc2   :  { %v1658_v28 = vadd.f32 %v1434_v24, %v750_v20  ;;  %v1659_v29 = vadd.f32 %v1435_v25, %v751_v23  ;;  %1082 = vperm.xlu1 %6236, %v76_v7   ;;  %v6515_v32 = vpop.eup %6514  ;;  %v1441_v23 = vmul.f32 %v8605_v10, %v1011_v30  ;;  %v757_v25 = vmul.f32 %v8611_v12, %v230_v55  ;;  %v6400_v30 = vld [vmem:[%s11725_s6 + $0x40] ss:$8 sps:$4 sm:$0xff]   ;;  %v6407_v55 = vld [vmem:[%s11725_s6 + $0x74] ss:$8 sps:$4 sm:$0xff]  }
  0xc3   :  { %v6517_v36 = vpop.eup %6516 }
  0xc4   :  { %v1894_v33 = vadd.f32 %v8627_v21, %v1658_v28  ;;  %v1895_v34 = vadd.f32 %v8630_v22, %v1659_v29  ;;  %v220_v35 = vpop.permute.xlu1 %219 }
  0xc5   :  { %v752_v44 = vmul.f32 %v8608_v11, %v220_v35  ;;  %v753_v46 = vmul.f32 %v8611_v12, %v220_v35  ;;  %v6401_v35 = vld [vmem:[%s11725_s6 + $0x54] ss:$8 sps:$4 sm:$0xff]  }
  0xc6   :  { %v6519_v37 = vpop.eup %6518  ;;  %6526 = vtanh.f32 %v1894_v33  ;;  %1086 = vperm.xlu1 %6236, %v8565_v60   ;;  %v6392_v60 = vld [vmem:[%s11725_s6 + $0x24] ss:$8 sps:$4 sm:$0xff]   ;;  %v1664_v33 = vadd.f32 %v1440_v14, %v756_v15 }
  0xc7   :  { %v6521_v40 = vpop.eup %6520  ;;  %6528 = vtanh.f32 %v1895_v34  ;;  %v2328_v41 = vpack.c.bf16 %v6519_v37, %v6515_v32  ;;  %3773 = vmatprep.subr.bf16.mxu1 %v6392_v60  ;;  %v80_v32 = vld [vmem:[%s11720_s0 + $0x120] sm:$0xff]  ;;  %v1665_v34 = vadd.f32 %v1441_v23, %v757_v25 }
  0xc8   :  { %v2329_v42 = vpack.c.bf16 %v6521_v40, %v6517_v36  ;;  %3774 = vmatpush1.bf16.msra.mxu1 %v6394_v49  ;;  %v6523_v61 = vpop.eup %6522  ;;  %v6403_v36 = vld [vmem:[%s11725_s6 + $0x50] ss:$8 sps:$4 sm:$0xff]   ;;  %v1900_v37 = vadd.f32 %v8627_v21, %v1664_v33  ;;  %v6412_v25 = vld [vmem:[%s11725_s6 + $0x80] ss:$8 sps:$4 sm:$0xff]  }
  0xc9   :  { %v1003_v45 = vpop.permute.xlu1 %1002  ;;  %v6525_v7 = vpop.eup %6524  ;;  %3775 = vmatprep.subr.bf16.mxu1 %v6395_v57 }
  0xca   :  { %v1436_v47 = vmul.f32 %v8602_v9, %v1003_v45  ;;  %v1437_v48 = vmul.f32 %v8605_v10, %v1003_v45  ;;  %2708 = vmatprep.mubr.bf16.mxu0 %v2329_v42  ;;  %6237 = vset.pattern.permute.xlu1 %v8288_v1 }
  0xcb   :  { %2709 = vmatmul.mubr.bf16.gmra.mrb[16].mxu0 %v2328_v41  ;;  %334 = vperm.xlu1 %6237, %v79_v38  }
  0xcc   :  { %v1660_v50 = vadd.f32 %v1436_v47, %v752_v44  ;;  %v1661_v51 = vadd.f32 %v1437_v48, %v753_v46  ;;  %3776 = vmatpush1.bf16.msra.mxu1 %v6397_v59  ;;  %v1901_v44 = vadd.f32 %v8630_v22, %v1665_v34  ;;  %v245_v46 = vpop.permute.xlu0 %244  ;;  %v6406_v47 = vld [vmem:[%s11725_s6 + $0x60] ss:$8 sps:$4 sm:$0xff]  }
  0xcd   :  { %v1007_v56 = vpop.permute.xlu1 %1006  ;;  %3777 = vmatprep.subr.bf16.mxu1 %v6398_v54  ;;  %v763_v23 = vmul.f32 %v8611_v12, %v245_v46 }
  0xce   :  { %v1896_v62 = vadd.f32 %v8627_v21, %v1660_v50  ;;  %v1438_v3 = vmul.f32 %v8602_v9, %v1007_v56  ;;  %v1439_v6 = vmul.f32 %v8605_v10, %v1007_v56  ;;  %v1897_v13 = vadd.f32 %v8630_v22, %v1661_v51 }
  0xcf   :  { %6239 = vset.pattern.permute.xlu1 %v8287_v0 }
  0xd0   :  { %v6527_v17 = vpop.eup %6526  ;;  %v1662_v18 = vadd.f32 %v1438_v3, %v754_v52  ;;  %v1663_v19 = vadd.f32 %v1439_v6, %v755_v53  ;;  %1094 = vperm.xlu1 %6239, %v79_v38   ;;  %6530 = vtanh.f32 %v1896_v62  ;;  %3778 = vmatpush1.bf16.msra.mxu1 %v6400_v30  ;;  %v8828_v38 = vld [vmem:[%s11720_s0 + $0x1c8] sm:$0xff]  ;;  %v102_v52 = vld [vmem:[%s11720_s0 + $0x1d0] sm:$0xff]  ;;  %v250_v57 = vpop.permute.xlu0 %249  ;;  %v83_v3 = vld [vmem:[%s11720_s0 + $0x138] sm:$0xff] }
  0xd1   :  { %v6529_v20 = vpop.eup %6528  ;;  %v2330_v24 = vpack.c.bf16 %v6527_v17, %v6523_v61  ;;  %6532 = vtanh.f32 %v1897_v13  ;;  %3779 = vmatprep.subr.bf16.mxu1 %v6401_v35  ;;  %444 = vperm.xlu0 %6263, %v8828_v38   ;;  %v6409_v6 = vld [vmem:[%s11725_s6 + $0x70] ss:$8 sps:$4 sm:$0xff]   ;;  %v764_v34 = vmul.f32 %v8608_v11, %v250_v57 }
  0xd2   :  { %v1898_v26 = vadd.f32 %v8627_v21, %v1662_v18  ;;  %v1899_v28 = vadd.f32 %v8630_v22, %v1663_v19  ;;  %v235_v29 = vpop.permute.xlu1 %234  ;;  %v2331_v31 = vpack.c.bf16 %v6529_v20, %v6525_v7  ;;  %v762_v18 = vmul.f32 %v8608_v11, %v245_v46  ;;  %v84_v46 = vld [vmem:[%s11720_s0 + $0x140] sm:$0xff] }
  0xd3   :  { %v758_v40 = vmul.f32 %v8608_v11, %v235_v29  ;;  %v759_v41 = vmul.f32 %v8611_v12, %v235_v29 }
  0xd4   :  { %6534 = vtanh.f32 %v1898_v26  ;;  %2718 = vmatprep.mubr.bf16.mxu0 %v2331_v31  ;;  %6240 = vset.pattern.permute.xlu1 %v8288_v1  ;;  %v6413_v26 = vld [vmem:[%s11725_s6 + $0x94] ss:$8 sps:$4 sm:$0xff]  }
  0xd5   :  { %6536 = vtanh.f32 %v1899_v28  ;;  %2719 = vmatmul.mubr.bf16.gmra.mrb[20].mxu0 %v2330_v24  ;;  %339 = vperm.xlu1 %6240, %v80_v32   ;;  %v1027_v24 = vpop.permute.xlu0 %1026 }
  0xd6   :  { %3780 = vmatpush1.bf16.msra.mxu1 %v6403_v36  ;;  %6538 = vtanh.f32 %v1900_v37  ;;  %449 = vperm.xlu0 %6263, %v102_v52   ;;  %v1448_v35 = vmul.f32 %v8602_v9, %v1027_v24 }
  0xd7   :  { %v1015_v58 = vpop.permute.xlu1 %1014  ;;  %3781 = vmatprep.subr.bf16.mxu1 %v6404_v39  ;;  %6540 = vtanh.f32 %v1901_v44 }
  0xd8   :  { %v1442_v42 = vmul.f32 %v8602_v9, %v1015_v58  ;;  %v1443_v43 = vmul.f32 %v8605_v10, %v1015_v58 }
  0xd9   :  { %6241 = vset.pattern.permute.xlu1 %v8287_v0 }
  0xda   :  { %v1666_v45 = vadd.f32 %v1442_v42, %v758_v40  ;;  %v1667_v60 = vadd.f32 %v1443_v43, %v759_v41  ;;  %1098 = vperm.xlu1 %6241, %v80_v32   ;;  %v6531_v48 = vpop.eup %6530  ;;  %3782 = vmatpush1.bf16.msra.mxu1 %v6406_v47  ;;  %v765_v40 = vmul.f32 %v8611_v12, %v250_v57  ;;  %v6415_v47 = vld [vmem:[%s11725_s6 + $0x90] ss:$8 sps:$4 sm:$0xff]  }
  0xdb   :  { %v6533_v53 = vpop.eup %6532  ;;  %3783 = vmatprep.subr.bf16.mxu1 %v6407_v55  ;;  %6268 = vset.pattern.permute.xlu0 %v8287_v0  ;;  %v1449_v42 = vmul.f32 %v8605_v10, %v1027_v24  ;;  %v6418_v55 = vld [vmem:[%s11725_s6 + $0xa0] ss:$8 sps:$4 sm:$0xff]  }
  0xdc   :  { %v1902_v49 = vadd.f32 %v8627_v21, %v1666_v45  ;;  %v1903_v50 = vadd.f32 %v8630_v22, %v1667_v60  ;;  %v240_v51 = vpop.permute.xlu1 %239  ;;  %1186 = vperm.xlu0 %6268, %v102_v52  }
  0xdd   :  { %v760_v7 = vmul.f32 %v8608_v11, %v240_v51  ;;  %v761_v14 = vmul.f32 %v8611_v12, %v240_v51  ;;  %v1673_v51 = vadd.f32 %v1449_v42, %v765_v40 }
  0xde   :  { %v6535_v56 = vpop.eup %6534  ;;  %6542 = vtanh.f32 %v1902_v49  ;;  %1102 = vperm.xlu1 %6241, %v8599_v8   ;;  %v6410_v8 = vld [vmem:[%s11725_s6 + $0x84] ss:$8 sps:$4 sm:$0xff]   ;;  %3784 = vmatpush1.bf16.msra.mxu1 %v6409_v6  ;;  %v1672_v49 = vadd.f32 %v1448_v35, %v764_v34 }
  0xdf   :  { %v6537_v59 = vpop.eup %6536  ;;  %6544 = vtanh.f32 %v1903_v50  ;;  %v2332_v61 = vpack.c.bf16 %v6535_v56, %v6531_v48  ;;  %3785 = vmatprep.subr.bf16.mxu1 %v6410_v8  ;;  %v106_v48 = vld [vmem:[%s11720_s0 + $0x1f0] sm:$0xff]  ;;  %v6416_v50 = vld [vmem:[%s11725_s6 + $0xa4] ss:$8 sps:$4 sm:$0xff]   ;;  %v1909_v6 = vadd.f32 %v8630_v22, %v1673_v51  ;;  %v1043_v8 = vpop.permute.xlu0 %1042 }
  0xe0   :  { %v2333_v62 = vpack.c.bf16 %v6537_v59, %v6533_v53  ;;  %v6539_v28 = vpop.eup %6538  ;;  %1202 = vperm.xlu0 %6268, %v106_v48   ;;  %v1908_v53 = vadd.f32 %v8627_v21, %v1672_v49  ;;  %v8907_v56 = vld [vmem:[%s11720_s0 + $0x1e8] sm:$0xff]  ;;  %v1456_v49 = vmul.f32 %v8602_v9, %v1043_v8 }
  0xe1   :  { %v1019_v13 = vpop.permute.xlu1 %1018  ;;  %v6541_v30 = vpop.eup %6540 }
  0xe2   :  { %v1444_v15 = vmul.f32 %v8602_v9, %v1019_v13  ;;  %v1445_v17 = vmul.f32 %v8605_v10, %v1019_v13  ;;  %2728 = vmatprep.mubr.bf16.mxu0 %v2333_v62  ;;  %6242 = vset.pattern.permute.xlu1 %v8288_v1 }
  0xe3   :  { %2729 = vmatmul.mubr.bf16.gmra.mrb[24].mxu0 %v2332_v61  ;;  %354 = vperm.xlu1 %6242, %v83_v3  }
  0xe4   :  { %v1668_v19 = vadd.f32 %v1444_v15, %v760_v7  ;;  %v1669_v20 = vadd.f32 %v1445_v17, %v761_v14  ;;  %3786 = vmatpush1.bf16.msra.mxu1 %v6412_v25  ;;  %6273 = vset.pattern.permute.xlu0 %v8288_v1  ;;  %v6421_v14 = vld [vmem:[%s11725_s6 + $0xb0] ss:$8 sps:$4 sm:$0xff]  }
  0xe5   :  { %v1023_v54 = vpop.permute.xlu1 %1022  ;;  %3787 = vmatprep.subr.bf16.mxu1 %v6413_v26  ;;  %464 = vperm.xlu0 %6273, %v8907_v56  }
  0xe6   :  { %v1904_v29 = vadd.f32 %v8627_v21, %v1668_v19  ;;  %v1446_v31 = vmul.f32 %v8602_v9, %v1023_v54  ;;  %v1447_v32 = vmul.f32 %v8605_v10, %v1023_v54  ;;  %v1905_v33 = vadd.f32 %v8630_v22, %v1669_v20  ;;  %v6422_v20 = vld [vmem:[%s11725_s6 + $0xc4] ss:$8 sps:$4 sm:$0xff]  }
  0xe7   :  { %6244 = vset.pattern.permute.xlu1 %v8287_v0 }
  0xe8   :  { %v6543_v36 = vpop.eup %6542  ;;  %v1670_v58 = vadd.f32 %v1446_v31, %v762_v18  ;;  %v1671_v37 = vadd.f32 %v1447_v32, %v763_v23  ;;  %1110 = vperm.xlu1 %6244, %v83_v3   ;;  %6546 = vtanh.f32 %v1904_v29  ;;  %3788 = vmatpush1.bf16.msra.mxu1 %v6415_v47  ;;  %v6419_v3 = vld [vmem:[%s11725_s6 + $0xb4] ss:$8 sps:$4 sm:$0xff]   ;;  %v265_v29 = vpop.permute.xlu0 %264  ;;  %v6424_v31 = vld [vmem:[%s11725_s6 + $0xc0] ss:$8 sps:$4 sm:$0xff]  }
  0xe9   :  { %v6545_v39 = vpop.eup %6544  ;;  %v2334_v41 = vpack.c.bf16 %v6543_v36, %v6539_v28  ;;  %6548 = vtanh.f32 %v1905_v33  ;;  %3789 = vmatprep.subr.bf16.mxu1 %v6416_v50  ;;  %469 = vperm.xlu0 %6273, %v106_v48   ;;  %v87_v28 = vld [vmem:[%s11720_s0 + $0x158] sm:$0xff] }
  0xea   :  { %v1906_v43 = vadd.f32 %v8627_v21, %v1670_v58  ;;  %v1907_v44 = vadd.f32 %v8630_v22, %v1671_v37  ;;  %v255_v45 = vpop.permute.xlu1 %254  ;;  %v2335_v60 = vpack.c.bf16 %v6545_v39, %v6541_v30  ;;  %v770_v37 = vmul.f32 %v8608_v11, %v265_v29 }
  0xeb   :  { %v766_v57 = vmul.f32 %v8608_v11, %v255_v45  ;;  %v767_v59 = vmul.f32 %v8611_v12, %v255_v45  ;;  %v771_v39 = vmul.f32 %v8611_v12, %v265_v29 }
  0xec   :  { %6550 = vtanh.f32 %v1906_v43  ;;  %2738 = vmatprep.mubr.bf16.mxu0 %v2335_v60  ;;  %6245 = vset.pattern.permute.xlu1 %v8288_v1  ;;  %v270_v40 = vpop.permute.xlu0 %269  ;;  %v6428_v43 = vld [vmem:[%s11725_s6 + $0xe4] ss:$8 sps:$4 sm:$0xff]  }
  0xed   :  { %6552 = vtanh.f32 %v1907_v44  ;;  %2739 = vmatmul.mubr.bf16.gmra.mrb[28].mxu0 %v2334_v41  ;;  %359 = vperm.xlu1 %6245, %v84_v46   ;;  %v6427_v41 = vld [vmem:[%s11725_s6 + $0xd0] ss:$8 sps:$4 sm:$0xff]   ;;  %v772_v50 = vmul.f32 %v8608_v11, %v270_v40 }
  0xee   :  { %3790 = vmatpush1.bf16.msra.mxu1 %v6418_v55  ;;  %6554 = vtanh.f32 %v1908_v53 }
  0xef   :  { %v1031_v52 = vpop.permute.xlu1 %1030  ;;  %3791 = vmatprep.subr.bf16.mxu1 %v6419_v3  ;;  %6556 = vtanh.f32 %v1909_v6 }
  0xf0   :  { %v1450_v61 = vmul.f32 %v8602_v9, %v1031_v52  ;;  %v1451_v62 = vmul.f32 %v8605_v10, %v1031_v52 }
  0xf1   :  { %6246 = vset.pattern.permute.xlu1 %v8287_v0 }
  0xf2   :  { %v1674_v7 = vadd.f32 %v1450_v61, %v766_v57  ;;  %v1675_v13 = vadd.f32 %v1451_v62, %v767_v59  ;;  %1114 = vperm.xlu1 %6246, %v84_v46   ;;  %v6547_v15 = vpop.eup %6546  ;;  %3792 = vmatpush1.bf16.msra.mxu1 %v6421_v14  ;;  %v1457_v57 = vmul.f32 %v8605_v10, %v1043_v8  ;;  %v6430_v14 = vld [vmem:[%s11725_s6 + $0xe0] ss:$8 sps:$4 sm:$0xff]  }
  0xf3   :  { %v6549_v23 = vpop.eup %6548  ;;  %3793 = vmatprep.subr.bf16.mxu1 %v6422_v20  ;;  %v773_v61 = vmul.f32 %v8611_v12, %v270_v40  ;;  %v1680_v8 = vadd.f32 %v1456_v49, %v772_v50 }
  0xf4   :  { %v1910_v17 = vadd.f32 %v8627_v21, %v1674_v7  ;;  %v1911_v18 = vadd.f32 %v8630_v22, %v1675_v13  ;;  %v260_v19 = vpop.permute.xlu1 %259  ;;  %v88_v13 = vld [vmem:[%s11720_s0 + $0x160] sm:$0xff] }
  0xf5   :  { %v768_v32 = vmul.f32 %v8608_v11, %v260_v19  ;;  %v769_v33 = vmul.f32 %v8611_v12, %v260_v19  ;;  %v1916_v20 = vadd.f32 %v8627_v21, %v1680_v8 }
  0xf6   :  { %v6551_v24 = vpop.eup %6550  ;;  %6558 = vtanh.f32 %v1910_v17  ;;  %1118 = vperm.xlu1 %6246, %v8635_v27   ;;  %v6425_v27 = vld [vmem:[%s11725_s6 + $0xd4] ss:$8 sps:$4 sm:$0xff]   ;;  %3794 = vmatpush1.bf16.msra.mxu1 %v6424_v31  ;;  %v1681_v17 = vadd.f32 %v1457_v57, %v773_v61 }
  0xf7   :  { %v6553_v25 = vpop.eup %6552  ;;  %6560 = vtanh.f32 %v1911_v18  ;;  %v2336_v54 = vpack.c.bf16 %v6551_v24, %v6547_v15  ;;  %3795 = vmatprep.subr.bf16.mxu1 %v6425_v27  ;;  %v6431_v15 = vld [vmem:[%s11725_s6 + $0xf4] ss:$8 sps:$4 sm:$0xff]   ;;  %v6433_v18 = vld [vmem:[%s11725_s6 + $0xf0] ss:$8 sps:$4 sm:$0xff]  }
  0xf8   :  { %v2337_v26 = vpack.c.bf16 %v6553_v25, %v6549_v23  ;;  %v6555_v44 = vpop.eup %6554 }
  0xf9   :  { %v1035_v30 = vpop.permute.xlu1 %1034  ;;  %v6557_v47 = vpop.eup %6556 }
  0xfa   :  { %v1452_v34 = vmul.f32 %v8602_v9, %v1035_v30  ;;  %v1453_v35 = vmul.f32 %v8605_v10, %v1035_v30  ;;  %2748 = vmatprep.mubr.bf16.mxu0 %v2337_v26  ;;  %6247 = vset.pattern.permute.xlu1 %v8288_v1  ;;  %v1917_v26 = vadd.f32 %v8630_v22, %v1681_v17 }
  0xfb   :  { %2749 = vmatmul.mubr.bf16.gmra.mrb[32].mxu0 %v2336_v54  ;;  %374 = vperm.xlu1 %6247, %v87_v28  }
  0xfc   :  { %v1676_v36 = vadd.f32 %v1452_v34, %v768_v32  ;;  %v1677_v58 = vadd.f32 %v1453_v35, %v769_v33  ;;  %3796 = vmatpush1.bf16.msra.mxu1 %v6427_v41  ;;  %v285_v32 = vpop.permute.xlu0 %284 }
  0xfd   :  { %v1039_v42 = vpop.permute.xlu1 %1038  ;;  %3797 = vmatprep.subr.bf16.mxu1 %v6428_v43  ;;  %v779_v49 = vmul.f32 %v8611_v12, %v285_v32 }
  0xfe   :  { %v1912_v45 = vadd.f32 %v8627_v21, %v1676_v36  ;;  %v1454_v60 = vmul.f32 %v8602_v9, %v1039_v42  ;;  %v1455_v46 = vmul.f32 %v8605_v10, %v1039_v42  ;;  %v1913_v48 = vadd.f32 %v8630_v22, %v1677_v58  ;;  %v91_v42 = vld [vmem:[%s11720_s0 + $0x178] sm:$0xff] }
  0xff   :  { %6249 = vset.pattern.permute.xlu1 %v8287_v0 }
 0x100   :  { %v6559_v51 = vpop.eup %6558  ;;  %v1678_v52 = vadd.f32 %v1454_v60, %v770_v37  ;;  %v1679_v53 = vadd.f32 %v1455_v46, %v771_v39  ;;  %1126 = vperm.xlu1 %6249, %v87_v28   ;;  %6562 = vtanh.f32 %v1912_v45  ;;  %3798 = vmatpush1.bf16.msra.mxu1 %v6430_v14  ;;  %v8984_v28 = vld [vmem:[%s11720_s0 + $0x208] sm:$0xff]  ;;  %v290_v58 = vpop.permute.xlu0 %289  ;;  %v110_v37 = vld [vmem:[%s11720_s0 + $0x210] sm:$0xff] }
 0x101   :  { %v6561_v55 = vpop.eup %6560  ;;  %v2338_v59 = vpack.c.bf16 %v6559_v51, %v6555_v44  ;;  %6564 = vtanh.f32 %v1913_v48  ;;  %3799 = vmatprep.subr.bf16.mxu1 %v6431_v15  ;;  %484 = vperm.xlu0 %6273, %v8984_v28   ;;  %v778_v48 = vmul.f32 %v8608_v11, %v285_v32  ;;  %v781_v8 = vmul.f32 %v8611_v12, %v290_v58 }
 0x102   :  { %v1914_v62 = vadd.f32 %v8627_v21, %v1678_v52  ;;  %v1915_v3 = vadd.f32 %v8630_v22, %v1679_v53  ;;  %v275_v6 = vpop.permute.xlu1 %274  ;;  %v2339_v7 = vpack.c.bf16 %v6561_v55, %v6557_v47 }
 0x103   :  { %v774_v23 = vmul.f32 %v8608_v11, %v275_v6  ;;  %v775_v24 = vmul.f32 %v8611_v12, %v275_v6 }
 0x104   :  { %6566 = vtanh.f32 %v1914_v62  ;;  %2758 = vmatprep.mubr.bf16.mxu0 %v2339_v7  ;;  %6250 = vset.pattern.permute.xlu1 %v8288_v1  ;;  %v1059_v50 = vpop.permute.xlu0 %1058  ;;  %v780_v62 = vmul.f32 %v8608_v11, %v290_v58 }
 0x105   :  { %6568 = vtanh.f32 %v1915_v3  ;;  %2759 = vmatmul.mubr.bf16.gmra.mrb[36].mxu0 %v2338_v59  ;;  %379 = vperm.xlu1 %6250, %v88_v13   ;;  %v1464_v3 = vmul.f32 %v8602_v9, %v1059_v50  ;;  %v1465_v17 = vmul.f32 %v8605_v10, %v1059_v50 }
 0x106   :  { %3800 = vmatpush1.bf16.msra.mxu1 %v6433_v18  ;;  %6570 = vtanh.f32 %v1916_v20  ;;  %489 = vperm.xlu0 %6273, %v110_v37  }
 0x107   :  { %v1047_v19 = vpop.permute.xlu1 %1046  ;;  %6572 = vtanh.f32 %v1917_v26  ;;  %v1689_v26 = vadd.f32 %v1465_v17, %v781_v8 }
 0x108   :  { %v1458_v25 = vmul.f32 %v8602_v9, %v1047_v19  ;;  %v1459_v54 = vmul.f32 %v8605_v10, %v1047_v19 }
 0x109   :  { %6251 = vset.pattern.permute.xlu1 %v8287_v0 }
 0x10a   :  { %v1682_v29 = vadd.f32 %v1458_v25, %v774_v23  ;;  %v1683_v31 = vadd.f32 %v1459_v54, %v775_v24  ;;  %1130 = vperm.xlu1 %6251, %v88_v13   ;;  %v6563_v30 = vpop.eup %6562  ;;  %6278 = vset.pattern.permute.xlu0 %v8287_v0  ;;  %v92_v24 = vld [vmem:[%s11720_s0 + $0x180] sm:$0xff]  ;;  %v1688_v25 = vadd.f32 %v1464_v3, %v780_v62  ;;  %v114_v54 = vld [vmem:[%s11720_s0 + $0x230] sm:$0xff] }
 0x10b   :  { %v6565_v35 = vpop.eup %6564  ;;  %1218 = vperm.xlu0 %6278, %v110_v37   ;;  %v1075_v37 = vpop.permute.xlu0 %1074 }
 0x10c   :  { %v1918_v27 = vadd.f32 %v8627_v21, %v1682_v29  ;;  %v1919_v33 = vadd.f32 %v8630_v22, %v1683_v31  ;;  %v280_v34 = vpop.permute.xlu1 %279  ;;  %v1924_v31 = vadd.f32 %v8627_v21, %v1688_v25  ;;  %v1472_v17 = vmul.f32 %v8602_v9, %v1075_v37 }
 0x10d   :  { %v776_v43 = vmul.f32 %v8608_v11, %v280_v34  ;;  %v777_v45 = vmul.f32 %v8611_v12, %v280_v34  ;;  %v1925_v34 = vadd.f32 %v8630_v22, %v1689_v26  ;;  %v1473_v25 = vmul.f32 %v8605_v10, %v1075_v37 }
 0x10e   :  { %v6567_v36 = vpop.eup %6566  ;;  %6574 = vtanh.f32 %v1918_v27  ;;  %1134 = vperm.xlu1 %6251, %v8675_v16  }
 0x10f   :  { %v6569_v39 = vpop.eup %6568  ;;  %6576 = vtanh.f32 %v1919_v33  ;;  %v2340_v40 = vpack.c.bf16 %v6567_v36, %v6563_v30  ;;  %1234 = vperm.xlu0 %6278, %v114_v54  }
 0x110   :  { %v2341_v41 = vpack.c.bf16 %v6569_v39, %v6565_v35  ;;  %v6571_v52 = vpop.eup %6570  ;;  %v9032_v35 = vld [vmem:[%s11720_s0 + $0x228] sm:$0xff] }
 0x111   :  { %v1051_v44 = vpop.permute.xlu1 %1050  ;;  %v6573_v59 = vpop.eup %6572 }
 0x112   :  { %v1460_v16 = vmul.f32 %v8602_v9, %v1051_v44  ;;  %v1461_v60 = vmul.f32 %v8605_v10, %v1051_v44  ;;  %2768 = vmatprep.mubr.bf16.mxu0 %v2341_v41  ;;  %6252 = vset.pattern.permute.xlu1 %v8288_v1 }
 0x113   :  { %2769 = vmatmul.mubr.bf16.gmra.mrb[40].mxu0 %v2340_v40  ;;  %394 = vperm.xlu1 %6252, %v91_v42  }
 0x114   :  { %v1684_v46 = vadd.f32 %v1460_v16, %v776_v43  ;;  %v1685_v47 = vadd.f32 %v1461_v60, %v777_v45  ;;  %6283 = vset.pattern.permute.xlu0 %v8288_v1  ;;  %v8274_v45 = vld [vmem:[%s11720_s0 + $0x188] sm:$0xff] }
 0x115   :  { %v1055_v51 = vpop.permute.xlu1 %1054  ;;  %504 = vperm.xlu0 %6283, %v9032_v35  }
 0x116   :  { %v1920_v53 = vadd.f32 %v8627_v21, %v1684_v46  ;;  %v1462_v55 = vmul.f32 %v8602_v9, %v1055_v51  ;;  %v1463_v57 = vmul.f32 %v8605_v10, %v1055_v51  ;;  %v1921_v61 = vadd.f32 %v8630_v22, %v1685_v47  ;;  %v95_v47 = vld [vmem:[%s11720_s0 + $0x198] sm:$0xff] }
 0x117   :  { %6254 = vset.pattern.permute.xlu1 %v8287_v0 }
 0x118   :  { %v6575_v6 = vpop.eup %6574  ;;  %v1686_v7 = vadd.f32 %v1462_v55, %v778_v48  ;;  %v1687_v13 = vadd.f32 %v1463_v57, %v779_v49  ;;  %1142 = vperm.xlu1 %6254, %v91_v42   ;;  %6578 = vtanh.f32 %v1920_v53  ;;  %v305_v48 = vpop.permute.xlu0 %304 }
 0x119   :  { %v6577_v14 = vpop.eup %6576  ;;  %v2342_v15 = vpack.c.bf16 %v6575_v6, %v6571_v52  ;;  %6580 = vtanh.f32 %v1921_v61  ;;  %509 = vperm.xlu0 %6283, %v114_v54   ;;  %v787_v61 = vmul.f32 %v8611_v12, %v305_v48 }
 0x11a   :  { %v1922_v18 = vadd.f32 %v8627_v21, %v1686_v7  ;;  %v1923_v19 = vadd.f32 %v8630_v22, %v1687_v13  ;;  %v295_v20 = vpop.permute.xlu1 %294  ;;  %v2343_v23 = vpack.c.bf16 %v6577_v14, %v6573_v59  ;;  %v786_v59 = vmul.f32 %v8608_v11, %v305_v48 }
 0x11b   :  { %v782_v32 = vmul.f32 %v8608_v11, %v295_v20  ;;  %v783_v30 = vmul.f32 %v8611_v12, %v295_v20 }
 0x11c   :  { %6582 = vtanh.f32 %v1922_v18  ;;  %2778 = vmatprep.mubr.bf16.mxu0 %v2343_v23  ;;  %6255 = vset.pattern.permute.xlu1 %v8288_v1  ;;  %v310_v62 = vpop.permute.xlu0 %309 }
 0x11d   :  { %6584 = vtanh.f32 %v1923_v19  ;;  %2779 = vmatmul.mubr.bf16.gmra.mrb[44].mxu0 %v2342_v15  ;;  %399 = vperm.xlu1 %6255, %v92_v24   ;;  %v788_v18 = vmul.f32 %v8608_v11, %v310_v62  ;;  %v789_v26 = vmul.f32 %v8611_v12, %v310_v62 }
 0x11e   :  { %6586 = vtanh.f32 %v1924_v31 }
 0x11f   :  { %v1063_v29 = vpop.permute.xlu1 %1062  ;;  %6588 = vtanh.f32 %v1925_v34  ;;  %v1697_v34 = vadd.f32 %v1473_v25, %v789_v26 }
 0x120   :  { %v1466_v27 = vmul.f32 %v8602_v9, %v1063_v29  ;;  %v1467_v33 = vmul.f32 %v8605_v10, %v1063_v29 }
 0x121   :  { %6256 = vset.pattern.permute.xlu1 %v8287_v0 }
 0x122   :  { %v1690_v36 = vadd.f32 %v1466_v27, %v782_v32  ;;  %v1691_v58 = vadd.f32 %v1467_v33, %v783_v30  ;;  %1146 = vperm.xlu1 %6256, %v92_v24   ;;  %v6579_v39 = vpop.eup %6578  ;;  %v96_v27 = vld [vmem:[%s11720_s0 + $0x1a0] sm:$0xff]  ;;  %v1696_v33 = vadd.f32 %v1472_v17, %v788_v18 }
 0x123   :  { %v6581_v43 = vpop.eup %6580 }
 0x124   :  { %v1926_v40 = vadd.f32 %v8627_v21, %v1690_v36  ;;  %v1927_v41 = vadd.f32 %v8630_v22, %v1691_v58  ;;  %v300_v42 = vpop.permute.xlu1 %299  ;;  %v1932_v58 = vadd.f32 %v8627_v21, %v1696_v33 }
 0x125   :  { %v784_v49 = vmul.f32 %v8608_v11, %v300_v42  ;;  %v785_v51 = vmul.f32 %v8611_v12, %v300_v42  ;;  %v1933_v42 = vadd.f32 %v8630_v22, %v1697_v34 }
 0x126   :  { %v6583_v44 = vpop.eup %6582  ;;  %6590 = vtanh.f32 %v1926_v40  ;;  %1150 = vperm.xlu1 %6256, %v8274_v45  }
 0x127   :  { %v6585_v16 = vpop.eup %6584  ;;  %6592 = vtanh.f32 %v1927_v41  ;;  %v2344_v60 = vpack.c.bf16 %v6583_v44, %v6579_v39 }
 0x128   :  { %v2345_v46 = vpack.c.bf16 %v6585_v16, %v6581_v43  ;;  %v6587_v6 = vpop.eup %6586  ;;  %v117_v43 = vld [vmem:[%s11720_s0 + $0x248] sm:$0xff]  ;;  %v325_v16 = vpop.permute.xlu0 %324 }
 0x129   :  { %v1067_v50 = vpop.permute.xlu1 %1066  ;;  %v6589_v8 = vpop.eup %6588  ;;  %524 = vperm.xlu0 %6283, %v117_v43   ;;  %v795_v17 = vmul.f32 %v8611_v12, %v325_v16 }
 0x12a   :  { %v1468_v52 = vmul.f32 %v8602_v9, %v1067_v50  ;;  %v1469_v53 = vmul.f32 %v8605_v10, %v1067_v50  ;;  %2788 = vmatprep.mubr.bf16.mxu0 %v2345_v46  ;;  %6257 = vset.pattern.permute.xlu1 %v8288_v1 }
 0x12b   :  { %2789 = vmatmul.mubr.bf16.gmra.mrb[48].mxu0 %v2344_v60  ;;  %414 = vperm.xlu1 %6257, %v95_v47  }
 0x12c   :  { %v1692_v55 = vadd.f32 %v1468_v52, %v784_v49  ;;  %v1693_v57 = vadd.f32 %v1469_v53, %v785_v51  ;;  %v8275_v51 = vld [vmem:[%s11720_s0 + $0x1a8] sm:$0xff]  ;;  %v330_v52 = vpop.permute.xlu0 %329  ;;  %v118_v53 = vld [vmem:[%s11720_s0 + $0x250] sm:$0xff] }
 0x12d   :  { %v1071_v3 = vpop.permute.xlu1 %1070  ;;  %529 = vperm.xlu0 %6283, %v118_v53   ;;  %v797_v34 = vmul.f32 %v8611_v12, %v330_v52 }
 0x12e   :  { %v1928_v7 = vadd.f32 %v8627_v21, %v1692_v55  ;;  %v1470_v13 = vmul.f32 %v8602_v9, %v1071_v3  ;;  %v1471_v14 = vmul.f32 %v8605_v10, %v1071_v3  ;;  %v1929_v15 = vadd.f32 %v8630_v22, %v1693_v57 }
 0x12f   :  { %6259 = vset.pattern.permute.xlu1 %v8287_v0 }
 0x130   :  { %v6591_v19 = vpop.eup %6590  ;;  %v1694_v20 = vadd.f32 %v1470_v13, %v786_v59  ;;  %v1695_v23 = vadd.f32 %v1471_v14, %v787_v61  ;;  %1158 = vperm.xlu1 %6259, %v95_v47   ;;  %6594 = vtanh.f32 %v1928_v7  ;;  %v99_v61 = vld [vmem:[%s11720_s0 + $0x1b8] sm:$0xff]  ;;  %v1091_v18 = vpop.permute.xlu0 %1090 }
 0x131   :  { %v6593_v24 = vpop.eup %6592  ;;  %v2346_v54 = vpack.c.bf16 %v6591_v19, %v6587_v6  ;;  %6596 = vtanh.f32 %v1929_v15  ;;  %v794_v15 = vmul.f32 %v8608_v11, %v325_v16  ;;  %6288 = vset.pattern.permute.xlu0 %v8287_v0 }
 0x132   :  { %v1930_v29 = vadd.f32 %v8627_v21, %v1694_v20  ;;  %v1931_v31 = vadd.f32 %v8630_v22, %v1695_v23  ;;  %v315_v32 = vpop.permute.xlu1 %314  ;;  %v2347_v30 = vpack.c.bf16 %v6593_v24, %v6589_v8  ;;  %1250 = vperm.xlu0 %6288, %v118_v53  }
 0x133   :  { %v790_v37 = vmul.f32 %v8608_v11, %v315_v32  ;;  %v791_v39 = vmul.f32 %v8611_v12, %v315_v32 }
 0x134   :  { %6598 = vtanh.f32 %v1930_v29  ;;  %2798 = vmatprep.mubr.bf16.mxu0 %v2347_v30  ;;  %6260 = vset.pattern.permute.xlu1 %v8288_v1  ;;  %v796_v29 = vmul.f32 %v8608_v11, %v330_v52 }
 0x135   :  { %6600 = vtanh.f32 %v1931_v31  ;;  %2799 = vmatmul.mubr.bf16.gmra.mrb[52].mxu0 %v2346_v54  ;;  %419 = vperm.xlu1 %6260, %v96_v27   ;;  %v1480_v31 = vmul.f32 %v8602_v9, %v1091_v18 }
 0x136   :  { %6602 = vtanh.f32 %v1932_v58  ;;  %v1481_v58 = vmul.f32 %v8605_v10, %v1091_v18 }
 0x137   :  { %v1079_v36 = vpop.permute.xlu1 %1078  ;;  %6604 = vtanh.f32 %v1933_v42  ;;  %v100_v42 = vld [vmem:[%s11720_s0 + $0x1c0] sm:$0xff]  ;;  %v1704_v43 = vadd.f32 %v1480_v31, %v796_v29 }
 0x138   :  { %v1474_v40 = vmul.f32 %v8602_v9, %v1079_v36  ;;  %v1475_v41 = vmul.f32 %v8605_v10, %v1079_v36 }
 0x139   :  { %6261 = vset.pattern.permute.xlu1 %v8287_v0 }
 0x13a   :  { %v1698_v44 = vadd.f32 %v1474_v40, %v790_v37  ;;  %v1699_v45 = vadd.f32 %v1475_v41, %v791_v39  ;;  %1162 = vperm.xlu1 %6261, %v96_v27   ;;  %v6595_v60 = vpop.eup %6594 }
 0x13b   :  { %v6597_v49 = vpop.eup %6596 }
 0x13c   :  { %v1934_v46 = vadd.f32 %v8627_v21, %v1698_v44  ;;  %v1935_v47 = vadd.f32 %v8630_v22, %v1699_v45  ;;  %v320_v48 = vpop.permute.xlu1 %319  ;;  %v122_v44 = vld [vmem:[%s11720_s0 + $0x270] sm:$0xff]  ;;  %v1705_v45 = vadd.f32 %v1481_v58, %v797_v34 }
 0x13d   :  { %v792_v62 = vmul.f32 %v8608_v11, %v320_v48  ;;  %v793_v6 = vmul.f32 %v8611_v12, %v320_v48  ;;  %1266 = vperm.xlu0 %6288, %v122_v44  }
 0x13e   :  { %v6599_v50 = vpop.eup %6598  ;;  %6606 = vtanh.f32 %v1934_v46  ;;  %1166 = vperm.xlu1 %6261, %v8275_v51   ;;  %v121_v51 = vld [vmem:[%s11720_s0 + $0x268] sm:$0xff] }
 0x13f   :  { %v6601_v55 = vpop.eup %6600  ;;  %6608 = vtanh.f32 %v1935_v47  ;;  %v2348_v57 = vpack.c.bf16 %v6599_v50, %v6595_v60  ;;  %v1940_v60 = vadd.f32 %v8627_v21, %v1704_v43  ;;  %v1941_v50 = vadd.f32 %v8630_v22, %v1705_v45 }
 0x140   :  { %v2349_v59 = vpack.c.bf16 %v6601_v55, %v6597_v49  ;;  %v6603_v20 = vpop.eup %6602  ;;  %v1107_v55 = vpop.permute.xlu0 %1106 }
 0x141   :  { %v1083_v3 = vpop.permute.xlu1 %1082  ;;  %v6605_v54 = vpop.eup %6604  ;;  %6293 = vset.pattern.permute.xlu0 %v8288_v1 }
 0x142   :  { %v1476_v7 = vmul.f32 %v8602_v9, %v1083_v3  ;;  %v1477_v13 = vmul.f32 %v8605_v10, %v1083_v3  ;;  %2808 = vmatprep.mubr.bf16.mxu0 %v2349_v59  ;;  %6262 = vset.pattern.permute.xlu1 %v8288_v1 }
 0x143   :  { %2809 = vmatmul.mubr.bf16.gmra.mrb[56].mxu0 %v2348_v57  ;;  %434 = vperm.xlu1 %6262, %v99_v61  }
 0x144   :  { %v1700_v14 = vadd.f32 %v1476_v7, %v792_v62  ;;  %v1701_v8 = vadd.f32 %v1477_v13, %v793_v6  ;;  %544 = vperm.xlu0 %6293, %v121_v51  }
 0x145   :  { %v1087_v19 = vpop.permute.xlu1 %1086 }
 0x146   :  { %v1936_v23 = vadd.f32 %v8627_v21, %v1700_v14  ;;  %v1478_v24 = vmul.f32 %v8602_v9, %v1087_v19  ;;  %v1479_v25 = vmul.f32 %v8605_v10, %v1087_v19  ;;  %v1937_v26 = vadd.f32 %v8630_v22, %v1701_v8  ;;  %v103_v8 = vld [vmem:[%s11720_s0 + $0x1d8] sm:$0xff] }
 0x147   :  { %6264 = vset.pattern.permute.xlu1 %v8287_v0 }
 0x148   :  { %v6607_v32 = vpop.eup %6606  ;;  %v1702_v30 = vadd.f32 %v1478_v24, %v794_v15  ;;  %v1703_v27 = vadd.f32 %v1479_v25, %v795_v17  ;;  %1174 = vperm.xlu1 %6264, %v99_v61   ;;  %6610 = vtanh.f32 %v1936_v23  ;;  %549 = vperm.xlu0 %6293, %v122_v44   ;;  %v345_v15 = vpop.permute.xlu0 %344 }
 0x149   :  { %v6609_v33 = vpop.eup %6608  ;;  %v2350_v36 = vpack.c.bf16 %v6607_v32, %v6603_v20  ;;  %6612 = vtanh.f32 %v1937_v26  ;;  %v802_v25 = vmul.f32 %v8608_v11, %v345_v15 }
 0x14a   :  { %v1938_v37 = vadd.f32 %v8627_v21, %v1702_v30  ;;  %v1939_v39 = vadd.f32 %v8630_v22, %v1703_v27  ;;  %v335_v40 = vpop.permute.xlu1 %334  ;;  %v2351_v41 = vpack.c.bf16 %v6609_v33, %v6605_v54  ;;  %v803_v54 = vmul.f32 %v8611_v12, %v345_v15 }
 0x14b   :  { %v798_v46 = vmul.f32 %v8608_v11, %v335_v40  ;;  %v799_v47 = vmul.f32 %v8611_v12, %v335_v40 }
 0x14c   :  { %6614 = vtanh.f32 %v1938_v37  ;;  %2818 = vmatprep.mubr.bf16.mxu0 %v2351_v41  ;;  %6265 = vset.pattern.permute.xlu1 %v8288_v1  ;;  %v350_v26 = vpop.permute.xlu0 %349 }
 0x14d   :  { %6616 = vtanh.f32 %v1939_v39  ;;  %2819 = vmatmul.mubr.bf16.gmra.mrb[60].mxu0 %v2350_v36  ;;  %439 = vperm.xlu1 %6265, %v100_v42   ;;  %v1488_v36 = vmul.f32 %v8602_v9, %v1107_v55  ;;  %v804_v58 = vmul.f32 %v8608_v11, %v350_v26  ;;  %v805_v44 = vmul.f32 %v8611_v12, %v350_v26 }
 0x14e   :  { %6618 = vtanh.f32 %v1940_v60 }
 0x14f   :  { %v1095_v16 = vpop.permute.xlu1 %1094  ;;  %6620 = vtanh.f32 %v1941_v50 }
 0x150   :  { %v1482_v48 = vmul.f32 %v8602_v9, %v1095_v16  ;;  %v1483_v49 = vmul.f32 %v8605_v10, %v1095_v16 }
 0x151   :  { %6266 = vset.pattern.permute.xlu1 %v8287_v0 }
 0x152   :  { %v1706_v52 = vadd.f32 %v1482_v48, %v798_v46  ;;  %v1707_v53 = vadd.f32 %v1483_v49, %v799_v47  ;;  %1178 = vperm.xlu1 %6266, %v100_v42   ;;  %v6611_v57 = vpop.eup %6610  ;;  %v1489_v42 = vmul.f32 %v8605_v10, %v1107_v55  ;;  %v104_v47 = vld [vmem:[%s11720_s0 + $0x1e0] sm:$0xff]  ;;  %v1712_v48 = vadd.f32 %v1488_v36, %v804_v58 }
 0x153   :  { %v6613_v3 = vpop.eup %6612 }
 0x154   :  { %v1942_v59 = vadd.f32 %v8627_v21, %v1706_v52  ;;  %v1943_v61 = vadd.f32 %v8630_v22, %v1707_v53  ;;  %v340_v62 = vpop.permute.xlu1 %339  ;;  %v1713_v49 = vadd.f32 %v1489_v42, %v805_v44  ;;  %v1948_v51 = vadd.f32 %v8627_v21, %v1712_v48 }
 0x155   :  { %v800_v17 = vmul.f32 %v8608_v11, %v340_v62  ;;  %v801_v19 = vmul.f32 %v8611_v12, %v340_v62  ;;  %v2464_v62 = vld [vmem:[%s11726_s5] sm:$0x3] }
 0x156   :  { %v6615_v6 = vpop.eup %6614  ;;  %6622 = vtanh.f32 %v1942_v59  ;;  %1182 = vperm.xlu1 %6266, %v8828_v38   ;;  %v365_v59 = vpop.permute.xlu0 %364 }
 0x157   :  { %v6617_v7 = vpop.eup %6616  ;;  %6624 = vtanh.f32 %v1943_v61  ;;  %v2352_v13 = vpack.c.bf16 %v6615_v6, %v6611_v57  ;;  %v1949_v61 = vadd.f32 %v8630_v22, %v1713_v49  ;;  %v810_v42 = vmul.f32 %v8608_v11, %v365_v59 }
 0x158   :  { %v2353_v14 = vpack.c.bf16 %v6617_v7, %v6613_v3  ;;  %v6619_v31 = vpop.eup %6618  ;;  %v125_v3 = vld [vmem:[%s11720_s0 + $0x288] sm:$0xff] }
 0x159   :  { %v1099_v18 = vpop.permute.xlu1 %1098  ;;  %v6621_v33 = vpop.eup %6620  ;;  %564 = vperm.xlu0 %6293, %v125_v3  }
 0x15a   :  { %v1484_v20 = vmul.f32 %v8602_v9, %v1099_v18  ;;  %v1485_v23 = vmul.f32 %v8605_v10, %v1099_v18  ;;  %2828 = vmatprep.mubr.bf16.mxu0 %v2353_v14  ;;  %6267 = vset.pattern.permute.xlu1 %v8288_v1  ;;  %v370_v18 = vpop.permute.xlu0 %369 }
 0x15b   :  { %2829 = vmatmul.mubr.bf16.gmra.mrb[64].mxu0 %v2352_v13  ;;  %454 = vperm.xlu1 %6267, %v103_v8  }
 0x15c   :  { %v1708_v38 = vadd.f32 %v1484_v20, %v800_v17  ;;  %v1709_v24 = vadd.f32 %v1485_v23, %v801_v19  ;;  %v9168_v17 = vrot.slane %v2464_v62, %v8585_v4  ;;  %v9171_v20 = vrot.slane %v2464_v62, %v8588_v5 }
 0x15d   :  { %v1103_v29 = vpop.permute.xlu1 %1102 }
 0x15e   :  { %v1944_v32 = vadd.f32 %v8627_v21, %v1708_v38  ;;  %v1486_v30 = vmul.f32 %v8602_v9, %v1103_v29  ;;  %v1487_v27 = vmul.f32 %v8605_v10, %v1103_v29  ;;  %v1945_v34 = vadd.f32 %v8630_v22, %v1709_v24  ;;  %v126_v38 = vld [vmem:[%s11720_s0 + $0x290] sm:$0xff] }
 0x15f   :  { %6269 = vset.pattern.permute.xlu1 %v8287_v0  ;;  %569 = vperm.xlu0 %6293, %v126_v38  }
 0x160   :  { %v6623_v37 = vpop.eup %6622  ;;  %v1710_v39 = vadd.f32 %v1486_v30, %v802_v25  ;;  %v1711_v40 = vadd.f32 %v1487_v27, %v803_v54  ;;  %1190 = vperm.xlu1 %6269, %v103_v8   ;;  %6626 = vtanh.f32 %v1944_v32  ;;  %v107_v32 = vld [vmem:[%s11720_s0 + $0x1f8] sm:$0xff] }
 0x161   :  { %v6625_v41 = vpop.eup %6624  ;;  %v2354_v43 = vpack.c.bf16 %v6623_v37, %v6619_v31  ;;  %6628 = vtanh.f32 %v1945_v34 }
 0x162   :  { %v1946_v45 = vadd.f32 %v8627_v21, %v1710_v39  ;;  %v1947_v16 = vadd.f32 %v8630_v22, %v1711_v40  ;;  %v355_v60 = vpop.permute.xlu1 %354  ;;  %v2355_v46 = vpack.c.bf16 %v6625_v41, %v6621_v33  ;;  %v1123_v40 = vpop.permute.xlu0 %1122 }
 0x163   :  { %v806_v52 = vmul.f32 %v8608_v11, %v355_v60  ;;  %v807_v53 = vmul.f32 %v8611_v12, %v355_v60  ;;  %6298 = vset.pattern.permute.xlu0 %v8287_v0  ;;  %v812_v60 = vmul.f32 %v8608_v11, %v370_v18 }
 0x164   :  { %6630 = vtanh.f32 %v1946_v45  ;;  %2838 = vmatprep.mubr.bf16.mxu0 %v2355_v46  ;;  %6270 = vset.pattern.permute.xlu1 %v8288_v1  ;;  %v811_v45 = vmul.f32 %v8611_v12, %v365_v59  ;;  %v1496_v46 = vmul.f32 %v8602_v9, %v1123_v40  ;;  %v813_v59 = vmul.f32 %v8611_v12, %v370_v18  ;;  %v108_v18 = vld [vmem:[%s11720_s0 + $0x200] sm:$0xff] }
 0x165   :  { %6632 = vtanh.f32 %v1947_v16  ;;  %2839 = vmatmul.mubr.bf16.gmra.mrb[68].mxu0 %v2354_v43  ;;  %459 = vperm.xlu1 %6270, %v104_v47  }
 0x166   :  { %6634 = vtanh.f32 %v1948_v51  ;;  %1282 = vperm.xlu0 %6298, %v126_v38  }
 0x167   :  { %v1111_v50 = vpop.permute.xlu1 %1110  ;;  %6636 = vtanh.f32 %v1949_v61 }
 0x168   :  { %v1490_v55 = vmul.f32 %v8602_v9, %v1111_v50  ;;  %v1491_v57 = vmul.f32 %v8605_v10, %v1111_v50 }
 0x169   :  { %6271 = vset.pattern.permute.xlu1 %v8287_v0 }
 0x16a   :  { %v1714_v6 = vadd.f32 %v1490_v55, %v806_v52  ;;  %v1715_v7 = vadd.f32 %v1491_v57, %v807_v53  ;;  %1194 = vperm.xlu1 %6271, %v104_v47   ;;  %v6627_v13 = vpop.eup %6626 }
 0x16b   :  { %v6629_v19 = vpop.eup %6628 }
 0x16c   :  { %v1950_v14 = vadd.f32 %v8627_v21, %v1714_v6  ;;  %v1951_v8 = vadd.f32 %v8630_v22, %v1715_v7  ;;  %v360_v15 = vpop.permute.xlu1 %359  ;;  %v1497_v6 = vmul.f32 %v8605_v10, %v1123_v40  ;;  %v1720_v7 = vadd.f32 %v1496_v46, %v812_v60 }
 0x16d   :  { %v808_v30 = vmul.f32 %v8608_v11, %v360_v15 }
 0x16e   :  { %v6631_v23 = vpop.eup %6630  ;;  %6638 = vtanh.f32 %v1950_v14  ;;  %1198 = vperm.xlu1 %6271, %v8907_v56   ;;  %v809_v56 = vmul.f32 %v8611_v12, %v360_v15 }
 0x16f   :  { %v6633_v24 = vpop.eup %6632  ;;  %6640 = vtanh.f32 %v1951_v8  ;;  %v2670_v25 = vpop.f32.mrb[0].mxu0  ;;  %v2356_v54 = vpack.c.bf16 %v6631_v23, %v6627_v13 }
 0x170   :  { %v2671_v26 = vadd.f32 %v2670_v25, %v9168_v17  ;;  %v2672_v29 = vpop.f32.mrb[1].mxu0  ;;  %v2357_v31 = vpack.c.bf16 %v6633_v24, %v6629_v19  ;;  %v6635_v47 = vpop.eup %6634 }
 0x171   :  { %v2673_v27 = vadd.f32 %v2672_v29, %v9171_v20  ;;  %v2674_v33 = vpop.f32.mrb[2].mxu0  ;;  %v1115_v34 = vpop.permute.xlu1 %1114  ;;  %v130_v29 = vld [vmem:[%s11720_s0 + $0x2b0] sm:$0xff] }
 0x172   :  { %6642 = vtanh.f32 %v2671_v26  ;;  %v2675_v36 = vadd.f32 %v2674_v33, %v9168_v17  ;;  %v2676_v58 = vpop.f32.mrb[3].mxu0  ;;  %v1492_v37 = vmul.f32 %v8602_v9, %v1115_v34  ;;  %v1493_v39 = vmul.f32 %v8605_v10, %v1115_v34  ;;  %2848 = vmatprep.mubr.bf16.mxu0 %v2357_v31  ;;  %6272 = vset.pattern.permute.xlu1 %v8288_v1  ;;  %v6637_v51 = vpop.eup %6636 }
 0x173   :  { %6644 = vtanh.f32 %v2673_v27  ;;  %v2677_v41 = vadd.f32 %v2676_v58, %v9171_v20  ;;  %2849 = vmatmul.mubr.bf16.gmra.mrb[72].mxu0 %v2356_v54  ;;  %474 = vperm.xlu1 %6272, %v107_v32   ;;  %v1956_v27 = vadd.f32 %v8627_v21, %v1720_v7 }
 0x174   :  { %6646 = vtanh.f32 %v2675_v36  ;;  %v1716_v43 = vadd.f32 %v1492_v37, %v808_v30  ;;  %v1717_v44 = vadd.f32 %v1493_v39, %v809_v56  ;;  %v1721_v30 = vadd.f32 %v1497_v6, %v813_v59  ;;  %1298 = vperm.xlu0 %6298, %v130_v29   ;;  %v111_v6 = vld [vmem:[%s11720_s0 + $0x218] sm:$0xff] }
 0x175   :  { %6648 = vtanh.f32 %v2677_v41  ;;  %v1119_v16 = vpop.permute.xlu1 %1118 }
 0x176   :  { %v1952_v48 = vadd.f32 %v8627_v21, %v1716_v43  ;;  %v1494_v49 = vmul.f32 %v8602_v9, %v1119_v16  ;;  %v1495_v50 = vmul.f32 %v8605_v10, %v1119_v16  ;;  %v1953_v52 = vadd.f32 %v8630_v22, %v1717_v44  ;;  %v129_v43 = vld [vmem:[%s11720_s0 + $0x2a8] sm:$0xff]  ;;  %v9224_v16 = vpop.permute.xlu0 %1138 }
 0x177   :  { %6274 = vset.pattern.permute.xlu1 %v8287_v0 }
 0x178   :  { %v6639_v53 = vpop.eup %6638  ;;  %v1718_v55 = vadd.f32 %v1494_v49, %v810_v42  ;;  %v1719_v57 = vadd.f32 %v1495_v50, %v811_v45  ;;  %1206 = vperm.xlu1 %6274, %v107_v32   ;;  %6650 = vtanh.f32 %v1952_v48  ;;  %v1957_v42 = vadd.f32 %v8630_v22, %v1721_v30  ;;  %6303 = vset.pattern.permute.xlu0 %v8288_v1 }
 0x179   :  { %v6641_v61 = vpop.eup %6640  ;;  %v2680_v62 = vpop.f32.mrb[4].mxu0  ;;  %v2358_v3 = vpack.c.bf16 %v6639_v53, %v6635_v47  ;;  %6652 = vtanh.f32 %v1953_v52  ;;  %584 = vperm.xlu0 %6303, %v129_v43   ;;  %v1505_v43 = vmul.f32 %v8605_v10, %v9224_v16 }
 0x17a   :  { %v1954_v13 = vadd.f32 %v8627_v21, %v1718_v55  ;;  %v1955_v14 = vadd.f32 %v8630_v22, %v1719_v57  ;;  %v2681_v8 = vadd.f32 %v2680_v62, %v9168_v17  ;;  %v2682_v15 = vpop.f32.mrb[5].mxu0  ;;  %v375_v19 = vpop.permute.xlu1 %374  ;;  %v2359_v23 = vpack.c.bf16 %v6641_v61, %v6637_v51 }
 0x17b   :  { %v2683_v38 = vadd.f32 %v2682_v15, %v9171_v20  ;;  %v2684_v24 = vpop.f32.mrb[6].mxu0  ;;  %v814_v34 = vmul.f32 %v8608_v11, %v375_v19  ;;  %v815_v36 = vmul.f32 %v8611_v12, %v375_v19  ;;  %v385_v7 = vpop.permute.xlu0 %384 }
 0x17c   :  { %v6643_v25 = vpop.eup %6642  ;;  %6654 = vtanh.f32 %v1954_v13  ;;  %v2685_v54 = vadd.f32 %v2684_v24, %v9168_v17  ;;  %v2686_v26 = vpop.f32.mrb[7].mxu0  ;;  %2858 = vmatprep.mubr.bf16.mxu0 %v2359_v23  ;;  %6275 = vset.pattern.permute.xlu1 %v8288_v1 }
 0x17d   :  { %v6645_v31 = vpop.eup %6644  ;;  %6656 = vtanh.f32 %v1955_v14  ;;  %v2687_v32 = vadd.f32 %v2686_v26, %v9171_v20  ;;  %2859 = vmatmul.mubr.bf16.gmra.mrb[76].mxu0 %v2358_v3  ;;  %479 = vperm.xlu1 %6275, %v108_v18   ;;  %v818_v26 = vmul.f32 %v8608_v11, %v385_v7 }
 0x17e   :  { %v6647_v56 = vpop.eup %6646  ;;  %6658 = vtanh.f32 %v2681_v8  ;;  %589 = vperm.xlu0 %6303, %v130_v29   ;;  %v819_v29 = vmul.f32 %v8611_v12, %v385_v7 }
 0x17f   :  { %v6649_v33 = vpop.eup %6648  ;;  %6660 = vtanh.f32 %v2683_v38  ;;  %v1127_v58 = vpop.permute.xlu1 %1126  ;;  %v3453_v37 = vpack.c.bf16 %v6647_v56, %v6643_v25 }
 0x180   :  { %6662 = vtanh.f32 %v2685_v54  ;;  %v1498_v39 = vmul.f32 %v8602_v9, %v1127_v58  ;;  %v1499_v40 = vmul.f32 %v8605_v10, %v1127_v58  ;;  %v3454_v41 = vpack.c.bf16 %v6649_v33, %v6645_v31  ;;  %v390_v56 = vpop.permute.xlu0 %389 }
 0x181   :  { %6664 = vtanh.f32 %v2687_v32  ;;  %6276 = vset.pattern.permute.xlu1 %v8287_v0 }
 0x182   :  { %v1722_v44 = vadd.f32 %v1498_v39, %v814_v34  ;;  %v1723_v45 = vadd.f32 %v1499_v40, %v815_v36  ;;  %3801 = vmatprep.mubr.bf16.mxu1 %v3454_v41  ;;  %1210 = vperm.xlu1 %6276, %v108_v18   ;;  %v6651_v60 = vpop.eup %6650  ;;  %6666 = vtanh.f32 %v1956_v27  ;;  %v1504_v40 = vmul.f32 %v8602_v9, %v9224_v16 }
 0x183   :  { %3802 = vmatmul.mubr.bf16.vlgmr.msra.gmra.mrb[0].mxu1 %v3453_v37  ;;  %v6653_v49 = vpop.eup %6652  ;;  %6668 = vtanh.f32 %v1957_v42  ;;  %v820_v41 = vmul.f32 %v8608_v11, %v390_v56 }
 0x184   :  { %v1958_v46 = vadd.f32 %v8627_v21, %v1722_v44  ;;  %v1959_v47 = vadd.f32 %v8630_v22, %v1723_v45  ;;  %v380_v48 = vpop.permute.xlu1 %379 }
 0x185   :  { %v817_v14 = vmul.f32 %v8611_v12, %v380_v48 }
 0x186   :  { %v6655_v50 = vpop.eup %6654  ;;  %6670 = vtanh.f32 %v1958_v46  ;;  %v2690_v51 = vpop.f32.mrb[8].mxu0  ;;  %1214 = vperm.xlu1 %6276, %v8984_v28   ;;  %v816_v28 = vmul.f32 %v8608_v11, %v380_v48 }
 0x187   :  { %v6657_v52 = vpop.eup %6656  ;;  %6672 = vtanh.f32 %v1959_v47  ;;  %v2691_v53 = vadd.f32 %v2690_v51, %v9168_v17  ;;  %v2692_v55 = vpop.f32.mrb[9].mxu0  ;;  %v2360_v57 = vpack.c.bf16 %v6655_v50, %v6651_v60  ;;  %v821_v50 = vmul.f32 %v8611_v12, %v390_v56 }
 0x188   :  { %v6659_v59 = vpop.eup %6658  ;;  %v2693_v61 = vadd.f32 %v2692_v55, %v9171_v20  ;;  %v2694_v62 = vpop.f32.mrb[10].mxu0  ;;  %v2361_v3 = vpack.c.bf16 %v6657_v52, %v6653_v49 }
 0x189   :  { %v6661_v13 = vpop.eup %6660  ;;  %6674 = vtanh.f32 %v2691_v53  ;;  %v2695_v8 = vadd.f32 %v2694_v62, %v9168_v17  ;;  %v2696_v15 = vpop.f32.mrb[11].mxu0 }
 0x18a   :  { %v1131_v19 = vpop.permute.xlu1 %1130  ;;  %v6663_v23 = vpop.eup %6662  ;;  %6676 = vtanh.f32 %v2693_v61  ;;  %v2697_v18 = vadd.f32 %v2696_v15, %v9171_v20  ;;  %2868 = vmatprep.mubr.bf16.mxu0 %v2361_v3  ;;  %6277 = vset.pattern.permute.xlu1 %v8288_v1 }
 0x18b   :  { %v1500_v38 = vmul.f32 %v8602_v9, %v1131_v19  ;;  %v1501_v24 = vmul.f32 %v8605_v10, %v1131_v19  ;;  %v6665_v25 = vpop.eup %6664  ;;  %6678 = vtanh.f32 %v2695_v8  ;;  %2869 = vmatmul.mubr.bf16.gmra.mrb[80].mxu0 %v2360_v57  ;;  %494 = vperm.xlu1 %6277, %v111_v6   ;;  %v3455_v54 = vpack.c.bf16 %v6663_v23, %v6659_v59  ;;  %v112_v59 = vld [vmem:[%s11720_s0 + $0x220] sm:$0xff]  ;;  %v405_v56 = vpop.permute.xlu0 %404 }
 0x18c   :  { %6680 = vtanh.f32 %v2697_v18  ;;  %v3456_v30 = vpack.c.bf16 %v6665_v25, %v6661_v13  ;;  %v6667_v33 = vpop.eup %6666 }
 0x18d   :  { %v1724_v31 = vadd.f32 %v1500_v38, %v816_v28  ;;  %v1725_v32 = vadd.f32 %v1501_v24, %v817_v14  ;;  %v6669_v39 = vpop.eup %6668  ;;  %v1729_v14 = vadd.f32 %v1505_v43, %v821_v50 }
 0x18e   :  { %v1135_v27 = vpop.permute.xlu1 %1134  ;;  %3811 = vmatprep.mubr.bf16.mxu1 %v3456_v30 }
 0x18f   :  { %v1960_v34 = vadd.f32 %v8627_v21, %v1724_v31  ;;  %v1961_v36 = vadd.f32 %v8630_v22, %v1725_v32  ;;  %v1502_v58 = vmul.f32 %v8602_v9, %v1135_v27  ;;  %v1503_v37 = vmul.f32 %v8605_v10, %v1135_v27  ;;  %3812 = vmatmul.mubr.bf16.gmra.mrb[4].mxu1 %v3455_v54 }
 0x190   :  { %6279 = vset.pattern.permute.xlu1 %v8287_v0  ;;  %v6671_v42 = vpop.eup %6670  ;;  %v2700_v60 = vpop.f32.mrb[12].mxu0 }
 0x191   :  { %6682 = vtanh.f32 %v1960_v34  ;;  %v1726_v44 = vadd.f32 %v1502_v58, %v818_v26  ;;  %v1727_v45 = vadd.f32 %v1503_v37, %v819_v29  ;;  %1222 = vperm.xlu1 %6279, %v111_v6   ;;  %v6673_v46 = vpop.eup %6672  ;;  %v2701_v47 = vadd.f32 %v2700_v60, %v9168_v17  ;;  %v2702_v48 = vpop.f32.mrb[13].mxu0  ;;  %v133_v29 = vld [vmem:[%s11720_s0 + $0x2c8] sm:$0xff] }
 0x192   :  { %6684 = vtanh.f32 %v1961_v36  ;;  %v2362_v49 = vpack.c.bf16 %v6671_v42, %v6667_v33  ;;  %v2703_v53 = vadd.f32 %v2702_v48, %v9171_v20  ;;  %v2704_v55 = vpop.f32.mrb[14].mxu0  ;;  %v395_v16 = vpop.permute.xlu1 %394  ;;  %v2363_v57 = vpack.c.bf16 %v6673_v46, %v6669_v39  ;;  %604 = vperm.xlu0 %6303, %v133_v29  }
 0x193   :  { %v1962_v51 = vadd.f32 %v8627_v21, %v1726_v44  ;;  %v1963_v52 = vadd.f32 %v8630_v22, %v1727_v45  ;;  %v6675_v61 = vpop.eup %6674  ;;  %6686 = vtanh.f32 %v2701_v47  ;;  %v2705_v62 = vadd.f32 %v2704_v55, %v9168_v17  ;;  %v2706_v3 = vpop.f32.mrb[15].mxu0 }
 0x194   :  { %v1728_v6 = vadd.f32 %v1504_v40, %v820_v41  ;;  %v6677_v7 = vpop.eup %6676  ;;  %v2707_v13 = vadd.f32 %v2706_v3, %v9171_v20  ;;  %2878 = vmatprep.mubr.bf16.mxu0 %v2363_v57  ;;  %v822_v19 = vmul.f32 %v8608_v11, %v395_v16  ;;  %v823_v24 = vmul.f32 %v8611_v12, %v395_v16  ;;  %v410_v40 = vpop.permute.xlu0 %409  ;;  %v134_v41 = vld [vmem:[%s11720_s0 + $0x2d0] sm:$0xff] }
 0x195   :  { %6688 = vtanh.f32 %v1962_v51  ;;  %6280 = vset.pattern.permute.xlu1 %v8288_v1  ;;  %v6679_v28 = vpop.eup %6678  ;;  %2879 = vmatmul.mubr.bf16.gmra.mrb[84].mxu0 %v2362_v49  ;;  %v1965_v26 = vadd.f32 %v8630_v22, %v1729_v14 }
 0x196   :  { %6690 = vtanh.f32 %v1963_v52  ;;  %499 = vperm.xlu1 %6280, %v112_v59   ;;  %v6681_v8 = vpop.eup %6680  ;;  %v3457_v15 = vpack.c.bf16 %v6679_v28, %v6675_v61  ;;  %v1964_v18 = vadd.f32 %v8627_v21, %v1728_v6  ;;  %609 = vperm.xlu0 %6303, %v134_v41   ;;  %v826_v6 = vmul.f32 %v8608_v11, %v405_v56 }
 0x197   :  { %6692 = vtanh.f32 %v2703_v53  ;;  %v1143_v23 = vpop.permute.xlu1 %1142  ;;  %v3458_v38 = vpack.c.bf16 %v6681_v8, %v6677_v7  ;;  %v827_v28 = vmul.f32 %v8611_v12, %v405_v56 }
 0x198   :  { %6694 = vtanh.f32 %v2705_v62  ;;  %v1506_v25 = vmul.f32 %v8602_v9, %v1143_v23  ;;  %v1507_v54 = vmul.f32 %v8605_v10, %v1143_v23  ;;  %v1155_v14 = vpop.permute.xlu0 %1154 }
 0x199   :  { %6696 = vtanh.f32 %v2707_v13  ;;  %3821 = vmatprep.mubr.bf16.mxu1 %v3458_v38 }
 0x19a   :  { %6281 = vset.pattern.permute.xlu1 %v8287_v0  ;;  %v1730_v32 = vadd.f32 %v1506_v25, %v822_v19  ;;  %v1731_v30 = vadd.f32 %v1507_v54, %v823_v24  ;;  %3822 = vmatmul.mubr.bf16.gmra.mrb[8].mxu1 %v3457_v15  ;;  %6698 = vtanh.f32 %v1964_v18  ;;  %v828_v25 = vmul.f32 %v8608_v11, %v410_v40 }
 0x19b   :  { %v6683_v31 = vpop.eup %6682  ;;  %1226 = vperm.xlu1 %6281, %v112_v59   ;;  %6700 = vtanh.f32 %v1965_v26  ;;  %6308 = vset.pattern.permute.xlu0 %v8287_v0  ;;  %v1512_v54 = vmul.f32 %v8602_v9, %v1155_v14 }
 0x19c   :  { %v6685_v27 = vpop.eup %6684  ;;  %v1966_v33 = vadd.f32 %v8627_v21, %v1730_v32  ;;  %v1967_v34 = vadd.f32 %v8630_v22, %v1731_v30  ;;  %v400_v36 = vpop.permute.xlu1 %399  ;;  %1314 = vperm.xlu0 %6308, %v134_v41   ;;  %v829_v30 = vmul.f32 %v8611_v12, %v410_v40  ;;  %v116_v40 = vld [vmem:[%s11720_s0 + $0x240] sm:$0xff] }
 0x19d   :  { %v6687_v58 = vpop.eup %6686  ;;  %v824_v50 = vmul.f32 %v8608_v11, %v400_v36  ;;  %v825_v51 = vmul.f32 %v8611_v12, %v400_v36  ;;  %v1513_v36 = vmul.f32 %v8605_v10, %v1155_v14  ;;  %v9328_v14 = vpop.permute.xlu0 %1170 }
 0x19e   :  { %6702 = vtanh.f32 %v1966_v33  ;;  %v2710_v39 = vpop.f32.mrb[16].mxu0 }
 0x19f   :  { %v6689_v37 = vpop.eup %6688  ;;  %1230 = vperm.xlu1 %6281, %v9032_v35   ;;  %6704 = vtanh.f32 %v1967_v34  ;;  %v2711_v43 = vadd.f32 %v2710_v39, %v9168_v17  ;;  %v2712_v44 = vpop.f32.mrb[17].mxu0  ;;  %v115_v35 = vld [vmem:[%s11720_s0 + $0x238] sm:$0xff] }
 0x1a0   :  { %v6691_v42 = vpop.eup %6690  ;;  %v2364_v45 = vpack.c.bf16 %v6689_v37, %v6683_v31  ;;  %v2713_v46 = vadd.f32 %v2712_v44, %v9171_v20  ;;  %v2714_v47 = vpop.f32.mrb[18].mxu0 }
 0x1a1   :  { %v6693_v60 = vpop.eup %6692  ;;  %v2365_v48 = vpack.c.bf16 %v6691_v42, %v6685_v27  ;;  %6706 = vtanh.f32 %v2711_v43  ;;  %v2715_v52 = vadd.f32 %v2714_v47, %v9168_v17  ;;  %v2716_v53 = vpop.f32.mrb[19].mxu0 }
 0x1a2   :  { %v6695_v49 = vpop.eup %6694  ;;  %v1147_v55 = vpop.permute.xlu1 %1146  ;;  %6708 = vtanh.f32 %v2713_v46  ;;  %v2717_v57 = vadd.f32 %v2716_v53, %v9171_v20  ;;  %v1736_v46 = vadd.f32 %v1512_v54, %v828_v25  ;;  %v8276_v25 = vld [vmem:[%s11720_s0 + $0x248] sm:$0xff] }
 0x1a3   :  { %v6697_v16 = vpop.eup %6696  ;;  %v1508_v59 = vmul.f32 %v8602_v9, %v1147_v55  ;;  %v1509_v61 = vmul.f32 %v8605_v10, %v1147_v55  ;;  %2888 = vmatprep.mubr.bf16.mxu0 %v2365_v48  ;;  %6282 = vset.pattern.permute.xlu1 %v8288_v1  ;;  %6710 = vtanh.f32 %v2715_v52  ;;  %v3459_v3 = vpack.c.bf16 %v6695_v49, %v6687_v58 }
 0x1a4   :  { %2889 = vmatmul.mubr.bf16.gmra.mrb[88].mxu0 %v2364_v45  ;;  %v3460_v62 = vpack.c.bf16 %v6697_v16, %v6693_v60  ;;  %514 = vperm.xlu1 %6282, %v115_v35   ;;  %6712 = vtanh.f32 %v2717_v57  ;;  %v6699_v15 = vpop.eup %6698  ;;  %v1972_v16 = vadd.f32 %v8627_v21, %v1736_v46 }
 0x1a5   :  { %v1732_v7 = vadd.f32 %v1508_v59, %v824_v50  ;;  %v1733_v13 = vadd.f32 %v1509_v61, %v825_v51  ;;  %v6701_v24 = vpop.eup %6700  ;;  %v1737_v50 = vadd.f32 %v1513_v36, %v829_v30 }
 0x1a6   :  { %3831 = vmatprep.mubr.bf16.mxu1 %v3460_v62  ;;  %v1151_v8 = vpop.permute.xlu1 %1150 }
 0x1a7   :  { %v1968_v19 = vadd.f32 %v8627_v21, %v1732_v7  ;;  %v1969_v23 = vadd.f32 %v8630_v22, %v1733_v13  ;;  %3832 = vmatmul.mubr.bf16.gmra.mrb[12].mxu1 %v3459_v3  ;;  %v1510_v18 = vmul.f32 %v8602_v9, %v1151_v8  ;;  %v1511_v38 = vmul.f32 %v8605_v10, %v1151_v8 }
 0x1a8   :  { %6284 = vset.pattern.permute.xlu1 %v8287_v0  ;;  %v6703_v26 = vpop.eup %6702  ;;  %v2720_v32 = vpop.f32.mrb[20].mxu0  ;;  %v1973_v3 = vadd.f32 %v8630_v22, %v1737_v50 }
 0x1a9   :  { %6714 = vtanh.f32 %v1968_v19  ;;  %v1734_v29 = vadd.f32 %v1510_v18, %v826_v6  ;;  %v1735_v31 = vadd.f32 %v1511_v38, %v827_v28  ;;  %1238 = vperm.xlu1 %6284, %v115_v35   ;;  %v6705_v56 = vpop.eup %6704  ;;  %v2721_v27 = vadd.f32 %v2720_v32, %v9168_v17  ;;  %v2722_v33 = vpop.f32.mrb[21].mxu0  ;;  %v138_v35 = vld [vmem:[%s11720_s0 + $0x2f0] sm:$0xff]  ;;  %v137_v6 = vld [vmem:[%s11720_s0 + $0x2e8] sm:$0xff] }
 0x1aa   :  { %6716 = vtanh.f32 %v1969_v23  ;;  %v2366_v34 = vpack.c.bf16 %v6703_v26, %v6699_v15  ;;  %v2723_v39 = vadd.f32 %v2722_v33, %v9171_v20  ;;  %v2724_v41 = vpop.f32.mrb[22].mxu0  ;;  %v415_v42 = vpop.permute.xlu1 %414  ;;  %v2367_v43 = vpack.c.bf16 %v6705_v56, %v6701_v24  ;;  %1330 = vperm.xlu0 %6308, %v138_v35   ;;  %v119_v33 = vld [vmem:[%s11720_s0 + $0x258] sm:$0xff] }
 0x1ab   :  { %v1970_v58 = vadd.f32 %v8627_v21, %v1734_v29  ;;  %v1971_v37 = vadd.f32 %v8630_v22, %v1735_v31  ;;  %v6707_v44 = vpop.eup %6706  ;;  %6718 = vtanh.f32 %v2721_v27  ;;  %v2725_v45 = vadd.f32 %v2724_v41, %v9168_v17  ;;  %v2726_v60 = vpop.f32.mrb[23].mxu0 }
 0x1ac   :  { %v6709_v47 = vpop.eup %6708  ;;  %v2727_v48 = vadd.f32 %v2726_v60, %v9171_v20  ;;  %2898 = vmatprep.mubr.bf16.mxu0 %v2367_v43  ;;  %v830_v53 = vmul.f32 %v8608_v11, %v415_v42  ;;  %v831_v59 = vmul.f32 %v8611_v12, %v415_v42 }
 0x1ad   :  { %6720 = vtanh.f32 %v1970_v58  ;;  %6285 = vset.pattern.permute.xlu1 %v8288_v1  ;;  %v6711_v49 = vpop.eup %6710  ;;  %2899 = vmatmul.mubr.bf16.gmra.mrb[92].mxu0 %v2366_v34  ;;  %v425_v34 = vpop.permute.xlu0 %424 }
 0x1ae   :  { %6722 = vtanh.f32 %v1971_v37  ;;  %519 = vperm.xlu1 %6285, %v116_v40   ;;  %v6713_v51 = vpop.eup %6712  ;;  %v3461_v52 = vpack.c.bf16 %v6711_v49, %v6707_v44  ;;  %6313 = vset.pattern.permute.xlu0 %v8288_v1  ;;  %v835_v49 = vmul.f32 %v8611_v12, %v425_v34 }
 0x1af   :  { %6724 = vtanh.f32 %v2723_v39  ;;  %v1159_v55 = vpop.permute.xlu1 %1158  ;;  %v3462_v57 = vpack.c.bf16 %v6713_v51, %v6709_v47  ;;  %624 = vperm.xlu0 %6313, %v137_v6   ;;  %v834_v47 = vmul.f32 %v8608_v11, %v425_v34  ;;  %v1521_v6 = vmul.f32 %v8605_v10, %v9328_v14 }
 0x1b0   :  { %6726 = vtanh.f32 %v2725_v45  ;;  %v1514_v61 = vmul.f32 %v8602_v9, %v1159_v55  ;;  %v1515_v62 = vmul.f32 %v8605_v10, %v1159_v55 }
 0x1b1   :  { %6728 = vtanh.f32 %v2727_v48  ;;  %3841 = vmatprep.mubr.bf16.mxu1 %v3462_v57  ;;  %v430_v50 = vpop.permute.xlu0 %429 }
 0x1b2   :  { %6286 = vset.pattern.permute.xlu1 %v8287_v0  ;;  %v1738_v13 = vadd.f32 %v1514_v61, %v830_v53  ;;  %v1739_v28 = vadd.f32 %v1515_v62, %v831_v59  ;;  %3842 = vmatmul.mubr.bf16.gmra.mrb[16].mxu1 %v3461_v52  ;;  %6730 = vtanh.f32 %v1972_v16  ;;  %v1520_v61 = vmul.f32 %v8602_v9, %v9328_v14 }
 0x1b3   :  { %v6715_v7 = vpop.eup %6714  ;;  %1242 = vperm.xlu1 %6286, %v116_v40   ;;  %6732 = vtanh.f32 %v1973_v3  ;;  %629 = vperm.xlu0 %6313, %v138_v35   ;;  %v836_v62 = vmul.f32 %v8608_v11, %v430_v50 }
 0x1b4   :  { %v6717_v8 = vpop.eup %6716  ;;  %v1974_v15 = vadd.f32 %v8627_v21, %v1738_v13  ;;  %v1975_v19 = vadd.f32 %v8630_v22, %v1739_v28  ;;  %v420_v23 = vpop.permute.xlu1 %419 }
 0x1b5   :  { %v6719_v18 = vpop.eup %6718  ;;  %v832_v58 = vmul.f32 %v8608_v11, %v420_v23  ;;  %v833_v37 = vmul.f32 %v8611_v12, %v420_v23 }
 0x1b6   :  { %6734 = vtanh.f32 %v1974_v15  ;;  %v2730_v24 = vpop.f32.mrb[24].mxu0 }
 0x1b7   :  { %v6721_v38 = vpop.eup %6720  ;;  %1246 = vperm.xlu1 %6286, %v8276_v25   ;;  %6736 = vtanh.f32 %v1975_v19  ;;  %v2731_v26 = vadd.f32 %v2730_v24, %v9168_v17  ;;  %v2732_v29 = vpop.f32.mrb[25].mxu0 }
 0x1b8   :  { %v6723_v54 = vpop.eup %6722  ;;  %v2368_v31 = vpack.c.bf16 %v6721_v38, %v6715_v7  ;;  %v2733_v30 = vadd.f32 %v2732_v29, %v9171_v20  ;;  %v2734_v56 = vpop.f32.mrb[26].mxu0  ;;  %v120_v29 = vld [vmem:[%s11720_s0 + $0x260] sm:$0xff] }
 0x1b9   :  { %v6725_v32 = vpop.eup %6724  ;;  %v2369_v27 = vpack.c.bf16 %v6723_v54, %v6717_v8  ;;  %6738 = vtanh.f32 %v2731_v26  ;;  %v2735_v39 = vadd.f32 %v2734_v56, %v9168_v17  ;;  %v2736_v41 = vpop.f32.mrb[27].mxu0  ;;  %v1744_v56 = vadd.f32 %v1520_v61, %v836_v62  ;;  %v142_v62 = vld [vmem:[%s11720_s0 + $0x310] sm:$0xff] }
 0x1ba   :  { %v6727_v36 = vpop.eup %6726  ;;  %v1163_v42 = vpop.permute.xlu1 %1162  ;;  %6740 = vtanh.f32 %v2733_v30  ;;  %v2737_v40 = vadd.f32 %v2736_v41, %v9171_v20 }
 0x1bb   :  { %v6729_v43 = vpop.eup %6728  ;;  %v1516_v44 = vmul.f32 %v8602_v9, %v1163_v42  ;;  %v1517_v45 = vmul.f32 %v8605_v10, %v1163_v42  ;;  %2908 = vmatprep.mubr.bf16.mxu0 %v2369_v27  ;;  %6287 = vset.pattern.permute.xlu1 %v8288_v1  ;;  %6742 = vtanh.f32 %v2735_v39  ;;  %v3463_v46 = vpack.c.bf16 %v6727_v36, %v6719_v18 }
 0x1bc   :  { %2909 = vmatmul.mubr.bf16.gmra.mrb[96].mxu0 %v2368_v31  ;;  %v3464_v60 = vpack.c.bf16 %v6729_v43, %v6725_v32  ;;  %534 = vperm.xlu1 %6287, %v119_v33   ;;  %6744 = vtanh.f32 %v2737_v40  ;;  %v6731_v52 = vpop.eup %6730  ;;  %v837_v18 = vmul.f32 %v8611_v12, %v430_v50  ;;  %v1980_v42 = vadd.f32 %v8627_v21, %v1744_v56 }
 0x1bd   :  { %v1740_v48 = vadd.f32 %v1516_v44, %v832_v58  ;;  %v1741_v35 = vadd.f32 %v1517_v45, %v833_v37  ;;  %v6733_v59 = vpop.eup %6732 }
 0x1be   :  { %3851 = vmatprep.mubr.bf16.mxu1 %v3464_v60  ;;  %v1167_v51 = vpop.permute.xlu1 %1166  ;;  %v1745_v36 = vadd.f32 %v1521_v6, %v837_v18 }
 0x1bf   :  { %v1976_v53 = vadd.f32 %v8627_v21, %v1740_v48  ;;  %v1977_v55 = vadd.f32 %v8630_v22, %v1741_v35  ;;  %3852 = vmatmul.mubr.bf16.gmra.mrb[20].mxu1 %v3463_v46  ;;  %v1518_v16 = vmul.f32 %v8602_v9, %v1167_v51  ;;  %v1519_v57 = vmul.f32 %v8605_v10, %v1167_v51  ;;  %v141_v46 = vld [vmem:[%s11720_s0 + $0x308] sm:$0xff] }
 0x1c0   :  { %6289 = vset.pattern.permute.xlu1 %v8287_v0  ;;  %v6735_v3 = vpop.eup %6734  ;;  %v2740_v28 = vpop.f32.mrb[28].mxu0  ;;  %v1981_v60 = vadd.f32 %v8630_v22, %v1745_v36  ;;  %644 = vperm.xlu0 %6313, %v141_v46  }
 0x1c1   :  { %6746 = vtanh.f32 %v1976_v53  ;;  %v1742_v7 = vadd.f32 %v1518_v16, %v834_v47  ;;  %v1743_v13 = vadd.f32 %v1519_v57, %v835_v49  ;;  %1254 = vperm.xlu1 %6289, %v119_v33   ;;  %v6737_v8 = vpop.eup %6736  ;;  %v2741_v15 = vadd.f32 %v2740_v28, %v9168_v17  ;;  %v2742_v19 = vpop.f32.mrb[29].mxu0 }
 0x1c2   :  { %6748 = vtanh.f32 %v1977_v55  ;;  %v2370_v23 = vpack.c.bf16 %v6735_v3, %v6731_v52  ;;  %v2743_v25 = vadd.f32 %v2742_v19, %v9171_v20  ;;  %v2744_v54 = vpop.f32.mrb[30].mxu0  ;;  %v435_v14 = vpop.permute.xlu1 %434  ;;  %v2371_v26 = vpack.c.bf16 %v6737_v8, %v6733_v59  ;;  %v8277_v59 = vld [vmem:[%s11720_s0 + $0x268] sm:$0xff] }
 0x1c3   :  { %v1978_v38 = vadd.f32 %v8627_v21, %v1742_v7  ;;  %v1979_v24 = vadd.f32 %v8630_v22, %v1743_v13  ;;  %v6739_v31 = vpop.eup %6738  ;;  %6750 = vtanh.f32 %v2741_v15  ;;  %v2745_v32 = vadd.f32 %v2744_v54, %v9168_v17  ;;  %v2746_v30 = vpop.f32.mrb[31].mxu0 }
 0x1c4   :  { %v6741_v27 = vpop.eup %6740  ;;  %v2747_v33 = vadd.f32 %v2746_v30, %v9171_v20  ;;  %2918 = vmatprep.mubr.bf16.mxu0 %v2371_v26  ;;  %v838_v39 = vmul.f32 %v8608_v11, %v435_v14  ;;  %v839_v40 = vmul.f32 %v8611_v12, %v435_v14  ;;  %v445_v49 = vpop.permute.xlu0 %444  ;;  %649 = vperm.xlu0 %6313, %v142_v62  }
 0x1c5   :  { %6752 = vtanh.f32 %v1978_v38  ;;  %6290 = vset.pattern.permute.xlu1 %v8288_v1  ;;  %v6743_v34 = vpop.eup %6742  ;;  %2919 = vmatmul.mubr.bf16.gmra.mrb[100].mxu0 %v2370_v23  ;;  %v123_v23 = vld [vmem:[%s11720_s0 + $0x278] sm:$0xff]  ;;  %v843_v36 = vmul.f32 %v8611_v12, %v445_v49 }
 0x1c6   :  { %6754 = vtanh.f32 %v1979_v24  ;;  %539 = vperm.xlu1 %6290, %v120_v29   ;;  %v6745_v58 = vpop.eup %6744  ;;  %v3465_v37 = vpack.c.bf16 %v6743_v34, %v6739_v31 }
 0x1c7   :  { %6756 = vtanh.f32 %v2743_v25  ;;  %v1175_v41 = vpop.permute.xlu1 %1174  ;;  %v3466_v43 = vpack.c.bf16 %v6745_v58, %v6741_v27  ;;  %v842_v27 = vmul.f32 %v8608_v11, %v445_v49 }
 0x1c8   :  { %6758 = vtanh.f32 %v2745_v32  ;;  %v1522_v44 = vmul.f32 %v8602_v9, %v1175_v41  ;;  %v1523_v45 = vmul.f32 %v8605_v10, %v1175_v41  ;;  %v450_v61 = vpop.permute.xlu0 %449  ;;  %6318 = vset.pattern.permute.xlu0 %v8287_v0 }
 0x1c9   :  { %6760 = vtanh.f32 %v2747_v33  ;;  %3861 = vmatprep.mubr.bf16.mxu1 %v3466_v43  ;;  %1346 = vperm.xlu0 %6318, %v142_v62   ;;  %v845_v49 = vmul.f32 %v8611_v12, %v450_v61 }
 0x1ca   :  { %6291 = vset.pattern.permute.xlu1 %v8287_v0  ;;  %v1746_v48 = vadd.f32 %v1522_v44, %v838_v39  ;;  %v1747_v35 = vadd.f32 %v1523_v45, %v839_v40  ;;  %3862 = vmatmul.mubr.bf16.gmra.mrb[24].mxu1 %v3465_v37  ;;  %6762 = vtanh.f32 %v1980_v42  ;;  %v844_v45 = vmul.f32 %v8608_v11, %v450_v61  ;;  %v124_v61 = vld [vmem:[%s11720_s0 + $0x280] sm:$0xff] }
 0x1cb   :  { %v6747_v47 = vpop.eup %6746  ;;  %1258 = vperm.xlu1 %6291, %v120_v29   ;;  %6764 = vtanh.f32 %v1981_v60 }
 0x1cc   :  { %v6749_v50 = vpop.eup %6748  ;;  %v1982_v51 = vadd.f32 %v8627_v21, %v1746_v48  ;;  %v1983_v52 = vadd.f32 %v8630_v22, %v1747_v35  ;;  %v440_v53 = vpop.permute.xlu1 %439 }
 0x1cd   :  { %v6751_v55 = vpop.eup %6750  ;;  %v840_v38 = vmul.f32 %v8608_v11, %v440_v53  ;;  %v841_v24 = vmul.f32 %v8611_v12, %v440_v53  ;;  %v1187_v58 = vpop.permute.xlu0 %1186 }
 0x1ce   :  { %6766 = vtanh.f32 %v1982_v51  ;;  %v2750_v57 = vpop.f32.mrb[32].mxu0  ;;  %v1528_v60 = vmul.f32 %v8602_v9, %v1187_v58 }
 0x1cf   :  { %v6753_v16 = vpop.eup %6752  ;;  %1262 = vperm.xlu1 %6291, %v8277_v59   ;;  %6768 = vtanh.f32 %v1983_v52  ;;  %v2751_v6 = vadd.f32 %v2750_v57, %v9168_v17  ;;  %v2752_v7 = vpop.f32.mrb[33].mxu0 }
 0x1d0   :  { %v6755_v3 = vpop.eup %6754  ;;  %v2372_v13 = vpack.c.bf16 %v6753_v16, %v6747_v47  ;;  %v2753_v8 = vadd.f32 %v2752_v7, %v9171_v20  ;;  %v2754_v15 = vpop.f32.mrb[34].mxu0 }
 0x1d1   :  { %v6757_v28 = vpop.eup %6756  ;;  %v2373_v19 = vpack.c.bf16 %v6755_v3, %v6749_v50  ;;  %6770 = vtanh.f32 %v2751_v6  ;;  %v2755_v25 = vadd.f32 %v2754_v15, %v9168_v17  ;;  %v2756_v54 = vpop.f32.mrb[35].mxu0 }
 0x1d2   :  { %v6759_v18 = vpop.eup %6758  ;;  %v1179_v14 = vpop.permute.xlu1 %1178  ;;  %6772 = vtanh.f32 %v2753_v8  ;;  %v2757_v29 = vadd.f32 %v2756_v54, %v9171_v20  ;;  %v1752_v8 = vadd.f32 %v1528_v60, %v844_v45  ;;  %v8278_v45 = vld [vmem:[%s11720_s0 + $0x288] sm:$0xff] }
 0x1d3   :  { %v6761_v26 = vpop.eup %6760  ;;  %v1524_v31 = vmul.f32 %v8602_v9, %v1179_v14  ;;  %v1525_v32 = vmul.f32 %v8605_v10, %v1179_v14  ;;  %2928 = vmatprep.mubr.bf16.mxu0 %v2373_v19  ;;  %6292 = vset.pattern.permute.xlu1 %v8288_v1  ;;  %6774 = vtanh.f32 %v2755_v25  ;;  %v3467_v56 = vpack.c.bf16 %v6759_v18, %v6751_v55 }
 0x1d4   :  { %2929 = vmatmul.mubr.bf16.gmra.mrb[104].mxu0 %v2372_v13  ;;  %v3468_v30 = vpack.c.bf16 %v6761_v26, %v6757_v28  ;;  %554 = vperm.xlu1 %6292, %v123_v23   ;;  %6776 = vtanh.f32 %v2757_v29  ;;  %v6763_v39 = vpop.eup %6762  ;;  %v1529_v55 = vmul.f32 %v8605_v10, %v1187_v58  ;;  %v1988_v26 = vadd.f32 %v8627_v21, %v1752_v8  ;;  %v9436_v58 = vpop.permute.xlu0 %1202 }
 0x1d5   :  { %v1748_v33 = vadd.f32 %v1524_v31, %v840_v38  ;;  %v1749_v34 = vadd.f32 %v1525_v32, %v841_v24  ;;  %v6765_v44 = vpop.eup %6764 }
 0x1d6   :  { %3871 = vmatprep.mubr.bf16.mxu1 %v3468_v30  ;;  %v1183_v37 = vpop.permute.xlu1 %1182  ;;  %v1753_v38 = vadd.f32 %v1529_v55, %v845_v49 }
 0x1d7   :  { %v1984_v41 = vadd.f32 %v8627_v21, %v1748_v33  ;;  %v1985_v42 = vadd.f32 %v8630_v22, %v1749_v34  ;;  %3872 = vmatmul.mubr.bf16.gmra.mrb[28].mxu1 %v3467_v56  ;;  %v1526_v43 = vmul.f32 %v8602_v9, %v1183_v37  ;;  %v1527_v40 = vmul.f32 %v8605_v10, %v1183_v37 }
 0x1d8   :  { %6294 = vset.pattern.permute.xlu1 %v8287_v0  ;;  %v6767_v46 = vpop.eup %6766  ;;  %v2760_v35 = vpop.f32.mrb[36].mxu0  ;;  %v1989_v56 = vadd.f32 %v8630_v22, %v1753_v38 }
 0x1d9   :  { %6778 = vtanh.f32 %v1984_v41  ;;  %v1750_v47 = vadd.f32 %v1526_v43, %v842_v27  ;;  %v1751_v48 = vadd.f32 %v1527_v40, %v843_v36  ;;  %1270 = vperm.xlu1 %6294, %v123_v23   ;;  %v6769_v50 = vpop.eup %6768  ;;  %v2761_v51 = vadd.f32 %v2760_v35, %v9168_v17  ;;  %v2762_v52 = vpop.f32.mrb[37].mxu0  ;;  %v146_v23 = vld [vmem:[%s11720_s0 + $0x330] sm:$0xff]  ;;  %v145_v27 = vld [vmem:[%s11720_s0 + $0x328] sm:$0xff] }
 0x1da   :  { %6780 = vtanh.f32 %v1985_v42  ;;  %v2374_v53 = vpack.c.bf16 %v6767_v46, %v6763_v39  ;;  %v2763_v59 = vadd.f32 %v2762_v52, %v9171_v20  ;;  %v2764_v62 = vpop.f32.mrb[38].mxu0  ;;  %v455_v3 = vpop.permute.xlu1 %454  ;;  %v2375_v6 = vpack.c.bf16 %v6769_v50, %v6765_v44  ;;  %1362 = vperm.xlu0 %6318, %v146_v23   ;;  %v127_v52 = vld [vmem:[%s11720_s0 + $0x298] sm:$0xff] }
 0x1db   :  { %v1986_v16 = vadd.f32 %v8627_v21, %v1750_v47  ;;  %v1987_v57 = vadd.f32 %v8630_v22, %v1751_v48  ;;  %v6771_v7 = vpop.eup %6770  ;;  %6782 = vtanh.f32 %v2761_v51  ;;  %v2765_v13 = vadd.f32 %v2764_v62, %v9168_v17  ;;  %v2766_v28 = vpop.f32.mrb[39].mxu0 }
 0x1dc   :  { %v6773_v15 = vpop.eup %6772  ;;  %v2767_v19 = vadd.f32 %v2766_v28, %v9171_v20  ;;  %2938 = vmatprep.mubr.bf16.mxu0 %v2375_v6  ;;  %v846_v54 = vmul.f32 %v8608_v11, %v455_v3  ;;  %v847_v31 = vmul.f32 %v8611_v12, %v455_v3 }
 0x1dd   :  { %6784 = vtanh.f32 %v1986_v16  ;;  %6295 = vset.pattern.permute.xlu1 %v8288_v1  ;;  %v6775_v18 = vpop.eup %6774  ;;  %2939 = vmatmul.mubr.bf16.gmra.mrb[108].mxu0 %v2374_v53  ;;  %v465_v53 = vpop.permute.xlu0 %464 }
 0x1de   :  { %6786 = vtanh.f32 %v1987_v57  ;;  %559 = vperm.xlu1 %6295, %v124_v61   ;;  %v6777_v24 = vpop.eup %6776  ;;  %v3469_v25 = vpack.c.bf16 %v6775_v18, %v6771_v7  ;;  %6323 = vset.pattern.permute.xlu0 %v8288_v1  ;;  %v851_v18 = vmul.f32 %v8611_v12, %v465_v53 }
 0x1df   :  { %6788 = vtanh.f32 %v2763_v59  ;;  %v1191_v14 = vpop.permute.xlu1 %1190  ;;  %v3470_v29 = vpack.c.bf16 %v6777_v24, %v6773_v15  ;;  %664 = vperm.xlu0 %6323, %v145_v27   ;;  %v850_v15 = vmul.f32 %v8608_v11, %v465_v53  ;;  %v1537_v27 = vmul.f32 %v8605_v10, %v9436_v58 }
 0x1e0   :  { %6790 = vtanh.f32 %v2765_v13  ;;  %v1530_v32 = vmul.f32 %v8602_v9, %v1191_v14  ;;  %v1531_v30 = vmul.f32 %v8605_v10, %v1191_v14 }
 0x1e1   :  { %6792 = vtanh.f32 %v2767_v19  ;;  %3881 = vmatprep.mubr.bf16.mxu1 %v3470_v29  ;;  %v470_v38 = vpop.permute.xlu0 %469 }
 0x1e2   :  { %6296 = vset.pattern.permute.xlu1 %v8287_v0  ;;  %v1754_v34 = vadd.f32 %v1530_v32, %v846_v54  ;;  %v1755_v36 = vadd.f32 %v1531_v30, %v847_v31  ;;  %3882 = vmatmul.mubr.bf16.gmra.mrb[32].mxu1 %v3469_v25  ;;  %6794 = vtanh.f32 %v1988_v26  ;;  %v1536_v32 = vmul.f32 %v8602_v9, %v9436_v58 }
 0x1e3   :  { %v6779_v33 = vpop.eup %6778  ;;  %1274 = vperm.xlu1 %6296, %v124_v61   ;;  %6796 = vtanh.f32 %v1989_v56  ;;  %669 = vperm.xlu0 %6323, %v146_v23   ;;  %v852_v30 = vmul.f32 %v8608_v11, %v470_v38 }
 0x1e4   :  { %v6781_v37 = vpop.eup %6780  ;;  %v1990_v39 = vadd.f32 %v8627_v21, %v1754_v34  ;;  %v1991_v41 = vadd.f32 %v8630_v22, %v1755_v36  ;;  %v460_v42 = vpop.permute.xlu1 %459 }
 0x1e5   :  { %v6783_v43 = vpop.eup %6782  ;;  %v848_v16 = vmul.f32 %v8608_v11, %v460_v42  ;;  %v849_v57 = vmul.f32 %v8611_v12, %v460_v42 }
 0x1e6   :  { %6798 = vtanh.f32 %v1990_v39  ;;  %v2770_v44 = vpop.f32.mrb[40].mxu0 }
 0x1e7   :  { %v6785_v40 = vpop.eup %6784  ;;  %1278 = vperm.xlu1 %6296, %v8278_v45   ;;  %6800 = vtanh.f32 %v1991_v41  ;;  %v2771_v46 = vadd.f32 %v2770_v44, %v9168_v17  ;;  %v2772_v47 = vpop.f32.mrb[41].mxu0 }
 0x1e8   :  { %v6787_v60 = vpop.eup %6786  ;;  %v2376_v48 = vpack.c.bf16 %v6785_v40, %v6779_v33  ;;  %v2773_v49 = vadd.f32 %v2772_v47, %v9171_v20  ;;  %v2774_v50 = vpop.f32.mrb[42].mxu0  ;;  %v128_v47 = vld [vmem:[%s11720_s0 + $0x2a0] sm:$0xff] }
 0x1e9   :  { %v6789_v35 = vpop.eup %6788  ;;  %v2377_v51 = vpack.c.bf16 %v6787_v60, %v6781_v37  ;;  %6802 = vtanh.f32 %v2771_v46  ;;  %v2775_v59 = vadd.f32 %v2774_v50, %v9168_v17  ;;  %v2776_v62 = vpop.f32.mrb[43].mxu0  ;;  %v1760_v50 = vadd.f32 %v1536_v32, %v852_v30  ;;  %v8279_v32 = vld [vmem:[%s11720_s0 + $0x2a8] sm:$0xff] }
 0x1ea   :  { %v6791_v55 = vpop.eup %6790  ;;  %v1195_v3 = vpop.permute.xlu1 %1194  ;;  %6804 = vtanh.f32 %v2773_v49  ;;  %v2777_v61 = vadd.f32 %v2776_v62, %v9171_v20 }
 0x1eb   :  { %v6793_v6 = vpop.eup %6792  ;;  %v1532_v7 = vmul.f32 %v8602_v9, %v1195_v3  ;;  %v1533_v13 = vmul.f32 %v8605_v10, %v1195_v3  ;;  %2948 = vmatprep.mubr.bf16.mxu0 %v2377_v51  ;;  %6297 = vset.pattern.permute.xlu1 %v8288_v1  ;;  %6806 = vtanh.f32 %v2775_v59  ;;  %v3471_v8 = vpack.c.bf16 %v6791_v55, %v6783_v43 }
 0x1ec   :  { %2949 = vmatmul.mubr.bf16.gmra.mrb[112].mxu0 %v2376_v48  ;;  %v3472_v28 = vpack.c.bf16 %v6793_v6, %v6789_v35  ;;  %574 = vperm.xlu1 %6297, %v127_v52   ;;  %6808 = vtanh.f32 %v2777_v61  ;;  %v6795_v25 = vpop.eup %6794  ;;  %v853_v43 = vmul.f32 %v8611_v12, %v470_v38  ;;  %v1996_v6 = vadd.f32 %v8627_v21, %v1760_v50 }
 0x1ed   :  { %v1756_v19 = vadd.f32 %v1532_v7, %v848_v16  ;;  %v1757_v23 = vadd.f32 %v1533_v13, %v849_v57  ;;  %v6797_v31 = vpop.eup %6796  ;;  %v149_v16 = vld [vmem:[%s11720_s0 + $0x348] sm:$0xff] }
 0x1ee   :  { %3891 = vmatprep.mubr.bf16.mxu1 %v3472_v28  ;;  %v1199_v24 = vpop.permute.xlu1 %1198  ;;  %v1761_v55 = vadd.f32 %v1537_v27, %v853_v43  ;;  %684 = vperm.xlu0 %6323, %v149_v16  }
 0x1ef   :  { %v1992_v54 = vadd.f32 %v8627_v21, %v1756_v19  ;;  %v1993_v14 = vadd.f32 %v8630_v22, %v1757_v23  ;;  %3892 = vmatmul.mubr.bf16.gmra.mrb[36].mxu1 %v3471_v8  ;;  %v1534_v26 = vmul.f32 %v8602_v9, %v1199_v24  ;;  %v1535_v29 = vmul.f32 %v8605_v10, %v1199_v24  ;;  %v150_v24 = vld [vmem:[%s11720_s0 + $0x350] sm:$0xff] }
 0x1f0   :  { %6299 = vset.pattern.permute.xlu1 %v8287_v0  ;;  %v6799_v56 = vpop.eup %6798  ;;  %v2780_v36 = vpop.f32.mrb[44].mxu0  ;;  %v1997_v8 = vadd.f32 %v8630_v22, %v1761_v55 }
 0x1f1   :  { %6810 = vtanh.f32 %v1992_v54  ;;  %v1758_v33 = vadd.f32 %v1534_v26, %v850_v15  ;;  %v1759_v34 = vadd.f32 %v1535_v29, %v851_v18  ;;  %1286 = vperm.xlu1 %6299, %v127_v52   ;;  %v6801_v37 = vpop.eup %6800  ;;  %v2781_v39 = vadd.f32 %v2780_v36, %v9168_v17  ;;  %v2782_v41 = vpop.f32.mrb[45].mxu0 }
 0x1f2   :  { %6812 = vtanh.f32 %v1993_v14  ;;  %v2378_v42 = vpack.c.bf16 %v6799_v56, %v6795_v25  ;;  %v2783_v45 = vadd.f32 %v2782_v41, %v9171_v20  ;;  %v2784_v60 = vpop.f32.mrb[46].mxu0  ;;  %v475_v58 = vpop.permute.xlu1 %474  ;;  %v2379_v46 = vpack.c.bf16 %v6801_v37, %v6797_v31  ;;  %6328 = vset.pattern.permute.xlu0 %v8287_v0 }
 0x1f3   :  { %v1994_v40 = vadd.f32 %v8627_v21, %v1758_v33  ;;  %v1995_v44 = vadd.f32 %v8630_v22, %v1759_v34  ;;  %v6803_v48 = vpop.eup %6802  ;;  %6814 = vtanh.f32 %v2781_v39  ;;  %v2785_v35 = vadd.f32 %v2784_v60, %v9168_v17  ;;  %v2786_v49 = vpop.f32.mrb[47].mxu0  ;;  %1378 = vperm.xlu0 %6328, %v150_v24  }
 0x1f4   :  { %v6805_v51 = vpop.eup %6804  ;;  %v2787_v52 = vadd.f32 %v2786_v49, %v9171_v20  ;;  %2958 = vmatprep.mubr.bf16.mxu0 %v2379_v46  ;;  %v854_v62 = vmul.f32 %v8608_v11, %v475_v58  ;;  %v855_v7 = vmul.f32 %v8611_v12, %v475_v58  ;;  %v485_v18 = vpop.permute.xlu0 %484 }
 0x1f5   :  { %6816 = vtanh.f32 %v1994_v40  ;;  %6300 = vset.pattern.permute.xlu1 %v8288_v1  ;;  %v6807_v53 = vpop.eup %6806  ;;  %2959 = vmatmul.mubr.bf16.gmra.mrb[116].mxu0 %v2378_v42  ;;  %v131_v42 = vld [vmem:[%s11720_s0 + $0x2b8] sm:$0xff]  ;;  %v859_v55 = vmul.f32 %v8611_v12, %v485_v18 }
 0x1f6   :  { %6818 = vtanh.f32 %v1995_v44  ;;  %579 = vperm.xlu1 %6300, %v128_v47   ;;  %v6809_v57 = vpop.eup %6808  ;;  %v3473_v59 = vpack.c.bf16 %v6807_v53, %v6803_v48 }
 0x1f7   :  { %6820 = vtanh.f32 %v2783_v45  ;;  %v1207_v3 = vpop.permute.xlu1 %1206  ;;  %v3474_v61 = vpack.c.bf16 %v6809_v57, %v6805_v51  ;;  %6329 = vset.pattern.permute.xlu0 %v8288_v1  ;;  %v858_v51 = vmul.f32 %v8608_v11, %v485_v18  ;;  %v153_v57 = vld [vmem:[%s11720_s0 + $0x368] sm:$0xff] }
 0x1f8   :  { %6822 = vtanh.f32 %v2785_v35  ;;  %v1538_v13 = vmul.f32 %v8602_v9, %v1207_v3  ;;  %v1539_v28 = vmul.f32 %v8605_v10, %v1207_v3  ;;  %v490_v30 = vpop.permute.xlu0 %489  ;;  %689 = vperm.xlu0 %6329, %v150_v24   ;;  %v154_v24 = vld [vmem:[%s11720_s0 + $0x370] sm:$0xff] }
 0x1f9   :  { %6824 = vtanh.f32 %v2787_v52  ;;  %3901 = vmatprep.mubr.bf16.mxu1 %v3474_v61 }
 0x1fa   :  { %6301 = vset.pattern.permute.xlu1 %v8287_v0  ;;  %v1762_v19 = vadd.f32 %v1538_v13, %v854_v62  ;;  %v1763_v23 = vadd.f32 %v1539_v28, %v855_v7  ;;  %3902 = vmatmul.mubr.bf16.gmra.mrb[40].mxu1 %v3473_v59  ;;  %6826 = vtanh.f32 %v1996_v6  ;;  %v860_v28 = vmul.f32 %v8608_v11, %v490_v30 }
 0x1fb   :  { %v6811_v15 = vpop.eup %6810  ;;  %1290 = vperm.xlu1 %6301, %v128_v47   ;;  %6828 = vtanh.f32 %v1997_v8 }
 0x1fc   :  { %v6813_v38 = vpop.eup %6812  ;;  %v1998_v25 = vadd.f32 %v8627_v21, %v1762_v19  ;;  %v1999_v54 = vadd.f32 %v8630_v22, %v1763_v23  ;;  %v480_v14 = vpop.permute.xlu1 %479  ;;  %704 = vperm.xlu0 %6329, %v153_v57  }
 0x1fd   :  { %v6815_v26 = vpop.eup %6814  ;;  %v856_v40 = vmul.f32 %v8608_v11, %v480_v14  ;;  %v857_v44 = vmul.f32 %v8611_v12, %v480_v14  ;;  %v1219_v16 = vpop.permute.xlu0 %1218 }
 0x1fe   :  { %6830 = vtanh.f32 %v1998_v25  ;;  %v2790_v31 = vpop.f32.mrb[48].mxu0  ;;  %v1544_v8 = vmul.f32 %v8602_v9, %v1219_v16 }
 0x1ff   :  { %v6817_v29 = vpop.eup %6816  ;;  %1294 = vperm.xlu1 %6301, %v8279_v32   ;;  %6832 = vtanh.f32 %v1999_v54  ;;  %v2791_v27 = vadd.f32 %v2790_v31, %v9168_v17  ;;  %v2792_v33 = vpop.f32.mrb[49].mxu0 }
 0x200   :  { %v6819_v56 = vpop.eup %6818  ;;  %v2380_v34 = vpack.c.bf16 %v6817_v29, %v6811_v15  ;;  %v2793_v37 = vadd.f32 %v2792_v33, %v9171_v20  ;;  %v2794_v39 = vpop.f32.mrb[50].mxu0  ;;  %v1545_v29 = vmul.f32 %v8605_v10, %v1219_v16  ;;  %709 = vperm.xlu0 %6329, %v154_v24  }
 0x201   :  { %v6821_v36 = vpop.eup %6820  ;;  %v2381_v41 = vpack.c.bf16 %v6819_v56, %v6813_v38  ;;  %6834 = vtanh.f32 %v2791_v27  ;;  %v2795_v45 = vadd.f32 %v2794_v39, %v9168_v17  ;;  %v2796_v60 = vpop.f32.mrb[51].mxu0  ;;  %v861_v38 = vmul.f32 %v8611_v12, %v490_v30 }
 0x202   :  { %v6823_v43 = vpop.eup %6822  ;;  %v1211_v58 = vpop.permute.xlu1 %1210  ;;  %6836 = vtanh.f32 %v2793_v37  ;;  %v2797_v47 = vadd.f32 %v2796_v60, %v9171_v20 }
 0x203   :  { %v6825_v46 = vpop.eup %6824  ;;  %v1540_v48 = vmul.f32 %v8602_v9, %v1211_v58  ;;  %v1541_v35 = vmul.f32 %v8605_v10, %v1211_v58  ;;  %2968 = vmatprep.mubr.bf16.mxu0 %v2381_v41  ;;  %6302 = vset.pattern.permute.xlu1 %v8288_v1  ;;  %6838 = vtanh.f32 %v2795_v45  ;;  %v3475_v50 = vpack.c.bf16 %v6823_v43, %v6815_v26  ;;  %v9546_v16 = vpop.permute.xlu0 %1234 }
 0x204   :  { %2969 = vmatmul.mubr.bf16.gmra.mrb[120].mxu0 %v2380_v34  ;;  %v3476_v49 = vpack.c.bf16 %v6825_v46, %v6821_v36  ;;  %594 = vperm.xlu1 %6302, %v131_v42   ;;  %6840 = vtanh.f32 %v2797_v47  ;;  %v6827_v62 = vpop.eup %6826  ;;  %v132_v34 = vld [vmem:[%s11720_s0 + $0x2c0] sm:$0xff]  ;;  %v1768_v41 = vadd.f32 %v1544_v8, %v860_v28 }
 0x205   :  { %v1764_v52 = vadd.f32 %v1540_v48, %v856_v40  ;;  %v1765_v53 = vadd.f32 %v1541_v35, %v857_v44  ;;  %v6829_v13 = vpop.eup %6828  ;;  %v1769_v44 = vadd.f32 %v1545_v29, %v861_v38  ;;  %6334 = vset.pattern.permute.xlu0 %v8287_v0 }
 0x206   :  { %3911 = vmatprep.mubr.bf16.mxu1 %v3476_v49  ;;  %v1215_v59 = vpop.permute.xlu1 %1214  ;;  %v2004_v47 = vadd.f32 %v8627_v21, %v1768_v41  ;;  %1394 = vperm.xlu0 %6334, %v154_v24  }
 0x207   :  { %v2000_v3 = vadd.f32 %v8627_v21, %v1764_v52  ;;  %v2001_v6 = vadd.f32 %v8630_v22, %v1765_v53  ;;  %3912 = vmatmul.mubr.bf16.gmra.mrb[44].mxu1 %v3475_v50  ;;  %v1542_v61 = vmul.f32 %v8602_v9, %v1215_v59  ;;  %v1543_v7 = vmul.f32 %v8605_v10, %v1215_v59 }
 0x208   :  { %6304 = vset.pattern.permute.xlu1 %v8287_v0  ;;  %v6831_v15 = vpop.eup %6830  ;;  %v2800_v18 = vpop.f32.mrb[52].mxu0 }
 0x209   :  { %6842 = vtanh.f32 %v2000_v3  ;;  %v1766_v19 = vadd.f32 %v1542_v61, %v858_v51  ;;  %v1767_v23 = vadd.f32 %v1543_v7, %v859_v55  ;;  %1302 = vperm.xlu1 %6304, %v131_v42   ;;  %v6833_v25 = vpop.eup %6832  ;;  %v2801_v54 = vadd.f32 %v2800_v18, %v9168_v17  ;;  %v2802_v14 = vpop.f32.mrb[53].mxu0 }
 0x20a   :  { %6844 = vtanh.f32 %v2001_v6  ;;  %v2382_v26 = vpack.c.bf16 %v6831_v15, %v6827_v62  ;;  %v2803_v56 = vadd.f32 %v2802_v14, %v9171_v20  ;;  %v2804_v30 = vpop.f32.mrb[54].mxu0  ;;  %v495_v27 = vpop.permute.xlu1 %494  ;;  %v2383_v33 = vpack.c.bf16 %v6833_v25, %v6829_v13  ;;  %6337 = vset.pattern.permute.xlu0 %v8288_v1  ;;  %v8280_v13 = vld [vmem:[%s11720_s0 + $0x2c8] sm:$0xff]  ;;  %v135_v25 = vld [vmem:[%s11720_s0 + $0x2d8] sm:$0xff] }
 0x20b   :  { %v2002_v31 = vadd.f32 %v8627_v21, %v1766_v19  ;;  %v2003_v32 = vadd.f32 %v8630_v22, %v1767_v23  ;;  %v6835_v36 = vpop.eup %6834  ;;  %6846 = vtanh.f32 %v2801_v54  ;;  %v2805_v37 = vadd.f32 %v2804_v30, %v9168_v17  ;;  %v2806_v39 = vpop.f32.mrb[55].mxu0 }
 0x20c   :  { %v6837_v42 = vpop.eup %6836  ;;  %v2807_v43 = vadd.f32 %v2806_v39, %v9171_v20  ;;  %2978 = vmatprep.mubr.bf16.mxu0 %v2383_v33  ;;  %v862_v58 = vmul.f32 %v8608_v11, %v495_v27  ;;  %v863_v35 = vmul.f32 %v8611_v12, %v495_v27  ;;  %v2005_v51 = vadd.f32 %v8630_v22, %v1769_v44  ;;  %v505_v54 = vpop.permute.xlu0 %504 }
 0x20d   :  { %6848 = vtanh.f32 %v2002_v31  ;;  %6305 = vset.pattern.permute.xlu1 %v8288_v1  ;;  %v6839_v40 = vpop.eup %6838  ;;  %2979 = vmatmul.mubr.bf16.gmra.mrb[124].mxu0 %v2382_v26  ;;  %v866_v39 = vmul.f32 %v8608_v11, %v505_v54 }
 0x20e   :  { %6850 = vtanh.f32 %v2003_v32  ;;  %599 = vperm.xlu1 %6305, %v132_v34   ;;  %v6841_v45 = vpop.eup %6840  ;;  %v3477_v60 = vpack.c.bf16 %v6839_v40, %v6835_v36 }
 0x20f   :  { %6852 = vtanh.f32 %v2803_v56  ;;  %v3478_v48 = vpack.c.bf16 %v6841_v45, %v6837_v42 }
 0x210   :  { %6854 = vtanh.f32 %v2805_v37  ;;  %v1223_v46 = vpop.permute.xlu1 %1222  ;;  %v510_v40 = vpop.permute.xlu0 %509 }
 0x211   :  { %6856 = vtanh.f32 %v2807_v43  ;;  %v1546_v49 = vmul.f32 %v8602_v9, %v1223_v46  ;;  %v1547_v50 = vmul.f32 %v8605_v10, %v1223_v46  ;;  %3921 = vmatprep.mubr.bf16.mxu1 %v3478_v48  ;;  %v867_v43 = vmul.f32 %v8611_v12, %v505_v54 }
 0x212   :  { %6306 = vset.pattern.permute.xlu1 %v8287_v0  ;;  %3922 = vmatmul.mubr.bf16.gmra.mrb[48].mxu1 %v3477_v60  ;;  %6858 = vtanh.f32 %v2004_v47 }
 0x213   :  { %v6843_v52 = vpop.eup %6842  ;;  %v1770_v53 = vadd.f32 %v1546_v49, %v862_v58  ;;  %v1771_v55 = vadd.f32 %v1547_v50, %v863_v35  ;;  %1306 = vperm.xlu1 %6306, %v132_v34   ;;  %6860 = vtanh.f32 %v2005_v51  ;;  %v1552_v35 = vmul.f32 %v8602_v9, %v9546_v16 }
 0x214   :  { %v6845_v57 = vpop.eup %6844  ;;  %v868_v49 = vmul.f32 %v8608_v11, %v510_v40  ;;  %v1553_v51 = vmul.f32 %v8605_v10, %v9546_v16 }
 0x215   :  { %v2006_v59 = vadd.f32 %v8627_v21, %v1770_v53  ;;  %v2007_v62 = vadd.f32 %v8630_v22, %v1771_v55  ;;  %v500_v3 = vpop.permute.xlu1 %499  ;;  %v6847_v6 = vpop.eup %6846 }
 0x216   :  { %v2810_v7 = vpop.f32.mrb[56].mxu0  ;;  %v864_v26 = vmul.f32 %v8608_v11, %v500_v3  ;;  %v865_v29 = vmul.f32 %v8611_v12, %v500_v3 }
 0x217   :  { %v6849_v61 = vpop.eup %6848  ;;  %6862 = vtanh.f32 %v2006_v59  ;;  %1310 = vperm.xlu1 %6306, %v8280_v13   ;;  %v2811_v8 = vadd.f32 %v2810_v7, %v9168_v17  ;;  %v2812_v15 = vpop.f32.mrb[57].mxu0 }
 0x218   :  { %v6851_v28 = vpop.eup %6850  ;;  %6864 = vtanh.f32 %v2007_v62  ;;  %v2384_v19 = vpack.c.bf16 %v6849_v61, %v6843_v52  ;;  %v2813_v18 = vadd.f32 %v2812_v15, %v9171_v20  ;;  %v2814_v38 = vpop.f32.mrb[58].mxu0  ;;  %v136_v15 = vld [vmem:[%s11720_s0 + $0x2e0] sm:$0xff] }
 0x219   :  { %v6853_v23 = vpop.eup %6852  ;;  %v2385_v24 = vpack.c.bf16 %v6851_v28, %v6845_v57  ;;  %6866 = vtanh.f32 %v2811_v8  ;;  %v2815_v31 = vadd.f32 %v2814_v38, %v9168_v17  ;;  %v2816_v32 = vpop.f32.mrb[59].mxu0  ;;  %v1776_v38 = vadd.f32 %v1552_v35, %v868_v49 }
 0x21a   :  { %v6855_v14 = vpop.eup %6854  ;;  %v1227_v56 = vpop.permute.xlu1 %1226  ;;  %6868 = vtanh.f32 %v2813_v18  ;;  %v2817_v27 = vadd.f32 %v2816_v32, %v9171_v20 }
 0x21b   :  { %v6857_v30 = vpop.eup %6856  ;;  %v1548_v33 = vmul.f32 %v8602_v9, %v1227_v56  ;;  %v1549_v34 = vmul.f32 %v8605_v10, %v1227_v56  ;;  %2988 = vmatprep.mubr.bf16.mxu0 %v2385_v24  ;;  %6307 = vset.pattern.permute.xlu1 %v8288_v1  ;;  %6870 = vtanh.f32 %v2815_v31  ;;  %v3479_v37 = vpack.c.bf16 %v6855_v14, %v6847_v6 }
 0x21c   :  { %2989 = vmatmul.mubr.bf16.gmra.mrb[128].mxu0 %v2384_v19  ;;  %v3480_v36 = vpack.c.bf16 %v6857_v30, %v6853_v23  ;;  %614 = vperm.xlu1 %6307, %v135_v25   ;;  %6872 = vtanh.f32 %v2817_v27  ;;  %v6859_v45 = vpop.eup %6858  ;;  %v869_v6 = vmul.f32 %v8611_v12, %v510_v40  ;;  %v2012_v56 = vadd.f32 %v8627_v21, %v1776_v38 }
 0x21d   :  { %v1772_v41 = vadd.f32 %v1548_v33, %v864_v26  ;;  %v1773_v42 = vadd.f32 %v1549_v34, %v865_v29  ;;  %v6861_v48 = vpop.eup %6860 }
 0x21e   :  { %3931 = vmatprep.mubr.bf16.mxu1 %v3480_v36  ;;  %v1231_v44 = vpop.permute.xlu1 %1230  ;;  %v1777_v14 = vadd.f32 %v1553_v51, %v869_v6  ;;  %v525_v36 = vpop.permute.xlu0 %524 }
 0x21f   :  { %v2008_v60 = vadd.f32 %v8627_v21, %v1772_v41  ;;  %v2009_v58 = vadd.f32 %v8630_v22, %v1773_v42  ;;  %3932 = vmatmul.mubr.bf16.gmra.mrb[52].mxu1 %v3479_v37  ;;  %v1550_v46 = vmul.f32 %v8602_v9, %v1231_v44  ;;  %v1551_v47 = vmul.f32 %v8605_v10, %v1231_v44 }
 0x220   :  { %6309 = vset.pattern.permute.xlu1 %v8287_v0  ;;  %v2820_v55 = vpop.f32.mrb[60].mxu0  ;;  %v2013_v37 = vadd.f32 %v8630_v22, %v1777_v14  ;;  %v874_v38 = vmul.f32 %v8608_v11, %v525_v36 }
 0x221   :  { %v6863_v50 = vpop.eup %6862  ;;  %6874 = vtanh.f32 %v2008_v60  ;;  %v1774_v52 = vadd.f32 %v1550_v46, %v866_v39  ;;  %v1775_v53 = vadd.f32 %v1551_v47, %v867_v43  ;;  %1318 = vperm.xlu1 %6309, %v135_v25   ;;  %v2821_v59 = vadd.f32 %v2820_v55, %v9168_v17  ;;  %v2822_v62 = vpop.f32.mrb[61].mxu0 }
 0x222   :  { %v6865_v57 = vpop.eup %6864  ;;  %6876 = vtanh.f32 %v2009_v58  ;;  %v2386_v3 = vpack.c.bf16 %v6863_v50, %v6859_v45  ;;  %v2823_v13 = vadd.f32 %v2822_v62, %v9171_v20  ;;  %v2824_v28 = vpop.f32.mrb[62].mxu0 }
 0x223   :  { %v2010_v61 = vadd.f32 %v8627_v21, %v1774_v52  ;;  %v2011_v7 = vadd.f32 %v8630_v22, %v1775_v53  ;;  %v515_v16 = vpop.permute.xlu1 %514  ;;  %v2387_v8 = vpack.c.bf16 %v6865_v57, %v6861_v48  ;;  %v6867_v19 = vpop.eup %6866  ;;  %6878 = vtanh.f32 %v2821_v59  ;;  %v8281_v48 = vld [vmem:[%s11720_s0 + $0x2e8] sm:$0xff]  ;;  %v139_v59 = vld [vmem:[%s11720_s0 + $0x2f8] sm:$0xff] }
 0x224   :  { %v2825_v23 = vadd.f32 %v2824_v28, %v9168_v17  ;;  %v2826_v18 = vpop.f32.mrb[63].mxu0  ;;  %v6869_v24 = vpop.eup %6868  ;;  %v870_v31 = vmul.f32 %v8608_v11, %v515_v16  ;;  %v871_v27 = vmul.f32 %v8611_v12, %v515_v16 }
 0x225   :  { %6880 = vtanh.f32 %v2010_v61  ;;  %v2827_v25 = vadd.f32 %v2826_v18, %v9171_v20  ;;  %2998 = vmatprep.mubr.bf16.mxu0 %v2387_v8  ;;  %6310 = vset.pattern.permute.xlu1 %v8288_v1  ;;  %v6871_v54 = vpop.eup %6870  ;;  %v530_v60 = vpop.permute.xlu0 %529 }
 0x226   :  { %6882 = vtanh.f32 %v2011_v7  ;;  %2999 = vmatmul.mubr.bf16.gmra.mrb[132].mxu0 %v2386_v3  ;;  %619 = vperm.xlu1 %6310, %v136_v15   ;;  %v6873_v26 = vpop.eup %6872  ;;  %v3481_v29 = vpack.c.bf16 %v6871_v54, %v6867_v19  ;;  %v875_v54 = vmul.f32 %v8611_v12, %v525_v36 }
 0x227   :  { %6884 = vtanh.f32 %v2823_v13  ;;  %v3482_v30 = vpack.c.bf16 %v6873_v26, %v6869_v24 }
 0x228   :  { %6886 = vtanh.f32 %v2825_v23  ;;  %v1239_v32 = vpop.permute.xlu1 %1238 }
 0x229   :  { %6888 = vtanh.f32 %v2827_v25  ;;  %v1554_v33 = vmul.f32 %v8602_v9, %v1239_v32  ;;  %v1555_v34 = vmul.f32 %v8605_v10, %v1239_v32  ;;  %3941 = vmatprep.mubr.bf16.mxu1 %v3482_v30  ;;  %v1251_v19 = vpop.permute.xlu0 %1250 }
 0x22a   :  { %6311 = vset.pattern.permute.xlu1 %v8287_v0  ;;  %3942 = vmatmul.mubr.bf16.gmra.mrb[56].mxu1 %v3481_v29  ;;  %6890 = vtanh.f32 %v2012_v56 }
 0x22b   :  { %v6875_v39 = vpop.eup %6874  ;;  %v1778_v41 = vadd.f32 %v1554_v33, %v870_v31  ;;  %v1779_v42 = vadd.f32 %v1555_v34, %v871_v27  ;;  %1322 = vperm.xlu1 %6311, %v136_v15   ;;  %6892 = vtanh.f32 %v2013_v37  ;;  %v876_v33 = vmul.f32 %v8608_v11, %v530_v60 }
 0x22c   :  { %v6877_v43 = vpop.eup %6876  ;;  %v1560_v34 = vmul.f32 %v8602_v9, %v1251_v19 }
 0x22d   :  { %v2014_v40 = vadd.f32 %v8627_v21, %v1778_v41  ;;  %v2015_v44 = vadd.f32 %v8630_v22, %v1779_v42  ;;  %v520_v45 = vpop.permute.xlu1 %519  ;;  %v6879_v58 = vpop.eup %6878  ;;  %v877_v42 = vmul.f32 %v8611_v12, %v530_v60 }
 0x22e   :  { %v2830_v47 = vpop.f32.mrb[64].mxu0  ;;  %v872_v3 = vmul.f32 %v8608_v11, %v520_v45  ;;  %v873_v6 = vmul.f32 %v8611_v12, %v520_v45  ;;  %v9619_v30 = vpop.permute.xlu0 %1266 }
 0x22f   :  { %v6881_v46 = vpop.eup %6880  ;;  %6894 = vtanh.f32 %v2014_v40  ;;  %1326 = vperm.xlu1 %6311, %v8281_v48   ;;  %v2831_v49 = vadd.f32 %v2830_v47, %v9168_v17  ;;  %v2832_v50 = vpop.f32.mrb[65].mxu0  ;;  %v6434_v47 = vld [vmem:[%s11727_s8] ss:$8 sps:$4 sm:$0xff]  }
 0x230   :  { %v6883_v35 = vpop.eup %6882  ;;  %6896 = vtanh.f32 %v2015_v44  ;;  %v2388_v51 = vpack.c.bf16 %v6881_v46, %v6875_v39  ;;  %v2833_v53 = vadd.f32 %v2832_v50, %v9171_v20  ;;  %v2834_v55 = vpop.f32.mrb[66].mxu0  ;;  %v1561_v46 = vmul.f32 %v8605_v10, %v1251_v19 }
 0x231   :  { %v6885_v52 = vpop.eup %6884  ;;  %v2389_v57 = vpack.c.bf16 %v6883_v35, %v6877_v43  ;;  %6898 = vtanh.f32 %v2831_v49  ;;  %v2835_v61 = vadd.f32 %v2834_v55, %v9168_v17  ;;  %v2836_v7 = vpop.f32.mrb[67].mxu0  ;;  %v140_v43 = vld [vmem:[%s11720_s0 + $0x300] sm:$0xff] }
 0x232   :  { %v6887_v62 = vpop.eup %6886  ;;  %v1243_v13 = vpop.permute.xlu1 %1242  ;;  %6900 = vtanh.f32 %v2833_v53  ;;  %v2837_v16 = vadd.f32 %v2836_v7, %v9171_v20  ;;  %v1785_v7 = vadd.f32 %v1561_v46, %v877_v42  ;;  %v1569_v42 = vmul.f32 %v8605_v10, %v9619_v30 }
 0x233   :  { %v6889_v28 = vpop.eup %6888  ;;  %v1556_v8 = vmul.f32 %v8602_v9, %v1243_v13  ;;  %v1557_v15 = vmul.f32 %v8605_v10, %v1243_v13  ;;  %3008 = vmatprep.mubr.bf16.mxu0 %v2389_v57  ;;  %6312 = vset.pattern.permute.xlu1 %v8288_v1  ;;  %6902 = vtanh.f32 %v2835_v61  ;;  %v3483_v18 = vpack.c.bf16 %v6887_v62, %v6879_v58 }
 0x234   :  { %3009 = vmatmul.mubr.bf16.gmra.mrb[136].mxu0 %v2388_v51  ;;  %v3484_v23 = vpack.c.bf16 %v6889_v28, %v6885_v52  ;;  %634 = vperm.xlu1 %6312, %v139_v59   ;;  %6904 = vtanh.f32 %v2837_v16  ;;  %v6891_v26 = vpop.eup %6890  ;;  %v6436_v52 = vld [vmem:[%s11727_s8 + $0x4] ss:$8 sps:$4 sm:$0xff]  }
 0x235   :  { %v1780_v24 = vadd.f32 %v1556_v8, %v872_v3  ;;  %v1781_v25 = vadd.f32 %v1557_v15, %v873_v6  ;;  %v6893_v27 = vpop.eup %6892  ;;  %v9642_v6 = vpop.permute.xlu0 %544  ;;  %4902 = vmatprep.subr.bf16.mxu0 %v6436_v52 }
 0x236   :  { %3951 = vmatprep.mubr.bf16.mxu1 %v3484_v23  ;;  %v1247_v14 = vpop.permute.xlu1 %1246  ;;  %4903 = vmatpush1.bf16.msra.mxu0 %v6434_v47 }
 0x237   :  { %v2016_v29 = vadd.f32 %v8627_v21, %v1780_v24  ;;  %v2017_v31 = vadd.f32 %v8630_v22, %v1781_v25  ;;  %3952 = vmatmul.mubr.bf16.gmra.mrb[60].mxu1 %v3483_v18  ;;  %v1558_v32 = vmul.f32 %v8602_v9, %v1247_v14  ;;  %v1559_v56 = vmul.f32 %v8605_v10, %v1247_v14 }
 0x238   :  { %6314 = vset.pattern.permute.xlu1 %v8287_v0  ;;  %v2840_v41 = vpop.f32.mrb[68].mxu0  ;;  %v2021_v25 = vadd.f32 %v8630_v22, %v1785_v7 }
 0x239   :  { %v6895_v36 = vpop.eup %6894  ;;  %6906 = vtanh.f32 %v2016_v29  ;;  %v1782_v37 = vadd.f32 %v1558_v32, %v874_v38  ;;  %v1783_v39 = vadd.f32 %v1559_v56, %v875_v54  ;;  %1334 = vperm.xlu1 %6314, %v139_v59   ;;  %v2841_v44 = vadd.f32 %v2840_v41, %v9168_v17  ;;  %v2842_v45 = vpop.f32.mrb[69].mxu0  ;;  %v8282_v41 = vld [vmem:[%s11720_s0 + $0x308] sm:$0xff] }
 0x23a   :  { %v6897_v40 = vpop.eup %6896  ;;  %6908 = vtanh.f32 %v2017_v31  ;;  %v2390_v58 = vpack.c.bf16 %v6895_v36, %v6891_v26  ;;  %v2843_v35 = vadd.f32 %v2842_v45, %v9171_v20  ;;  %v2844_v49 = vpop.f32.mrb[70].mxu0  ;;  %v1784_v59 = vadd.f32 %v1560_v34, %v876_v33 }
 0x23b   :  { %v2018_v48 = vadd.f32 %v8627_v21, %v1782_v37  ;;  %v2019_v60 = vadd.f32 %v8630_v22, %v1783_v39  ;;  %v535_v50 = vpop.permute.xlu1 %534  ;;  %v2391_v51 = vpack.c.bf16 %v6897_v40, %v6893_v27  ;;  %v6899_v53 = vpop.eup %6898  ;;  %6910 = vtanh.f32 %v2841_v44 }
 0x23c   :  { %v2845_v55 = vadd.f32 %v2844_v49, %v9168_v17  ;;  %v2846_v57 = vpop.f32.mrb[71].mxu0  ;;  %v6901_v62 = vpop.eup %6900  ;;  %v878_v16 = vmul.f32 %v8608_v11, %v535_v50  ;;  %v2020_v15 = vadd.f32 %v8627_v21, %v1784_v59  ;;  %v879_v23 = vmul.f32 %v8611_v12, %v535_v50 }
 0x23d   :  { %6912 = vtanh.f32 %v2018_v48  ;;  %v2847_v3 = vadd.f32 %v2846_v57, %v9171_v20  ;;  %3018 = vmatprep.mubr.bf16.mxu0 %v2391_v51  ;;  %6315 = vset.pattern.permute.xlu1 %v8288_v1  ;;  %v6903_v61 = vpop.eup %6902  ;;  %v550_v24 = vpop.permute.xlu0 %549  ;;  %v1568_v31 = vmul.f32 %v8602_v9, %v9619_v30  ;;  %v882_v49 = vmul.f32 %v8608_v11, %v9642_v6 }
 0x23e   :  { %6914 = vtanh.f32 %v2019_v60  ;;  %3019 = vmatmul.mubr.bf16.gmra.mrb[140].mxu0 %v2390_v58  ;;  %639 = vperm.xlu1 %6315, %v140_v43   ;;  %v6905_v13 = vpop.eup %6904  ;;  %v3485_v28 = vpack.c.bf16 %v6903_v61, %v6899_v53  ;;  %v884_v32 = vmul.f32 %v8608_v11, %v550_v24  ;;  %v885_v30 = vmul.f32 %v8611_v12, %v550_v24 }
 0x23f   :  { %6916 = vtanh.f32 %v2843_v35  ;;  %v3486_v19 = vpack.c.bf16 %v6905_v13, %v6901_v62  ;;  %v143_v35 = vld [vmem:[%s11720_s0 + $0x318] sm:$0xff] }
 0x240   :  { %6918 = vtanh.f32 %v2845_v55  ;;  %v1255_v8 = vpop.permute.xlu1 %1254  ;;  %v1792_v58 = vadd.f32 %v1568_v31, %v884_v32 }
 0x241   :  { %6920 = vtanh.f32 %v2847_v3  ;;  %v1562_v18 = vmul.f32 %v8602_v9, %v1255_v8  ;;  %v1563_v38 = vmul.f32 %v8605_v10, %v1255_v8  ;;  %3961 = vmatprep.mubr.bf16.mxu1 %v3486_v19  ;;  %v9656_v34 = vpop.permute.xlu0 %564  ;;  %v883_v19 = vmul.f32 %v8611_v12, %v9642_v6 }
 0x242   :  { %6316 = vset.pattern.permute.xlu1 %v8287_v0  ;;  %3962 = vmatmul.mubr.bf16.gmra.mrb[64].mxu1 %v3485_v28  ;;  %6922 = vtanh.f32 %v2020_v15 }
 0x243   :  { %v6907_v54 = vpop.eup %6906  ;;  %v1786_v14 = vadd.f32 %v1562_v18, %v878_v16  ;;  %v1787_v26 = vadd.f32 %v1563_v38, %v879_v23  ;;  %1338 = vperm.xlu1 %6316, %v140_v43   ;;  %6924 = vtanh.f32 %v2021_v25  ;;  %v2028_v16 = vadd.f32 %v8627_v21, %v1792_v58 }
 0x244   :  { %v6909_v29 = vpop.eup %6908 }
 0x245   :  { %v2022_v56 = vadd.f32 %v8627_v21, %v1786_v14  ;;  %v2023_v27 = vadd.f32 %v8630_v22, %v1787_v26  ;;  %v540_v33 = vpop.permute.xlu1 %539  ;;  %v6911_v36 = vpop.eup %6910 }
 0x246   :  { %v2850_v39 = vpop.f32.mrb[72].mxu0  ;;  %v9671_v50 = vpop.permute.xlu0 %569  ;;  %v880_v52 = vmul.f32 %v8608_v11, %v540_v33  ;;  %v881_v53 = vmul.f32 %v8611_v12, %v540_v33 }
 0x247   :  { %v6913_v37 = vpop.eup %6912  ;;  %6926 = vtanh.f32 %v2022_v56  ;;  %1342 = vperm.xlu1 %6316, %v8282_v41   ;;  %v2851_v40 = vadd.f32 %v2850_v39, %v9168_v17  ;;  %v2852_v44 = vpop.f32.mrb[73].mxu0  ;;  %v3597_v41 = vld [vmem:[%s11728_s7] sm:$0x3] }
 0x248   :  { %v6915_v43 = vpop.eup %6914  ;;  %6928 = vtanh.f32 %v2023_v27  ;;  %v2392_v45 = vpack.c.bf16 %v6913_v37, %v6907_v54  ;;  %v2853_v47 = vadd.f32 %v2852_v44, %v9171_v20  ;;  %v2854_v48 = vpop.f32.mrb[74].mxu0  ;;  %v892_v27 = vmul.f32 %v8608_v11, %v9671_v50 }
 0x249   :  { %v6917_v46 = vpop.eup %6916  ;;  %v2393_v60 = vpack.c.bf16 %v6915_v43, %v6909_v29  ;;  %6930 = vtanh.f32 %v2851_v40  ;;  %v2855_v55 = vadd.f32 %v2854_v48, %v9168_v17  ;;  %v2856_v57 = vpop.f32.mrb[75].mxu0  ;;  %v1793_v29 = vadd.f32 %v1569_v42, %v885_v30 }
 0x24a   :  { %v6919_v51 = vpop.eup %6918  ;;  %v1259_v59 = vpop.permute.xlu1 %1258  ;;  %6932 = vtanh.f32 %v2853_v47  ;;  %v2857_v3 = vadd.f32 %v2856_v57, %v9171_v20  ;;  %v144_v47 = vld [vmem:[%s11720_s0 + $0x320] sm:$0xff]  ;;  %v893_v57 = vmul.f32 %v8611_v12, %v9671_v50 }
 0x24b   :  { %v6921_v62 = vpop.eup %6920  ;;  %v1564_v61 = vmul.f32 %v8602_v9, %v1259_v59  ;;  %v1565_v7 = vmul.f32 %v8605_v10, %v1259_v59  ;;  %3028 = vmatprep.mubr.bf16.mxu0 %v2393_v60  ;;  %6317 = vset.pattern.permute.xlu1 %v8288_v1  ;;  %6934 = vtanh.f32 %v2855_v55  ;;  %v3487_v28 = vpack.c.bf16 %v6919_v51, %v6911_v36  ;;  %v1283_v14 = vpop.permute.xlu0 %1282 }
 0x24c   :  { %3029 = vmatmul.mubr.bf16.gmra.mrb[144].mxu0 %v2392_v45  ;;  %v3488_v13 = vpack.c.bf16 %v6921_v62, %v6917_v46  ;;  %654 = vperm.xlu1 %6317, %v143_v35   ;;  %6936 = vtanh.f32 %v2857_v3  ;;  %v6923_v18 = vpop.eup %6922  ;;  %v1576_v42 = vmul.f32 %v8602_v9, %v1283_v14  ;;  %v9705_v51 = vrot.slane %v3597_v41, %v8588_v5 }
 0x24d   :  { %v1788_v8 = vadd.f32 %v1564_v61, %v880_v52  ;;  %v1789_v15 = vadd.f32 %v1565_v7, %v881_v53  ;;  %v6925_v26 = vpop.eup %6924  ;;  %6938 = vtanh.f32 %v2028_v16  ;;  %v9708_v53 = vrot.slane %v3597_v41, %v8585_v4 }
 0x24e   :  { %3971 = vmatprep.mubr.bf16.mxu1 %v3488_v13  ;;  %v1263_v23 = vpop.permute.xlu1 %1262  ;;  %v2029_v55 = vadd.f32 %v8630_v22, %v1793_v29  ;;  %v1577_v61 = vmul.f32 %v8605_v10, %v1283_v14  ;;  %v1800_v7 = vadd.f32 %v1576_v42, %v892_v27 }
 0x24f   :  { %v2024_v38 = vadd.f32 %v8627_v21, %v1788_v8  ;;  %v2025_v24 = vadd.f32 %v8630_v22, %v1789_v15  ;;  %3972 = vmatmul.mubr.bf16.gmra.mrb[68].mxu1 %v3487_v28  ;;  %v1566_v25 = vmul.f32 %v8602_v9, %v1263_v23  ;;  %v1567_v54 = vmul.f32 %v8605_v10, %v1263_v23 }
 0x250   :  { %6319 = vset.pattern.permute.xlu1 %v8287_v0  ;;  %v2860_v56 = vpop.f32.mrb[76].mxu0 }
 0x251   :  { %v6927_v31 = vpop.eup %6926  ;;  %6940 = vtanh.f32 %v2024_v38  ;;  %v1790_v6 = vadd.f32 %v1566_v25, %v882_v49  ;;  %v1791_v32 = vadd.f32 %v1567_v54, %v883_v19  ;;  %1350 = vperm.xlu1 %6319, %v143_v35   ;;  %v2861_v36 = vadd.f32 %v2860_v56, %v9168_v17  ;;  %v2862_v37 = vpop.f32.mrb[77].mxu0 }
 0x252   :  { %v6929_v33 = vpop.eup %6928  ;;  %6942 = vtanh.f32 %v2025_v24  ;;  %v2394_v39 = vpack.c.bf16 %v6927_v31, %v6923_v18  ;;  %v2863_v44 = vadd.f32 %v2862_v37, %v9171_v20  ;;  %v2864_v45 = vpop.f32.mrb[78].mxu0 }
 0x253   :  { %v2026_v43 = vadd.f32 %v8627_v21, %v1790_v6  ;;  %v2027_v40 = vadd.f32 %v8630_v22, %v1791_v32  ;;  %v555_v58 = vpop.permute.xlu1 %554  ;;  %v2395_v46 = vpack.c.bf16 %v6929_v33, %v6925_v26  ;;  %v6931_v48 = vpop.eup %6930  ;;  %6944 = vtanh.f32 %v2861_v36 }
 0x254   :  { %v2865_v60 = vadd.f32 %v2864_v45, %v9168_v17  ;;  %v2866_v35 = vpop.f32.mrb[79].mxu0  ;;  %v6933_v49 = vpop.eup %6932  ;;  %v886_v13 = vmul.f32 %v8608_v11, %v555_v58  ;;  %v887_v28 = vmul.f32 %v8611_v12, %v555_v58  ;;  %v1801_v32 = vadd.f32 %v1577_v61, %v893_v57 }
 0x255   :  { %6946 = vtanh.f32 %v2026_v43  ;;  %v2867_v30 = vadd.f32 %v2866_v35, %v9171_v20  ;;  %3038 = vmatprep.mubr.bf16.mxu0 %v2395_v46  ;;  %6320 = vset.pattern.permute.xlu1 %v8288_v1  ;;  %v6935_v52 = vpop.eup %6934  ;;  %v2036_v36 = vadd.f32 %v8627_v21, %v1800_v7  ;;  %v8283_v43 = vld [vmem:[%s11720_s0 + $0x328] sm:$0xff] }
 0x256   :  { %6948 = vtanh.f32 %v2027_v40  ;;  %3039 = vmatmul.mubr.bf16.gmra.mrb[148].mxu0 %v2394_v39  ;;  %659 = vperm.xlu1 %6320, %v144_v47   ;;  %v6937_v59 = vpop.eup %6936  ;;  %v3803_v62 = vpop.f32.mrb[0].mxu1  ;;  %v3489_v3 = vpack.c.bf16 %v6935_v52, %v6931_v48  ;;  %v6437_v40 = vld [vmem:[%s11727_s8 + $0x10] ss:$8 sps:$4 sm:$0xff]   ;;  %v2037_v52 = vadd.f32 %v8630_v22, %v1801_v32 }
 0x257   :  { %6950 = vtanh.f32 %v2863_v44  ;;  %v3805_v16 = vpop.f32.mrb[1].mxu1  ;;  %v3490_v15 = vpack.c.bf16 %v6937_v59, %v6933_v49  ;;  %v9719_v38 = vpop.eup %6938  ;;  %v3804_v24 = vadd.f32 %v3803_v62, %v9708_v53  ;;  %v6439_v44 = vld [vmem:[%s11727_s8 + $0x14] ss:$8 sps:$4 sm:$0xff]  }
 0x258   :  { %6952 = vtanh.f32 %v2865_v60  ;;  %v1271_v8 = vpop.permute.xlu1 %1270  ;;  %v3806_v19 = vadd.f32 %v3805_v16, %v9705_v51  ;;  %v3807_v23 = vpop.f32.mrb[2].mxu1  ;;  %4904 = vmatprep.subr.bf16.mxu0 %v6439_v44 }
 0x259   :  { %6954 = vtanh.f32 %v2867_v30  ;;  %v1570_v50 = vmul.f32 %v8602_v9, %v1271_v8  ;;  %v1571_v18 = vmul.f32 %v8605_v10, %v1271_v8  ;;  %v3808_v25 = vadd.f32 %v3807_v23, %v9708_v53  ;;  %v3809_v54 = vpop.f32.mrb[3].mxu1  ;;  %3981 = vmatprep.mubr.bf16.mxu1 %v3490_v15  ;;  %v9730_v39 = vpop.permute.xlu0 %1298  ;;  %v147_v30 = vld [vmem:[%s11720_s0 + $0x338] sm:$0xff]  ;;  %4905 = vmatpush1.bf16.msra.mxu0 %v6437_v40 }
 0x25a   :  { %6956 = vtanh.f32 %v2029_v55  ;;  %6321 = vset.pattern.permute.xlu1 %v8287_v0  ;;  %v3810_v31 = vadd.f32 %v3809_v54, %v9705_v51  ;;  %3982 = vmatmul.mubr.bf16.gmra.mrb[72].mxu1 %v3489_v3 }
 0x25b   :  { %v6941_v14 = vpop.eup %6940  ;;  %6958 = vtanh.f32 %v3806_v19  ;;  %v1794_v26 = vadd.f32 %v1570_v50, %v886_v13  ;;  %v1795_v29 = vadd.f32 %v1571_v18, %v887_v28  ;;  %1354 = vperm.xlu1 %6321, %v144_v47  }
 0x25c   :  { %v6943_v6 = vpop.eup %6942  ;;  %6960 = vtanh.f32 %v3808_v25 }
 0x25d   :  { %v2030_v56 = vadd.f32 %v8627_v21, %v1794_v26  ;;  %v2031_v27 = vadd.f32 %v8630_v22, %v1795_v29  ;;  %6962 = vtanh.f32 %v3810_v31  ;;  %v560_v33 = vpop.permute.xlu1 %559  ;;  %v9728_v37 = vpop.eup %6944 }
 0x25e   :  { %6964 = vtanh.f32 %v3804_v24  ;;  %v2870_v42 = vpop.f32.mrb[80].mxu0  ;;  %v888_v57 = vmul.f32 %v8608_v11, %v560_v33  ;;  %v889_v59 = vmul.f32 %v8611_v12, %v560_v33  ;;  %v9758_v24 = vpop.permute.xlu0 %584  ;;  %v891_v33 = vmul.f32 %v8611_v12, %v9656_v34 }
 0x25f   :  { %v6947_v41 = vpop.eup %6946  ;;  %6966 = vtanh.f32 %v2030_v56  ;;  %1358 = vperm.xlu1 %6321, %v8283_v43   ;;  %v2871_v58 = vadd.f32 %v2870_v42, %v9168_v17  ;;  %v2872_v46 = vpop.f32.mrb[81].mxu0 }
 0x260   :  { %v6949_v45 = vpop.eup %6948  ;;  %6968 = vtanh.f32 %v2031_v27  ;;  %v2396_v47 = vpack.c.bf16 %v6947_v41, %v6941_v14  ;;  %v2873_v60 = vadd.f32 %v2872_v46, %v9171_v20  ;;  %v2874_v35 = vpop.f32.mrb[82].mxu0  ;;  %v890_v27 = vmul.f32 %v8608_v11, %v9656_v34 }
 0x261   :  { %v6951_v48 = vpop.eup %6950  ;;  %v2397_v49 = vpack.c.bf16 %v6949_v45, %v6943_v6  ;;  %6970 = vtanh.f32 %v2036_v36  ;;  %v2875_v62 = vadd.f32 %v2874_v35, %v9168_v17  ;;  %v2876_v3 = vpop.f32.mrb[83].mxu0 }
 0x262   :  { %v6953_v55 = vpop.eup %6952  ;;  %6972 = vtanh.f32 %v2871_v58  ;;  %v1275_v61 = vpop.permute.xlu1 %1274  ;;  %v2877_v28 = vadd.f32 %v2876_v3, %v9171_v20 }
 0x263   :  { %v6955_v7 = vpop.eup %6954  ;;  %v3813_v13 = vpop.f32.mrb[4].mxu1  ;;  %6974 = vtanh.f32 %v2873_v60  ;;  %v1572_v16 = vmul.f32 %v8602_v9, %v1275_v61  ;;  %v1573_v8 = vmul.f32 %v8605_v10, %v1275_v61  ;;  %3048 = vmatprep.mubr.bf16.mxu0 %v2397_v49  ;;  %6322 = vset.pattern.permute.xlu1 %v8288_v1  ;;  %v3491_v18 = vpack.c.bf16 %v6953_v55, %v9728_v37  ;;  %v148_v61 = vld [vmem:[%s11720_s0 + $0x340] sm:$0xff] }
 0x264   :  { %v9754_v15 = vpop.eup %6956  ;;  %v3814_v19 = vadd.f32 %v3813_v13, %v9708_v53  ;;  %6976 = vtanh.f32 %v2875_v62  ;;  %v3815_v23 = vpop.f32.mrb[5].mxu1  ;;  %3049 = vmatmul.mubr.bf16.gmra.mrb[152].mxu0 %v2396_v47  ;;  %v3492_v50 = vpack.c.bf16 %v6955_v7, %v6951_v48  ;;  %674 = vperm.xlu1 %6322, %v147_v30   ;;  %v1584_v47 = vmul.f32 %v8602_v9, %v9730_v39 }
 0x265   :  { %v9760_v25 = vpop.eup %6958  ;;  %v3816_v54 = vadd.f32 %v3815_v23, %v9705_v51  ;;  %6978 = vtanh.f32 %v2877_v28  ;;  %v3817_v14 = vpop.f32.mrb[6].mxu1  ;;  %v1796_v26 = vadd.f32 %v1572_v16, %v888_v57  ;;  %v1797_v29 = vadd.f32 %v1573_v8, %v889_v59 }
 0x266   :  { %v9763_v31 = vpop.eup %6960  ;;  %v3818_v6 = vadd.f32 %v3817_v14, %v9708_v53  ;;  %v3819_v32 = vpop.f32.mrb[7].mxu1  ;;  %3991 = vmatprep.mubr.bf16.mxu1 %v3492_v50  ;;  %6980 = vtanh.f32 %v2037_v52 }
 0x267   :  { %v1279_v56 = vpop.permute.xlu1 %1278  ;;  %v9770_v36 = vpop.eup %6962  ;;  %6982 = vtanh.f32 %v3814_v19  ;;  %v2032_v37 = vadd.f32 %v8627_v21, %v1796_v26  ;;  %v2033_v41 = vadd.f32 %v8630_v22, %v1797_v29  ;;  %v3820_v42 = vadd.f32 %v3819_v32, %v9705_v51  ;;  %3992 = vmatmul.mubr.bf16.gmra.mrb[76].mxu1 %v3491_v18 }
 0x268   :  { %v9775_v43 = vpop.eup %6964  ;;  %6984 = vtanh.f32 %v3818_v6  ;;  %v1574_v40 = vmul.f32 %v8602_v9, %v1279_v56  ;;  %v1575_v44 = vmul.f32 %v8605_v10, %v1279_v56  ;;  %6324 = vset.pattern.permute.xlu1 %v8287_v0  ;;  %v9780_v34 = vpop.permute.xlu0 %589 }
 0x269   :  { %v6967_v58 = vpop.eup %6966  ;;  %6986 = vtanh.f32 %v3816_v54  ;;  %v2880_v46 = vpop.f32.mrb[84].mxu0  ;;  %1366 = vperm.xlu1 %6324, %v147_v30   ;;  %v900_v7 = vmul.f32 %v8608_v11, %v9780_v34 }
 0x26a   :  { %v6969_v60 = vpop.eup %6968  ;;  %6988 = vtanh.f32 %v2032_v37  ;;  %v1798_v35 = vadd.f32 %v1574_v40, %v890_v27  ;;  %v1799_v49 = vadd.f32 %v1575_v44, %v891_v33  ;;  %v2881_v52 = vadd.f32 %v2880_v46, %v9168_v17  ;;  %v2882_v55 = vpop.f32.mrb[85].mxu0 }
 0x26b   :  { %v9789_v57 = vpop.eup %6970  ;;  %6990 = vtanh.f32 %v3820_v42  ;;  %v2884_v59 = vpop.f32.mrb[86].mxu0  ;;  %v2399_v30 = vpack.c.bf16 %v6969_v60, %v9754_v15  ;;  %v2398_v3 = vpack.c.bf16 %v6967_v58, %v9719_v38  ;;  %v2883_v50 = vadd.f32 %v2882_v55, %v9171_v20 }
 0x26c   :  { %v575_v62 = vpop.permute.xlu1 %574  ;;  %v6973_v13 = vpop.eup %6972  ;;  %6992 = vtanh.f32 %v2033_v41  ;;  %v2034_v28 = vadd.f32 %v8627_v21, %v1798_v35  ;;  %v2035_v16 = vadd.f32 %v8630_v22, %v1799_v49  ;;  %v2885_v8 = vadd.f32 %v2884_v59, %v9168_v17 }
 0x26d   :  { %v2886_v19 = vpop.f32.mrb[87].mxu0  ;;  %v6975_v23 = vpop.eup %6974  ;;  %6994 = vtanh.f32 %v2881_v52  ;;  %3058 = vmatprep.mubr.bf16.mxu0 %v2399_v30  ;;  %6325 = vset.pattern.permute.xlu1 %v8288_v1  ;;  %v1808_v6 = vadd.f32 %v1584_v47, %v900_v7  ;;  %v894_v56 = vmul.f32 %v8608_v11, %v575_v62  ;;  %v895_v27 = vmul.f32 %v8611_v12, %v575_v62 }
 0x26e   :  { %v2887_v38 = vadd.f32 %v2886_v19, %v9171_v20  ;;  %v6977_v15 = vpop.eup %6976  ;;  %6996 = vtanh.f32 %v2034_v28  ;;  %3059 = vmatmul.mubr.bf16.gmra.mrb[156].mxu0 %v2398_v3  ;;  %v3823_v18 = vpop.f32.mrb[8].mxu1  ;;  %679 = vperm.xlu1 %6325, %v148_v61   ;;  %v1585_v30 = vmul.f32 %v8605_v10, %v9730_v39  ;;  %v901_v3 = vmul.f32 %v8611_v12, %v9780_v34 }
 0x26f   :  { %v6979_v54 = vpop.eup %6978  ;;  %6998 = vtanh.f32 %v2035_v16  ;;  %v3824_v14 = vadd.f32 %v3823_v18, %v9708_v53  ;;  %v3825_v26 = vpop.f32.mrb[9].mxu1  ;;  %v3493_v29 = vpack.c.bf16 %v6977_v15, %v6973_v13  ;;  %v2044_v16 = vadd.f32 %v8627_v21, %v1808_v6  ;;  %v6440_v15 = vld [vmem:[%s11727_s8 + $0x20] ss:$8 sps:$4 sm:$0xff]  }
 0x270   :  { %v9805_v32 = vpop.eup %6980  ;;  %7000 = vtanh.f32 %v2885_v8  ;;  %v3827_v33 = vpop.f32.mrb[10].mxu1  ;;  %v3494_v41 = vpack.c.bf16 %v6979_v54, %v6975_v23  ;;  %v3826_v60 = vadd.f32 %v3825_v26, %v9705_v51  ;;  %v9852_v26 = vmul.f32 %v8608_v11, %v9758_v24 }
 0x271   :  { %v1287_v37 = vpop.permute.xlu1 %1286  ;;  %v9809_v42 = vpop.eup %6982  ;;  %7002 = vtanh.f32 %v2887_v38  ;;  %v3828_v40 = vadd.f32 %v3827_v33, %v9708_v53  ;;  %v8284_v38 = vld [vmem:[%s11720_s0 + $0x348] sm:$0xff] }
 0x272   :  { %v1578_v44 = vmul.f32 %v8602_v9, %v1287_v37  ;;  %v1579_v58 = vmul.f32 %v8605_v10, %v1287_v37  ;;  %v3829_v46 = vpop.f32.mrb[11].mxu1  ;;  %v9814_v47 = vpop.eup %6984  ;;  %7004 = vtanh.f32 %v2883_v50  ;;  %4001 = vmatprep.mubr.bf16.mxu1 %v3494_v41  ;;  %6326 = vset.pattern.permute.xlu1 %v8287_v0  ;;  %v6442_v50 = vld [vmem:[%s11727_s8 + $0x24] ss:$8 sps:$4 sm:$0xff]   ;;  %v151_v41 = vld [vmem:[%s11720_s0 + $0x358] sm:$0xff] }
 0x273   :  { %v3830_v35 = vadd.f32 %v3829_v46, %v9705_v51  ;;  %v9819_v49 = vpop.eup %6986  ;;  %7006 = vtanh.f32 %v3824_v14  ;;  %4002 = vmatmul.mubr.bf16.gmra.mrb[80].mxu1 %v3493_v29  ;;  %1370 = vperm.xlu1 %6326, %v148_v61   ;;  %v9834_v8 = vpop.permute.xlu0 %604  ;;  %v1809_v29 = vadd.f32 %v1585_v30, %v901_v3 }
 0x274   :  { %v1802_v52 = vadd.f32 %v1578_v44, %v894_v56  ;;  %v1803_v55 = vadd.f32 %v1579_v58, %v895_v27  ;;  %v9823_v62 = vpop.eup %6988  ;;  %7008 = vtanh.f32 %v3828_v40  ;;  %4906 = vmatprep.subr.bf16.mxu0 %v6442_v50 }
 0x275   :  { %v9829_v7 = vpop.eup %6990  ;;  %7010 = vtanh.f32 %v3830_v35  ;;  %v580_v61 = vpop.permute.xlu1 %579  ;;  %4907 = vmatpush1.bf16.msra.mxu0 %v6440_v15 }
 0x276   :  { %v2038_v13 = vadd.f32 %v8627_v21, %v1802_v52  ;;  %v2039_v28 = vadd.f32 %v8630_v22, %v1803_v55  ;;  %v6993_v19 = vpop.eup %6992  ;;  %7012 = vtanh.f32 %v3826_v60  ;;  %v896_v56 = vmul.f32 %v8608_v11, %v580_v61 }
 0x277   :  { %v9838_v23 = vpop.eup %6994  ;;  %v2890_v34 = vpop.f32.mrb[88].mxu0  ;;  %1374 = vperm.xlu1 %6326, %v8284_v38   ;;  %v897_v58 = vmul.f32 %v8611_v12, %v580_v61 }
 0x278   :  { %7014 = vtanh.f32 %v2038_v13  ;;  %v6997_v18 = vpop.eup %6996  ;;  %v2891_v54 = vadd.f32 %v2890_v34, %v9168_v17  ;;  %v2892_v14 = vpop.f32.mrb[89].mxu0 }
 0x279   :  { %7016 = vtanh.f32 %v2039_v28  ;;  %v6999_v6 = vpop.eup %6998  ;;  %v2893_v27 = vadd.f32 %v2892_v14, %v9171_v20  ;;  %v2894_v33 = vpop.f32.mrb[90].mxu0  ;;  %v2400_v37 = vpack.c.bf16 %v6997_v18, %v9823_v62 }
 0x27a   :  { %7018 = vtanh.f32 %v2044_v16  ;;  %v9860_v40 = vpop.permute.xlu0 %609  ;;  %v7001_v44 = vpop.eup %7000  ;;  %v2895_v60 = vadd.f32 %v2894_v33, %v9168_v17  ;;  %v2401_v52 = vpack.c.bf16 %v6999_v6, %v6993_v19 }
 0x27b   :  { %7020 = vtanh.f32 %v2891_v54  ;;  %v3833_v46 = vpop.f32.mrb[12].mxu1  ;;  %v2896_v35 = vpop.f32.mrb[91].mxu0  ;;  %6327 = vset.pattern.permute.xlu1 %v8288_v1  ;;  %v3495_v28 = vpack.c.bf16 %v7001_v44, %v9838_v23  ;;  %v2045_v23 = vadd.f32 %v8630_v22, %v1809_v29 }
 0x27c   :  { %v7003_v55 = vpop.eup %7002  ;;  %v3834_v62 = vadd.f32 %v3833_v46, %v9708_v53  ;;  %7022 = vtanh.f32 %v2893_v27  ;;  %v3835_v30 = vpop.f32.mrb[13].mxu1  ;;  %v2897_v3 = vadd.f32 %v2896_v35, %v9171_v20  ;;  %3068 = vmatprep.mubr.bf16.mxu0 %v2401_v52  ;;  %694 = vperm.xlu1 %6327, %v151_v41  }
 0x27d   :  { %v1291_v13 = vpop.permute.xlu1 %1290  ;;  %v7005_v61 = vpop.eup %7004  ;;  %7024 = vtanh.f32 %v2895_v60  ;;  %v3836_v16 = vadd.f32 %v3835_v30, %v9705_v51  ;;  %3069 = vmatmul.mubr.bf16.gmra.mrb[160].mxu0 %v2400_v37  ;;  %v899_v60 = vmul.f32 %v8611_v12, %v9758_v24 }
 0x27e   :  { %v3837_v34 = vpop.f32.mrb[14].mxu1  ;;  %v1580_v19 = vmul.f32 %v8602_v9, %v1291_v13  ;;  %v1581_v38 = vmul.f32 %v8605_v10, %v1291_v13  ;;  %v9871_v15 = vpop.eup %7006  ;;  %7026 = vtanh.f32 %v3834_v62  ;;  %v3496_v54 = vpack.c.bf16 %v7003_v55, %v7005_v61 }
 0x27f   :  { %v3838_v50 = vadd.f32 %v3837_v34, %v9708_v53  ;;  %v3839_v18 = vpop.f32.mrb[15].mxu1  ;;  %v9875_v14 = vpop.eup %7008  ;;  %7028 = vtanh.f32 %v3836_v16 }
 0x280   :  { %v1804_v6 = vadd.f32 %v1580_v19, %v896_v56  ;;  %v1805_v27 = vadd.f32 %v1581_v38, %v897_v58  ;;  %v3840_v33 = vadd.f32 %v3839_v18, %v9705_v51  ;;  %v9878_v44 = vpop.eup %7010  ;;  %7030 = vtanh.f32 %v2897_v3  ;;  %4011 = vmatprep.mubr.bf16.mxu1 %v3496_v54  ;;  %6330 = vset.pattern.permute.xlu1 %v8287_v0  ;;  %v2900_v24 = vpop.f32.mrb[92].mxu0  ;;  %v152_v18 = vld [vmem:[%s11720_s0 + $0x360] sm:$0xff] }
 0x281   :  { %v1295_v46 = vpop.permute.xlu1 %1294  ;;  %v9884_v35 = vpop.eup %7012  ;;  %7032 = vtanh.f32 %v3838_v50  ;;  %4012 = vmatmul.mubr.bf16.gmra.mrb[84].mxu1 %v3495_v28  ;;  %1382 = vperm.xlu1 %6330, %v151_v41   ;;  %v2901_v28 = vadd.f32 %v2900_v24, %v9168_v17 }
 0x282   :  { %v2040_v29 = vadd.f32 %v8627_v21, %v1804_v6  ;;  %v2041_v56 = vadd.f32 %v8630_v22, %v1805_v27  ;;  %v1582_v58 = vmul.f32 %v8602_v9, %v1295_v46  ;;  %v7015_v52 = vpop.eup %7014  ;;  %7034 = vtanh.f32 %v3840_v33  ;;  %v9891_v62 = vpop.permute.xlu0 %1314 }
 0x283   :  { %v1583_v55 = vmul.f32 %v8605_v10, %v1295_v46  ;;  %v7017_v3 = vpop.eup %7016  ;;  %v2902_v61 = vpop.f32.mrb[93].mxu0  ;;  %v2402_v16 = vpack.c.bf16 %v7015_v52, %v9789_v57  ;;  %7036 = vtanh.f32 %v2045_v23  ;;  %v1592_v27 = vmul.f32 %v8602_v9, %v9891_v62  ;;  %v6443_v52 = vld [vmem:[%s11727_s8 + $0x30] ss:$8 sps:$4 sm:$0xff]  }
 0x284   :  { %v1806_v13 = vadd.f32 %v1582_v58, %v9852_v26  ;;  %v9898_v34 = vpop.eup %7018  ;;  %7038 = vtanh.f32 %v2040_v29  ;;  %v2904_v38 = vpop.f32.mrb[94].mxu0  ;;  %v2403_v50 = vpack.c.bf16 %v7017_v3, %v9805_v32  ;;  %v908_v26 = vmul.f32 %v8608_v11, %v9860_v40 }
 0x285   :  { %v1807_v19 = vadd.f32 %v1583_v55, %v899_v60  ;;  %v595_v41 = vpop.permute.xlu1 %594  ;;  %v9906_v54 = vpop.eup %7020  ;;  %7040 = vtanh.f32 %v2041_v56  ;;  %v2905_v23 = vadd.f32 %v2904_v38, %v9168_v17  ;;  %6331 = vset.pattern.permute.xlu1 %v8288_v1  ;;  %v6445_v60 = vld [vmem:[%s11727_s8 + $0x34] ss:$8 sps:$4 sm:$0xff]   ;;  %v2903_v56 = vadd.f32 %v2902_v61, %v9171_v20 }
 0x286   :  { %v2042_v57 = vadd.f32 %v8627_v21, %v1806_v13  ;;  %v2906_v6 = vpop.f32.mrb[95].mxu0  ;;  %v7023_v33 = vpop.eup %7022  ;;  %7042 = vtanh.f32 %v2901_v28  ;;  %3078 = vmatprep.mubr.bf16.mxu0 %v2403_v50  ;;  %699 = vperm.xlu1 %6331, %v152_v18   ;;  %v902_v61 = vmul.f32 %v8608_v11, %v595_v41  ;;  %v1816_v50 = vadd.f32 %v1592_v27, %v908_v26 }
 0x287   :  { %v2043_v32 = vadd.f32 %v8630_v22, %v1807_v19  ;;  %v2907_v46 = vadd.f32 %v2906_v6, %v9171_v20  ;;  %v7025_v29 = vpop.eup %7024  ;;  %3079 = vmatmul.mubr.bf16.gmra.mrb[164].mxu0 %v2402_v16  ;;  %v3843_v58 = vpop.f32.mrb[16].mxu1  ;;  %4908 = vmatprep.subr.bf16.mxu0 %v6445_v60  ;;  %v903_v16 = vmul.f32 %v8611_v12, %v595_v41 }
 0x288   :  { %7044 = vtanh.f32 %v2042_v57  ;;  %v9922_v55 = vpop.eup %7026  ;;  %v3844_v24 = vadd.f32 %v3843_v58, %v9708_v53  ;;  %v3845_v3 = vpop.f32.mrb[17].mxu1  ;;  %v3497_v13 = vpack.c.bf16 %v7025_v29, %v9906_v54  ;;  %4909 = vmatpush1.bf16.msra.mxu0 %v6443_v52 }
 0x289   :  { %7046 = vtanh.f32 %v2043_v32  ;;  %v9926_v28 = vpop.eup %7028  ;;  %v3847_v19 = vpop.f32.mrb[18].mxu1  ;;  %v3846_v41 = vadd.f32 %v3845_v3, %v9705_v51 }
 0x28a   :  { %7048 = vtanh.f32 %v2905_v23  ;;  %v1303_v38 = vpop.permute.xlu1 %1302  ;;  %v7031_v57 = vpop.eup %7030  ;;  %v3848_v6 = vadd.f32 %v3847_v19, %v9708_v53  ;;  %v6448_v23 = vld [vmem:[%s11727_s8 + $0x44] ss:$8 sps:$4 sm:$0xff]   ;;  %6332 = vset.pattern.permute.xlu1 %v8287_v0 }
 0x28b   :  { %7050 = vtanh.f32 %v2907_v46  ;;  %v1586_v32 = vmul.f32 %v8602_v9, %v1303_v38  ;;  %v1587_v54 = vmul.f32 %v8605_v10, %v1303_v38  ;;  %v3849_v60 = vpop.f32.mrb[19].mxu1  ;;  %v9936_v29 = vpop.eup %7032  ;;  %v3498_v27 = vpack.c.bf16 %v7031_v57, %v7023_v33  ;;  %v6446_v46 = vld [vmem:[%s11727_s8 + $0x40] ss:$8 sps:$4 sm:$0xff]   ;;  %1386 = vperm.xlu1 %6332, %v152_v18   ;;  %4910 = vmatprep.subr.bf16.mxu0 %v6448_v23 }
 0x28c   :  { %7052 = vtanh.f32 %v2903_v56  ;;  %v3850_v26 = vadd.f32 %v3849_v60, %v9705_v51  ;;  %v9944_v58 = vpop.eup %7034  ;;  %v909_v56 = vmul.f32 %v8611_v12, %v9860_v40  ;;  %v1593_v33 = vmul.f32 %v8605_v10, %v9891_v62  ;;  %4911 = vmatpush1.bf16.msra.mxu0 %v6446_v46  ;;  %v6451_v62 = vld [vmem:[%s11727_s8 + $0x54] ss:$8 sps:$4 sm:$0xff]  }
 0x28d   :  { %7054 = vtanh.f32 %v3844_v24  ;;  %v1810_v52 = vadd.f32 %v1586_v32, %v902_v61  ;;  %v1811_v19 = vadd.f32 %v1587_v54, %v903_v16  ;;  %v9948_v3 = vpop.eup %7036  ;;  %4021 = vmatprep.mubr.bf16.mxu1 %v3498_v27  ;;  %v2052_v57 = vadd.f32 %v8627_v21, %v1816_v50  ;;  %v6449_v32 = vld [vmem:[%s11727_s8 + $0x50] ss:$8 sps:$4 sm:$0xff]   ;;  %v9970_v50 = vpop.permute.xlu0 %1330  ;;  %4912 = vmatprep.subr.bf16.mxu0 %v6451_v62  ;;  %v6454_v62 = vld [vmem:[%s11727_s8 + $0x64] ss:$8 sps:$4 sm:$0xff]  }
 0x28e   :  { %7056 = vtanh.f32 %v3848_v6  ;;  %v7039_v61 = vpop.eup %7038  ;;  %4022 = vmatmul.mubr.bf16.gmra.mrb[88].mxu1 %v3497_v13  ;;  %v600_v16 = vpop.permute.xlu1 %599  ;;  %v8285_v13 = vld [vmem:[%s11720_s0 + $0x368] sm:$0xff]  ;;  %v9975_v27 = vmul.f32 %v8608_v11, %v9834_v8  ;;  %v1817_v46 = vadd.f32 %v1593_v33, %v909_v56 }
 0x28f   :  { %v2046_v18 = vadd.f32 %v8627_v21, %v1810_v52  ;;  %v2047_v40 = vadd.f32 %v8630_v22, %v1811_v19  ;;  %7058 = vtanh.f32 %v3850_v26  ;;  %v7041_v6 = vpop.eup %7040  ;;  %v2910_v60 = vpop.f32.mrb[96].mxu0  ;;  %1390 = vperm.xlu1 %6332, %v8285_v13   ;;  %v904_v19 = vmul.f32 %v8608_v11, %v600_v16 }
 0x290   :  { %7060 = vtanh.f32 %v3846_v41  ;;  %v9965_v54 = vpop.eup %7042  ;;  %v2911_v41 = vadd.f32 %v2910_v60, %v9168_v17  ;;  %v2912_v26 = vpop.f32.mrb[97].mxu0  ;;  %4913 = vmatpush1.bf16.msra.mxu0 %v6449_v32  ;;  %v905_v56 = vmul.f32 %v8611_v12, %v600_v16 }
 0x291   :  { %7062 = vtanh.f32 %v2046_v18  ;;  %v2913_v18 = vadd.f32 %v2912_v26, %v9171_v20  ;;  %v2914_v13 = vpop.f32.mrb[98].mxu0  ;;  %4914 = vmatprep.subr.bf16.mxu0 %v6454_v62  ;;  %v2053_v62 = vadd.f32 %v8630_v22, %v1817_v46 }
 0x292   :  { %v7045_v23 = vpop.eup %7044  ;;  %7064 = vtanh.f32 %v2047_v40  ;;  %v155_v40 = vld [vmem:[%s11720_s0 + $0x378] sm:$0xff]  ;;  %v3853_v33 = vpop.f32.mrb[20].mxu1  ;;  %v2915_v32 = vadd.f32 %v2914_v13, %v9168_v17 }
 0x293   :  { %v7047_v52 = vpop.eup %7046  ;;  %v2404_v63 = vpack.c.bf16 %v7045_v23, %v7039_v61  ;;  %7066 = vtanh.f32 %v2052_v57  ;;  %v2916_v24 = vpop.f32.mrb[99].mxu0  ;;  %v6452_v61 = vld [vmem:[%s11727_s8 + $0x60] ss:$8 sps:$4 sm:$0xff]   ;;  %v3854_v57 = vadd.f32 %v3853_v33, %v9708_v53  ;;  %6333 = vset.pattern.permute.xlu1 %v8288_v1 }
 0x294   :  { %v7049_v60 = vpop.eup %7048  ;;  %7068 = vtanh.f32 %v2911_v41  ;;  %v2405_v26 = vpack.c.bf16 %v7047_v52, %v7041_v6  ;;  %v3855_v38 = vpop.f32.mrb[21].mxu1  ;;  %v2917_v37 = vadd.f32 %v2916_v24, %v9171_v20  ;;  %714 = vperm.xlu1 %6333, %v155_v40   ;;  %4915 = vmatpush1.bf16.msra.mxu0 %v6452_v61 }
 0x295   :  { %v7051_v23 = vpop.eup %7050  ;;  %7070 = vtanh.f32 %v2913_v18  ;;  %v1307_v30 = vpop.permute.xlu1 %1306  ;;  %v3499_v16 = vpack.c.bf16 %v7049_v60, %v9965_v54  ;;  %v3856_v6 = vadd.f32 %v3855_v38, %v9705_v51  ;;  %v6457_v38 = vld [vmem:[%s11727_s8 + $0x74] ss:$8 sps:$4 sm:$0xff]  }
 0x296   :  { %v7053_v41 = vpop.eup %7052  ;;  %7072 = vtanh.f32 %v2915_v32  ;;  %v3857_v52 = vpop.f32.mrb[22].mxu1  ;;  %v1588_v13 = vmul.f32 %v8602_v9, %v1307_v30  ;;  %v1589_v18 = vmul.f32 %v8605_v10, %v1307_v30  ;;  %3088 = vmatprep.mubr.bf16.mxu0 %v2405_v26  ;;  %4916 = vmatprep.subr.bf16.mxu0 %v6457_v38 }
 0x297   :  { %v9997_v33 = vpop.eup %7054  ;;  %7074 = vtanh.f32 %v3854_v57  ;;  %v3858_v24 = vadd.f32 %v3857_v52, %v9708_v53  ;;  %v3859_v59 = vpop.f32.mrb[23].mxu1  ;;  %3089 = vmatmul.mubr.bf16.gmra.mrb[168].mxu0 %v2404_v63  ;;  %v3500_v54 = vpack.c.bf16 %v7051_v23, %v7053_v41  ;;  %v6455_v63 = vld [vmem:[%s11727_s8 + $0x70] ss:$8 sps:$4 sm:$0xff]   ;;  %v907_v41 = vmul.f32 %v8611_v12, %v9834_v8 }
 0x298   :  { %v10001_v60 = vpop.permute.xlu0 %624  ;;  %v10006_v32 = vpop.eup %7056  ;;  %7076 = vtanh.f32 %v3856_v6  ;;  %v1812_v30 = vadd.f32 %v1588_v13, %v904_v19  ;;  %v1813_v26 = vadd.f32 %v1589_v18, %v905_v56  ;;  %v3860_v57 = vadd.f32 %v3859_v59, %v9705_v51  ;;  %6335 = vset.pattern.permute.xlu1 %v8287_v0  ;;  %v6460_v18 = vld [vmem:[%s11727_s8 + $0x84] ss:$8 sps:$4 sm:$0xff]   ;;  %4917 = vmatpush1.bf16.msra.mxu0 %v6455_v63 }
 0x299   :  { %v10012_v23 = vpop.eup %7058  ;;  %7078 = vtanh.f32 %v2917_v37  ;;  %4031 = vmatprep.mubr.bf16.mxu1 %v3500_v54  ;;  %v1311_v46 = vpop.permute.xlu1 %1310  ;;  %1398 = vperm.xlu1 %6335, %v155_v40  }
 0x29a   :  { %v10018_v56 = vpop.eup %7060  ;;  %7080 = vtanh.f32 %v3858_v24  ;;  %v2048_v59 = vadd.f32 %v8627_v21, %v1812_v30  ;;  %v2049_v61 = vadd.f32 %v8630_v22, %v1813_v26  ;;  %4032 = vmatmul.mubr.bf16.gmra.mrb[92].mxu1 %v3499_v16  ;;  %v1590_v6 = vmul.f32 %v8602_v9, %v1311_v46  ;;  %v2920_v52 = vpop.f32.mrb[100].mxu0  ;;  %4918 = vmatprep.subr.bf16.mxu0 %v6460_v18 }
 0x29b   :  { %v7063_v37 = vpop.eup %7062  ;;  %7082 = vtanh.f32 %v3860_v57  ;;  %v1591_v8 = vmul.f32 %v8605_v10, %v1311_v46  ;;  %v2921_v0 = vadd.f32 %v2920_v52, %v9168_v17  ;;  %v2922_v38 = vpop.f32.mrb[101].mxu0  ;;  %v1600_v24 = vmul.f32 %v8602_v9, %v9970_v50 }
 0x29c   :  { %v10025_v13 = vpop.permute.xlu0 %629  ;;  %v7065_v16 = vpop.eup %7064  ;;  %v1814_v54 = vadd.f32 %v1590_v6, %v9975_v27  ;;  %v2406_v30 = vpack.c.bf16 %v7063_v37, %v9898_v34  ;;  %7084 = vtanh.f32 %v2053_v62  ;;  %v6458_v27 = vld [vmem:[%s11727_s8 + $0x80] ss:$8 sps:$4 sm:$0xff]   ;;  %v2923_v52 = vadd.f32 %v2922_v38, %v9171_v20 }
 0x29d   :  { %v10035_v40 = vpop.eup %7066  ;;  %7086 = vtanh.f32 %v2048_v59  ;;  %v1815_v26 = vadd.f32 %v1591_v8, %v907_v41  ;;  %v2924_v57 = vpop.f32.mrb[102].mxu0  ;;  %v2407_v19 = vpack.c.bf16 %v7065_v16, %v9948_v3  ;;  %v916_v41 = vmul.f32 %v8608_v11, %v10025_v13  ;;  %v6463_v8 = vld [vmem:[%s11727_s8 + $0x94] ss:$8 sps:$4 sm:$0xff]   ;;  %6336 = vset.pattern.permute.xlu1 %v8288_v1  ;;  %4919 = vmatpush1.bf16.msra.mxu0 %v6458_v27 }
 0x29e   :  { %v615_v46 = vpop.permute.xlu1 %614  ;;  %v10043_v6 = vpop.eup %7068  ;;  %7088 = vtanh.f32 %v2049_v61  ;;  %v2050_v34 = vadd.f32 %v8627_v21, %v1814_v54  ;;  %v2925_v62 = vadd.f32 %v2924_v57, %v9168_v17  ;;  %4920 = vmatprep.subr.bf16.mxu0 %v6463_v8 }
 0x29f   :  { %v2926_v63 = vpop.f32.mrb[103].mxu0  ;;  %v7071_v3 = vpop.eup %7070  ;;  %v2051_v59 = vadd.f32 %v8630_v22, %v1815_v26  ;;  %7090 = vtanh.f32 %v2921_v0  ;;  %3098 = vmatprep.mubr.bf16.mxu0 %v2407_v19  ;;  %v6461_v26 = vld [vmem:[%s11727_s8 + $0x90] ss:$8 sps:$4 sm:$0xff]   ;;  %v910_v38 = vmul.f32 %v8608_v11, %v615_v46 }
 0x2a0   :  { %v2927_v37 = vadd.f32 %v2926_v63, %v9171_v20  ;;  %v7073_v61 = vpop.eup %7072  ;;  %7092 = vtanh.f32 %v2050_v34  ;;  %3099 = vmatmul.mubr.bf16.gmra.mrb[172].mxu0 %v2406_v30  ;;  %v3863_v18 = vpop.f32.mrb[24].mxu1  ;;  %v911_v30 = vmul.f32 %v8611_v12, %v615_v46  ;;  %v1824_v63 = vadd.f32 %v1600_v24, %v916_v41 }
 0x2a1   :  { %v10056_v16 = vpop.eup %7074  ;;  %7094 = vtanh.f32 %v2051_v59  ;;  %v3864_v54 = vadd.f32 %v3863_v18, %v9708_v53  ;;  %v3865_v0 = vpop.f32.mrb[25].mxu1  ;;  %v3501_v19 = vpack.c.bf16 %v7073_v61, %v10043_v6  ;;  %4921 = vmatpush1.bf16.msra.mxu0 %v6461_v26 }
 0x2a2   :  { %11778 = vst [vmem:[#allocation6_spill] sm:$0xff] %v10056_v16  ;;  %v10063_v1 = vpop.eup %7076  ;;  %7096 = vtanh.f32 %v2925_v62  ;;  %v3867_v57 = vpop.f32.mrb[26].mxu1  ;;  %v6466_v62 = vld [vmem:[%s11727_s8 + $0xa4] ss:$8 sps:$4 sm:$0xff]   ;;  %v3866_v46 = vadd.f32 %v3865_v0, %v9705_v51 }
 0x2a3   :  { %v1319_v34 = vpop.permute.xlu1 %1318  ;;  %v7079_v59 = vpop.eup %7078  ;;  %7098 = vtanh.f32 %v2927_v37  ;;  %v3868_v6 = vadd.f32 %v3867_v57, %v9708_v53  ;;  %4922 = vmatprep.subr.bf16.mxu0 %v6466_v62 }
 0x2a4   :  { %v1594_v27 = vmul.f32 %v8602_v9, %v1319_v34  ;;  %v1595_v61 = vmul.f32 %v8605_v10, %v1319_v34  ;;  %v3869_v18 = vpop.f32.mrb[27].mxu1  ;;  %v10073_v39 = vpop.eup %7080  ;;  %7100 = vtanh.f32 %v2923_v52  ;;  %v3502_v41 = vpack.c.bf16 %v7079_v59, %v7071_v3  ;;  %v6464_v34 = vld [vmem:[%s11727_s8 + $0xa0] ss:$8 sps:$4 sm:$0xff]  }
 0x2a5   :  { %v3870_v24 = vadd.f32 %v3869_v18, %v9705_v51  ;;  %v10077_v37 = vpop.eup %7082  ;;  %7102 = vtanh.f32 %v3864_v54  ;;  %v1601_v3 = vmul.f32 %v8605_v10, %v9970_v50  ;;  %v917_v52 = vmul.f32 %v8611_v12, %v10025_v13  ;;  %v6469_v50 = vld [vmem:[%s11727_s8 + $0xb4] ss:$8 sps:$4 sm:$0xff]   ;;  %4923 = vmatpush1.bf16.msra.mxu0 %v6464_v34 }
 0x2a6   :  { %v1818_v8 = vadd.f32 %v1594_v27, %v910_v38  ;;  %v1819_v57 = vadd.f32 %v1595_v61, %v911_v30  ;;  %v10084_v45 = vpop.eup %7084  ;;  %7104 = vtanh.f32 %v3868_v6  ;;  %4041 = vmatprep.mubr.bf16.mxu1 %v3502_v41  ;;  %v2060_v59 = vadd.f32 %v8627_v21, %v1824_v63  ;;  %v10095_v6 = vpop.permute.xlu0 %644  ;;  %4924 = vmatprep.subr.bf16.mxu0 %v6469_v50 }
 0x2a7   :  { %v7087_v0 = vpop.eup %7086  ;;  %7106 = vtanh.f32 %v3870_v24  ;;  %4042 = vmatmul.mubr.bf16.gmra.mrb[96].mxu1 %v3501_v19  ;;  %v620_v30 = vpop.permute.xlu1 %619  ;;  %v6467_v19 = vld [vmem:[%s11727_s8 + $0xb0] ss:$8 sps:$4 sm:$0xff]   ;;  %v10108_v24 = vmul.f32 %v8608_v11, %v10001_v60  ;;  %v1825_v41 = vadd.f32 %v1601_v3, %v917_v52 }
 0x2a8   :  { %v2054_v26 = vadd.f32 %v8627_v21, %v1818_v8  ;;  %v2055_v38 = vadd.f32 %v8630_v22, %v1819_v57  ;;  %v7089_v13 = vpop.eup %7088  ;;  %7108 = vtanh.f32 %v3866_v46  ;;  %v2930_v61 = vpop.f32.mrb[104].mxu0  ;;  %v912_v8 = vmul.f32 %v8608_v11, %v620_v30 }
 0x2a9   :  { %v10100_v27 = vpop.eup %7090  ;;  %v2931_v63 = vadd.f32 %v2930_v61, %v9168_v17  ;;  %v2932_v62 = vpop.f32.mrb[105].mxu0  ;;  %v913_v54 = vmul.f32 %v8611_v12, %v620_v30  ;;  %4925 = vmatpush1.bf16.msra.mxu0 %v6467_v19  ;;  %v6470_v30 = vld [vmem:[%s11727_s8 + $0xc0] ss:$8 sps:$4 sm:$0xff]  }
 0x2aa   :  { %7110 = vtanh.f32 %v2054_v26  ;;  %v7093_v18 = vpop.eup %7092  ;;  %v2933_v57 = vadd.f32 %v2932_v62, %v9171_v20  ;;  %v2934_v34 = vpop.f32.mrb[106].mxu0 }
 0x2ab   :  { %7112 = vtanh.f32 %v2055_v38  ;;  %v7095_v46 = vpop.eup %7094  ;;  %v2408_v26 = vpack.c.bf16 %v7093_v18, %v7087_v0  ;;  %v10112_v48 = vpop.permute.xlu0 %649  ;;  %v6472_v38 = vld [vmem:[%s11727_s8 + $0xc4] ss:$8 sps:$4 sm:$0xff]   ;;  %v2935_v52 = vadd.f32 %v2934_v34, %v9168_v17 }
 0x2ac   :  { %7114 = vtanh.f32 %v2060_v59  ;;  %v7097_v61 = vpop.eup %7096  ;;  %v3873_v3 = vpop.f32.mrb[28].mxu1  ;;  %v2409_v2 = vpack.c.bf16 %v7095_v46, %v7089_v13  ;;  %4926 = vmatprep.subr.bf16.mxu0 %v6472_v38 }
 0x2ad   :  { %7116 = vtanh.f32 %v2931_v63  ;;  %v2936_v50 = vpop.f32.mrb[107].mxu0  ;;  %v7099_v5 = vpop.eup %7098  ;;  %v3874_v0 = vadd.f32 %v3873_v3, %v9708_v53  ;;  %v3503_v4 = vpack.c.bf16 %v7097_v61, %v10100_v27  ;;  %4927 = vmatpush1.bf16.msra.mxu0 %v6470_v30 }
 0x2ae   :  { %7118 = vtanh.f32 %v2933_v57  ;;  %v3875_v59 = vpop.f32.mrb[29].mxu1  ;;  %v2937_v18 = vadd.f32 %v2936_v50, %v9171_v20  ;;  %v1323_v62 = vpop.permute.xlu1 %1322  ;;  %3108 = vmatprep.mubr.bf16.mxu0 %v2409_v2  ;;  %v2061_v50 = vadd.f32 %v8630_v22, %v1825_v41  ;;  %v6473_v41 = vld [vmem:[%s11727_s8 + $0xd0] ss:$8 sps:$4 sm:$0xff]  }
 0x2af   :  { %v7101_v63 = vpop.eup %7100  ;;  %7120 = vtanh.f32 %v2935_v52  ;;  %v3876_v34 = vadd.f32 %v3875_v59, %v9705_v51  ;;  %v3877_v13 = vpop.f32.mrb[30].mxu1  ;;  %v1596_v46 = vmul.f32 %v8602_v9, %v1323_v62  ;;  %v1597_v57 = vmul.f32 %v8605_v10, %v1323_v62  ;;  %3109 = vmatmul.mubr.bf16.gmra.mrb[176].mxu0 %v2408_v26  ;;  %v6475_v52 = vld [vmem:[%s11727_s8 + $0xd4] ss:$8 sps:$4 sm:$0xff]  }
 0x2b0   :  { %v10128_v3 = vpop.eup %7102  ;;  %7122 = vtanh.f32 %v3874_v0  ;;  %v3878_v27 = vadd.f32 %v3877_v13, %v9708_v53  ;;  %v3879_v19 = vpop.f32.mrb[31].mxu1  ;;  %v3504_v61 = vpack.c.bf16 %v7099_v5, %v7101_v63  ;;  %v915_v5 = vmul.f32 %v8611_v12, %v10001_v60  ;;  %4928 = vmatprep.subr.bf16.mxu0 %v6475_v52 }
 0x2b1   :  { %11779 = vst [vmem:[#allocation7_spill] sm:$0xff] %v10128_v3  ;;  %v10135_v59 = vpop.eup %7104  ;;  %7124 = vtanh.f32 %v3876_v34  ;;  %v1820_v62 = vadd.f32 %v1596_v46, %v912_v8  ;;  %v1821_v2 = vadd.f32 %v1597_v57, %v913_v54  ;;  %v3880_v38 = vadd.f32 %v3879_v19, %v9705_v51  ;;  %v2940_v34 = vpop.f32.mrb[108].mxu0  ;;  %v6478_v46 = vld [vmem:[%s11727_s8 + $0xe4] ss:$8 sps:$4 sm:$0xff]   ;;  %4929 = vmatpush1.bf16.msra.mxu0 %v6473_v41 }
 0x2b2   :  { %11780 = vst [vmem:[#allocation8_spill] sm:$0xff] %v10135_v59  ;;  %v10138_v16 = vpop.eup %7106  ;;  %7126 = vtanh.f32 %v2937_v18  ;;  %4051 = vmatprep.mubr.bf16.mxu1 %v3504_v61  ;;  %v1327_v0 = vpop.permute.xlu1 %1326  ;;  %v2941_v19 = vadd.f32 %v2940_v34, %v9168_v17  ;;  %v924_v57 = vmul.f32 %v8608_v11, %v10112_v48  ;;  %4930 = vmatprep.subr.bf16.mxu0 %v6478_v46 }
 0x2b3   :  { %11781 = vst [vmem:[#allocation9_spill] sm:$0xff] %v10138_v16  ;;  %v10147_v8 = vpop.eup %7108  ;;  %7128 = vtanh.f32 %v3878_v27  ;;  %v2056_v54 = vadd.f32 %v8627_v21, %v1820_v62  ;;  %v2057_v18 = vadd.f32 %v8630_v22, %v1821_v2  ;;  %4052 = vmatmul.mubr.bf16.gmra.mrb[100].mxu1 %v3503_v4  ;;  %v1598_v63 = vmul.f32 %v8602_v9, %v1327_v0  ;;  %v10153_v13 = vpop.permute.xlu0 %1346 }
 0x2b4   :  { %11782 = vst [vmem:[#allocation10_spill] sm:$0xff] %v10147_v8  ;;  %v7111_v60 = vpop.eup %7110  ;;  %7130 = vtanh.f32 %v3880_v38  ;;  %v1599_v30 = vmul.f32 %v8605_v10, %v1327_v0  ;;  %v2942_v61 = vpop.f32.mrb[109].mxu0 }
 0x2b5   :  { %v7113_v27 = vpop.eup %7112  ;;  %v1822_v4 = vadd.f32 %v1598_v63, %v10108_v24  ;;  %v2410_v52 = vpack.c.bf16 %v7111_v60, %v10035_v40  ;;  %7132 = vtanh.f32 %v2061_v50  ;;  %v2944_v38 = vpop.f32.mrb[110].mxu0  ;;  %v6476_v24 = vld [vmem:[%s11727_s8 + $0xe0] ss:$8 sps:$4 sm:$0xff]   ;;  %v2943_v34 = vadd.f32 %v2942_v61, %v9171_v20 }
 0x2b6   :  { %v10163_v62 = vpop.eup %7114  ;;  %7134 = vtanh.f32 %v2056_v54  ;;  %v1823_v2 = vadd.f32 %v1599_v30, %v915_v5  ;;  %v635_v0 = vpop.permute.xlu1 %634  ;;  %v2411_v26 = vpack.c.bf16 %v7113_v27, %v10084_v45  ;;  %v2945_v50 = vadd.f32 %v2944_v38, %v9168_v17  ;;  %4931 = vmatpush1.bf16.msra.mxu0 %v6476_v24 }
 0x2b7   :  { %v7117_v63 = vpop.eup %7116  ;;  %7136 = vtanh.f32 %v2057_v18  ;;  %v2058_v40 = vadd.f32 %v8627_v21, %v1822_v4  ;;  %v2946_v54 = vpop.f32.mrb[111].mxu0  ;;  %v1608_v5 = vmul.f32 %v8602_v9, %v10153_v13  ;;  %v6481_v18 = vld [vmem:[%s11727_s8 + $0xf4] ss:$8 sps:$4 sm:$0xff]   ;;  %v919_v61 = vmul.f32 %v8611_v12, %v635_v0 }
 0x2b8   :  { %v7119_v45 = vpop.eup %7118  ;;  %v2059_v60 = vadd.f32 %v8630_v22, %v1823_v2  ;;  %7138 = vtanh.f32 %v2941_v19  ;;  %v2947_v41 = vadd.f32 %v2946_v54, %v9171_v20  ;;  %3118 = vmatprep.mubr.bf16.mxu0 %v2411_v26  ;;  %v3883_v27 = vpop.f32.mrb[32].mxu1  ;;  %v6479_v26 = vld [vmem:[%s11727_s8 + $0xf0] ss:$8 sps:$4 sm:$0xff]   ;;  %4932 = vmatprep.subr.bf16.mxu0 %v6481_v18 }
 0x2b9   :  { %v7121_v30 = vpop.eup %7120  ;;  %7140 = vtanh.f32 %v2058_v40  ;;  %3119 = vmatmul.mubr.bf16.gmra.mrb[180].mxu0 %v2410_v52  ;;  %v3884_v46 = vadd.f32 %v3883_v27, %v9708_v53  ;;  %v3885_v2 = vpop.f32.mrb[33].mxu1  ;;  %v918_v40 = vmul.f32 %v8608_v11, %v635_v0  ;;  %v1832_v3 = vadd.f32 %v1608_v5, %v924_v57 }
 0x2ba   :  { %v10181_v4 = vpop.eup %7122  ;;  %7142 = vtanh.f32 %v2059_v60  ;;  %v3505_v19 = vpack.c.bf16 %v7121_v30, %v7117_v63  ;;  %v3887_v52 = vpop.f32.mrb[34].mxu1  ;;  %4933 = vmatpush1.bf16.msra.mxu0 %v6479_v26 }
 0x2bb   :  { %11783 = vst [vmem:[#allocation11_spill] sm:$0xff] %v10181_v4  ;;  %v10187_v38 = vpop.eup %7124  ;;  %7144 = vtanh.f32 %v2945_v50  ;;  %v1335_v54 = vpop.permute.xlu1 %1334  ;;  %v3888_v63 = vadd.f32 %v3887_v52, %v9708_v53  ;;  %v3886_v50 = vadd.f32 %v3885_v2, %v9705_v51  ;;  %v1609_v2 = vmul.f32 %v8605_v10, %v10153_v13 }
 0x2bc   :  { %11784 = vst [vmem:[#allocation12_spill] sm:$0xff] %v10187_v38  ;;  %v7127_v60 = vpop.eup %7126  ;;  %7146 = vtanh.f32 %v2947_v41  ;;  %v1602_v24 = vmul.f32 %v8602_v9, %v1335_v54  ;;  %v1603_v30 = vmul.f32 %v8605_v10, %v1335_v54  ;;  %v3889_v27 = vpop.f32.mrb[35].mxu1  ;;  %v2068_v52 = vadd.f32 %v8627_v21, %v1832_v3 }
 0x2bd   :  { %v10194_v59 = vpop.eup %7128  ;;  %7148 = vtanh.f32 %v2943_v34  ;;  %v3890_v0 = vadd.f32 %v3889_v27, %v9705_v51  ;;  %v3506_v8 = vpack.c.bf16 %v7127_v60, %v7119_v45  ;;  %v925_v34 = vmul.f32 %v8611_v12, %v10112_v48  ;;  %v10213_v60 = vpop.permute.xlu0 %1362 }
 0x2be   :  { %11785 = vst [vmem:[#allocation13_spill] sm:$0xff] %v10194_v59  ;;  %v10198_v16 = vpop.eup %7130  ;;  %7150 = vtanh.f32 %v3884_v46  ;;  %v1826_v57 = vadd.f32 %v1602_v24, %v918_v40  ;;  %v1827_v5 = vadd.f32 %v1603_v30, %v919_v61  ;;  %v922_v30 = vmul.f32 %v8608_v11, %v10095_v6 }
 0x2bf   :  { %v10202_v18 = vpop.eup %7132  ;;  %7152 = vtanh.f32 %v3888_v63  ;;  %4061 = vmatprep.mubr.bf16.mxu1 %v3506_v8  ;;  %v640_v61 = vpop.permute.xlu1 %639  ;;  %v1833_v27 = vadd.f32 %v1609_v2, %v925_v34 }
 0x2c0   :  { %v7135_v46 = vpop.eup %7134  ;;  %v2062_v40 = vadd.f32 %v8627_v21, %v1826_v57  ;;  %v2063_v26 = vadd.f32 %v8630_v22, %v1827_v5  ;;  %7154 = vtanh.f32 %v3890_v0  ;;  %4062 = vmatmul.mubr.bf16.gmra.mrb[104].mxu1 %v3505_v19  ;;  %v2950_v48 = vpop.f32.mrb[112].mxu0  ;;  %v920_v0 = vmul.f32 %v8608_v11, %v640_v61 }
 0x2c1   :  { %v7137_v8 = vpop.eup %7136  ;;  %7156 = vtanh.f32 %v3886_v50  ;;  %v2951_v63 = vadd.f32 %v2950_v48, %v9168_v17  ;;  %v2952_v24 = vpop.f32.mrb[113].mxu0 }
 0x2c2   :  { %v7139_v54 = vpop.eup %7138  ;;  %7158 = vtanh.f32 %v2062_v40  ;;  %v2953_v3 = vadd.f32 %v2952_v24, %v9171_v20  ;;  %v2954_v50 = vpop.f32.mrb[114].mxu0  ;;  %v921_v40 = vmul.f32 %v8611_v12, %v640_v61 }
 0x2c3   :  { %v7141_v13 = vpop.eup %7140  ;;  %7160 = vtanh.f32 %v2063_v26  ;;  %v3893_v26 = vpop.f32.mrb[36].mxu1  ;;  %v2955_v48 = vadd.f32 %v2954_v50, %v9168_v17 }
 0x2c4   :  { %v7143_v19 = vpop.eup %7142  ;;  %v2412_v57 = vpack.c.bf16 %v7141_v13, %v7135_v46  ;;  %7162 = vtanh.f32 %v2068_v52  ;;  %v2956_v41 = vpop.f32.mrb[115].mxu0  ;;  %v3894_v34 = vadd.f32 %v3893_v26, %v9708_v53 }
 0x2c5   :  { %v7145_v5 = vpop.eup %7144  ;;  %7164 = vtanh.f32 %v2951_v63  ;;  %v2413_v45 = vpack.c.bf16 %v7143_v19, %v7137_v8  ;;  %v3895_v2 = vpop.f32.mrb[37].mxu1  ;;  %v2957_v59 = vadd.f32 %v2956_v41, %v9171_v20 }
 0x2c6   :  { %v7147_v4 = vpop.eup %7146  ;;  %7166 = vtanh.f32 %v2953_v3  ;;  %v1339_v24 = vpop.permute.xlu1 %1338  ;;  %v3507_v38 = vpack.c.bf16 %v7145_v5, %v7139_v54  ;;  %v3896_v52 = vadd.f32 %v3895_v2, %v9705_v51  ;;  %v2069_v54 = vadd.f32 %v8630_v22, %v1833_v27 }
 0x2c7   :  { %v7149_v46 = vpop.eup %7148  ;;  %7168 = vtanh.f32 %v2955_v48  ;;  %v3897_v61 = vpop.f32.mrb[38].mxu1  ;;  %v1604_v13 = vmul.f32 %v8602_v9, %v1339_v24  ;;  %v1605_v63 = vmul.f32 %v8605_v10, %v1339_v24  ;;  %3128 = vmatprep.mubr.bf16.mxu0 %v2413_v45 }
 0x2c8   :  { %v10227_v8 = vpop.eup %7150  ;;  %7170 = vtanh.f32 %v3894_v34  ;;  %v3898_v19 = vadd.f32 %v3897_v61, %v9708_v53  ;;  %v3899_v3 = vpop.f32.mrb[39].mxu1  ;;  %3129 = vmatmul.mubr.bf16.gmra.mrb[184].mxu0 %v2412_v57  ;;  %v3508_v41 = vpack.c.bf16 %v7147_v4, %v7149_v46  ;;  %v923_v4 = vmul.f32 %v8611_v12, %v10095_v6 }
 0x2c9   :  { %11786 = vst [vmem:[#allocation14_spill] sm:$0xff] %v10227_v8  ;;  %v10231_v50 = vpop.permute.xlu0 %664  ;;  %v10233_v5 = vpop.eup %7152  ;;  %7172 = vtanh.f32 %v3896_v52  ;;  %v1828_v26 = vadd.f32 %v1604_v13, %v920_v0  ;;  %v1829_v48 = vadd.f32 %v1605_v63, %v921_v40  ;;  %v3900_v2 = vadd.f32 %v3899_v3, %v9705_v51 }
 0x2ca   :  { %11787 = vst [vmem:[#allocation15_spill] sm:$0xff] %v10233_v5  ;;  %v10236_v45 = vpop.eup %7154  ;;  %7174 = vtanh.f32 %v2957_v59  ;;  %4071 = vmatprep.mubr.bf16.mxu1 %v3508_v41  ;;  %v1343_v57 = vpop.permute.xlu1 %1342  ;;  %v1616_v34 = vmul.f32 %v8602_v9, %v10213_v60 }
 0x2cb   :  { %11788 = vst [vmem:[#allocation16_spill] sm:$0xff] %v10236_v45  ;;  %v10242_v27 = vpop.eup %7156  ;;  %7176 = vtanh.f32 %v3898_v19  ;;  %v2064_v24 = vadd.f32 %v8627_v21, %v1828_v26  ;;  %v2065_v0 = vadd.f32 %v8630_v22, %v1829_v48  ;;  %4072 = vmatmul.mubr.bf16.gmra.mrb[108].mxu1 %v3507_v38  ;;  %v1606_v40 = vmul.f32 %v8602_v9, %v1343_v57  ;;  %v2960_v59 = vpop.f32.mrb[116].mxu0 }
 0x2cc   :  { %11789 = vst [vmem:[#allocation17_spill] sm:$0xff] %v10242_v27  ;;  %v7159_v46 = vpop.eup %7158  ;;  %7178 = vtanh.f32 %v3900_v2  ;;  %v1607_v52 = vmul.f32 %v8605_v10, %v1343_v57  ;;  %v2961_v19 = vadd.f32 %v2960_v59, %v9168_v17  ;;  %v2962_v3 = vpop.f32.mrb[117].mxu0 }
 0x2cd   :  { %v10248_v61 = vpop.permute.xlu0 %669  ;;  %v7161_v13 = vpop.eup %7160  ;;  %v1830_v63 = vadd.f32 %v1606_v40, %v922_v30  ;;  %v2414_v41 = vpack.c.bf16 %v7159_v46, %v10163_v62  ;;  %7180 = vtanh.f32 %v2069_v54  ;;  %v2963_v46 = vadd.f32 %v2962_v3, %v9171_v20 }
 0x2ce   :  { %v10254_v38 = vpop.eup %7162  ;;  %7182 = vtanh.f32 %v2064_v24  ;;  %v1831_v26 = vadd.f32 %v1607_v52, %v923_v4  ;;  %v2964_v48 = vpop.f32.mrb[118].mxu0  ;;  %v2415_v57 = vpack.c.bf16 %v7161_v13, %v10202_v18  ;;  %v932_v62 = vmul.f32 %v8608_v11, %v10248_v61 }
 0x2cf   :  { %v655_v2 = vpop.permute.xlu1 %654  ;;  %v7165_v6 = vpop.eup %7164  ;;  %7184 = vtanh.f32 %v2065_v0  ;;  %v2066_v30 = vadd.f32 %v8627_v21, %v1830_v63  ;;  %v2965_v40 = vadd.f32 %v2964_v48, %v9168_v17 }
 0x2d0   :  { %v2966_v59 = vpop.f32.mrb[119].mxu0  ;;  %v7167_v54 = vpop.eup %7166  ;;  %v2067_v4 = vadd.f32 %v8630_v22, %v1831_v26  ;;  %7186 = vtanh.f32 %v2961_v19  ;;  %3138 = vmatprep.mubr.bf16.mxu0 %v2415_v57  ;;  %v926_v19 = vmul.f32 %v8608_v11, %v655_v2  ;;  %v927_v26 = vmul.f32 %v8611_v12, %v655_v2 }
 0x2d1   :  { %v2967_v24 = vadd.f32 %v2966_v59, %v9171_v20  ;;  %v7169_v18 = vpop.eup %7168  ;;  %7188 = vtanh.f32 %v2066_v30  ;;  %3139 = vmatmul.mubr.bf16.gmra.mrb[188].mxu0 %v2414_v41  ;;  %v3903_v0 = vpop.f32.mrb[40].mxu1  ;;  %v1840_v59 = vadd.f32 %v1616_v34, %v932_v62 }
 0x2d2   :  { %v10266_v52 = vpop.eup %7170  ;;  %7190 = vtanh.f32 %v2067_v4  ;;  %v3904_v13 = vadd.f32 %v3903_v0, %v9708_v53  ;;  %v3905_v63 = vpop.f32.mrb[41].mxu1  ;;  %v3509_v48 = vpack.c.bf16 %v7169_v18, %v7165_v6 }
 0x2d3   :  { %11790 = vst [vmem:[#allocation18_spill] sm:$0xff] %v10266_v52  ;;  %v10269_v8 = vpop.eup %7172  ;;  %7192 = vtanh.f32 %v2965_v40  ;;  %v3907_v57 = vpop.f32.mrb[42].mxu1  ;;  %v3906_v40 = vadd.f32 %v3905_v63, %v9705_v51  ;;  %v933_v63 = vmul.f32 %v8611_v12, %v10248_v61 }
 0x2d4   :  { %11791 = vst [vmem:[#allocation19_spill] sm:$0xff] %v10269_v8  ;;  %v1351_v30 = vpop.permute.xlu1 %1350  ;;  %v7175_v3 = vpop.eup %7174  ;;  %7194 = vtanh.f32 %v2967_v24  ;;  %v3908_v41 = vadd.f32 %v3907_v57, %v9708_v53 }
 0x2d5   :  { %v1610_v4 = vmul.f32 %v8602_v9, %v1351_v30  ;;  %v1611_v0 = vmul.f32 %v8605_v10, %v1351_v30  ;;  %v3909_v5 = vpop.f32.mrb[43].mxu1  ;;  %v10276_v6 = vpop.eup %7176  ;;  %7196 = vtanh.f32 %v2963_v46  ;;  %v3510_v2 = vpack.c.bf16 %v7175_v3, %v7167_v54 }
 0x2d6   :  { %11792 = vst [vmem:[#allocation20_spill] sm:$0xff] %v10276_v6  ;;  %v3910_v18 = vadd.f32 %v3909_v5, %v9705_v51  ;;  %v10280_v27 = vpop.eup %7178  ;;  %7198 = vtanh.f32 %v3904_v13  ;;  %v1617_v46 = vmul.f32 %v8605_v10, %v10213_v60 }
 0x2d7   :  { %11793 = vst [vmem:[#allocation21_spill] sm:$0xff] %v10280_v27  ;;  %v1834_v62 = vadd.f32 %v1610_v4, %v926_v19  ;;  %v1835_v24 = vadd.f32 %v1611_v0, %v927_v26  ;;  %v10284_v57 = vpop.eup %7180  ;;  %7200 = vtanh.f32 %v3908_v41  ;;  %4081 = vmatprep.mubr.bf16.mxu1 %v3510_v2  ;;  %v2076_v26 = vadd.f32 %v8627_v21, %v1840_v59  ;;  %v2970_v60 = vpop.f32.mrb[120].mxu0 }
 0x2d8   :  { %v7183_v54 = vpop.eup %7182  ;;  %7202 = vtanh.f32 %v3910_v18  ;;  %4082 = vmatmul.mubr.bf16.gmra.mrb[112].mxu1 %v3509_v48  ;;  %v660_v19 = vpop.permute.xlu1 %659  ;;  %v2971_v61 = vadd.f32 %v2970_v60, %v9168_v17  ;;  %v930_v2 = vmul.f32 %v8608_v11, %v10231_v50 }
 0x2d9   :  { %v2070_v30 = vadd.f32 %v8627_v21, %v1834_v62  ;;  %v2071_v13 = vadd.f32 %v8630_v22, %v1835_v24  ;;  %v7185_v3 = vpop.eup %7184  ;;  %7204 = vtanh.f32 %v3906_v40  ;;  %v2972_v0 = vpop.f32.mrb[121].mxu0  ;;  %v1841_v62 = vadd.f32 %v1617_v46, %v933_v63 }
 0x2da   :  { %v7187_v41 = vpop.eup %7186  ;;  %v10298_v24 = vpop.permute.xlu0 %684  ;;  %v928_v18 = vmul.f32 %v8608_v11, %v660_v19  ;;  %v2973_v59 = vadd.f32 %v2972_v0, %v9171_v20 }
 0x2db   :  { %7206 = vtanh.f32 %v2070_v30  ;;  %v7189_v4 = vpop.eup %7188  ;;  %v2974_v40 = vpop.f32.mrb[122].mxu0 }
 0x2dc   :  { %7208 = vtanh.f32 %v2071_v13  ;;  %v7191_v48 = vpop.eup %7190  ;;  %v2416_v34 = vpack.c.bf16 %v7189_v4, %v7183_v54  ;;  %v929_v13 = vmul.f32 %v8611_v12, %v660_v19  ;;  %v3913_v60 = vpop.f32.mrb[44].mxu1  ;;  %v2975_v5 = vadd.f32 %v2974_v40, %v9168_v17 }
 0x2dd   :  { %7210 = vtanh.f32 %v2076_v26  ;;  %v7193_v30 = vpop.eup %7192  ;;  %v2976_v52 = vpop.f32.mrb[123].mxu0  ;;  %v2417_v6 = vpack.c.bf16 %v7191_v48, %v7185_v3  ;;  %v3914_v63 = vadd.f32 %v3913_v60, %v9708_v53 }
 0x2de   :  { %7212 = vtanh.f32 %v2971_v61  ;;  %v7195_v46 = vpop.eup %7194  ;;  %v3915_v8 = vpop.f32.mrb[45].mxu1  ;;  %v2977_v27 = vadd.f32 %v2976_v52, %v9171_v20  ;;  %v3511_v45 = vpack.c.bf16 %v7193_v30, %v7187_v41 }
 0x2df   :  { %7214 = vtanh.f32 %v2973_v59  ;;  %v1355_v0 = vpop.permute.xlu1 %1354  ;;  %v7197_v54 = vpop.eup %7196  ;;  %v3916_v26 = vadd.f32 %v3915_v8, %v9705_v51  ;;  %3148 = vmatprep.mubr.bf16.mxu0 %v2417_v6 }
 0x2e0   :  { %7216 = vtanh.f32 %v2975_v5  ;;  %v3917_v19 = vpop.f32.mrb[46].mxu1  ;;  %v1612_v4 = vmul.f32 %v8602_v9, %v1355_v0  ;;  %v1613_v61 = vmul.f32 %v8605_v10, %v1355_v0  ;;  %v10309_v3 = vpop.permute.xlu0 %1378  ;;  %3149 = vmatmul.mubr.bf16.gmra.mrb[192].mxu0 %v2416_v34  ;;  %v3512_v41 = vpack.c.bf16 %v7195_v46, %v7197_v54 }
 0x2e1   :  { %v10311_v48 = vpop.eup %7198  ;;  %7218 = vtanh.f32 %v3914_v63  ;;  %v3918_v59 = vadd.f32 %v3917_v19, %v9708_v53  ;;  %v3919_v52 = vpop.f32.mrb[47].mxu1  ;;  %v2077_v5 = vadd.f32 %v8630_v22, %v1841_v62  ;;  %v931_v34 = vmul.f32 %v8611_v12, %v10231_v50 }
 0x2e2   :  { %11794 = vst [vmem:[#allocation22_spill] sm:$0xff] %v10311_v48  ;;  %v10315_v40 = vpop.eup %7200  ;;  %7220 = vtanh.f32 %v3916_v26  ;;  %v1836_v8 = vadd.f32 %v1612_v4, %v928_v18  ;;  %v1837_v30 = vadd.f32 %v1613_v61, %v929_v13  ;;  %v3920_v60 = vadd.f32 %v3919_v52, %v9705_v51  ;;  %4091 = vmatprep.mubr.bf16.mxu1 %v3512_v41 }
 0x2e3   :  { %11795 = vst [vmem:[#allocation23_spill] sm:$0xff] %v10315_v40  ;;  %v10318_v6 = vpop.eup %7202  ;;  %7222 = vtanh.f32 %v2977_v27  ;;  %v1359_v63 = vpop.permute.xlu1 %1358  ;;  %4092 = vmatmul.mubr.bf16.gmra.mrb[116].mxu1 %v3511_v45  ;;  %v1624_v0 = vmul.f32 %v8602_v9, %v10309_v3 }
 0x2e4   :  { %11796 = vst [vmem:[#allocation24_spill] sm:$0xff] %v10318_v6  ;;  %v10324_v46 = vpop.eup %7204  ;;  %7224 = vtanh.f32 %v3918_v59  ;;  %v2072_v62 = vadd.f32 %v8627_v21, %v1836_v8  ;;  %v2073_v18 = vadd.f32 %v8630_v22, %v1837_v30  ;;  %v1614_v13 = vmul.f32 %v8602_v9, %v1359_v63  ;;  %v2980_v27 = vpop.f32.mrb[124].mxu0 }
 0x2e5   :  { %11797 = vst [vmem:[#allocation25_spill] sm:$0xff] %v10324_v46  ;;  %v7207_v54 = vpop.eup %7206  ;;  %7226 = vtanh.f32 %v3920_v60  ;;  %v1615_v26 = vmul.f32 %v8605_v10, %v1359_v63  ;;  %v2981_v61 = vadd.f32 %v2980_v27, %v9168_v17  ;;  %v2982_v59 = vpop.f32.mrb[125].mxu0 }
 0x2e6   :  { %v7209_v4 = vpop.eup %7208  ;;  %v1838_v50 = vadd.f32 %v1614_v13, %v930_v2  ;;  %v2418_v52 = vpack.c.bf16 %v7207_v54, %v10254_v38  ;;  %7228 = vtanh.f32 %v2077_v5  ;;  %v690_v41 = vpop.permute.xlu0 %689 }
 0x2e7   :  { %v10334_v45 = vpop.eup %7210  ;;  %7230 = vtanh.f32 %v2072_v62  ;;  %v1839_v8 = vadd.f32 %v1615_v26, %v931_v34  ;;  %v2984_v30 = vpop.f32.mrb[126].mxu0  ;;  %v2419_v63 = vpack.c.bf16 %v7209_v4, %v10284_v57  ;;  %v940_v5 = vmul.f32 %v8608_v11, %v690_v41 }
 0x2e8   :  { %v675_v60 = vpop.permute.xlu1 %674  ;;  %v7213_v19 = vpop.eup %7212  ;;  %7232 = vtanh.f32 %v2073_v18  ;;  %v2074_v2 = vadd.f32 %v8627_v21, %v1838_v50  ;;  %v2985_v13 = vadd.f32 %v2984_v30, %v9168_v17  ;;  %v2983_v26 = vadd.f32 %v2982_v59, %v9171_v20 }
 0x2e9   :  { %v2986_v38 = vpop.f32.mrb[127].mxu0  ;;  %v7215_v54 = vpop.eup %7214  ;;  %v2075_v62 = vadd.f32 %v8630_v22, %v1839_v8  ;;  %7234 = vtanh.f32 %v2981_v61  ;;  %3158 = vmatprep.mubr.bf16.mxu0 %v2419_v63  ;;  %v934_v61 = vmul.f32 %v8608_v11, %v675_v60  ;;  %v935_v8 = vmul.f32 %v8611_v12, %v675_v60 }
 0x2ea   :  { %v2987_v34 = vadd.f32 %v2986_v38, %v9171_v20  ;;  %v7217_v57 = vpop.eup %7216  ;;  %7236 = vtanh.f32 %v2074_v2  ;;  %3159 = vmatmul.mubr.bf16.gmra.mrb[196].mxu0 %v2418_v52  ;;  %v3923_v18 = vpop.f32.mrb[48].mxu1  ;;  %v1848_v38 = vadd.f32 %v1624_v0, %v940_v5 }
 0x2eb   :  { %v10345_v27 = vpop.eup %7218  ;;  %7238 = vtanh.f32 %v2075_v62  ;;  %v3924_v4 = vadd.f32 %v3923_v18, %v9708_v53  ;;  %v3925_v50 = vpop.f32.mrb[49].mxu1  ;;  %v3513_v30 = vpack.c.bf16 %v7217_v57, %v7213_v19 }
 0x2ec   :  { %11798 = vst [vmem:[#allocation26_spill] sm:$0xff] %v10345_v27  ;;  %v10348_v48 = vpop.eup %7220  ;;  %7240 = vtanh.f32 %v2985_v13  ;;  %v3927_v63 = vpop.f32.mrb[50].mxu1  ;;  %v3926_v13 = vadd.f32 %v3925_v50, %v9705_v51 }
 0x2ed   :  { %11799 = vst [vmem:[#allocation27_spill] sm:$0xff] %v10348_v48  ;;  %v1367_v2 = vpop.permute.xlu1 %1366  ;;  %v7223_v59 = vpop.eup %7222  ;;  %7242 = vtanh.f32 %v2987_v34  ;;  %v3928_v52 = vadd.f32 %v3927_v63, %v9708_v53 }
 0x2ee   :  { %v1618_v62 = vmul.f32 %v8602_v9, %v1367_v2  ;;  %v1619_v18 = vmul.f32 %v8605_v10, %v1367_v2  ;;  %v3929_v40 = vpop.f32.mrb[51].mxu1  ;;  %v10355_v19 = vpop.eup %7224  ;;  %7244 = vtanh.f32 %v2983_v26  ;;  %v3514_v60 = vpack.c.bf16 %v7223_v59, %v7215_v54 }
 0x2ef   :  { %11800 = vst [vmem:[#allocation28_spill] sm:$0xff] %v10355_v19  ;;  %v3930_v57 = vadd.f32 %v3929_v40, %v9705_v51  ;;  %v10359_v46 = vpop.eup %7226  ;;  %7246 = vtanh.f32 %v3924_v4  ;;  %v10363_v63 = vpop.permute.xlu0 %704  ;;  %v1625_v26 = vmul.f32 %v8605_v10, %v10309_v3  ;;  %v941_v40 = vmul.f32 %v8611_v12, %v690_v41 }
 0x2f0   :  { %11801 = vst [vmem:[#allocation29_spill] sm:$0xff] %v10359_v46  ;;  %v1842_v5 = vadd.f32 %v1618_v62, %v934_v61  ;;  %v1843_v34 = vadd.f32 %v1619_v18, %v935_v8  ;;  %v10365_v2 = vpop.eup %7228  ;;  %7248 = vtanh.f32 %v3928_v52  ;;  %4101 = vmatprep.mubr.bf16.mxu1 %v3514_v60  ;;  %v2084_v8 = vadd.f32 %v8627_v21, %v1848_v38  ;;  %v2990_v3 = vpop.f32.mrb[128].mxu0 }
 0x2f1   :  { %v7231_v50 = vpop.eup %7230  ;;  %7250 = vtanh.f32 %v3930_v57  ;;  %4102 = vmatmul.mubr.bf16.gmra.mrb[120].mxu1 %v3513_v30  ;;  %v680_v61 = vpop.permute.xlu1 %679  ;;  %v2991_v41 = vadd.f32 %v2990_v3, %v9168_v17  ;;  %v1849_v0 = vadd.f32 %v1625_v26, %v941_v40 }
 0x2f2   :  { %v2078_v59 = vadd.f32 %v8627_v21, %v1842_v5  ;;  %v2079_v4 = vadd.f32 %v8630_v22, %v1843_v34  ;;  %v7233_v52 = vpop.eup %7232  ;;  %7252 = vtanh.f32 %v3926_v13  ;;  %v2992_v60 = vpop.f32.mrb[129].mxu0  ;;  %v936_v5 = vmul.f32 %v8608_v11, %v680_v61 }
 0x2f3   :  { %v7235_v62 = vpop.eup %7234  ;;  %v2993_v57 = vadd.f32 %v2992_v60, %v9171_v20  ;;  %v2994_v30 = vpop.f32.mrb[130].mxu0 }
 0x2f4   :  { %7254 = vtanh.f32 %v2078_v59  ;;  %v7237_v18 = vpop.eup %7236  ;;  %v10378_v38 = vpop.permute.xlu0 %709  ;;  %v937_v59 = vmul.f32 %v8611_v12, %v680_v61 }
 0x2f5   :  { %7256 = vtanh.f32 %v2079_v4  ;;  %v7239_v54 = vpop.eup %7238  ;;  %v2420_v34 = vpack.c.bf16 %v7237_v18, %v7231_v50  ;;  %v3933_v27 = vpop.f32.mrb[52].mxu1  ;;  %v2995_v4 = vadd.f32 %v2994_v30, %v9168_v17 }
 0x2f6   :  { %7258 = vtanh.f32 %v2084_v8  ;;  %v7241_v13 = vpop.eup %7240  ;;  %v2996_v3 = vpop.f32.mrb[131].mxu0  ;;  %v2421_v19 = vpack.c.bf16 %v7239_v54, %v7233_v52  ;;  %v3934_v40 = vadd.f32 %v3933_v27, %v9708_v53 }
 0x2f7   :  { %7260 = vtanh.f32 %v2991_v41  ;;  %v7243_v26 = vpop.eup %7242  ;;  %v3935_v48 = vpop.f32.mrb[53].mxu1  ;;  %v2997_v60 = vadd.f32 %v2996_v3, %v9171_v20  ;;  %v3515_v8 = vpack.c.bf16 %v7241_v13, %v7235_v62  ;;  %v2085_v62 = vadd.f32 %v8630_v22, %v1849_v0 }
 0x2f8   :  { %7262 = vtanh.f32 %v2993_v57  ;;  %v1371_v50 = vpop.permute.xlu1 %1370  ;;  %v7245_v18 = vpop.eup %7244  ;;  %v3936_v46 = vadd.f32 %v3935_v48, %v9705_v51  ;;  %3168 = vmatprep.mubr.bf16.mxu0 %v2421_v19  ;;  %v948_v19 = vmul.f32 %v8608_v11, %v10378_v38 }
 0x2f9   :  { %7264 = vtanh.f32 %v2995_v4  ;;  %v3937_v61 = vpop.f32.mrb[54].mxu1  ;;  %v1620_v41 = vmul.f32 %v8602_v9, %v1371_v50  ;;  %v1621_v30 = vmul.f32 %v8605_v10, %v1371_v50  ;;  %v10387_v54 = vpop.eup %7246  ;;  %3169 = vmatmul.mubr.bf16.gmra.mrb[200].mxu0 %v2420_v34  ;;  %v3516_v57 = vpack.c.bf16 %v7243_v26, %v7245_v18 }
 0x2fa   :  { %11802 = vst [vmem:[#allocation30_spill] sm:$0xff] %v10387_v54  ;;  %7266 = vtanh.f32 %v3934_v40  ;;  %v3938_v27 = vadd.f32 %v3937_v61, %v9708_v53  ;;  %v3939_v52 = vpop.f32.mrb[55].mxu1  ;;  %v10391_v13 = vpop.eup %7248  ;;  %v938_v40 = vmul.f32 %v8608_v11, %v10298_v24  ;;  %v939_v50 = vmul.f32 %v8611_v12, %v10298_v24 }
 0x2fb   :  { %11803 = vst [vmem:[#allocation31_spill] sm:$0xff] %v10391_v13  ;;  %7268 = vtanh.f32 %v3936_v46  ;;  %v1844_v48 = vadd.f32 %v1620_v41, %v936_v5  ;;  %v1845_v4 = vadd.f32 %v1621_v30, %v937_v59  ;;  %v3940_v3 = vadd.f32 %v3939_v52, %v9705_v51  ;;  %v10394_v6 = vpop.eup %7250  ;;  %4111 = vmatprep.mubr.bf16.mxu1 %v3516_v57  ;;  %v10408_v61 = vpop.permute.xlu0 %1394 }
 0x2fc   :  { %7270 = vtanh.f32 %v2997_v60  ;;  %v1375_v34 = vpop.permute.xlu1 %1374  ;;  %v10400_v26 = vpop.eup %7252  ;;  %4112 = vmatmul.mubr.bf16.gmra.mrb[124].mxu1 %v3515_v8 }
 0x2fd   :  { %11804 = vst [vmem:[#allocation32_spill] sm:$0xff] %v10400_v26  ;;  %7272 = vtanh.f32 %v3938_v27  ;;  %v2080_v46 = vadd.f32 %v8627_v21, %v1844_v48  ;;  %v2081_v0 = vadd.f32 %v8630_v22, %v1845_v4  ;;  %v1622_v5 = vmul.f32 %v8602_v9, %v1375_v34  ;;  %v3000_v60 = vpop.f32.mrb[132].mxu0 }
 0x2fe   :  { %v7255_v59 = vpop.eup %7254  ;;  %7274 = vtanh.f32 %v3940_v3  ;;  %v1623_v18 = vmul.f32 %v8605_v10, %v1375_v34  ;;  %v3001_v52 = vadd.f32 %v3000_v60, %v9168_v17  ;;  %v3002_v8 = vpop.f32.mrb[133].mxu0 }
 0x2ff   :  { %v7257_v30 = vpop.eup %7256  ;;  %v1846_v27 = vadd.f32 %v1622_v5, %v938_v40  ;;  %7276 = vtanh.f32 %v2085_v62  ;;  %v2422_v57 = vpack.c.bf16 %v7255_v59, %v10334_v45  ;;  %v3004_v4 = vpop.f32.mrb[134].mxu0  ;;  %v1632_v45 = vmul.f32 %v8602_v9, %v10408_v61 }
 0x300   :  { %v10414_v48 = vpop.eup %7258  ;;  %7278 = vtanh.f32 %v2080_v46  ;;  %v1847_v24 = vadd.f32 %v1623_v18, %v939_v50  ;;  %v695_v3 = vpop.permute.xlu1 %694  ;;  %v2423_v34 = vpack.c.bf16 %v7257_v30, %v10365_v2  ;;  %v3005_v5 = vadd.f32 %v3004_v4, %v9168_v17 }
 0x301   :  { %v7261_v41 = vpop.eup %7260  ;;  %7280 = vtanh.f32 %v2081_v0  ;;  %v2082_v40 = vadd.f32 %v8627_v21, %v1846_v27  ;;  %v3006_v62 = vpop.f32.mrb[135].mxu0  ;;  %v3003_v18 = vadd.f32 %v3002_v8, %v9171_v20 }
 0x302   :  { %v7263_v59 = vpop.eup %7262  ;;  %v2083_v46 = vadd.f32 %v8630_v22, %v1847_v24  ;;  %7282 = vtanh.f32 %v3001_v52  ;;  %v3007_v50 = vadd.f32 %v3006_v62, %v9171_v20  ;;  %3178 = vmatprep.mubr.bf16.mxu0 %v2423_v34  ;;  %v3943_v0 = vpop.f32.mrb[56].mxu1  ;;  %v942_v52 = vmul.f32 %v8608_v11, %v695_v3 }
 0x303   :  { %v7265_v2 = vpop.eup %7264  ;;  %7284 = vtanh.f32 %v2082_v40  ;;  %3179 = vmatmul.mubr.bf16.gmra.mrb[204].mxu0 %v2422_v57  ;;  %v3944_v30 = vadd.f32 %v3943_v0, %v9708_v53  ;;  %v3945_v27 = vpop.f32.mrb[57].mxu1  ;;  %v943_v24 = vmul.f32 %v8611_v12, %v695_v3  ;;  %v1856_v62 = vadd.f32 %v1632_v45, %v948_v19 }
 0x304   :  { %v10426_v60 = vpop.eup %7266  ;;  %7286 = vtanh.f32 %v2083_v46  ;;  %v3517_v4 = vpack.c.bf16 %v7265_v2, %v7261_v41  ;;  %v3947_v34 = vpop.f32.mrb[58].mxu1 }
 0x305   :  { %11805 = vst [vmem:[#allocation33_spill] sm:$0xff] %v10426_v60  ;;  %v10429_v54 = vpop.eup %7268  ;;  %7288 = vtanh.f32 %v3005_v5  ;;  %v1383_v40 = vpop.permute.xlu1 %1382  ;;  %v3948_v57 = vadd.f32 %v3947_v34, %v9708_v53  ;;  %v3946_v5 = vadd.f32 %v3945_v27, %v9705_v51 }
 0x306   :  { %11806 = vst [vmem:[#allocation34_spill] sm:$0xff] %v10429_v54  ;;  %v7271_v8 = vpop.eup %7270  ;;  %7290 = vtanh.f32 %v3007_v50  ;;  %v1626_v46 = vmul.f32 %v8602_v9, %v1383_v40  ;;  %v1627_v0 = vmul.f32 %v8605_v10, %v1383_v40  ;;  %v3949_v13 = vpop.f32.mrb[59].mxu1 }
 0x307   :  { %v10436_v41 = vpop.eup %7272  ;;  %7292 = vtanh.f32 %v3003_v18  ;;  %v3950_v2 = vadd.f32 %v3949_v13, %v9705_v51  ;;  %v3518_v3 = vpack.c.bf16 %v7271_v8, %v7263_v59  ;;  %v2092_v8 = vadd.f32 %v8627_v21, %v1856_v62 }
 0x308   :  { %11807 = vst [vmem:[#allocation35_spill] sm:$0xff] %v10436_v41  ;;  %v10440_v26 = vpop.eup %7274  ;;  %7294 = vtanh.f32 %v3944_v30  ;;  %v1850_v45 = vadd.f32 %v1626_v46, %v942_v52  ;;  %v1851_v50 = vadd.f32 %v1627_v0, %v943_v24  ;;  %v3010_v24 = vpop.f32.mrb[136].mxu0 }
 0x309   :  { %11808 = vst [vmem:[#allocation36_spill] sm:$0xff] %v10440_v26  ;;  %v10444_v34 = vpop.eup %7276  ;;  %7296 = vtanh.f32 %v3948_v57  ;;  %4121 = vmatprep.mubr.bf16.mxu1 %v3518_v3  ;;  %v700_v59 = vpop.permute.xlu1 %699  ;;  %v3011_v46 = vadd.f32 %v3010_v24, %v9168_v17 }
 0x30a   :  { %v7279_v40 = vpop.eup %7278  ;;  %v2086_v27 = vadd.f32 %v8627_v21, %v1850_v45  ;;  %v2087_v13 = vadd.f32 %v8630_v22, %v1851_v50  ;;  %7298 = vtanh.f32 %v3950_v2  ;;  %4122 = vmatmul.mubr.bf16.gmra.mrb[128].mxu1 %v3517_v4  ;;  %v3012_v0 = vpop.f32.mrb[137].mxu0  ;;  %v944_v45 = vmul.f32 %v8608_v11, %v700_v59 }
 0x30b   :  { %v7281_v30 = vpop.eup %7280  ;;  %7300 = vtanh.f32 %v3946_v5  ;;  %v3013_v50 = vadd.f32 %v3012_v0, %v9171_v20  ;;  %v3014_v2 = vpop.f32.mrb[138].mxu0  ;;  %v945_v62 = vmul.f32 %v8611_v12, %v700_v59 }
 0x30c   :  { %v7283_v52 = vpop.eup %7282  ;;  %7302 = vtanh.f32 %v2086_v27  ;;  %v3953_v5 = vpop.f32.mrb[60].mxu1  ;;  %v3015_v27 = vadd.f32 %v3014_v2, %v9168_v17 }
 0x30d   :  { %v7285_v57 = vpop.eup %7284  ;;  %7304 = vtanh.f32 %v2087_v13  ;;  %v3016_v18 = vpop.f32.mrb[139].mxu0  ;;  %v3954_v24 = vadd.f32 %v3953_v5, %v9708_v53 }
 0x30e   :  { %v7287_v3 = vpop.eup %7286  ;;  %7306 = vtanh.f32 %v2092_v8  ;;  %v2424_v4 = vpack.c.bf16 %v7285_v57, %v7279_v40  ;;  %v3955_v41 = vpop.f32.mrb[61].mxu1  ;;  %v3017_v54 = vadd.f32 %v3016_v18, %v9171_v20 }
 0x30f   :  { %v7289_v19 = vpop.eup %7288  ;;  %7308 = vtanh.f32 %v3011_v46  ;;  %v2425_v13 = vpack.c.bf16 %v7287_v3, %v7281_v30  ;;  %v1387_v0 = vpop.permute.xlu1 %1386  ;;  %v3956_v40 = vadd.f32 %v3955_v41, %v9705_v51  ;;  %v946_v3 = vmul.f32 %v8608_v11, %v10363_v63 }
 0x310   :  { %v7291_v60 = vpop.eup %7290  ;;  %7310 = vtanh.f32 %v3013_v50  ;;  %v3519_v26 = vpack.c.bf16 %v7289_v19, %v7283_v52  ;;  %v3957_v59 = vpop.f32.mrb[62].mxu1  ;;  %v1628_v57 = vmul.f32 %v8602_v9, %v1387_v0  ;;  %v1629_v46 = vmul.f32 %v8605_v10, %v1387_v0 }
 0x311   :  { %v7293_v8 = vpop.eup %7292  ;;  %7312 = vtanh.f32 %v3015_v27  ;;  %3188 = vmatprep.mubr.bf16.mxu0 %v2425_v13  ;;  %v3958_v18 = vadd.f32 %v3957_v59, %v9708_v53  ;;  %v3959_v50 = vpop.f32.mrb[63].mxu1  ;;  %v949_v0 = vmul.f32 %v8611_v12, %v10378_v38 }
 0x312   :  { %v10461_v30 = vpop.eup %7294  ;;  %7314 = vtanh.f32 %v3954_v24  ;;  %3189 = vmatmul.mubr.bf16.gmra.mrb[208].mxu0 %v2424_v4  ;;  %v3520_v19 = vpack.c.bf16 %v7291_v60, %v7293_v8  ;;  %v1852_v41 = vadd.f32 %v1628_v57, %v944_v45  ;;  %v1853_v2 = vadd.f32 %v1629_v46, %v945_v62 }
 0x313   :  { %v10466_v52 = vpop.eup %7296  ;;  %7316 = vtanh.f32 %v3956_v40  ;;  %v3960_v5 = vadd.f32 %v3959_v50, %v9705_v51  ;;  %v947_v24 = vmul.f32 %v8611_v12, %v10363_v63  ;;  %v1391_v60 = vpop.permute.xlu1 %1390  ;;  %v1633_v63 = vmul.f32 %v8605_v10, %v10408_v61 }
 0x314   :  { %v10469_v27 = vpop.eup %7298  ;;  %7318 = vtanh.f32 %v3017_v54  ;;  %4131 = vmatprep.mubr.bf16.mxu1 %v3520_v19  ;;  %v2088_v45 = vadd.f32 %v8627_v21, %v1852_v41  ;;  %v2089_v62 = vadd.f32 %v8630_v22, %v1853_v2  ;;  %v1630_v8 = vmul.f32 %v8602_v9, %v1391_v60  ;;  %v3020_v54 = vpop.f32.mrb[140].mxu0 }
 0x315   :  { %v10477_v4 = vpop.eup %7300  ;;  %7320 = vtanh.f32 %v3958_v18  ;;  %4132 = vmatmul.mubr.bf16.gmra.mrb[132].mxu1 %v3519_v26  ;;  %v1631_v38 = vmul.f32 %v8605_v10, %v1391_v60  ;;  %v3021_v18 = vadd.f32 %v3020_v54, %v9168_v17  ;;  %v3022_v50 = vpop.f32.mrb[141].mxu0 }
 0x316   :  { %v7303_v40 = vpop.eup %7302  ;;  %7322 = vtanh.f32 %v3960_v5  ;;  %v1854_v46 = vadd.f32 %v1630_v8, %v946_v3  ;;  %v3023_v61 = vadd.f32 %v3022_v50, %v9171_v20  ;;  %v3024_v2 = vpop.f32.mrb[142].mxu0 }
 0x317   :  { %v7305_v57 = vpop.eup %7304  ;;  %7324 = vtanh.f32 %v2088_v45  ;;  %v2426_v26 = vpack.c.bf16 %v7303_v40, %v10414_v48  ;;  %v1855_v41 = vadd.f32 %v1631_v38, %v947_v24  ;;  %v715_v5 = vpop.permute.xlu1 %714  ;;  %v3025_v3 = vadd.f32 %v3024_v2, %v9168_v17 }
 0x318   :  { %v10489_v19 = vpop.eup %7306  ;;  %7326 = vtanh.f32 %v2089_v62  ;;  %v2427_v60 = vpack.c.bf16 %v7305_v57, %v10444_v34  ;;  %v2090_v59 = vadd.f32 %v8627_v21, %v1854_v46  ;;  %v3026_v45 = vpop.f32.mrb[143].mxu0  ;;  %v1857_v40 = vadd.f32 %v1633_v63, %v949_v0 }
 0x319   :  { %v7309_v13 = vpop.eup %7308  ;;  %7328 = vtanh.f32 %v3021_v18  ;;  %v2091_v48 = vadd.f32 %v8630_v22, %v1855_v41  ;;  %v3027_v62 = vadd.f32 %v3026_v45, %v9171_v20  ;;  %v3963_v38 = vpop.f32.mrb[64].mxu1  ;;  %v950_v50 = vmul.f32 %v8608_v11, %v715_v5 }
 0x31a   :  { %v7311_v8 = vpop.eup %7310  ;;  %7330 = vtanh.f32 %v3023_v61  ;;  %3198 = vmatprep.mubr.bf16.mxu0 %v2427_v60  ;;  %v3964_v54 = vadd.f32 %v3963_v38, %v9708_v53  ;;  %v3965_v57 = vpop.f32.mrb[65].mxu1  ;;  %v951_v41 = vmul.f32 %v8611_v12, %v715_v5 }
 0x31b   :  { %v7313_v24 = vpop.eup %7312  ;;  %7332 = vtanh.f32 %v2090_v59  ;;  %3199 = vmatmul.mubr.bf16.gmra.mrb[212].mxu0 %v2426_v26  ;;  %v3966_v61 = vadd.f32 %v3965_v57, %v9705_v51  ;;  %v3967_v0 = vpop.f32.mrb[66].mxu1 }
 0x31c   :  { %v10497_v34 = vpop.eup %7314  ;;  %7334 = vtanh.f32 %v2091_v48  ;;  %v3521_v46 = vpack.c.bf16 %v7313_v24, %v7309_v13  ;;  %v1399_v63 = vpop.permute.xlu1 %1398  ;;  %v3968_v26 = vadd.f32 %v3967_v0, %v9708_v53 }
 0x31d   :  { %v10500_v18 = vpop.eup %7316  ;;  %7336 = vtanh.f32 %v3025_v3  ;;  %v1634_v2 = vmul.f32 %v8602_v9, %v1399_v63  ;;  %v1635_v60 = vmul.f32 %v8605_v10, %v1399_v63  ;;  %v3969_v13 = vpop.f32.mrb[67].mxu1  ;;  %v2093_v3 = vadd.f32 %v8630_v22, %v1857_v40 }
 0x31e   :  { %v7319_v59 = vpop.eup %7318  ;;  %7338 = vtanh.f32 %v3027_v62  ;;  %v3970_v11 = vadd.f32 %v3969_v13, %v9705_v51 }
 0x31f   :  { %v10508_v45 = vpop.eup %7320  ;;  %7340 = vtanh.f32 %v3964_v54  ;;  %v3522_v12 = vpack.c.bf16 %v7319_v59, %v7311_v8  ;;  %v1858_v62 = vadd.f32 %v1634_v2, %v950_v50  ;;  %v1859_v24 = vadd.f32 %v1635_v60, %v951_v41 }
 0x320   :  { %v10512_v5 = vpop.eup %7322  ;;  %7342 = vtanh.f32 %v3966_v61  ;;  %v3030_v61 = vpop.f32.mrb[144].mxu0 }
 0x321   :  { %v7325_v9 = vpop.eup %7324  ;;  %7344 = vtanh.f32 %v3968_v26  ;;  %4141 = vmatprep.mubr.bf16.mxu1 %v3522_v12  ;;  %v2094_v40 = vadd.f32 %v8627_v21, %v1858_v62  ;;  %v2095_v54 = vadd.f32 %v8630_v22, %v1859_v24  ;;  %v3031_v41 = vadd.f32 %v3030_v61, %v9168_v17  ;;  %v3032_v0 = vpop.f32.mrb[145].mxu0 }
 0x322   :  { %v7327_v38 = vpop.eup %7326  ;;  %7346 = vtanh.f32 %v3970_v11  ;;  %4142 = vmatmul.mubr.bf16.gmra.mrb[136].mxu1 %v3521_v46  ;;  %v3033_v59 = vadd.f32 %v3032_v0, %v9171_v20  ;;  %v3034_v26 = vpop.f32.mrb[146].mxu0 }
 0x323   :  { %v7329_v8 = vpop.eup %7328  ;;  %7348 = vtanh.f32 %v2093_v3  ;;  %v3973_v22 = vpop.f32.mrb[68].mxu1  ;;  %v3035_v46 = vadd.f32 %v3034_v26, %v9168_v17 }
 0x324   :  { %v7331_v57 = vpop.eup %7330  ;;  %7350 = vtanh.f32 %v2094_v40  ;;  %v3036_v60 = vpop.f32.mrb[147].mxu0  ;;  %v3974_v11 = vadd.f32 %v3973_v22, %v9708_v53 }
 0x325   :  { %v7333_v50 = vpop.eup %7332  ;;  %7352 = vtanh.f32 %v2095_v54  ;;  %v3975_v12 = vpop.f32.mrb[69].mxu1  ;;  %v3037_v62 = vadd.f32 %v3036_v60, %v9171_v20 }
 0x326   :  { %v7335_v63 = vpop.eup %7334  ;;  %v2428_v2 = vpack.c.bf16 %v7333_v50, %v7325_v9  ;;  %7354 = vtanh.f32 %v3031_v41  ;;  %v3976_v9 = vadd.f32 %v3975_v12, %v9705_v51  ;;  %v3977_v54 = vpop.f32.mrb[70].mxu1 }
 0x327   :  { %v7337_v21 = vpop.eup %7336  ;;  %v2429_v13 = vpack.c.bf16 %v7335_v63, %v7327_v38  ;;  %7356 = vtanh.f32 %v3033_v59  ;;  %v3978_v38 = vadd.f32 %v3977_v54, %v9708_v53  ;;  %v3979_v41 = vpop.f32.mrb[71].mxu1 }
 0x328   :  { %v7339_v3 = vpop.eup %7338  ;;  %v3523_v24 = vpack.c.bf16 %v7337_v21, %v7329_v8  ;;  %7358 = vtanh.f32 %v3035_v46  ;;  %v3980_v8 = vadd.f32 %v3979_v41, %v9705_v51 }
 0x329   :  { %v10525_v40 = vpop.eup %7340  ;;  %3208 = vmatprep.mubr.bf16.mxu0 %v2429_v13  ;;  %v3524_v61 = vpack.c.bf16 %v7339_v3, %v7331_v57  ;;  %7360 = vtanh.f32 %v3974_v11 }
 0x32a   :  { %v10528_v50 = vpop.eup %7342  ;;  %3209 = vmatmul.mubr.bf16.gmra.mrb[216].mxu0 %v2428_v2  ;;  %7362 = vtanh.f32 %v3976_v9  ;;  %v3040_v2 = vpop.f32.mrb[148].mxu0 }
 0x32b   :  { %v10531_v0 = vpop.eup %7344  ;;  %4151 = vmatprep.mubr.bf16.mxu1 %v3524_v61  ;;  %7364 = vtanh.f32 %v3037_v62  ;;  %v3041_v46 = vadd.f32 %v3040_v2, %v9168_v17  ;;  %v3042_v60 = vpop.f32.mrb[149].mxu0 }
 0x32c   :  { %v10534_v63 = vpop.eup %7346  ;;  %4152 = vmatmul.mubr.bf16.gmra.mrb[140].mxu1 %v3523_v24  ;;  %7366 = vtanh.f32 %v3978_v38  ;;  %v3043_v3 = vadd.f32 %v3042_v60, %v9171_v20  ;;  %v3044_v11 = vpop.f32.mrb[150].mxu0 }
 0x32d   :  { %v7349_v57 = vpop.eup %7348  ;;  %7368 = vtanh.f32 %v3980_v8  ;;  %v3045_v24 = vadd.f32 %v3044_v11, %v9168_v17  ;;  %v3046_v9 = vpop.f32.mrb[151].mxu0 }
 0x32e   :  { %v7351_v21 = vpop.eup %7350  ;;  %7370 = vtanh.f32 %v3041_v46  ;;  %v3047_v61 = vadd.f32 %v3046_v9, %v9171_v20  ;;  %v3983_v41 = vpop.f32.mrb[72].mxu1 }
 0x32f   :  { %v7353_v22 = vpop.eup %7352  ;;  %v2430_v13 = vpack.c.bf16 %v7351_v21, %v10489_v19  ;;  %7372 = vtanh.f32 %v3043_v3  ;;  %v3984_v19 = vadd.f32 %v3983_v41, %v9708_v53  ;;  %v11809_v21 = vpack.c.bf16 %v9770_v36, %v9760_v25  ;;  %v11846_v36 = vld [vmem:[#allocation25_spill] sm:$0xff] }
 0x330   :  { %v2431_v12 = vpack.c.bf16 %v7353_v22, %v7349_v57  ;;  %v7355_v62 = vpop.eup %7354  ;;  %7374 = vtanh.f32 %v3045_v24  ;;  %v3985_v57 = vpop.f32.mrb[73].mxu1 }
 0x331   :  { %v7357_v54 = vpop.eup %7356  ;;  %7376 = vtanh.f32 %v3047_v61  ;;  %v3986_v46 = vadd.f32 %v3985_v57, %v9705_v51  ;;  %v3987_v60 = vpop.f32.mrb[74].mxu1 }
 0x332   :  { %3218 = vmatprep.mubr.bf16.mxu0 %v2431_v12  ;;  %v7359_v38 = vpop.eup %7358  ;;  %7378 = vtanh.f32 %v3984_v19  ;;  %v3989_v11 = vpop.f32.mrb[75].mxu1 }
 0x333   :  { %3219 = vmatmul.mubr.bf16.gmra.mrb[220].mxu0 %v2430_v13  ;;  %v10545_v8 = vpop.eup %7360  ;;  %v3525_v2 = vpack.c.bf16 %v7359_v38, %v7355_v62  ;;  %v3988_v13 = vadd.f32 %v3987_v60, %v9708_v53  ;;  %7380 = vtanh.f32 %v3986_v46  ;;  %v3990_v24 = vadd.f32 %v3989_v11, %v9705_v51 }
 0x334   :  { %4934 = vmatprep.mubr.bf16.mxu0 %v11809_v21  ;;  %v10551_v22 = vpop.eup %7362  ;;  %v11810_v38 = vpack.c.bf16 %v9763_v31, %v9775_v43 }
 0x335   :  { %v7365_v3 = vpop.eup %7364  ;;  %7382 = vtanh.f32 %v3988_v13 }
 0x336   :  { %v10555_v12 = vpop.eup %7366  ;;  %v3526_v9 = vpack.c.bf16 %v7365_v3, %v7357_v54  ;;  %7384 = vtanh.f32 %v3990_v24  ;;  %v11811_v54 = vpack.c.bf16 %v9829_v7, %v9819_v49 }
 0x337   :  { %v10558_v61 = vpop.eup %7368  ;;  %v3050_v19 = vpop.f32.mrb[152].mxu0 }
 0x338   :  { %4161 = vmatprep.mubr.bf16.mxu1 %v3526_v9  ;;  %v7371_v62 = vpop.eup %7370  ;;  %v3051_v21 = vadd.f32 %v3050_v19, %v9168_v17  ;;  %v3052_v46 = vpop.f32.mrb[153].mxu0 }
 0x339   :  { %4162 = vmatmul.mubr.bf16.gmra.mrb[144].mxu1 %v3525_v2  ;;  %v7373_v41 = vpop.eup %7372  ;;  %v3053_v3 = vadd.f32 %v3052_v46, %v9171_v20  ;;  %v3054_v13 = vpop.f32.mrb[154].mxu0 }
 0x33a   :  { %v7375_v57 = vpop.eup %7374  ;;  %7386 = vtanh.f32 %v3051_v21  ;;  %v3993_v11 = vpop.f32.mrb[76].mxu1  ;;  %v3055_v31 = vadd.f32 %v3054_v13, %v9168_v17  ;;  %v11812_v13 = vpack.c.bf16 %v9814_v47, %v9809_v42 }
 0x33b   :  { %4935 = vmatmul.mubr.bf16.vlgmr.msra.gmra.mrb[224].mxu0 %v11810_v38  ;;  %v7377_v60 = vpop.eup %7376  ;;  %v3527_v2 = vpack.c.bf16 %v7375_v57, %v7371_v62  ;;  %v3056_v43 = vpop.f32.mrb[155].mxu0  ;;  %7388 = vtanh.f32 %v3053_v3  ;;  %v3994_v49 = vadd.f32 %v3993_v11, %v9708_v53  ;;  %v11813_v11 = vpack.c.bf16 %v9878_v44, %v9884_v35 }
 0x33c   :  { %4944 = vmatprep.mubr.bf16.mxu0 %v11811_v54  ;;  %v3528_v24 = vpack.c.bf16 %v7377_v60, %v7373_v41  ;;  %v10573_v9 = vpop.eup %7378  ;;  %v3995_v7 = vpop.f32.mrb[77].mxu1  ;;  %v3057_v38 = vadd.f32 %v3056_v43, %v9171_v20  ;;  %7390 = vtanh.f32 %v3055_v31 }
 0x33d   :  { %v10577_v19 = vpop.eup %7380  ;;  %v3996_v54 = vadd.f32 %v3995_v7, %v9705_v51  ;;  %v3997_v62 = vpop.f32.mrb[78].mxu1  ;;  %7392 = vtanh.f32 %v3994_v49 }
 0x33e   :  { %4171 = vmatprep.mubr.bf16.mxu1 %v3528_v24  ;;  %v3998_v41 = vadd.f32 %v3997_v62, %v9708_v53  ;;  %v3999_v21 = vpop.f32.mrb[79].mxu1 }
 0x33f   :  { %v10580_v57 = vpop.eup %7382  ;;  %7394 = vtanh.f32 %v3996_v54  ;;  %v4000_v3 = vadd.f32 %v3999_v21, %v9705_v51 }
 0x340   :  { %v10583_v46 = vpop.eup %7384  ;;  %7396 = vtanh.f32 %v3057_v38 }
 0x341   :  { %4172 = vmatmul.mubr.bf16.gmra.mrb[148].mxu1 %v3527_v2  ;;  %7398 = vtanh.f32 %v3998_v41  ;;  %v3060_v31 = vpop.f32.mrb[156].mxu0  ;;  %v11814_v41 = vpack.c.bf16 %v9875_v14, %v9871_v15 }
 0x342   :  { %7400 = vtanh.f32 %v4000_v3  ;;  %v3061_v43 = vadd.f32 %v3060_v31, %v9168_v17  ;;  %v3062_v24 = vpop.f32.mrb[157].mxu0 }
 0x343   :  { %4945 = vmatmul.mubr.bf16.gmra.mrb[228].mxu0 %v11812_v13  ;;  %v3063_v49 = vadd.f32 %v3062_v24, %v9171_v20  ;;  %v3064_v7 = vpop.f32.mrb[158].mxu0 }
 0x344   :  { %4954 = vmatprep.mubr.bf16.mxu0 %v11813_v11  ;;  %v7387_v54 = vpop.eup %7386  ;;  %7402 = vtanh.f32 %v3061_v43  ;;  %v3065_v42 = vadd.f32 %v3064_v7, %v9168_v17  ;;  %v3066_v47 = vpop.f32.mrb[159].mxu0  ;;  %v11815_v11 = vpack.c.bf16 %v9944_v58, %v9926_v28  ;;  %v11840_v58 = vld [vmem:[#allocation19_spill] sm:$0xff] }
 0x345   :  { %v7389_v38 = vpop.eup %7388  ;;  %7404 = vtanh.f32 %v3063_v49  ;;  %v3067_v44 = vadd.f32 %v3066_v47, %v9171_v20 }
 0x346   :  { %v7391_v35 = vpop.eup %7390  ;;  %7406 = vtanh.f32 %v3065_v42  ;;  %v4003_v62 = vpop.f32.mrb[80].mxu1 }
 0x347   :  { %v10603_v21 = vpop.eup %7392  ;;  %7408 = vtanh.f32 %v3067_v44  ;;  %v4004_v3 = vadd.f32 %v4003_v62, %v9708_v53  ;;  %v4005_v13 = vpop.f32.mrb[81].mxu1  ;;  %v3529_v31 = vpack.c.bf16 %v7391_v35, %v7387_v54  ;;  %v11816_v35 = vpack.c.bf16 %v9936_v29, %v9922_v55 }
 0x348   :  { %v4006_v24 = vadd.f32 %v4005_v13, %v9705_v51  ;;  %v4007_v49 = vpop.f32.mrb[82].mxu1 }
 0x349   :  { %v10609_v43 = vpop.eup %7394  ;;  %7410 = vtanh.f32 %v4004_v3  ;;  %v4008_v15 = vadd.f32 %v4007_v49, %v9708_v53  ;;  %v4009_v14 = vpop.f32.mrb[83].mxu1 }
 0x34a   :  { %v7397_v7 = vpop.eup %7396  ;;  %7412 = vtanh.f32 %v4006_v24  ;;  %v4010_v47 = vadd.f32 %v4009_v14, %v9705_v51 }
 0x34b   :  { %4955 = vmatmul.mubr.bf16.gmra.mrb[232].mxu0 %v11814_v41  ;;  %v10613_v42 = vpop.eup %7398  ;;  %v3530_v44 = vpack.c.bf16 %v7397_v7, %v7389_v38  ;;  %7414 = vtanh.f32 %v4008_v15  ;;  %v11817_v38 = vpack.c.bf16 %v10012_v23, %v10018_v56 }
 0x34c   :  { %4964 = vmatprep.mubr.bf16.mxu0 %v11815_v11  ;;  %v10616_v62 = vpop.eup %7400  ;;  %7416 = vtanh.f32 %v4010_v47 }
 0x34d   :  { %4181 = vmatprep.mubr.bf16.mxu1 %v3530_v44 }
 0x34e   :  { %4182 = vmatmul.mubr.bf16.gmra.mrb[152].mxu1 %v3529_v31  ;;  %v7403_v54 = vpop.eup %7402 }
 0x34f   :  { %v7405_v41 = vpop.eup %7404 }
 0x350   :  { %v7407_v3 = vpop.eup %7406  ;;  %v3070_v13 = vpop.f32.mrb[160].mxu0 }
 0x351   :  { %v7409_v11 = vpop.eup %7408  ;;  %v3071_v24 = vadd.f32 %v3070_v13, %v9168_v17  ;;  %v3072_v49 = vpop.f32.mrb[161].mxu0  ;;  %v3531_v7 = vpack.c.bf16 %v7407_v3, %v7403_v54 }
 0x352   :  { %v3073_v15 = vadd.f32 %v3072_v49, %v9171_v20  ;;  %v3074_v31 = vpop.f32.mrb[162].mxu0  ;;  %v3532_v14 = vpack.c.bf16 %v7409_v11, %v7405_v41 }
 0x353   :  { %4965 = vmatmul.mubr.bf16.gmra.mrb[236].mxu0 %v11816_v35  ;;  %v10630_v47 = vpop.eup %7410  ;;  %7418 = vtanh.f32 %v3071_v24  ;;  %v3075_v29 = vadd.f32 %v3074_v31, %v9168_v17  ;;  %v3076_v44 = vpop.f32.mrb[163].mxu0 }
 0x354   :  { %4974 = vmatprep.mubr.bf16.mxu0 %v11817_v38  ;;  %v4013_v55 = vpop.f32.mrb[84].mxu1  ;;  %v10633_v23 = vpop.eup %7412  ;;  %7420 = vtanh.f32 %v3073_v15  ;;  %v3077_v38 = vadd.f32 %v3076_v44, %v9171_v20  ;;  %4191 = vmatprep.mubr.bf16.mxu1 %v3532_v14  ;;  %v11818_v15 = vpack.c.bf16 %v10006_v32, %v9997_v33  ;;  %v11819_v14 = vpack.c.bf16 %v10077_v37, %v10063_v1 }
 0x355   :  { %v4014_v56 = vadd.f32 %v4013_v55, %v9708_v53  ;;  %v4015_v35 = vpop.f32.mrb[85].mxu1  ;;  %v10637_v54 = vpop.eup %7414  ;;  %7422 = vtanh.f32 %v3075_v29 }
 0x356   :  { %v4016_v41 = vadd.f32 %v4015_v35, %v9705_v51  ;;  %v4017_v3 = vpop.f32.mrb[86].mxu1  ;;  %4192 = vmatmul.mubr.bf16.gmra.mrb[156].mxu1 %v3531_v7  ;;  %v10640_v13 = vpop.eup %7416 }
 0x357   :  { %7424 = vtanh.f32 %v4014_v56  ;;  %v4018_v24 = vadd.f32 %v4017_v3, %v9708_v53  ;;  %v4019_v49 = vpop.f32.mrb[87].mxu1 }
 0x358   :  { %7426 = vtanh.f32 %v4016_v41  ;;  %v4020_v31 = vadd.f32 %v4019_v49, %v9705_v51  ;;  %v11822_v49 = vld [vmem:[#allocation9_spill] sm:$0xff] }
 0x359   :  { %7428 = vtanh.f32 %v3077_v38  ;;  %v11820_v38 = vld [vmem:[#allocation6_spill] sm:$0xff] }
 0x35a   :  { %7430 = vtanh.f32 %v4018_v24  ;;  %v3080_v55 = vpop.f32.mrb[164].mxu0  ;;  %v11821_v3 = vpack.c.bf16 %v10073_v39, %v11820_v38 }
 0x35b   :  { %4975 = vmatmul.mubr.bf16.gmra.mrb[240].mxu0 %v11818_v15  ;;  %7432 = vtanh.f32 %v4020_v31  ;;  %v3081_v29 = vadd.f32 %v3080_v55, %v9168_v17  ;;  %v3082_v44 = vpop.f32.mrb[165].mxu0  ;;  %v11823_v15 = vld [vmem:[#allocation10_spill] sm:$0xff] }
 0x35c   :  { %4984 = vmatprep.mubr.bf16.mxu0 %v11819_v14  ;;  %v3083_v33 = vadd.f32 %v3082_v44, %v9171_v20  ;;  %v3084_v32 = vpop.f32.mrb[166].mxu0  ;;  %v11824_v31 = vpack.c.bf16 %v11822_v49, %v11823_v15 }
 0x35d   :  { %7434 = vtanh.f32 %v3081_v29  ;;  %v3085_v56 = vadd.f32 %v3084_v32, %v9168_v17  ;;  %v3086_v35 = vpop.f32.mrb[167].mxu0  ;;  %v7419_v41 = vpop.eup %7418 }
 0x35e   :  { %7436 = vtanh.f32 %v3083_v33  ;;  %v3087_v1 = vadd.f32 %v3086_v35, %v9171_v20  ;;  %v7421_v37 = vpop.eup %7420 }
 0x35f   :  { %7438 = vtanh.f32 %v3085_v56  ;;  %v7423_v24 = vpop.eup %7422 }
 0x360   :  { %7440 = vtanh.f32 %v3087_v1  ;;  %v3533_v29 = vpack.c.bf16 %v7423_v24, %v7419_v41 }
 0x361   :  { %v10664_v14 = vpop.eup %7424  ;;  %v4023_v55 = vpop.f32.mrb[88].mxu1 }
 0x362   :  { %v10666_v44 = vpop.eup %7426  ;;  %v4024_v33 = vadd.f32 %v4023_v55, %v9708_v53  ;;  %v4025_v32 = vpop.f32.mrb[89].mxu1 }
 0x363   :  { %4985 = vmatmul.mubr.bf16.gmra.mrb[244].mxu0 %v11821_v3  ;;  %v7429_v56 = vpop.eup %7428  ;;  %v4026_v35 = vadd.f32 %v4025_v32, %v9705_v51  ;;  %v4027_v39 = vpop.f32.mrb[90].mxu1  ;;  %v11826_v32 = vld [vmem:[#allocation7_spill] sm:$0xff] }
 0x364   :  { %4994 = vmatprep.mubr.bf16.mxu0 %v11824_v31  ;;  %v10670_v38 = vpop.eup %7430  ;;  %7442 = vtanh.f32 %v4024_v33  ;;  %v4028_v1 = vadd.f32 %v4027_v39, %v9708_v53  ;;  %v4029_v3 = vpop.f32.mrb[91].mxu1  ;;  %v3534_v49 = vpack.c.bf16 %v7429_v56, %v7421_v37  ;;  %v11825_v33 = vld [vmem:[#allocation8_spill] sm:$0xff] }
 0x365   :  { %v10673_v15 = vpop.eup %7432  ;;  %7444 = vtanh.f32 %v4026_v35  ;;  %v4030_v24 = vadd.f32 %v4029_v3, %v9705_v51  ;;  %v11827_v39 = vpack.c.bf16 %v11825_v33, %v11826_v32  ;;  %v11828_v56 = vld [vmem:[#allocation12_spill] sm:$0xff] }
 0x366   :  { %7446 = vtanh.f32 %v4028_v1  ;;  %4201 = vmatprep.mubr.bf16.mxu1 %v3534_v49  ;;  %v11829_v11 = vpack.c.bf16 %v10198_v16, %v11828_v56 }
 0x367   :  { %v7435_v55 = vpop.eup %7434  ;;  %7448 = vtanh.f32 %v4030_v24  ;;  %4202 = vmatmul.mubr.bf16.gmra.mrb[160].mxu1 %v3533_v29 }
 0x368   :  { %v7437_v37 = vpop.eup %7436 }
 0x369   :  { %v7439_v35 = vpop.eup %7438 }
 0x36a   :  { %v3090_v41 = vpop.f32.mrb[168].mxu0  ;;  %v7441_v3 = vpop.eup %7440  ;;  %v3535_v7 = vpack.c.bf16 %v7439_v35, %v7435_v55 }
 0x36b   :  { %4995 = vmatmul.mubr.bf16.gmra.mrb[248].mxu0 %v11827_v39  ;;  %v3091_v1 = vadd.f32 %v3090_v41, %v9168_v17  ;;  %v3092_v49 = vpop.f32.mrb[169].mxu0  ;;  %v3536_v29 = vpack.c.bf16 %v7441_v3, %v7437_v37 }
 0x36c   :  { %5004 = vmatprep.mubr.bf16.mxu0 %v11829_v11  ;;  %v3093_v31 = vadd.f32 %v3092_v49, %v9171_v20  ;;  %v3094_v24 = vpop.f32.mrb[170].mxu0 }
 0x36d   :  { %7450 = vtanh.f32 %v3091_v1  ;;  %v4033_v28 = vpop.f32.mrb[92].mxu1  ;;  %v3095_v33 = vadd.f32 %v3094_v24, %v9168_v17  ;;  %v3096_v32 = vpop.f32.mrb[171].mxu0  ;;  %4211 = vmatprep.mubr.bf16.mxu1 %v3536_v29  ;;  %v11831_v1 = vld [vmem:[#allocation11_spill] sm:$0xff]  ;;  %v11833_v29 = vld [vmem:[#allocation16_spill] sm:$0xff] }
 0x36e   :  { %7452 = vtanh.f32 %v3093_v31  ;;  %v4034_v16 = vadd.f32 %v4033_v28, %v9708_v53  ;;  %v4035_v11 = vpop.f32.mrb[93].mxu1  ;;  %v3097_v39 = vadd.f32 %v3096_v32, %v9171_v20  ;;  %v10691_v56 = vpop.eup %7442  ;;  %v11830_v31 = vld [vmem:[#allocation13_spill] sm:$0xff] }
 0x36f   :  { %7454 = vtanh.f32 %v3095_v33  ;;  %v4036_v41 = vadd.f32 %v4035_v11, %v9705_v51  ;;  %v4037_v55 = vpop.f32.mrb[94].mxu1  ;;  %v10694_v35 = vpop.eup %7444  ;;  %4212 = vmatmul.mubr.bf16.gmra.mrb[164].mxu1 %v3535_v7  ;;  %v11832_v28 = vpack.c.bf16 %v11830_v31, %v11831_v1  ;;  %v11834_v33 = vld [vmem:[#allocation17_spill] sm:$0xff] }
 0x370   :  { %7456 = vtanh.f32 %v4034_v16  ;;  %v4038_v37 = vadd.f32 %v4037_v55, %v9708_v53  ;;  %v4039_v3 = vpop.f32.mrb[95].mxu1  ;;  %v10700_v49 = vpop.eup %7446  ;;  %v11835_v32 = vpack.c.bf16 %v11833_v29, %v11834_v33  ;;  %v11837_v16 = vld [vmem:[#allocation14_spill] sm:$0xff] }
 0x371   :  { %7458 = vtanh.f32 %v4036_v41  ;;  %v4040_v24 = vadd.f32 %v4039_v3, %v9705_v51  ;;  %v10706_v11 = vpop.eup %7448 }
 0x372   :  { %7460 = vtanh.f32 %v3097_v39 }
 0x373   :  { %5005 = vmatmul.mubr.bf16.gmra.mrb[252].mxu0 %v11832_v28  ;;  %7462 = vtanh.f32 %v4038_v37  ;;  %v3100_v7 = vpop.f32.mrb[172].mxu0 }
 0x374   :  { %5014 = vmatprep.mubr.bf16.mxu0 %v11835_v32  ;;  %7464 = vtanh.f32 %v4040_v24  ;;  %v3101_v41 = vadd.f32 %v3100_v7, %v9168_v17  ;;  %v3102_v31 = vpop.f32.mrb[173].mxu0  ;;  %v11836_v32 = vld [vmem:[#allocation15_spill] sm:$0xff]  ;;  %v11839_v7 = vld [vmem:[#allocation21_spill] sm:$0xff] }
 0x375   :  { %v3103_v3 = vadd.f32 %v3102_v31, %v9171_v20  ;;  %v3104_v1 = vpop.f32.mrb[174].mxu0  ;;  %v11838_v55 = vpack.c.bf16 %v11836_v32, %v11837_v16  ;;  %v11841_v31 = vpack.c.bf16 %v11839_v7, %v11840_v58 }
 0x376   :  { %7466 = vtanh.f32 %v3101_v41  ;;  %v3105_v28 = vadd.f32 %v3104_v1, %v9168_v17  ;;  %v3106_v29 = vpop.f32.mrb[175].mxu0 }
 0x377   :  { %v7451_v33 = vpop.eup %7450  ;;  %7468 = vtanh.f32 %v3103_v3  ;;  %v3107_v39 = vadd.f32 %v3106_v29, %v9171_v20 }
 0x378   :  { %v7453_v37 = vpop.eup %7452  ;;  %7470 = vtanh.f32 %v3105_v28 }
 0x379   :  { %v7455_v24 = vpop.eup %7454  ;;  %7472 = vtanh.f32 %v3107_v39 }
 0x37a   :  { %v10722_v41 = vpop.eup %7456  ;;  %v4043_v1 = vpop.f32.mrb[96].mxu1  ;;  %v3537_v60 = vpack.c.bf16 %v7455_v24, %v7451_v33 }
 0x37b   :  { %5015 = vmatmul.mubr.bf16.gmra.mrb[0].mxu0 %v11838_v55  ;;  %v10724_v2 = vpop.eup %7458  ;;  %v4044_v3 = vadd.f32 %v4043_v1, %v9708_v53  ;;  %v4045_v29 = vpop.f32.mrb[97].mxu1 }
 0x37c   :  { %5024 = vmatprep.mubr.bf16.mxu0 %v11841_v31  ;;  %v7461_v28 = vpop.eup %7460  ;;  %v4046_v25 = vadd.f32 %v4045_v29, %v9705_v51  ;;  %v4047_v16 = vpop.f32.mrb[98].mxu1  ;;  %v11843_v29 = vld [vmem:[#allocation18_spill] sm:$0xff] }
 0x37d   :  { %v10728_v55 = vpop.eup %7462  ;;  %7474 = vtanh.f32 %v4044_v3  ;;  %v4048_v39 = vadd.f32 %v4047_v16, %v9708_v53  ;;  %v4049_v58 = vpop.f32.mrb[99].mxu1  ;;  %v3538_v32 = vpack.c.bf16 %v7461_v28, %v7453_v37  ;;  %v11842_v3 = vld [vmem:[#allocation20_spill] sm:$0xff] }
 0x37e   :  { %v10731_v7 = vpop.eup %7464  ;;  %7476 = vtanh.f32 %v4046_v25  ;;  %v4050_v24 = vadd.f32 %v4049_v58, %v9705_v51  ;;  %v11844_v16 = vpack.c.bf16 %v11842_v3, %v11843_v29  ;;  %v11845_v28 = vld [vmem:[#allocation24_spill] sm:$0xff] }
 0x37f   :  { %7478 = vtanh.f32 %v4048_v39  ;;  %4221 = vmatprep.mubr.bf16.mxu1 %v3538_v32  ;;  %v11847_v59 = vpack.c.bf16 %v11845_v28, %v11846_v36 }
 0x380   :  { %v7467_v1 = vpop.eup %7466  ;;  %7480 = vtanh.f32 %v4050_v24  ;;  %4222 = vmatmul.mubr.bf16.gmra.mrb[168].mxu1 %v3537_v60 }
 0x381   :  { %v7469_v37 = vpop.eup %7468 }
 0x382   :  { %v7471_v25 = vpop.eup %7470  ;;  %v3110_v33 = vpop.f32.mrb[176].mxu0 }
 0x383   :  { %5025 = vmatmul.mubr.bf16.gmra.mrb[4].mxu0 %v11844_v16  ;;  %v7473_v58 = vpop.eup %7472  ;;  %v3111_v39 = vadd.f32 %v3110_v33, %v9168_v17  ;;  %v3112_v32 = vpop.f32.mrb[177].mxu0  ;;  %v3539_v26 = vpack.c.bf16 %v7471_v25, %v7467_v1 }
 0x384   :  { %5034 = vmatprep.mubr.bf16.mxu0 %v11847_v59  ;;  %v3113_v31 = vadd.f32 %v3112_v32, %v9171_v20  ;;  %v3114_v24 = vpop.f32.mrb[178].mxu0  ;;  %v3540_v60 = vpack.c.bf16 %v7473_v58, %v7469_v37 }
 0x385   :  { %7482 = vtanh.f32 %v3111_v39  ;;  %v3115_v3 = vadd.f32 %v3114_v24, %v9168_v17  ;;  %v3116_v29 = vpop.f32.mrb[179].mxu0  ;;  %v11851_v39 = vld [vmem:[#allocation22_spill] sm:$0xff] }
 0x386   :  { %v4053_v48 = vpop.f32.mrb[100].mxu1  ;;  %7484 = vtanh.f32 %v3113_v31  ;;  %v3117_v16 = vadd.f32 %v3116_v29, %v9171_v20  ;;  %4231 = vmatprep.mubr.bf16.mxu1 %v3540_v60  ;;  %v11850_v31 = vld [vmem:[#allocation23_spill] sm:$0xff]  ;;  %v11854_v60 = vld [vmem:[#allocation29_spill] sm:$0xff] }
 0x387   :  { %v4054_v36 = vadd.f32 %v4053_v48, %v9708_v53  ;;  %v4055_v59 = vpop.f32.mrb[101].mxu1  ;;  %v10749_v28 = vpop.eup %7474  ;;  %7486 = vtanh.f32 %v3115_v3  ;;  %v11852_v48 = vpack.c.bf16 %v11850_v31, %v11851_v39  ;;  %v11855_v3 = vld [vmem:[#allocation27_spill] sm:$0xff] }
 0x388   :  { %11848 = vst [vmem:[#allocation6_spill] sm:$0xff] %v10749_v28  ;;  %v4056_v33 = vadd.f32 %v4055_v59, %v9705_v51  ;;  %v4057_v1 = vpop.f32.mrb[102].mxu1  ;;  %v10752_v25 = vpop.eup %7476  ;;  %4232 = vmatmul.mubr.bf16.gmra.mrb[172].mxu1 %v3539_v26  ;;  %v11856_v29 = vpack.c.bf16 %v11854_v60, %v11855_v3 }
 0x389   :  { %11849 = vst [vmem:[#allocation9_spill] sm:$0xff] %v10752_v25  ;;  %7488 = vtanh.f32 %v4054_v36  ;;  %v4058_v37 = vadd.f32 %v4057_v1, %v9708_v53  ;;  %v4059_v58 = vpop.f32.mrb[103].mxu1  ;;  %v10758_v32 = vpop.eup %7478  ;;  %v11859_v36 = vld [vmem:[#allocation26_spill] sm:$0xff] }
 0x38a   :  { %11853 = vst [vmem:[#allocation10_spill] sm:$0xff] %v10758_v32  ;;  %7490 = vtanh.f32 %v4056_v33  ;;  %v4060_v24 = vadd.f32 %v4059_v58, %v9705_v51  ;;  %v10764_v59 = vpop.eup %7480  ;;  %v11869_v25 = vld [vmem:[#allocation34_spill] sm:$0xff] }
 0x38b   :  { %5035 = vmatmul.mubr.bf16.gmra.mrb[8].mxu0 %v11852_v48  ;;  %11857 = vst [vmem:[#allocation8_spill] sm:$0xff] %v10764_v59  ;;  %7492 = vtanh.f32 %v3117_v16 }
 0x38c   :  { %5044 = vmatprep.mubr.bf16.mxu0 %v11856_v29  ;;  %7494 = vtanh.f32 %v4058_v37  ;;  %v3120_v26 = vpop.f32.mrb[180].mxu0  ;;  %v11858_v29 = vld [vmem:[#allocation28_spill] sm:$0xff] }
 0x38d   :  { %7496 = vtanh.f32 %v4060_v24  ;;  %v3121_v33 = vadd.f32 %v3120_v26, %v9168_v17  ;;  %v3122_v31 = vpop.f32.mrb[181].mxu0  ;;  %v11860_v1 = vpack.c.bf16 %v11858_v29, %v11859_v36  ;;  %v11861_v26 = vld [vmem:[#allocation32_spill] sm:$0xff] }
 0x38e   :  { %v3123_v58 = vadd.f32 %v3122_v31, %v9171_v20  ;;  %v3124_v39 = vpop.f32.mrb[182].mxu0  ;;  %v11862_v31 = vpack.c.bf16 %v10394_v6, %v11861_v26 }
 0x38f   :  { %7498 = vtanh.f32 %v3121_v33  ;;  %v3125_v48 = vadd.f32 %v3124_v39, %v9168_v17  ;;  %v3126_v60 = vpop.f32.mrb[183].mxu0  ;;  %v7483_v3 = vpop.eup %7482 }
 0x390   :  { %7500 = vtanh.f32 %v3123_v58  ;;  %v3127_v16 = vadd.f32 %v3126_v60, %v9171_v20  ;;  %v7485_v37 = vpop.eup %7484 }
 0x391   :  { %7502 = vtanh.f32 %v3125_v48  ;;  %v7487_v24 = vpop.eup %7486 }
 0x392   :  { %7504 = vtanh.f32 %v3127_v16  ;;  %v3541_v10 = vpack.c.bf16 %v7487_v24, %v7483_v3 }
 0x393   :  { %5045 = vmatmul.mubr.bf16.gmra.mrb[12].mxu0 %v11860_v1  ;;  %v10780_v33 = vpop.eup %7488  ;;  %v4063_v39 = vpop.f32.mrb[104].mxu1 }
 0x394   :  { %5054 = vmatprep.mubr.bf16.mxu0 %v11862_v31  ;;  %11863 = vst [vmem:[#allocation7_spill] sm:$0xff] %v10780_v33  ;;  %v10782_v28 = vpop.eup %7490  ;;  %v4064_v58 = vadd.f32 %v4063_v39, %v9708_v53  ;;  %v4065_v60 = vpop.f32.mrb[105].mxu1 }
 0x395   :  { %v7493_v48 = vpop.eup %7492  ;;  %v4066_v32 = vadd.f32 %v4065_v60, %v9705_v51  ;;  %v4067_v36 = vpop.f32.mrb[106].mxu1  ;;  %v11866_v60 = vld [vmem:[#allocation30_spill] sm:$0xff] }
 0x396   :  { %v10786_v1 = vpop.eup %7494  ;;  %7506 = vtanh.f32 %v4064_v58  ;;  %v4068_v16 = vadd.f32 %v4067_v36, %v9708_v53  ;;  %v4069_v6 = vpop.f32.mrb[107].mxu1  ;;  %v3542_v29 = vpack.c.bf16 %v7493_v48, %v7485_v37  ;;  %v11865_v58 = vld [vmem:[#allocation31_spill] sm:$0xff]  ;;  %v11868_v48 = vld [vmem:[#allocation36_spill] sm:$0xff] }
 0x397   :  { %11864 = vst [vmem:[#allocation12_spill] sm:$0xff] %v10786_v1  ;;  %v10789_v26 = vpop.eup %7496  ;;  %7508 = vtanh.f32 %v4066_v32  ;;  %v4070_v24 = vadd.f32 %v4069_v6, %v9705_v51  ;;  %v11867_v36 = vpack.c.bf16 %v11865_v58, %v11866_v60  ;;  %v11870_v59 = vpack.c.bf16 %v11868_v48, %v11869_v25 }
 0x398   :  { %7510 = vtanh.f32 %v4068_v16  ;;  %4241 = vmatprep.mubr.bf16.mxu1 %v3542_v29 }
 0x399   :  { %v7499_v39 = vpop.eup %7498  ;;  %7512 = vtanh.f32 %v4070_v24  ;;  %4242 = vmatmul.mubr.bf16.gmra.mrb[176].mxu1 %v3541_v10 }
 0x39a   :  { %v7501_v37 = vpop.eup %7500 }
 0x39b   :  { %5055 = vmatmul.mubr.bf16.gmra.mrb[16].mxu0 %v11867_v36  ;;  %v7503_v32 = vpop.eup %7502  ;;  %v3130_v3 = vpop.f32.mrb[184].mxu0 }
 0x39c   :  { %5064 = vmatprep.mubr.bf16.mxu0 %v11870_v59  ;;  %v7505_v6 = vpop.eup %7504  ;;  %v3131_v16 = vadd.f32 %v3130_v3, %v9168_v17  ;;  %v3132_v29 = vpop.f32.mrb[185].mxu0  ;;  %v3543_v33 = vpack.c.bf16 %v7503_v32, %v7499_v39 }
 0x39d   :  { %v3133_v31 = vadd.f32 %v3132_v29, %v9171_v20  ;;  %v3134_v24 = vpop.f32.mrb[186].mxu0  ;;  %v3544_v10 = vpack.c.bf16 %v7505_v6, %v7501_v37 }
 0x39e   :  { %7514 = vtanh.f32 %v3131_v16  ;;  %v4073_v1 = vpop.f32.mrb[108].mxu1  ;;  %v3135_v58 = vadd.f32 %v3134_v24, %v9168_v17  ;;  %v3136_v60 = vpop.f32.mrb[187].mxu0  ;;  %v11872_v16 = vld [vmem:[#allocation33_spill] sm:$0xff] }
 0x39f   :  { %7516 = vtanh.f32 %v3133_v31  ;;  %v4074_v25 = vadd.f32 %v4073_v1, %v9708_v53  ;;  %v4075_v59 = vpop.f32.mrb[109].mxu1  ;;  %v3137_v36 = vadd.f32 %v3136_v60, %v9171_v20  ;;  %4251 = vmatprep.mubr.bf16.mxu1 %v3544_v10  ;;  %v11871_v31 = vld [vmem:[#allocation35_spill] sm:$0xff]  ;;  %v11874_v10 = vpack.c.bf16 %v10469_v27, %v10477_v4 }
 0x3a0   :  { %v10807_v48 = vpop.eup %7506  ;;  %7518 = vtanh.f32 %v3135_v58  ;;  %v4076_v3 = vadd.f32 %v4075_v59, %v9705_v51  ;;  %v4077_v39 = vpop.f32.mrb[110].mxu1  ;;  %v11873_v1 = vpack.c.bf16 %v11871_v31, %v11872_v16  ;;  %v11875_v16 = vpack.c.bf16 %v10466_v52, %v10461_v30 }
 0x3a1   :  { %v10810_v32 = vpop.eup %7508  ;;  %7520 = vtanh.f32 %v4074_v25  ;;  %v4078_v37 = vadd.f32 %v4077_v39, %v9708_v53  ;;  %v4079_v6 = vpop.f32.mrb[111].mxu1  ;;  %4252 = vmatmul.mubr.bf16.gmra.mrb[180].mxu1 %v3543_v33 }
 0x3a2   :  { %v10816_v29 = vpop.eup %7510  ;;  %7522 = vtanh.f32 %v4076_v3  ;;  %v4080_v24 = vadd.f32 %v4079_v6, %v9705_v51 }
 0x3a3   :  { %5065 = vmatmul.mubr.bf16.gmra.mrb[20].mxu0 %v11873_v1  ;;  %v10822_v58 = vpop.eup %7512  ;;  %v4638_v60 = vpack.c.bf16 %v10816_v29, %v10807_v48  ;;  %7524 = vtanh.f32 %v3137_v36 }
 0x3a4   :  { %5074 = vmatprep.mubr.bf16.mxu0 %v11874_v10  ;;  %7526 = vtanh.f32 %v4078_v37  ;;  %v3140_v33 = vpop.f32.mrb[188].mxu0  ;;  %v4639_v25 = vpack.c.bf16 %v10822_v58, %v10810_v32 }
 0x3a5   :  { %7528 = vtanh.f32 %v4080_v24  ;;  %v3141_v59 = vadd.f32 %v3140_v33, %v9168_v17  ;;  %v3142_v3 = vpop.f32.mrb[189].mxu0  ;;  %v11876_v24 = vpack.c.bf16 %v10512_v5, %v10500_v18 }
 0x3a6   :  { %v3143_v39 = vadd.f32 %v3142_v3, %v9171_v20  ;;  %v3144_v6 = vpop.f32.mrb[190].mxu0 }
 0x3a7   :  { %7530 = vtanh.f32 %v3141_v59  ;;  %v3145_v27 = vadd.f32 %v3144_v6, %v9168_v17  ;;  %v3146_v4 = vpop.f32.mrb[191].mxu0 }
 0x3a8   :  { %v7515_v31 = vpop.eup %7514  ;;  %7532 = vtanh.f32 %v3143_v39  ;;  %v3147_v36 = vadd.f32 %v3146_v4, %v9171_v20 }
 0x3a9   :  { %v7517_v37 = vpop.eup %7516  ;;  %7534 = vtanh.f32 %v3145_v27 }
 0x3aa   :  { %v7519_v1 = vpop.eup %7518  ;;  %7536 = vtanh.f32 %v3147_v36 }
 0x3ab   :  { %5075 = vmatmul.mubr.bf16.gmra.mrb[24].mxu0 %v11875_v16  ;;  %v10838_v10 = vpop.eup %7520  ;;  %v4083_v33 = vpop.f32.mrb[112].mxu1  ;;  %v3545_v59 = vpack.c.bf16 %v7519_v1, %v7515_v31 }
 0x3ac   :  { %5084 = vmatprep.mubr.bf16.mxu0 %v11876_v24  ;;  %v10840_v3 = vpop.eup %7522  ;;  %v4084_v39 = vadd.f32 %v4083_v33, %v9708_v53  ;;  %v4085_v6 = vpop.f32.mrb[113].mxu1 }
 0x3ad   :  { %v7525_v27 = vpop.eup %7524  ;;  %v4086_v4 = vadd.f32 %v4085_v6, %v9705_v51  ;;  %v4087_v30 = vpop.f32.mrb[114].mxu1  ;;  %v11878_v6 = vpack.c.bf16 %v10534_v63, %v10528_v50 }
 0x3ae   :  { %v10844_v52 = vpop.eup %7526  ;;  %7538 = vtanh.f32 %v4084_v39  ;;  %v4088_v36 = vadd.f32 %v4087_v30, %v9708_v53  ;;  %v4089_v18 = vpop.f32.mrb[115].mxu1  ;;  %v3546_v5 = vpack.c.bf16 %v7525_v27, %v7517_v37  ;;  %v11877_v39 = vpack.c.bf16 %v10508_v45, %v10497_v34 }
 0x3af   :  { %v10847_v16 = vpop.eup %7528  ;;  %7540 = vtanh.f32 %v4086_v4  ;;  %v4090_v1 = vadd.f32 %v4089_v18, %v9705_v51 }
 0x3b0   :  { %7542 = vtanh.f32 %v4088_v36  ;;  %4261 = vmatprep.mubr.bf16.mxu1 %v3546_v5 }
 0x3b1   :  { %v7531_v33 = vpop.eup %7530  ;;  %7544 = vtanh.f32 %v4090_v1  ;;  %4262 = vmatmul.mubr.bf16.gmra.mrb[184].mxu1 %v3545_v59 }
 0x3b2   :  { %v7533_v37 = vpop.eup %7532 }
 0x3b3   :  { %5085 = vmatmul.mubr.bf16.gmra.mrb[28].mxu0 %v11877_v39  ;;  %v7535_v27 = vpop.eup %7534  ;;  %v3150_v4 = vpop.f32.mrb[192].mxu0 }
 0x3b4   :  { %5094 = vmatprep.mubr.bf16.mxu0 %v11878_v6  ;;  %v7537_v30 = vpop.eup %7536  ;;  %v3151_v36 = vadd.f32 %v3150_v4, %v9168_v17  ;;  %v3152_v18 = vpop.f32.mrb[193].mxu0  ;;  %v3547_v5 = vpack.c.bf16 %v7535_v27, %v7531_v33 }
 0x3b5   :  { %v3153_v31 = vadd.f32 %v3152_v18, %v9171_v20  ;;  %v3154_v1 = vpop.f32.mrb[194].mxu0  ;;  %v3548_v59 = vpack.c.bf16 %v7537_v30, %v7533_v37  ;;  %v11880_v18 = vpack.c.bf16 %v10558_v61, %v10551_v22 }
 0x3b6   :  { %7546 = vtanh.f32 %v3151_v36  ;;  %v4093_v24 = vpop.f32.mrb[116].mxu1  ;;  %v3155_v34 = vadd.f32 %v3154_v1, %v9168_v17  ;;  %v3156_v45 = vpop.f32.mrb[195].mxu0 }
 0x3b7   :  { %7548 = vtanh.f32 %v3153_v31  ;;  %v4094_v50 = vadd.f32 %v4093_v24, %v9708_v53  ;;  %v4095_v63 = vpop.f32.mrb[117].mxu1  ;;  %v3157_v39 = vadd.f32 %v3156_v45, %v9171_v20  ;;  %4271 = vmatprep.mubr.bf16.mxu1 %v3548_v59  ;;  %v11879_v31 = vpack.c.bf16 %v10531_v0, %v10525_v40 }
 0x3b8   :  { %v10865_v6 = vpop.eup %7538  ;;  %7550 = vtanh.f32 %v3155_v34  ;;  %v4096_v33 = vadd.f32 %v4095_v63, %v9705_v51  ;;  %v4097_v27 = vpop.f32.mrb[118].mxu1 }
 0x3b9   :  { %v10868_v4 = vpop.eup %7540  ;;  %7552 = vtanh.f32 %v4094_v50  ;;  %v4098_v37 = vadd.f32 %v4097_v27, %v9708_v53  ;;  %v4099_v30 = vpop.f32.mrb[119].mxu1  ;;  %4272 = vmatmul.mubr.bf16.gmra.mrb[188].mxu1 %v3547_v5  ;;  %v11881_v27 = vpack.c.bf16 %v10555_v12, %v10545_v8 }
 0x3ba   :  { %v10874_v24 = vpop.eup %7542  ;;  %7554 = vtanh.f32 %v4096_v33  ;;  %v4100_v36 = vadd.f32 %v4099_v30, %v9705_v51  ;;  %v11882_v30 = vpack.c.bf16 %v10583_v46, %v10577_v19 }
 0x3bb   :  { %5095 = vmatmul.mubr.bf16.gmra.mrb[32].mxu0 %v11879_v31  ;;  %v10880_v1 = vpop.eup %7544  ;;  %v4642_v59 = vpack.c.bf16 %v10874_v24, %v10865_v6  ;;  %7556 = vtanh.f32 %v3157_v39  ;;  %v8289_v24 = vmov 1966171168  }
 0x3bc   :  { %5104 = vmatprep.mubr.bf16.mxu0 %v11880_v18  ;;  %7558 = vtanh.f32 %v4098_v37  ;;  %v4643_v40 = vpack.c.bf16 %v10880_v1, %v10868_v4 }
 0x3bd   :  { %v3160_v5 = vpop.f32.mrb[196].mxu0  ;;  %7560 = vtanh.f32 %v4100_v36 }
 0x3be   :  { %v3161_v0 = vadd.f32 %v3160_v5, %v9168_v17  ;;  %v3162_v34 = vpop.f32.mrb[197].mxu0 }
 0x3bf   :  { %v3163_v45 = vadd.f32 %v3162_v34, %v9171_v20  ;;  %v3164_v50 = vpop.f32.mrb[198].mxu0 }
 0x3c0   :  { %7562 = vtanh.f32 %v3161_v0  ;;  %v3165_v22 = vadd.f32 %v3164_v50, %v9168_v17  ;;  %v3166_v61 = vpop.f32.mrb[199].mxu0  ;;  %v7547_v63 = vpop.eup %7546 }
 0x3c1   :  { %7564 = vtanh.f32 %v3163_v45  ;;  %v3167_v39 = vadd.f32 %v3166_v61, %v9171_v20  ;;  %v7549_v33 = vpop.eup %7548 }
 0x3c2   :  { %7566 = vtanh.f32 %v3165_v22  ;;  %v7551_v37 = vpop.eup %7550 }
 0x3c3   :  { %5105 = vmatmul.mubr.bf16.gmra.mrb[36].mxu0 %v11881_v27  ;;  %7568 = vtanh.f32 %v3167_v39  ;;  %v10896_v31 = vpop.eup %7552  ;;  %v3549_v18 = vpack.c.bf16 %v7551_v37, %v7547_v63 }
 0x3c4   :  { %5114 = vmatprep.mubr.bf16.mxu0 %v11882_v30  ;;  %v4103_v36 = vpop.f32.mrb[120].mxu1  ;;  %v10898_v5 = vpop.eup %7554  ;;  %v11883_v30 = vpack.c.bf16 %v10580_v57, %v10573_v9 }
 0x3c5   :  { %v4104_v0 = vadd.f32 %v4103_v36, %v9708_v53  ;;  %v4105_v34 = vpop.f32.mrb[121].mxu1  ;;  %v7557_v45 = vpop.eup %7556  ;;  %v11884_v36 = vpack.c.bf16 %v10616_v62, %v10609_v43 }
 0x3c6   :  { %v4106_v50 = vadd.f32 %v4105_v34, %v9705_v51  ;;  %v4107_v8 = vpop.f32.mrb[122].mxu1  ;;  %v10902_v12 = vpop.eup %7558  ;;  %v3550_v46 = vpack.c.bf16 %v7557_v45, %v7549_v33 }
 0x3c7   :  { %7570 = vtanh.f32 %v4104_v0  ;;  %v4108_v22 = vadd.f32 %v4107_v8, %v9708_v53  ;;  %v4109_v19 = vpop.f32.mrb[123].mxu1  ;;  %v10905_v61 = vpop.eup %7560  ;;  %v4644_v63 = vpack.c.bf16 %v10902_v12, %v10896_v31 }
 0x3c8   :  { %7572 = vtanh.f32 %v4106_v50  ;;  %v4110_v39 = vadd.f32 %v4109_v19, %v9705_v51  ;;  %4281 = vmatprep.mubr.bf16.mxu1 %v3550_v46  ;;  %v4645_v27 = vpack.c.bf16 %v10905_v61, %v10898_v5 }
 0x3c9   :  { %7574 = vtanh.f32 %v4108_v22  ;;  %4282 = vmatmul.mubr.bf16.gmra.mrb[192].mxu1 %v3549_v18 }
 0x3ca   :  { %v7563_v37 = vpop.eup %7562  ;;  %7576 = vtanh.f32 %v4110_v39 }
 0x3cb   :  { %5115 = vmatmul.mubr.bf16.gmra.mrb[40].mxu0 %v11883_v30  ;;  %v7565_v33 = vpop.eup %7564 }
 0x3cc   :  { %5124 = vmatprep.mubr.bf16.mxu0 %v11884_v36  ;;  %v7567_v0 = vpop.eup %7566  ;;  %v3170_v34 = vpop.f32.mrb[200].mxu0 }
 0x3cd   :  { %v7569_v45 = vpop.eup %7568  ;;  %v3171_v50 = vadd.f32 %v3170_v34, %v9168_v17  ;;  %v3172_v8 = vpop.f32.mrb[201].mxu0  ;;  %v3551_v22 = vpack.c.bf16 %v7567_v0, %v7563_v37 }
 0x3ce   :  { %v3173_v19 = vadd.f32 %v3172_v8, %v9171_v20  ;;  %v3174_v46 = vpop.f32.mrb[202].mxu0  ;;  %v3552_v18 = vpack.c.bf16 %v7569_v45, %v7565_v33 }
 0x3cf   :  { %7578 = vtanh.f32 %v3171_v50  ;;  %v4113_v39 = vpop.f32.mrb[124].mxu1  ;;  %v3175_v9 = vadd.f32 %v3174_v46, %v9168_v17  ;;  %v3176_v57 = vpop.f32.mrb[203].mxu0  ;;  %v11885_v50 = vpack.c.bf16 %v10613_v42, %v10603_v21  ;;  %v11886_v46 = vpack.c.bf16 %v10640_v13, %v10633_v23 }
 0x3d0   :  { %7580 = vtanh.f32 %v3173_v19  ;;  %v4114_v43 = vadd.f32 %v4113_v39, %v9708_v53  ;;  %v4115_v62 = vpop.f32.mrb[125].mxu1  ;;  %v3177_v30 = vadd.f32 %v3176_v57, %v9171_v20  ;;  %4291 = vmatprep.mubr.bf16.mxu1 %v3552_v18 }
 0x3d1   :  { %v10923_v36 = vpop.eup %7570  ;;  %7582 = vtanh.f32 %v3175_v9  ;;  %v4116_v37 = vadd.f32 %v4115_v62, %v9705_v51  ;;  %v4117_v0 = vpop.f32.mrb[126].mxu1  ;;  %4292 = vmatmul.mubr.bf16.gmra.mrb[196].mxu1 %v3551_v22 }
 0x3d2   :  { %v10926_v34 = vpop.eup %7572  ;;  %7584 = vtanh.f32 %v4114_v43  ;;  %v4118_v33 = vadd.f32 %v4117_v0, %v9708_v53  ;;  %v4119_v45 = vpop.f32.mrb[127].mxu1  ;;  %v11887_v0 = vpack.c.bf16 %v10637_v54, %v10630_v47 }
 0x3d3   :  { %5125 = vmatmul.mubr.bf16.gmra.mrb[44].mxu0 %v11885_v50  ;;  %v10932_v8 = vpop.eup %7574  ;;  %7586 = vtanh.f32 %v4116_v37  ;;  %v4120_v19 = vadd.f32 %v4119_v45, %v9705_v51  ;;  %v11888_v45 = vpack.c.bf16 %v10673_v15, %v10666_v44 }
 0x3d4   :  { %5134 = vmatprep.mubr.bf16.mxu0 %v11886_v46  ;;  %v10938_v18 = vpop.eup %7576  ;;  %v4646_v39 = vpack.c.bf16 %v10932_v8, %v10923_v36  ;;  %7588 = vtanh.f32 %v3177_v30 }
 0x3d5   :  { %7590 = vtanh.f32 %v4118_v33  ;;  %v4647_v21 = vpack.c.bf16 %v10938_v18, %v10926_v34 }
 0x3d6   :  { %v3180_v22 = vpop.f32.mrb[204].mxu0  ;;  %7592 = vtanh.f32 %v4120_v19 }
 0x3d7   :  { %v3181_v42 = vadd.f32 %v3180_v22, %v9168_v17  ;;  %v3182_v9 = vpop.f32.mrb[205].mxu0 }
 0x3d8   :  { %v3183_v57 = vadd.f32 %v3182_v9, %v9171_v20  ;;  %v3184_v43 = vpop.f32.mrb[206].mxu0 }
 0x3d9   :  { %7594 = vtanh.f32 %v3181_v42  ;;  %v3185_v23 = vadd.f32 %v3184_v43, %v9168_v17  ;;  %v3186_v13 = vpop.f32.mrb[207].mxu0  ;;  %v7579_v62 = vpop.eup %7578 }
 0x3da   :  { %7596 = vtanh.f32 %v3183_v57  ;;  %v3187_v30 = vadd.f32 %v3186_v13, %v9171_v20  ;;  %v7581_v37 = vpop.eup %7580 }
 0x3db   :  { %7598 = vtanh.f32 %v3185_v23  ;;  %5135 = vmatmul.mubr.bf16.gmra.mrb[48].mxu0 %v11887_v0  ;;  %v7583_v33 = vpop.eup %7582 }
 0x3dc   :  { %7600 = vtanh.f32 %v3187_v30  ;;  %5144 = vmatprep.mubr.bf16.mxu0 %v11888_v45  ;;  %v10954_v50 = vpop.eup %7584  ;;  %v3553_v46 = vpack.c.bf16 %v7583_v33, %v7579_v62  ;;  %v11889_v45 = vpack.c.bf16 %v10670_v38, %v10664_v14 }
 0x3dd   :  { %v4123_v19 = vpop.f32.mrb[128].mxu1  ;;  %v10956_v22 = vpop.eup %7586 }
 0x3de   :  { %v4124_v42 = vadd.f32 %v4123_v19, %v9708_v53  ;;  %v4125_v9 = vpop.f32.mrb[129].mxu1  ;;  %v7589_v57 = vpop.eup %7588  ;;  %v11890_v19 = vpack.c.bf16 %v10706_v11, %v10694_v35 }
 0x3df   :  { %v4126_v43 = vadd.f32 %v4125_v9, %v9705_v51  ;;  %v4127_v47 = vpop.f32.mrb[130].mxu1  ;;  %v10960_v54 = vpop.eup %7590  ;;  %v3554_v15 = vpack.c.bf16 %v7589_v57, %v7581_v37 }
 0x3e0   :  { %7602 = vtanh.f32 %v4124_v42  ;;  %v4128_v23 = vadd.f32 %v4127_v47, %v9708_v53  ;;  %v4129_v44 = vpop.f32.mrb[131].mxu1  ;;  %v10963_v13 = vpop.eup %7592  ;;  %v4648_v62 = vpack.c.bf16 %v10960_v54, %v10954_v50 }
 0x3e1   :  { %7604 = vtanh.f32 %v4126_v43  ;;  %v4130_v30 = vadd.f32 %v4129_v44, %v9705_v51  ;;  %4301 = vmatprep.mubr.bf16.mxu1 %v3554_v15  ;;  %v4649_v0 = vpack.c.bf16 %v10963_v13, %v10956_v22 }
 0x3e2   :  { %7606 = vtanh.f32 %v4128_v23  ;;  %4302 = vmatmul.mubr.bf16.gmra.mrb[200].mxu1 %v3553_v46 }
 0x3e3   :  { %v7595_v33 = vpop.eup %7594  ;;  %7608 = vtanh.f32 %v4130_v30  ;;  %5145 = vmatmul.mubr.bf16.gmra.mrb[52].mxu0 %v11889_v45 }
 0x3e4   :  { %v7597_v37 = vpop.eup %7596  ;;  %5154 = vmatprep.mubr.bf16.mxu0 %v11890_v19 }
 0x3e5   :  { %v7599_v42 = vpop.eup %7598  ;;  %v3190_v9 = vpop.f32.mrb[208].mxu0 }
 0x3e6   :  { %v7601_v57 = vpop.eup %7600  ;;  %v3191_v43 = vadd.f32 %v3190_v9, %v9168_v17  ;;  %v3192_v47 = vpop.f32.mrb[209].mxu0  ;;  %v3555_v23 = vpack.c.bf16 %v7599_v42, %v7595_v33 }
 0x3e7   :  { %v3193_v44 = vadd.f32 %v3192_v47, %v9171_v20  ;;  %v3194_v15 = vpop.f32.mrb[210].mxu0  ;;  %v3556_v46 = vpack.c.bf16 %v7601_v57, %v7597_v37 }
 0x3e8   :  { %7610 = vtanh.f32 %v3191_v43  ;;  %v4133_v30 = vpop.f32.mrb[132].mxu1  ;;  %v3195_v14 = vadd.f32 %v3194_v15, %v9168_v17  ;;  %v3196_v38 = vpop.f32.mrb[211].mxu0  ;;  %v11891_v43 = vpack.c.bf16 %v10700_v49, %v10691_v56  ;;  %v11892_v15 = vpack.c.bf16 %v10731_v7, %v10724_v2 }
 0x3e9   :  { %7612 = vtanh.f32 %v3193_v44  ;;  %v4134_v35 = vadd.f32 %v4133_v30, %v9708_v53  ;;  %v4135_v11 = vpop.f32.mrb[133].mxu1  ;;  %v3197_v45 = vadd.f32 %v3196_v38, %v9171_v20  ;;  %4311 = vmatprep.mubr.bf16.mxu1 %v3556_v46 }
 0x3ea   :  { %v10981_v19 = vpop.eup %7602  ;;  %7614 = vtanh.f32 %v3195_v14  ;;  %v4136_v33 = vadd.f32 %v4135_v11, %v9705_v51  ;;  %v4137_v42 = vpop.f32.mrb[134].mxu1  ;;  %4312 = vmatmul.mubr.bf16.gmra.mrb[204].mxu1 %v3555_v23 }
 0x3eb   :  { %v10984_v9 = vpop.eup %7604  ;;  %7616 = vtanh.f32 %v4134_v35  ;;  %v4138_v37 = vadd.f32 %v4137_v42, %v9708_v53  ;;  %v4139_v57 = vpop.f32.mrb[135].mxu1  ;;  %5155 = vmatmul.mubr.bf16.gmra.mrb[56].mxu0 %v11891_v43  ;;  %v11893_v42 = vpack.c.bf16 %v10728_v55, %v10722_v41  ;;  %v11895_v43 = vld [vmem:[#allocation9_spill] sm:$0xff] }
 0x3ec   :  { %v10990_v47 = vpop.eup %7606  ;;  %7618 = vtanh.f32 %v4136_v33  ;;  %v4140_v44 = vadd.f32 %v4139_v57, %v9705_v51  ;;  %5164 = vmatprep.mubr.bf16.mxu0 %v11892_v15  ;;  %v11894_v57 = vld [vmem:[#allocation8_spill] sm:$0xff] }
 0x3ed   :  { %v10996_v46 = vpop.eup %7608  ;;  %7620 = vtanh.f32 %v3197_v45 }
 0x3ee   :  { %7622 = vtanh.f32 %v4138_v37  ;;  %v3200_v23 = vpop.f32.mrb[212].mxu0 }
 0x3ef   :  { %7624 = vtanh.f32 %v4140_v44  ;;  %v3201_v49 = vadd.f32 %v3200_v23, %v9168_v17  ;;  %v3202_v14 = vpop.f32.mrb[213].mxu0  ;;  %v11896_v44 = vpack.c.bf16 %v11894_v57, %v11895_v43 }
 0x3f0   :  { %v3203_v38 = vadd.f32 %v3202_v14, %v9171_v20  ;;  %v3204_v35 = vpop.f32.mrb[214].mxu0 }
 0x3f1   :  { %7626 = vtanh.f32 %v3201_v49  ;;  %v3205_v2 = vadd.f32 %v3204_v35, %v9168_v17  ;;  %v3206_v7 = vpop.f32.mrb[215].mxu0 }
 0x3f2   :  { %v7611_v11 = vpop.eup %7610  ;;  %7628 = vtanh.f32 %v3203_v38  ;;  %v3207_v45 = vadd.f32 %v3206_v7, %v9171_v20 }
 0x3f3   :  { %v7613_v33 = vpop.eup %7612  ;;  %7630 = vtanh.f32 %v3205_v2  ;;  %5165 = vmatmul.mubr.bf16.gmra.mrb[60].mxu0 %v11893_v42 }
 0x3f4   :  { %v7615_v37 = vpop.eup %7614  ;;  %7632 = vtanh.f32 %v3207_v45  ;;  %5174 = vmatprep.mubr.bf16.mxu0 %v11896_v44 }
 0x3f5   :  { %v11012_v15 = vpop.eup %7616  ;;  %v4143_v23 = vpop.f32.mrb[136].mxu1  ;;  %v3557_v49 = vpack.c.bf16 %v7615_v37, %v7611_v11 }
 0x3f6   :  { %v11014_v14 = vpop.eup %7618  ;;  %v4144_v38 = vadd.f32 %v4143_v23, %v9708_v53  ;;  %v4145_v35 = vpop.f32.mrb[137].mxu1 }
 0x3f7   :  { %v7621_v2 = vpop.eup %7620  ;;  %v4146_v7 = vadd.f32 %v4145_v35, %v9705_v51  ;;  %v4147_v41 = vpop.f32.mrb[138].mxu1  ;;  %v11898_v35 = vld [vmem:[#allocation6_spill] sm:$0xff] }
 0x3f8   :  { %v11018_v55 = vpop.eup %7622  ;;  %7634 = vtanh.f32 %v4144_v38  ;;  %v4148_v45 = vadd.f32 %v4147_v41, %v9708_v53  ;;  %v4149_v42 = vpop.f32.mrb[139].mxu1  ;;  %v3558_v57 = vpack.c.bf16 %v7621_v2, %v7613_v33  ;;  %v11897_v38 = vld [vmem:[#allocation10_spill] sm:$0xff]  ;;  %v11900_v2 = vpack.c.bf16 %v10789_v26, %v10782_v28 }
 0x3f9   :  { %v11021_v43 = vpop.eup %7624  ;;  %7636 = vtanh.f32 %v4146_v7  ;;  %v4150_v37 = vadd.f32 %v4149_v42, %v9705_v51  ;;  %v11899_v41 = vpack.c.bf16 %v11897_v38, %v11898_v35 }
 0x3fa   :  { %7638 = vtanh.f32 %v4148_v45  ;;  %4321 = vmatprep.mubr.bf16.mxu1 %v3558_v57 }
 0x3fb   :  { %v7627_v23 = vpop.eup %7626  ;;  %7640 = vtanh.f32 %v4150_v37  ;;  %4322 = vmatmul.mubr.bf16.gmra.mrb[208].mxu1 %v3557_v49  ;;  %5175 = vmatmul.mubr.bf16.gmra.mrb[64].mxu0 %v11899_v41 }
 0x3fc   :  { %v7629_v33 = vpop.eup %7628  ;;  %5184 = vmatprep.mubr.bf16.mxu0 %v11900_v2 }
 0x3fd   :  { %v7631_v7 = vpop.eup %7630  ;;  %v3210_v11 = vpop.f32.mrb[216].mxu0 }
 0x3fe   :  { %v7633_v42 = vpop.eup %7632  ;;  %v3211_v45 = vadd.f32 %v3210_v11, %v9168_v17  ;;  %v3212_v57 = vpop.f32.mrb[217].mxu0  ;;  %v3559_v30 = vpack.c.bf16 %v7631_v7, %v7627_v23 }
 0x3ff   :  { %v3213_v44 = vadd.f32 %v3212_v57, %v9171_v20  ;;  %v4153_v37 = vpop.f32.mrb[140].mxu1  ;;  %v3214_v49 = vpop.f32.mrb[218].mxu0  ;;  %v3560_v56 = vpack.c.bf16 %v7633_v42, %v7629_v33  ;;  %v11901_v57 = vld [vmem:[#allocation12_spill] sm:$0xff] }
 0x400   :  { %7642 = vtanh.f32 %v3211_v45  ;;  %v4154_v38 = vadd.f32 %v4153_v37, %v9708_v53  ;;  %v3215_v35 = vadd.f32 %v3214_v49, %v9168_v17  ;;  %v4155_v41 = vpop.f32.mrb[141].mxu1  ;;  %v3216_v28 = vpop.f32.mrb[219].mxu0 }
 0x401   :  { %7644 = vtanh.f32 %v3213_v44  ;;  %v4156_v26 = vadd.f32 %v4155_v41, %v9705_v51  ;;  %v3217_v2 = vadd.f32 %v3216_v28, %v9171_v20  ;;  %v4157_v11 = vpop.f32.mrb[142].mxu1  ;;  %4331 = vmatprep.mubr.bf16.mxu1 %v3560_v56  ;;  %v11902_v44 = vld [vmem:[#allocation7_spill] sm:$0xff] }
 0x402   :  { %v11040_v23 = vpop.eup %7634  ;;  %7646 = vtanh.f32 %v4154_v38  ;;  %v4158_v7 = vadd.f32 %v4157_v11, %v9708_v53  ;;  %v4159_v33 = vpop.f32.mrb[143].mxu1  ;;  %v11903_v37 = vpack.c.bf16 %v11901_v57, %v11902_v44  ;;  %v11905_v57 = vld [vmem:[#allocation4_spill] sm:$0xff] }
 0x403   :  { %v11043_v42 = vpop.eup %7636  ;;  %7648 = vtanh.f32 %v3215_v35  ;;  %v4160_v45 = vadd.f32 %v4159_v33, %v9705_v51  ;;  %4332 = vmatmul.mubr.bf16.gmra.mrb[212].mxu1 %v3559_v30 }
 0x404   :  { %5185 = vmatmul.mubr.bf16.gmra.mrb[68].mxu0 %v11903_v37  ;;  %v11049_v49 = vpop.eup %7638  ;;  %7650 = vtanh.f32 %v4156_v26 }
 0x405   :  { %5194 = vmatprep.mubr.bf16.mxu0 %v4639_v25  ;;  %v11054_v56 = vpop.eup %7640  ;;  %7652 = vtanh.f32 %v3217_v2  ;;  %v4730_v25 = vld [vmem:[%s11729_s9] sm:$0x3] }
 0x406   :  { %7654 = vtanh.f32 %v4158_v7  ;;  %v3220_v35 = vpop.f32.mrb[220].mxu0  ;;  %v11076_v44 = vrot.slane %v4730_v25, %v11905_v57 }
 0x407   :  { %7656 = vtanh.f32 %v4160_v45  ;;  %v3221_v41 = vadd.f32 %v3220_v35, %v9168_v17  ;;  %v3222_v28 = vpop.f32.mrb[221].mxu0 }
 0x408   :  { %v3223_v26 = vadd.f32 %v3222_v28, %v9171_v20  ;;  %v3224_v11 = vpop.f32.mrb[222].mxu0 }
 0x409   :  { %7658 = vtanh.f32 %v3221_v41  ;;  %v3225_v32 = vadd.f32 %v3224_v11, %v9168_v17  ;;  %v3226_v58 = vpop.f32.mrb[223].mxu0  ;;  %v11904_v17 = vpack.c.bf16 %v10847_v16, %v10840_v3  ;;  %v11906_v41 = vld [vmem:[#allocation5_spill] sm:$0xff] }
 0x40a   :  { %v7643_v2 = vpop.eup %7642  ;;  %7660 = vtanh.f32 %v3223_v26  ;;  %v3227_v7 = vadd.f32 %v3226_v58, %v9171_v20  ;;  %v11079_v20 = vrot.slane %v4730_v25, %v11906_v41 }
 0x40b   :  { %v7645_v33 = vpop.eup %7644  ;;  %7662 = vtanh.f32 %v3225_v32 }
 0x40c   :  { %5195 = vmatmul.mubr.bf16.gmra.mrb[72].mxu0 %v4638_v60  ;;  %v11070_v45 = vpop.eup %7646  ;;  %7664 = vtanh.f32 %v3227_v7  ;;  %v4163_v35 = vpop.f32.mrb[144].mxu1 }
 0x40d   :  { %5204 = vmatprep.mubr.bf16.mxu0 %v11904_v17  ;;  %v7649_v37 = vpop.eup %7648  ;;  %v4164_v48 = vadd.f32 %v4163_v35, %v9708_v53  ;;  %v4165_v29 = vpop.f32.mrb[145].mxu1 }
 0x40e   :  { %v11081_v28 = vpop.eup %7650  ;;  %v4936_v60 = vpop.f32.mrb[224].mxu0  ;;  %v3561_v26 = vpack.c.bf16 %v7649_v37, %v7643_v2  ;;  %v4166_v32 = vadd.f32 %v4165_v29, %v9705_v51 }
 0x40f   :  { %v7653_v11 = vpop.eup %7652  ;;  %v4167_v3 = vpop.f32.mrb[146].mxu1  ;;  %7666 = vtanh.f32 %v4164_v48  ;;  %v4937_v25 = vadd.f32 %v4936_v60, %v11076_v44 }
 0x410   :  { %v4938_v16 = vpop.f32.mrb[225].mxu0  ;;  %v11085_v58 = vpop.eup %7654  ;;  %v4168_v7 = vadd.f32 %v4167_v3, %v9708_v53  ;;  %v3562_v41 = vpack.c.bf16 %v7653_v11, %v7645_v33  ;;  %7668 = vtanh.f32 %v4166_v32  ;;  %v11907_v32 = vpack.c.bf16 %v10844_v52, %v10838_v10 }
 0x411   :  { %v4169_v17 = vpop.f32.mrb[147].mxu1  ;;  %v4940_v38 = vpop.f32.mrb[226].mxu0  ;;  %v4656_v2 = vpack.c.bf16 %v11085_v58, %v11070_v45  ;;  %v4939_v35 = vadd.f32 %v4938_v16, %v11079_v20 }
 0x412   :  { %v11089_v30 = vpop.eup %7656  ;;  %v4170_v37 = vadd.f32 %v4169_v17, %v9705_v51  ;;  %v4942_v29 = vpop.f32.mrb[227].mxu0  ;;  %7670 = vtanh.f32 %v4168_v7  ;;  %4341 = vmatprep.mubr.bf16.mxu1 %v3562_v41  ;;  %v4941_v48 = vadd.f32 %v4940_v38, %v11076_v44 }
 0x413   :  { %v4657_v60 = vpack.c.bf16 %v11089_v30, %v11081_v28  ;;  %v7659_v33 = vpop.eup %7658  ;;  %4342 = vmatmul.mubr.bf16.gmra.mrb[216].mxu1 %v3561_v26  ;;  %v4943_v11 = vadd.f32 %v4942_v29, %v11079_v20 }
 0x414   :  { %7672 = vtanh.f32 %v4170_v37  ;;  %5205 = vmatmul.mubr.bf16.gmra.mrb[76].mxu0 %v11907_v32  ;;  %v7661_v3 = vpop.eup %7660  ;;  %v4173_v38 = vpop.f32.mrb[148].mxu1 }
 0x415   :  { %7674 = vtanh.f32 %v4937_v25  ;;  %5214 = vmatprep.mubr.bf16.mxu0 %v4643_v40  ;;  %v7663_v16 = vpop.eup %7662  ;;  %v4174_v17 = vadd.f32 %v4173_v38, %v9708_v53  ;;  %v4175_v26 = vpop.f32.mrb[149].mxu1 }
 0x416   :  { %7676 = vtanh.f32 %v4939_v35  ;;  %v7665_v7 = vpop.eup %7664  ;;  %v4946_v41 = vpop.f32.mrb[228].mxu0  ;;  %v3563_v37 = vpack.c.bf16 %v7663_v16, %v7659_v33  ;;  %v4176_v10 = vadd.f32 %v4175_v26, %v9705_v51 }
 0x417   :  { %7678 = vtanh.f32 %v4941_v48  ;;  %v4947_v52 = vadd.f32 %v4946_v41, %v11076_v44  ;;  %v4177_v25 = vpop.f32.mrb[150].mxu1  ;;  %v4948_v29 = vpop.f32.mrb[229].mxu0  ;;  %v3564_v32 = vpack.c.bf16 %v7665_v7, %v7661_v3 }
 0x418   :  { %7680 = vtanh.f32 %v4943_v11  ;;  %v4178_v4 = vadd.f32 %v4177_v25, %v9708_v53  ;;  %v4949_v1 = vadd.f32 %v4948_v29, %v11079_v20  ;;  %v4179_v40 = vpop.f32.mrb[151].mxu1  ;;  %v4950_v35 = vpop.f32.mrb[230].mxu0 }
 0x419   :  { %7682 = vtanh.f32 %v4174_v17  ;;  %v4180_v48 = vadd.f32 %v4179_v40, %v9705_v51  ;;  %4351 = vmatprep.mubr.bf16.mxu1 %v3564_v32  ;;  %v4952_v33 = vpop.f32.mrb[231].mxu0  ;;  %v11111_v11 = vpop.eup %7666  ;;  %v4951_v16 = vadd.f32 %v4950_v35, %v11076_v44  ;;  %v6191_v35 = vld.sshfl [vmem:[%s11730_s10] sm:$0x11 pattern:$0x75316420] }
 0x41a   :  { %7684 = vtanh.f32 %v4176_v10  ;;  %v11114_v38 = vpop.eup %7668  ;;  %v4953_v3 = vadd.f32 %v4952_v33, %v11079_v20 }
 0x41b   :  { %7686 = vtanh.f32 %v4947_v52  ;;  %4352 = vmatmul.mubr.bf16.gmra.mrb[220].mxu1 %v3563_v37 }
 0x41c   :  { %7688 = vtanh.f32 %v4178_v4  ;;  %5215 = vmatmul.mubr.bf16.gmra.mrb[80].mxu0 %v4642_v59  ;;  %v11120_v7 = vpop.eup %7670  ;;  %v5852_v59 = vunpack.c.l.s4 %v8289_v24  ;;  %v11908_v24 = vld [vmem:[#allocation3_spill] sm:$0xff] }
 0x41d   :  { %7690 = vtanh.f32 %v4949_v1  ;;  %5224 = vmatprep.mubr.bf16.mxu0 %v4645_v27  ;;  %v4658_v26 = vpack.c.bf16 %v11120_v7, %v11111_v11 }
 0x41e   :  { %v11125_v17 = vpop.eup %7672  ;;  %7692 = vtanh.f32 %v4180_v48  ;;  %v4956_v37 = vpop.f32.mrb[232].mxu0  ;;  %v5853_v29 = vunpack.c.0.s8 %v5852_v59 }
 0x41f   :  { %v7675_v41 = vpop.eup %7674  ;;  %7694 = vtanh.f32 %v4951_v16  ;;  %v4659_v6 = vpack.c.bf16 %v11125_v17, %v11114_v38  ;;  %v4957_v52 = vadd.f32 %v4956_v37, %v11076_v44  ;;  %v4958_v5 = vpop.f32.mrb[233].mxu0 }
 0x420   :  { %v7677_v10 = vpop.eup %7676  ;;  %7696 = vtanh.f32 %v4953_v3  ;;  %v4959_v27 = vadd.f32 %v4958_v5, %v11079_v20  ;;  %v4960_v25 = vpop.f32.mrb[234].mxu0  ;;  %v5850_v3 = vcombine.high %v6191_v35, %v6191_v35 }
 0x421   :  { %v7679_v61 = vpop.eup %7678  ;;  %7698 = vtanh.f32 %v4957_v52  ;;  %v4961_v4 = vadd.f32 %v4960_v25, %v11076_v44  ;;  %v4962_v1 = vpop.f32.mrb[235].mxu0 }
 0x422   :  { %v7681_v32 = vpop.eup %7680  ;;  %v5720_v40 = vpack.c.bf16 %v7679_v61, %v7675_v41  ;;  %7700 = vtanh.f32 %v4959_v27  ;;  %v4963_v33 = vadd.f32 %v4962_v1, %v11079_v20  ;;  %v11146_v41 = vsub.s32 %v5853_v29, %v11908_v24 }
 0x423   :  { %v11137_v48 = vpop.eup %7682  ;;  %v5721_v16 = vpack.c.bf16 %v7681_v32, %v7677_v10  ;;  %7702 = vtanh.f32 %v4961_v4  ;;  %v4183_v10 = vpop.f32.mrb[152].mxu1 }
 0x424   :  { %v11140_v37 = vpop.eup %7684  ;;  %5225 = vmatmul.mubr.bf16.gmra.mrb[84].mxu0 %v4644_v63  ;;  %7704 = vtanh.f32 %v4963_v33  ;;  %v11154_v5 = vrot.slane %v5850_v3, %v11146_v41  ;;  %v4184_v12 = vadd.f32 %v4183_v10, %v9708_v53  ;;  %v4185_v63 = vpop.f32.mrb[153].mxu1 }
 0x425   :  { %v7687_v59 = vpop.eup %7686  ;;  %5867 = vmatprep.subr.bf16.mxu1 %v5721_v16  ;;  %5234 = vmatprep.mubr.bf16.mxu0 %v4647_v21  ;;  %v4186_v34 = vadd.f32 %v4185_v63, %v9705_v51  ;;  %v4187_v18 = vpop.f32.mrb[154].mxu1 }
 0x426   :  { %v11151_v52 = vpop.eup %7688  ;;  %5868 = vmatpush1.bf16.xpose.msra.mxu1 %v5720_v40  ;;  %v4966_v27 = vpop.f32.mrb[236].mxu0  ;;  %5899 = vmatprep.mubr.bf16.mxu1 %v11154_v5  ;;  %7706 = vtanh.f32 %v4184_v12  ;;  %v4188_v32 = vadd.f32 %v4187_v18, %v9708_v53 }
 0x427   :  { %v7691_v61 = vpop.eup %7690  ;;  %v4968_v21 = vpop.f32.mrb[237].mxu0  ;;  %v4967_v1 = vadd.f32 %v4966_v27, %v11076_v44  ;;  %7708 = vtanh.f32 %v4186_v34 }
 0x428   :  { %v11159_v25 = vpop.eup %7692  ;;  %v4189_v4 = vpop.f32.mrb[155].mxu1  ;;  %v4969_v3 = vadd.f32 %v4968_v21, %v11079_v20  ;;  %7710 = vtanh.f32 %v4188_v32 }
 0x429   :  { %v7695_v29 = vpop.eup %7694  ;;  %v4970_v40 = vpop.f32.mrb[238].mxu0  ;;  %v4661_v35 = vpack.c.bf16 %v11159_v25, %v11140_v37  ;;  %v4190_v16 = vadd.f32 %v4189_v4, %v9705_v51 }
 0x42a   :  { %v7697_v33 = vpop.eup %7696  ;;  %v4972_v24 = vpop.f32.mrb[239].mxu0  ;;  %v5722_v10 = vpack.c.bf16 %v7695_v29, %v7687_v59  ;;  %v4971_v12 = vadd.f32 %v4970_v40, %v11076_v44 }
 0x42b   :  { %v5723_v63 = vpack.c.bf16 %v7697_v33, %v7691_v61  ;;  %v7699_v18 = vpop.eup %7698  ;;  %7712 = vtanh.f32 %v4190_v16  ;;  %v4973_v27 = vadd.f32 %v4972_v24, %v11079_v20  ;;  %v4193_v34 = vpop.f32.mrb[156].mxu1 }
 0x42c   :  { %5235 = vmatmul.mubr.bf16.gmra.mrb[88].mxu0 %v4646_v39  ;;  %v7701_v31 = vpop.eup %7700  ;;  %7714 = vtanh.f32 %v4967_v1  ;;  %v4194_v21 = vadd.f32 %v4193_v34, %v9708_v53  ;;  %v4195_v29 = vpop.f32.mrb[157].mxu1 }
 0x42d   :  { %5869 = vmatprep.subr.bf16.mxu1 %v5723_v63  ;;  %5244 = vmatprep.mubr.bf16.mxu0 %v4649_v0  ;;  %v7703_v59 = vpop.eup %7702  ;;  %7716 = vtanh.f32 %v4969_v3  ;;  %v4196_v36 = vadd.f32 %v4195_v29, %v9705_v51  ;;  %v4197_v39 = vpop.f32.mrb[158].mxu1 }
 0x42e   :  { %5870 = vmatpush1.bf16.xpose.msra.mxu1 %v5722_v10  ;;  %v7705_v61 = vpop.eup %7704  ;;  %7718 = vtanh.f32 %v4971_v12  ;;  %v4976_v32 = vpop.f32.mrb[240].mxu0  ;;  %v5724_v4 = vpack.c.bf16 %v7703_v59, %v7699_v18  ;;  %v4198_v13 = vadd.f32 %v4197_v39, %v9708_v53  ;;  %v11909_v18 = vpack.c.bf16 %v10996_v46, %v10984_v9 }
 0x42f   :  { %7720 = vtanh.f32 %v4973_v27  ;;  %v4977_v8 = vadd.f32 %v4976_v32, %v11076_v44  ;;  %v4978_v1 = vpop.f32.mrb[241].mxu0  ;;  %v5725_v22 = vpack.c.bf16 %v7705_v61, %v7701_v31  ;;  %v4199_v40 = vpop.f32.mrb[159].mxu1 }
 0x430   :  { %7722 = vtanh.f32 %v4194_v21  ;;  %v4979_v0 = vadd.f32 %v4978_v1, %v11079_v20  ;;  %v4980_v33 = vpop.f32.mrb[242].mxu0  ;;  %v4200_v16 = vadd.f32 %v4199_v40, %v9705_v51  ;;  %v11183_v24 = vpop.eup %7706 }
 0x431   :  { %7724 = vtanh.f32 %v4196_v36  ;;  %v4982_v3 = vpop.f32.mrb[243].mxu0  ;;  %5871 = vmatprep.subr.bf16.mxu1 %v5725_v22  ;;  %v4981_v10 = vadd.f32 %v4980_v33, %v11076_v44  ;;  %v11186_v12 = vpop.eup %7708  ;;  %v11911_v33 = vpack.c.bf16 %v11021_v43, %v11014_v14 }
 0x432   :  { %7726 = vtanh.f32 %v4977_v8  ;;  %v4983_v31 = vadd.f32 %v4982_v3, %v11079_v20  ;;  %v11192_v63 = vpop.eup %7710 }
 0x433   :  { %7728 = vtanh.f32 %v4198_v13  ;;  %v4662_v59 = vpack.c.bf16 %v11192_v63, %v11183_v24 }
 0x434   :  { %5245 = vmatmul.mubr.bf16.gmra.mrb[92].mxu0 %v4648_v62  ;;  %7730 = vtanh.f32 %v4979_v0  ;;  %v11910_v0 = vpack.c.bf16 %v10990_v47, %v10981_v19 }
 0x435   :  { %5254 = vmatprep.mubr.bf16.mxu0 %v11909_v18  ;;  %v11197_v27 = vpop.eup %7712  ;;  %7732 = vtanh.f32 %v4200_v16 }
 0x436   :  { %5872 = vmatpush1.bf16.xpose.msra.mxu1 %v5724_v4  ;;  %v7715_v34 = vpop.eup %7714  ;;  %7734 = vtanh.f32 %v4981_v10  ;;  %v4986_v61 = vpop.f32.mrb[244].mxu0  ;;  %v4663_v50 = vpack.c.bf16 %v11197_v27, %v11186_v12 }
 0x437   :  { %v7717_v54 = vpop.eup %7716  ;;  %7736 = vtanh.f32 %v4983_v31  ;;  %v4987_v62 = vadd.f32 %v4986_v61, %v11076_v44  ;;  %v4988_v21 = vpop.f32.mrb[245].mxu0 }
 0x438   :  { %v7719_v9 = vpop.eup %7718  ;;  %v4989_v46 = vadd.f32 %v4988_v21, %v11079_v20  ;;  %v4990_v29 = vpop.f32.mrb[246].mxu0 }
 0x439   :  { %v7721_v32 = vpop.eup %7720  ;;  %7738 = vtanh.f32 %v4987_v62  ;;  %v4991_v36 = vadd.f32 %v4990_v29, %v11076_v44  ;;  %v4992_v4 = vpop.f32.mrb[247].mxu0  ;;  %v5726_v8 = vpack.c.bf16 %v7719_v9, %v7715_v34 }
 0x43a   :  { %v11206_v39 = vpop.eup %7722  ;;  %7740 = vtanh.f32 %v4989_v46  ;;  %v4993_v1 = vadd.f32 %v4992_v4, %v11079_v20  ;;  %v5727_v22 = vpack.c.bf16 %v7721_v32, %v7717_v54  ;;  %v4203_v31 = vpop.f32.mrb[160].mxu1 }
 0x43b   :  { %v11209_v13 = vpop.eup %7724  ;;  %7742 = vtanh.f32 %v4991_v36  ;;  %v4204_v19 = vadd.f32 %v4203_v31, %v9708_v53  ;;  %v4205_v47 = vpop.f32.mrb[161].mxu1  ;;  %v11912_v31 = vpack.c.bf16 %v11018_v55, %v11012_v15 }
 0x43c   :  { %5255 = vmatmul.mubr.bf16.gmra.mrb[96].mxu0 %v11910_v0  ;;  %v7727_v40 = vpop.eup %7726  ;;  %7744 = vtanh.f32 %v4993_v1  ;;  %5873 = vmatprep.subr.bf16.mxu1 %v5727_v22  ;;  %v4206_v62 = vadd.f32 %v4205_v47, %v9705_v51  ;;  %v4207_v14 = vpop.f32.mrb[162].mxu1 }
 0x43d   :  { %5264 = vmatprep.mubr.bf16.mxu0 %v11911_v33  ;;  %v11217_v16 = vpop.eup %7728  ;;  %7746 = vtanh.f32 %v4204_v19  ;;  %v4208_v46 = vadd.f32 %v4207_v14, %v9708_v53  ;;  %v4209_v29 = vpop.f32.mrb[163].mxu1 }
 0x43e   :  { %5874 = vmatpush1.bf16.xpose.msra.mxu1 %v5726_v8  ;;  %v7731_v3 = vpop.eup %7730  ;;  %v4664_v10 = vpack.c.bf16 %v11217_v16, %v11206_v39  ;;  %v4996_v18 = vpop.f32.mrb[248].mxu0  ;;  %7748 = vtanh.f32 %v4206_v62  ;;  %v4210_v8 = vadd.f32 %v4209_v29, %v9705_v51 }
 0x43f   :  { %v11221_v34 = vpop.eup %7732  ;;  %v4998_v61 = vpop.f32.mrb[249].mxu0  ;;  %v4997_v32 = vadd.f32 %v4996_v18, %v11076_v44  ;;  %7750 = vtanh.f32 %v4208_v46 }
 0x440   :  { %v7735_v54 = vpop.eup %7734  ;;  %v5000_v43 = vpop.f32.mrb[250].mxu0  ;;  %v4665_v21 = vpack.c.bf16 %v11221_v34, %v11209_v13  ;;  %v4999_v1 = vadd.f32 %v4998_v61, %v11079_v20  ;;  %7752 = vtanh.f32 %v4210_v8 }
 0x441   :  { %v7737_v9 = vpop.eup %7736  ;;  %v5002_v36 = vpop.f32.mrb[251].mxu0  ;;  %v5728_v4 = vpack.c.bf16 %v7735_v54, %v7727_v40  ;;  %v5001_v33 = vadd.f32 %v5000_v43, %v11076_v44  ;;  %v11913_v40 = vpack.c.bf16 %v11054_v56, %v11043_v42  ;;  %7754 = vtanh.f32 %v4997_v32 }
 0x442   :  { %v5729_v22 = vpack.c.bf16 %v7737_v9, %v7731_v3  ;;  %v5003_v18 = vadd.f32 %v5002_v36, %v11079_v20  ;;  %7756 = vtanh.f32 %v4999_v1  ;;  %v4213_v61 = vpop.f32.mrb[164].mxu1 }
 0x443   :  { %v7739_v0 = vpop.eup %7738  ;;  %7758 = vtanh.f32 %v5001_v33  ;;  %v4214_v15 = vadd.f32 %v4213_v61, %v9708_v53  ;;  %v4215_v55 = vpop.f32.mrb[165].mxu1 }
 0x444   :  { %5265 = vmatmul.mubr.bf16.gmra.mrb[100].mxu0 %v11912_v31  ;;  %v7741_v19 = vpop.eup %7740  ;;  %5875 = vmatprep.subr.bf16.mxu1 %v5729_v22  ;;  %7760 = vtanh.f32 %v5003_v18  ;;  %v4216_v42 = vadd.f32 %v4215_v55, %v9705_v51  ;;  %v4217_v56 = vpop.f32.mrb[166].mxu1 }
 0x445   :  { %5274 = vmatprep.mubr.bf16.mxu0 %v11913_v40  ;;  %v7743_v47 = vpop.eup %7742  ;;  %7762 = vtanh.f32 %v4214_v15  ;;  %v4218_v29 = vadd.f32 %v4217_v56, %v9708_v53  ;;  %v4219_v36 = vpop.f32.mrb[167].mxu1 }
 0x446   :  { %5876 = vmatpush1.bf16.xpose.msra.mxu1 %v5728_v4  ;;  %v7745_v3 = vpop.eup %7744  ;;  %v5006_v54 = vpop.f32.mrb[252].mxu0  ;;  %v5730_v62 = vpack.c.bf16 %v7743_v47, %v7739_v0  ;;  %7764 = vtanh.f32 %v4216_v42  ;;  %v4220_v8 = vadd.f32 %v4219_v36, %v9705_v51  ;;  %v11914_v0 = vpack.c.bf16 %v11049_v49, %v11040_v23 }
 0x447   :  { %v5007_v14 = vadd.f32 %v5006_v54, %v11076_v44  ;;  %v5008_v43 = vpop.f32.mrb[253].mxu0  ;;  %v5731_v9 = vpack.c.bf16 %v7745_v3, %v7741_v19  ;;  %v11245_v1 = vpop.eup %7746 }
 0x448   :  { %v5010_v46 = vpop.f32.mrb[254].mxu0  ;;  %v5009_v32 = vadd.f32 %v5008_v43, %v11079_v20  ;;  %v11251_v33 = vpop.eup %7748 }
 0x449   :  { %v5012_v4 = vpop.f32.mrb[255].mxu0  ;;  %5877 = vmatprep.subr.bf16.mxu1 %v5731_v9  ;;  %7766 = vtanh.f32 %v5007_v14  ;;  %v5011_v22 = vadd.f32 %v5010_v46, %v11076_v44  ;;  %v11257_v19 = vpop.eup %7750 }
 0x44a   :  { %7768 = vtanh.f32 %v4218_v29  ;;  %v5013_v31 = vadd.f32 %v5012_v4, %v11079_v20  ;;  %v11259_v18 = vpop.eup %7752  ;;  %v4666_v40 = vpack.c.bf16 %v11257_v19, %v11245_v1  ;;  %v17_v19 = vstv %s11731_s11 }
 0x44b   :  { %7770 = vtanh.f32 %v5009_v32  ;;  %v7755_v49 = vpop.eup %7754  ;;  %v4667_v30 = vpack.c.bf16 %v11259_v18, %v11251_v33  ;;  %18 = vst [vmem:[#allocation2] sm:$0x1] %v17_v19 }
 0x44c   :  { %5275 = vmatmul.mubr.bf16.gmra.mrb[104].mxu0 %v11914_v0  ;;  %7772 = vtanh.f32 %v4220_v8  ;;  %v7757_v28 = vpop.eup %7756 }
 0x44d   :  { %5284 = vmatprep.mubr.bf16.mxu0 %v4657_v60  ;;  %7774 = vtanh.f32 %v5011_v22  ;;  %v7759_v54 = vpop.eup %7758 }
 0x44e   :  { %5878 = vmatpush1.bf16.xpose.msra.mxu1 %v5730_v62  ;;  %v5016_v23 = vpop.f32.mrb[0].mxu0  ;;  %7776 = vtanh.f32 %v5013_v31  ;;  %v7761_v55 = vpop.eup %7760  ;;  %v5732_v43 = vpack.c.bf16 %v7759_v54, %v7755_v49 }
 0x44f   :  { %v5017_v47 = vadd.f32 %v5016_v23, %v11076_v44  ;;  %v5018_v3 = vpop.f32.mrb[1].mxu0  ;;  %v11269_v9 = vpop.eup %7762  ;;  %v5733_v42 = vpack.c.bf16 %v7761_v55, %v7757_v28 }
 0x450   :  { %v5019_v60 = vadd.f32 %v5018_v3, %v11079_v20  ;;  %v5020_v61 = vpop.f32.mrb[2].mxu0  ;;  %v11274_v56 = vpop.eup %7764 }
 0x451   :  { %7778 = vtanh.f32 %v5017_v47  ;;  %v5021_v62 = vadd.f32 %v5020_v61, %v11076_v44  ;;  %v5022_v15 = vpop.f32.mrb[3].mxu0  ;;  %5879 = vmatprep.subr.bf16.mxu1 %v5733_v42 }
 0x452   :  { %7780 = vtanh.f32 %v5019_v60  ;;  %v5023_v14 = vadd.f32 %v5022_v15, %v11079_v20 }
 0x453   :  { %7782 = vtanh.f32 %v5021_v62  ;;  %v7767_v46 = vpop.eup %7766  ;;  %v4223_v32 = vpop.f32.mrb[168].mxu1 }
 0x454   :  { %5285 = vmatmul.mubr.bf16.gmra.mrb[108].mxu0 %v4656_v2  ;;  %7784 = vtanh.f32 %v5023_v14  ;;  %v11279_v29 = vpop.eup %7768  ;;  %v4224_v45 = vadd.f32 %v4223_v32, %v9708_v53  ;;  %v4225_v58 = vpop.f32.mrb[169].mxu1 }
 0x455   :  { %5294 = vmatprep.mubr.bf16.mxu0 %v4659_v6  ;;  %v7771_v4 = vpop.eup %7770  ;;  %v4668_v8 = vpack.c.bf16 %v11279_v29, %v11269_v9  ;;  %v4226_v38 = vadd.f32 %v4225_v58, %v9705_v51  ;;  %v4227_v17 = vpop.f32.mrb[170].mxu1 }
 0x456   :  { %5880 = vmatpush1.bf16.xpose.msra.mxu1 %v5732_v43  ;;  %v5026_v36 = vpop.f32.mrb[4].mxu0  ;;  %v11284_v22 = vpop.eup %7772  ;;  %7786 = vtanh.f32 %v4224_v45  ;;  %v4228_v31 = vadd.f32 %v4227_v17, %v9708_v53 }
 0x457   :  { %v5028_v2 = vpop.f32.mrb[5].mxu0  ;;  %v7775_v0 = vpop.eup %7774  ;;  %v5027_v49 = vadd.f32 %v5026_v36, %v11076_v44  ;;  %v4669_v3 = vpack.c.bf16 %v11284_v22, %v11274_v56  ;;  %7788 = vtanh.f32 %v4226_v38 }
 0x458   :  { %v5030_v6 = vpop.f32.mrb[6].mxu0  ;;  %v4229_v23 = vpop.f32.mrb[171].mxu1  ;;  %v5029_v61 = vadd.f32 %v5028_v2, %v11079_v20  ;;  %v5734_v54 = vpack.c.bf16 %v7775_v0, %v7767_v46  ;;  %7790 = vtanh.f32 %v4228_v31 }
 0x459   :  { %v5032_v47 = vpop.f32.mrb[7].mxu0  ;;  %v7777_v28 = vpop.eup %7776  ;;  %v4230_v60 = vadd.f32 %v4229_v23, %v9705_v51  ;;  %v5031_v15 = vadd.f32 %v5030_v6, %v11076_v44 }
 0x45a   :  { %v5735_v55 = vpack.c.bf16 %v7777_v28, %v7771_v4  ;;  %v5033_v43 = vadd.f32 %v5032_v47, %v11079_v20 }
 0x45b   :  { %v7779_v62 = vpop.eup %7778  ;;  %7792 = vtanh.f32 %v4230_v60  ;;  %v4233_v32 = vpop.f32.mrb[172].mxu1 }
 0x45c   :  { %5295 = vmatmul.mubr.bf16.gmra.mrb[112].mxu0 %v4658_v26  ;;  %v7781_v14 = vpop.eup %7780  ;;  %7794 = vtanh.f32 %v5027_v49  ;;  %5881 = vmatprep.subr.bf16.mxu1 %v5735_v55  ;;  %v4234_v11 = vadd.f32 %v4233_v32, %v9708_v53  ;;  %v4235_v7 = vpop.f32.mrb[173].mxu1  ;;  %v11915_v49 = vpack.c.bf16 %v11151_v52, %v11137_v48 }
 0x45d   :  { %5304 = vmatprep.mubr.bf16.mxu0 %v4661_v35  ;;  %v7783_v42 = vpop.eup %7782  ;;  %7796 = vtanh.f32 %v5029_v61  ;;  %v4236_v37 = vadd.f32 %v4235_v7, %v9705_v51  ;;  %v4237_v25 = vpop.f32.mrb[174].mxu1 }
 0x45e   :  { %v7785_v46 = vpop.eup %7784  ;;  %5882 = vmatpush1.bf16.xpose.msra.mxu1 %v5734_v54  ;;  %v5036_v36 = vpop.f32.mrb[8].mxu0  ;;  %v5736_v4 = vpack.c.bf16 %v7783_v42, %v7779_v62  ;;  %7798 = vtanh.f32 %v5031_v15  ;;  %v4238_v2 = vadd.f32 %v4237_v25, %v9708_v53 }
 0x45f   :  { %v5037_v26 = vadd.f32 %v5036_v36, %v11076_v44  ;;  %v5038_v45 = vpop.f32.mrb[9].mxu0  ;;  %v5737_v58 = vpack.c.bf16 %v7785_v46, %v7781_v14  ;;  %7800 = vtanh.f32 %v5033_v43  ;;  %v4239_v17 = vpop.f32.mrb[175].mxu1 }
 0x460   :  { %v5040_v35 = vpop.f32.mrb[10].mxu0  ;;  %7802 = vtanh.f32 %v4234_v11  ;;  %v5039_v38 = vadd.f32 %v5038_v45, %v11079_v20  ;;  %v4240_v0 = vadd.f32 %v4239_v17, %v9705_v51  ;;  %v11307_v31 = vpop.eup %7786 }
 0x461   :  { %v5042_v6 = vpop.f32.mrb[11].mxu0  ;;  %5883 = vmatprep.subr.bf16.mxu1 %v5737_v58  ;;  %7804 = vtanh.f32 %v4236_v37  ;;  %v5041_v23 = vadd.f32 %v5040_v35, %v11076_v44  ;;  %v11313_v47 = vpop.eup %7788 }
 0x462   :  { %7806 = vtanh.f32 %v5037_v26  ;;  %v5043_v28 = vadd.f32 %v5042_v6, %v11079_v20  ;;  %v11319_v60 = vpop.eup %7790 }
 0x463   :  { %7808 = vtanh.f32 %v4238_v2  ;;  %v4670_v54 = vpack.c.bf16 %v11319_v60, %v11307_v31 }
 0x464   :  { %5305 = vmatmul.mubr.bf16.gmra.mrb[116].mxu0 %v11915_v49  ;;  %7810 = vtanh.f32 %v5039_v38 }
 0x465   :  { %5314 = vmatprep.mubr.bf16.mxu0 %v4663_v50  ;;  %v11321_v61 = vpop.eup %7792  ;;  %7812 = vtanh.f32 %v4240_v0 }
 0x466   :  { %5884 = vmatpush1.bf16.xpose.msra.mxu1 %v5736_v4  ;;  %v5046_v48 = vpop.f32.mrb[12].mxu0  ;;  %v7795_v52 = vpop.eup %7794  ;;  %7814 = vtanh.f32 %v5041_v23  ;;  %v4671_v12 = vpack.c.bf16 %v11321_v61, %v11313_v47 }
 0x467   :  { %v5047_v62 = vadd.f32 %v5046_v48, %v11076_v44  ;;  %v5048_v15 = vpop.f32.mrb[13].mxu0  ;;  %v7797_v27 = vpop.eup %7796  ;;  %7816 = vtanh.f32 %v5043_v28 }
 0x468   :  { %v5049_v50 = vadd.f32 %v5048_v15, %v11079_v20  ;;  %v5050_v55 = vpop.f32.mrb[14].mxu0  ;;  %v7799_v14 = vpop.eup %7798 }
 0x469   :  { %7818 = vtanh.f32 %v5047_v62  ;;  %v5051_v43 = vadd.f32 %v5050_v55, %v11076_v44  ;;  %v5052_v42 = vpop.f32.mrb[15].mxu0  ;;  %v7801_v46 = vpop.eup %7800  ;;  %v5738_v36 = vpack.c.bf16 %v7799_v14, %v7795_v52 }
 0x46a   :  { %7820 = vtanh.f32 %v5049_v50  ;;  %v5053_v32 = vadd.f32 %v5052_v42, %v11079_v20  ;;  %v11331_v4 = vpop.eup %7802  ;;  %v5739_v11 = vpack.c.bf16 %v7801_v46, %v7797_v27 }
 0x46b   :  { %7822 = vtanh.f32 %v5051_v43  ;;  %v11336_v7 = vpop.eup %7804 }
 0x46c   :  { %5315 = vmatmul.mubr.bf16.gmra.mrb[120].mxu0 %v4662_v59  ;;  %7824 = vtanh.f32 %v5053_v32  ;;  %v7807_v26 = vpop.eup %7806  ;;  %5885 = vmatprep.subr.bf16.mxu1 %v5739_v11  ;;  %v4243_v58 = vpop.f32.mrb[176].mxu1 }
 0x46d   :  { %5324 = vmatprep.mubr.bf16.mxu0 %v4665_v21  ;;  %v11341_v45 = vpop.eup %7808  ;;  %v4244_v24 = vadd.f32 %v4243_v58, %v9708_v53  ;;  %v4245_v63 = vpop.f32.mrb[177].mxu1 }
 0x46e   :  { %5886 = vmatpush1.bf16.xpose.msra.mxu1 %v5738_v36  ;;  %v5056_v37 = vpop.f32.mrb[16].mxu0  ;;  %v7811_v25 = vpop.eup %7810  ;;  %v4672_v35 = vpack.c.bf16 %v11341_v45, %v11331_v4  ;;  %v4246_v13 = vadd.f32 %v4245_v63, %v9705_v51 }
 0x46f   :  { %v5058_v59 = vpop.f32.mrb[17].mxu0  ;;  %v11346_v2 = vpop.eup %7812  ;;  %7826 = vtanh.f32 %v4244_v24  ;;  %v5057_v0 = vadd.f32 %v5056_v37, %v11076_v44 }
 0x470   :  { %v4247_v34 = vpop.f32.mrb[178].mxu1  ;;  %v5060_v21 = vpop.f32.mrb[18].mxu0  ;;  %v4673_v49 = vpack.c.bf16 %v11346_v2, %v11336_v7  ;;  %7828 = vtanh.f32 %v4246_v13  ;;  %v5059_v52 = vadd.f32 %v5058_v59, %v11079_v20 }
 0x471   :  { %v7815_v38 = vpop.eup %7814  ;;  %v4248_v17 = vadd.f32 %v4247_v34, %v9708_v53  ;;  %v4249_v6 = vpop.f32.mrb[179].mxu1  ;;  %v5061_v27 = vadd.f32 %v5060_v21, %v11076_v44 }
 0x472   :  { %v5062_v23 = vpop.f32.mrb[19].mxu0  ;;  %v7817_v28 = vpop.eup %7816  ;;  %v4250_v48 = vadd.f32 %v4249_v6, %v9705_v51  ;;  %v5740_v62 = vpack.c.bf16 %v7815_v38, %v7807_v26 }
 0x473   :  { %v7819_v15 = vpop.eup %7818  ;;  %7830 = vtanh.f32 %v4248_v17  ;;  %v5741_v50 = vpack.c.bf16 %v7817_v28, %v7811_v25  ;;  %v5063_v14 = vadd.f32 %v5062_v23, %v11079_v20 }
 0x474   :  { %5325 = vmatmul.mubr.bf16.gmra.mrb[124].mxu0 %v4664_v10  ;;  %v7821_v55 = vpop.eup %7820  ;;  %7832 = vtanh.f32 %v4250_v48  ;;  %v4253_v46 = vpop.f32.mrb[180].mxu1 }
 0x475   :  { %5334 = vmatprep.mubr.bf16.mxu0 %v4667_v30  ;;  %v7823_v43 = vpop.eup %7822  ;;  %7834 = vtanh.f32 %v5057_v0  ;;  %5887 = vmatprep.subr.bf16.mxu1 %v5741_v50  ;;  %v4254_v39 = vadd.f32 %v4253_v46, %v9708_v53  ;;  %v4255_v16 = vpop.f32.mrb[181].mxu1 }
 0x476   :  { %v7825_v42 = vpop.eup %7824  ;;  %7836 = vtanh.f32 %v5059_v52  ;;  %5888 = vmatpush1.bf16.xpose.msra.mxu1 %v5740_v62  ;;  %v5066_v32 = vpop.f32.mrb[20].mxu0  ;;  %v5742_v36 = vpack.c.bf16 %v7823_v43, %v7819_v15  ;;  %v4256_v33 = vadd.f32 %v4255_v16, %v9705_v51 }
 0x477   :  { %7838 = vtanh.f32 %v5061_v27  ;;  %v5067_v10 = vadd.f32 %v5066_v32, %v11076_v44  ;;  %v5068_v11 = vpop.f32.mrb[21].mxu0  ;;  %v5743_v26 = vpack.c.bf16 %v7825_v42, %v7821_v55  ;;  %v4257_v18 = vpop.f32.mrb[182].mxu1 }
 0x478   :  { %7840 = vtanh.f32 %v5063_v14  ;;  %v5070_v30 = vpop.f32.mrb[22].mxu0  ;;  %v4258_v58 = vadd.f32 %v4257_v18, %v9708_v53  ;;  %v5069_v37 = vadd.f32 %v5068_v11, %v11079_v20  ;;  %v4259_v25 = vpop.f32.mrb[183].mxu1 }
 0x479   :  { %7842 = vtanh.f32 %v4254_v39  ;;  %v5072_v24 = vpop.f32.mrb[23].mxu0  ;;  %5889 = vmatprep.subr.bf16.mxu1 %v5743_v26  ;;  %v4260_v63 = vadd.f32 %v4259_v25, %v9705_v51  ;;  %v11369_v59 = vpop.eup %7826  ;;  %v5071_v13 = vadd.f32 %v5070_v30, %v11076_v44  ;;  %v5832_v39 = vld [vmem:[#allocation2] sm:$0x1] }
 0x47a   :  { %7844 = vtanh.f32 %v4256_v33  ;;  %v11375_v34 = vpop.eup %7828  ;;  %v5073_v21 = vadd.f32 %v5072_v24, %v11079_v20  ;;  %5835 = vperm.xlu1 %6336, %v5832_v39  }
 0x47b   :  { %7846 = vtanh.f32 %v5067_v10 }
 0x47c   :  { %5335 = vmatmul.mubr.bf16.gmra.mrb[128].mxu0 %v4666_v40  ;;  %7848 = vtanh.f32 %v4258_v58 }
 0x47d   :  { %5344 = vmatprep.mubr.bf16.mxu0 %v4669_v3  ;;  %v11381_v38 = vpop.eup %7830  ;;  %7850 = vtanh.f32 %v5069_v37 }
 0x47e   :  { %v11383_v17 = vpop.eup %7832  ;;  %v4674_v6 = vpack.c.bf16 %v11381_v38, %v11369_v59  ;;  %7852 = vtanh.f32 %v4260_v63  ;;  %5890 = vmatpush1.bf16.xpose.msra.mxu1 %v5742_v36  ;;  %v5076_v1 = vpop.f32.mrb[24].mxu0 }
 0x47f   :  { %v7835_v40 = vpop.eup %7834  ;;  %7854 = vtanh.f32 %v5071_v13  ;;  %v5077_v56 = vadd.f32 %v5076_v1, %v11076_v44  ;;  %v5078_v22 = vpop.f32.mrb[25].mxu0  ;;  %v4675_v3 = vpack.c.bf16 %v11383_v17, %v11375_v34 }
 0x480   :  { %v7837_v0 = vpop.eup %7836  ;;  %7856 = vtanh.f32 %v5073_v21  ;;  %v5079_v23 = vadd.f32 %v5078_v22, %v11079_v20  ;;  %v5080_v28 = vpop.f32.mrb[26].mxu0 }
 0x481   :  { %v7839_v48 = vpop.eup %7838  ;;  %7858 = vtanh.f32 %v5077_v56  ;;  %v5081_v52 = vadd.f32 %v5080_v28, %v11076_v44  ;;  %v5082_v62 = vpop.f32.mrb[27].mxu0 }
 0x482   :  { %v7841_v15 = vpop.eup %7840  ;;  %7860 = vtanh.f32 %v5079_v23  ;;  %v5083_v27 = vadd.f32 %v5082_v62, %v11079_v20  ;;  %v5744_v50 = vpack.c.bf16 %v7839_v48, %v7835_v40 }
 0x483   :  { %v11396_v55 = vpop.eup %7842  ;;  %7862 = vtanh.f32 %v5081_v52  ;;  %v5745_v14 = vpack.c.bf16 %v7841_v15, %v7837_v0 }
 0x484   :  { %5345 = vmatmul.mubr.bf16.gmra.mrb[132].mxu0 %v4668_v8  ;;  %v11401_v43 = vpop.eup %7844  ;;  %7864 = vtanh.f32 %v5083_v27  ;;  %v4263_v32 = vpop.f32.mrb[184].mxu1 }
 0x485   :  { %5354 = vmatprep.mubr.bf16.mxu0 %v4671_v12  ;;  %v7847_v42 = vpop.eup %7846  ;;  %5891 = vmatprep.subr.bf16.mxu1 %v5745_v14  ;;  %v4264_v29 = vadd.f32 %v4263_v32, %v9708_v53  ;;  %v4265_v8 = vpop.f32.mrb[185].mxu1 }
 0x486   :  { %v11406_v46 = vpop.eup %7848  ;;  %5892 = vmatpush1.bf16.xpose.msra.mxu1 %v5744_v50  ;;  %v5086_v36 = vpop.f32.mrb[28].mxu0  ;;  %v4266_v47 = vadd.f32 %v4265_v8, %v9705_v51 }
 0x487   :  { %v7851_v16 = vpop.eup %7850  ;;  %v4676_v9 = vpack.c.bf16 %v11406_v46, %v11396_v55  ;;  %v5088_v10 = vpop.f32.mrb[29].mxu0  ;;  %7866 = vtanh.f32 %v4264_v29  ;;  %v5087_v30 = vadd.f32 %v5086_v36, %v11076_v44 }
 0x488   :  { %v11411_v11 = vpop.eup %7852  ;;  %v4267_v61 = vpop.f32.mrb[186].mxu1  ;;  %7868 = vtanh.f32 %v4266_v47  ;;  %v5089_v63 = vadd.f32 %v5088_v10, %v11079_v20 }
 0x489   :  { %v5090_v12 = vpop.f32.mrb[30].mxu0  ;;  %v7855_v26 = vpop.eup %7854  ;;  %v4268_v33 = vadd.f32 %v4267_v61, %v9708_v53  ;;  %v4677_v37 = vpack.c.bf16 %v11411_v11, %v11401_v43 }
 0x48a   :  { %v4269_v18 = vpop.f32.mrb[187].mxu1  ;;  %v5092_v58 = vpop.f32.mrb[31].mxu0  ;;  %v5746_v13 = vpack.c.bf16 %v7855_v26, %v7847_v42  ;;  %v5091_v1 = vadd.f32 %v5090_v12, %v11076_v44 }
 0x48b   :  { %v7857_v25 = vpop.eup %7856  ;;  %v4270_v24 = vadd.f32 %v4269_v18, %v9705_v51  ;;  %7870 = vtanh.f32 %v4268_v33  ;;  %v5093_v56 = vadd.f32 %v5092_v58, %v11079_v20 }
 0x48c   :  { %v7859_v21 = vpop.eup %7858  ;;  %v5747_v19 = vpack.c.bf16 %v7857_v25, %v7851_v16  ;;  %5355 = vmatmul.mubr.bf16.gmra.mrb[136].mxu0 %v4670_v54  ;;  %v4273_v23 = vpop.f32.mrb[188].mxu1 }
 0x48d   :  { %v7861_v40 = vpop.eup %7860  ;;  %7872 = vtanh.f32 %v4270_v24  ;;  %5364 = vmatprep.mubr.bf16.mxu0 %v4673_v49  ;;  %v4274_v31 = vadd.f32 %v4273_v23, %v9708_v53  ;;  %v4275_v60 = vpop.f32.mrb[189].mxu1 }
 0x48e   :  { %v7863_v22 = vpop.eup %7862  ;;  %7874 = vtanh.f32 %v5087_v30  ;;  %5893 = vmatprep.subr.bf16.mxu1 %v5747_v19  ;;  %v5096_v28 = vpop.f32.mrb[32].mxu0  ;;  %v4276_v7 = vadd.f32 %v4275_v60, %v9705_v51 }
 0x48f   :  { %v7865_v0 = vpop.eup %7864  ;;  %7876 = vtanh.f32 %v5089_v63  ;;  %5894 = vmatpush1.bf16.xpose.msra.mxu1 %v5746_v13  ;;  %v5748_v48 = vpack.c.bf16 %v7863_v22, %v7859_v21  ;;  %v5097_v54 = vadd.f32 %v5096_v28, %v11076_v44  ;;  %v5098_v52 = vpop.f32.mrb[33].mxu0 }
 0x490   :  { %7878 = vtanh.f32 %v5091_v1  ;;  %v5749_v62 = vpack.c.bf16 %v7865_v0, %v7861_v40  ;;  %v4277_v2 = vpop.f32.mrb[190].mxu1  ;;  %v5100_v49 = vpop.f32.mrb[34].mxu0  ;;  %v5099_v27 = vadd.f32 %v5098_v52, %v11079_v20  ;;  %v8286_v0 = vld.sshfl [vmem:[%s11730_s10] sm:$0x11 pattern:$0x75316420] }
 0x491   :  { %7880 = vtanh.f32 %v5093_v56  ;;  %v4278_v15 = vadd.f32 %v4277_v2, %v9708_v53  ;;  %v4279_v50 = vpop.f32.mrb[191].mxu1  ;;  %v5102_v14 = vpop.f32.mrb[35].mxu0  ;;  %v5101_v36 = vadd.f32 %v5100_v49, %v11076_v44  ;;  %v11480_v23 = vrot.slane %v8286_v0, %v11146_v41 }
 0x492   :  { %7882 = vtanh.f32 %v4274_v31  ;;  %5895 = vmatprep.subr.bf16.mxu1 %v5749_v62  ;;  %v4280_v42 = vadd.f32 %v4279_v50, %v9705_v51  ;;  %v11434_v32 = vpop.eup %7866  ;;  %v5103_v16 = vadd.f32 %v5102_v14, %v11079_v20 }
 0x493   :  { %7884 = vtanh.f32 %v4276_v7  ;;  %v11440_v39 = vpop.eup %7868 }
 0x494   :  { %7886 = vtanh.f32 %v5097_v54  ;;  %5365 = vmatmul.mubr.bf16.gmra.mrb[140].mxu0 %v4672_v35 }
 0x495   :  { %7888 = vtanh.f32 %v4278_v15  ;;  %5374 = vmatprep.mubr.bf16.mxu0 %v4675_v3  ;;  %v11446_v29 = vpop.eup %7870 }
 0x496   :  { %7890 = vtanh.f32 %v5099_v27  ;;  %v4678_v10 = vpack.c.bf16 %v11446_v29, %v11434_v32  ;;  %v5106_v4 = vpop.f32.mrb[36].mxu0 }
 0x497   :  { %v11448_v8 = vpop.eup %7872  ;;  %7892 = vtanh.f32 %v4280_v42  ;;  %5896 = vmatpush1.bf16.xpose.msra.mxu1 %v5748_v48  ;;  %v5107_v35 = vadd.f32 %v5106_v4, %v11076_v44  ;;  %v5108_v47 = vpop.f32.mrb[37].mxu0 }
 0x498   :  { %v7875_v45 = vpop.eup %7874  ;;  %7894 = vtanh.f32 %v5101_v36  ;;  %v4679_v34 = vpack.c.bf16 %v11448_v8, %v11440_v39  ;;  %v5109_v3 = vadd.f32 %v5108_v47, %v11079_v20  ;;  %v5110_v61 = vpop.f32.mrb[38].mxu0 }
 0x499   :  { %v7877_v17 = vpop.eup %7876  ;;  %7896 = vtanh.f32 %v5103_v16  ;;  %v5111_v26 = vadd.f32 %v5110_v61, %v11076_v44  ;;  %v5112_v33 = vpop.f32.mrb[39].mxu0 }
 0x49a   :  { %v7879_v12 = vpop.eup %7878  ;;  %7898 = vtanh.f32 %v5107_v35  ;;  %v5113_v30 = vadd.f32 %v5112_v33, %v11079_v20 }
 0x49b   :  { %v7881_v18 = vpop.eup %7880  ;;  %7900 = vtanh.f32 %v5109_v3  ;;  %v5750_v58 = vpack.c.bf16 %v7879_v12, %v7875_v45 }
 0x49c   :  { %v11458_v25 = vpop.eup %7882  ;;  %7902 = vtanh.f32 %v5111_v26  ;;  %v5751_v24 = vpack.c.bf16 %v7881_v18, %v7877_v17  ;;  %5375 = vmatmul.mubr.bf16.gmra.mrb[144].mxu0 %v4674_v6  ;;  %v4283_v1 = vpop.f32.mrb[192].mxu1 }
 0x49d   :  { %v11463_v63 = vpop.eup %7884  ;;  %7904 = vtanh.f32 %v5113_v30  ;;  %5384 = vmatprep.mubr.bf16.mxu0 %v4677_v37  ;;  %v4284_v59 = vadd.f32 %v4283_v1, %v9708_v53  ;;  %v4285_v38 = vpop.f32.mrb[193].mxu1 }
 0x49e   :  { %v7887_v13 = vpop.eup %7886  ;;  %5897 = vmatprep.subr.bf16.mxu1 %v5751_v24  ;;  %v5116_v19 = vpop.f32.mrb[40].mxu0  ;;  %v4286_v43 = vadd.f32 %v4285_v38, %v9705_v51 }
 0x49f   :  { %v11468_v21 = vpop.eup %7888  ;;  %5898 = vmatpush1.bf16.xpose.msra.mxu1 %v5750_v58  ;;  %v5118_v6 = vpop.f32.mrb[41].mxu0  ;;  %7906 = vtanh.f32 %v4284_v59  ;;  %v5117_v60 = vadd.f32 %v5116_v19, %v11076_v44 }
 0x4a0   :  { %v7891_v40 = vpop.eup %7890  ;;  %v4680_v56 = vpack.c.bf16 %v11468_v21, %v11458_v25  ;;  %v4287_v11 = vpop.f32.mrb[194].mxu1  ;;  %7908 = vtanh.f32 %v4286_v43  ;;  %v5119_v2 = vadd.f32 %v5118_v6, %v11079_v20 }
 0x4a1   :  { %v11473_v22 = vpop.eup %7892  ;;  %v5120_v37 = vpop.f32.mrb[42].mxu0  ;;  %v4288_v48 = vadd.f32 %v4287_v11, %v9708_v53 }
 0x4a2   :  { %v7895_v28 = vpop.eup %7894  ;;  %v4289_v31 = vpop.f32.mrb[195].mxu1  ;;  %v4681_v52 = vpack.c.bf16 %v11473_v22, %v11463_v63  ;;  %v5121_v27 = vadd.f32 %v5120_v37, %v11076_v44 }
 0x4a3   :  { %v5122_v54 = vpop.f32.mrb[43].mxu0  ;;  %v7897_v62 = vpop.eup %7896  ;;  %v4290_v7 = vadd.f32 %v4289_v31, %v9705_v51  ;;  %v5752_v49 = vpack.c.bf16 %v7895_v28, %v7887_v13  ;;  %7910 = vtanh.f32 %v4288_v48 }
 0x4a4   :  { %v7899_v15 = vpop.eup %7898  ;;  %v5753_v50 = vpack.c.bf16 %v7897_v62, %v7891_v40  ;;  %5385 = vmatmul.mubr.bf16.gmra.mrb[148].mxu0 %v4676_v9  ;;  %v5123_v42 = vadd.f32 %v5122_v54, %v11079_v20  ;;  %v4293_v16 = vpop.f32.mrb[196].mxu1 }
 0x4a5   :  { %v7901_v14 = vpop.eup %7900  ;;  %7912 = vtanh.f32 %v4290_v7  ;;  %5394 = vmatprep.mubr.bf16.mxu0 %v4679_v34  ;;  %v4294_v55 = vadd.f32 %v4293_v16, %v9708_v53  ;;  %v4295_v46 = vpop.f32.mrb[197].mxu1 }
 0x4a6   :  { %v7903_v36 = vpop.eup %7902  ;;  %7914 = vtanh.f32 %v5117_v60  ;;  %5908 = vmatprep.subr.bf16.mxu1 %v5753_v50  ;;  %5900 = vmatmul.mubr.bf16.vlgmr.msra.gmra.mrb[224].mxu1 %v11480_v23  ;;  %v5126_v8 = vpop.f32.mrb[44].mxu0  ;;  %v4296_v47 = vadd.f32 %v4295_v46, %v9705_v51 }
 0x4a7   :  { %v7905_v39 = vpop.eup %7904  ;;  %7916 = vtanh.f32 %v5119_v2  ;;  %5909 = vmatpush1.bf16.xpose.msra.mxu1 %v5752_v49  ;;  %v5754_v4 = vpack.c.bf16 %v7903_v36, %v7899_v15  ;;  %5940 = vmatprep.mubr.bf16.mxu1 %v11154_v5  ;;  %v5127_v9 = vadd.f32 %v5126_v8, %v11076_v44  ;;  %v5128_v45 = vpop.f32.mrb[45].mxu0 }
 0x4a8   :  { %7918 = vtanh.f32 %v5121_v27  ;;  %v5755_v35 = vpack.c.bf16 %v7905_v39, %v7901_v14  ;;  %v4297_v34 = vpop.f32.mrb[198].mxu1  ;;  %v5130_v17 = vpop.f32.mrb[46].mxu0  ;;  %v5129_v61 = vadd.f32 %v5128_v45, %v11079_v20 }
 0x4a9   :  { %7920 = vtanh.f32 %v5123_v42  ;;  %v4298_v3 = vadd.f32 %v4297_v34, %v9708_v53  ;;  %v4299_v12 = vpop.f32.mrb[199].mxu1  ;;  %v5132_v26 = vpop.f32.mrb[47].mxu0  ;;  %v5131_v30 = vadd.f32 %v5130_v17, %v11076_v44 }
 0x4aa   :  { %7922 = vtanh.f32 %v4294_v55  ;;  %5910 = vmatprep.subr.bf16.mxu1 %v5755_v35  ;;  %v4300_v33 = vadd.f32 %v4299_v12, %v9705_v51  ;;  %v11501_v18 = vpop.eup %7906  ;;  %v5133_v24 = vadd.f32 %v5132_v26, %v11079_v20 }
 0x4ab   :  { %7924 = vtanh.f32 %v4296_v47  ;;  %v7909_v58 = vpop.eup %7908 }
 0x4ac   :  { %7926 = vtanh.f32 %v5127_v9  ;;  %5395 = vmatmul.mubr.bf16.gmra.mrb[152].mxu0 %v4678_v10 }
 0x4ad   :  { %7928 = vtanh.f32 %v4298_v3  ;;  %5404 = vmatprep.mubr.bf16.mxu0 %v4681_v52  ;;  %v7911_v63 = vpop.eup %7910 }
 0x4ae   :  { %7930 = vtanh.f32 %v5129_v61  ;;  %v4682_v1 = vpack.c.bf16 %v7911_v63, %v11501_v18  ;;  %v5136_v19 = vpop.f32.mrb[48].mxu0 }
 0x4af   :  { %v7913_v13 = vpop.eup %7912  ;;  %7932 = vtanh.f32 %v4300_v33  ;;  %5911 = vmatpush1.bf16.xpose.msra.mxu1 %v5754_v4  ;;  %v5137_v59 = vadd.f32 %v5136_v19, %v11076_v44  ;;  %v5138_v38 = vpop.f32.mrb[49].mxu0 }
 0x4b0   :  { %v7915_v40 = vpop.eup %7914  ;;  %7934 = vtanh.f32 %v5131_v30  ;;  %v4683_v32 = vpack.c.bf16 %v7913_v13, %v7909_v58  ;;  %v5139_v10 = vadd.f32 %v5138_v38, %v11079_v20  ;;  %v5140_v6 = vpop.f32.mrb[50].mxu0 }
 0x4b1   :  { %v7917_v29 = vpop.eup %7916  ;;  %7936 = vtanh.f32 %v5133_v24  ;;  %v5141_v43 = vadd.f32 %v5140_v6, %v11076_v44  ;;  %v5142_v11 = vpop.f32.mrb[51].mxu0 }
 0x4b2   :  { %v7919_v22 = vpop.eup %7918  ;;  %7938 = vtanh.f32 %v5137_v59  ;;  %v5143_v0 = vadd.f32 %v5142_v11, %v11079_v20 }
 0x4b3   :  { %v7921_v37 = vpop.eup %7920  ;;  %7940 = vtanh.f32 %v5139_v10  ;;  %v5756_v28 = vpack.c.bf16 %v7919_v22, %v7915_v40 }
 0x4b4   :  { %v11513_v48 = vpop.eup %7922  ;;  %7942 = vtanh.f32 %v5141_v43  ;;  %v5757_v31 = vpack.c.bf16 %v7921_v37, %v7917_v29  ;;  %5405 = vmatmul.mubr.bf16.gmra.mrb[156].mxu0 %v4680_v56 }
 0x4b5   :  { %v7925_v60 = vpop.eup %7924  ;;  %7944 = vtanh.f32 %v5143_v0  ;;  %5414 = vmatprep.mubr.bf16.mxu0 %v4683_v32  ;;  %v4303_v62 = vpop.f32.mrb[200].mxu1 }
 0x4b6   :  { %v7927_v54 = vpop.eup %7926  ;;  %5912 = vmatprep.subr.bf16.mxu1 %v5757_v31  ;;  %v5146_v7 = vpop.f32.mrb[52].mxu0  ;;  %v4304_v15 = vadd.f32 %v4303_v62, %v9708_v53 }
 0x4b7   :  { %v11518_v52 = vpop.eup %7928  ;;  %5913 = vmatpush1.bf16.xpose.msra.mxu1 %v5756_v28  ;;  %v4305_v27 = vpop.f32.mrb[201].mxu1  ;;  %v5147_v16 = vadd.f32 %v5146_v7, %v11076_v44 }
 0x4b8   :  { %v7931_v2 = vpop.eup %7930  ;;  %v4684_v49 = vpack.c.bf16 %v11518_v52, %v11513_v48  ;;  %v5148_v50 = vpop.f32.mrb[53].mxu0  ;;  %v4306_v21 = vadd.f32 %v4305_v27, %v9705_v51  ;;  %7946 = vtanh.f32 %v4304_v15 }
 0x4b9   :  { %v7933_v25 = vpop.eup %7932  ;;  %v4307_v56 = vpop.f32.mrb[202].mxu1  ;;  %v5149_v9 = vadd.f32 %v5148_v50, %v11079_v20 }
 0x4ba   :  { %v5150_v14 = vpop.f32.mrb[54].mxu0  ;;  %v7935_v42 = vpop.eup %7934  ;;  %v4308_v36 = vadd.f32 %v4307_v56, %v9708_v53  ;;  %v4685_v4 = vpack.c.bf16 %v7933_v25, %v7925_v60  ;;  %7948 = vtanh.f32 %v4306_v21 }
 0x4bb   :  { %v4309_v39 = vpop.f32.mrb[203].mxu1  ;;  %v5152_v8 = vpop.f32.mrb[55].mxu0  ;;  %v5758_v45 = vpack.c.bf16 %v7935_v42, %v7927_v54  ;;  %v5151_v47 = vadd.f32 %v5150_v14, %v11076_v44 }
 0x4bc   :  { %v7937_v55 = vpop.eup %7936  ;;  %v4310_v46 = vadd.f32 %v4309_v39, %v9705_v51  ;;  %7950 = vtanh.f32 %v4308_v36  ;;  %5415 = vmatmul.mubr.bf16.gmra.mrb[160].mxu0 %v4682_v1  ;;  %v5153_v3 = vadd.f32 %v5152_v8, %v11079_v20 }
 0x4bd   :  { %v7939_v35 = vpop.eup %7938  ;;  %v5759_v34 = vpack.c.bf16 %v7937_v55, %v7931_v2  ;;  %5424 = vmatprep.mubr.bf16.mxu0 %v4685_v4  ;;  %v4313_v26 = vpop.f32.mrb[204].mxu1 }
 0x4be   :  { %v7941_v17 = vpop.eup %7940  ;;  %7952 = vtanh.f32 %v4310_v46  ;;  %v5156_v33 = vpop.f32.mrb[56].mxu0  ;;  %v4314_v30 = vadd.f32 %v4313_v26, %v9708_v53 }
 0x4bf   :  { %v7943_v61 = vpop.eup %7942  ;;  %7954 = vtanh.f32 %v5147_v16  ;;  %5914 = vmatprep.subr.bf16.mxu1 %v5759_v34  ;;  %v4315_v58 = vpop.f32.mrb[205].mxu1  ;;  %v5157_v24 = vadd.f32 %v5156_v33, %v11076_v44 }
 0x4c0   :  { %v7945_v12 = vpop.eup %7944  ;;  %7956 = vtanh.f32 %v5149_v9  ;;  %5915 = vmatpush1.bf16.xpose.msra.mxu1 %v5758_v45  ;;  %v5760_v18 = vpack.c.bf16 %v7943_v61, %v7939_v35  ;;  %v5158_v63 = vpop.f32.mrb[57].mxu0  ;;  %v4316_v1 = vadd.f32 %v4315_v58, %v9705_v51 }
 0x4c1   :  { %7958 = vtanh.f32 %v5151_v47  ;;  %v5761_v13 = vpack.c.bf16 %v7945_v12, %v7941_v17  ;;  %v4317_v19 = vpop.f32.mrb[206].mxu1  ;;  %v5160_v40 = vpop.f32.mrb[58].mxu0  ;;  %v5159_v38 = vadd.f32 %v5158_v63, %v11079_v20 }
 0x4c2   :  { %7960 = vtanh.f32 %v5153_v3  ;;  %v4318_v59 = vadd.f32 %v4317_v19, %v9708_v53  ;;  %v4319_v32 = vpop.f32.mrb[207].mxu1  ;;  %v5162_v29 = vpop.f32.mrb[59].mxu0  ;;  %v5161_v22 = vadd.f32 %v5160_v40, %v11076_v44 }
 0x4c3   :  { %7962 = vtanh.f32 %v4314_v30  ;;  %5916 = vmatprep.subr.bf16.mxu1 %v5761_v13  ;;  %v4320_v10 = vadd.f32 %v4319_v32, %v9705_v51  ;;  %v7947_v6 = vpop.eup %7946  ;;  %v5163_v11 = vadd.f32 %v5162_v29, %v11079_v20 }
 0x4c4   :  { %7964 = vtanh.f32 %v4316_v1  ;;  %5425 = vmatmul.mubr.bf16.gmra.mrb[164].mxu0 %v4684_v49  ;;  %v7949_v43 = vpop.eup %7948 }
 0x4c5   :  { %7966 = vtanh.f32 %v5157_v24 }
 0x4c6   :  { %7968 = vtanh.f32 %v4318_v59  ;;  %v7951_v37 = vpop.eup %7950  ;;  %v5166_v48 = vpop.f32.mrb[60].mxu0 }
 0x4c7   :  { %7970 = vtanh.f32 %v5159_v38  ;;  %v4686_v28 = vpack.c.bf16 %v7951_v37, %v7947_v6  ;;  %v5167_v60 = vadd.f32 %v5166_v48, %v11076_v44  ;;  %v5168_v52 = vpop.f32.mrb[61].mxu0 }
 0x4c8   :  { %v7953_v0 = vpop.eup %7952  ;;  %7972 = vtanh.f32 %v4320_v10  ;;  %5917 = vmatpush1.bf16.xpose.msra.mxu1 %v5760_v18  ;;  %v5169_v7 = vadd.f32 %v5168_v52, %v11079_v20  ;;  %v5170_v2 = vpop.f32.mrb[62].mxu0 }
 0x4c9   :  { %v7955_v31 = vpop.eup %7954  ;;  %7974 = vtanh.f32 %v5161_v22  ;;  %v4687_v54 = vpack.c.bf16 %v7953_v0, %v7949_v43  ;;  %v5171_v15 = vadd.f32 %v5170_v2, %v11076_v44  ;;  %v5172_v27 = vpop.f32.mrb[63].mxu0 }
 0x4ca   :  { %v7957_v62 = vpop.eup %7956  ;;  %7976 = vtanh.f32 %v5163_v11  ;;  %v5173_v25 = vadd.f32 %v5172_v27, %v11079_v20 }
 0x4cb   :  { %v7959_v49 = vpop.eup %7958  ;;  %7978 = vtanh.f32 %v5167_v60  ;;  %5434 = vmatprep.mubr.bf16.mxu0 %v4687_v54 }
 0x4cc   :  { %v7961_v50 = vpop.eup %7960  ;;  %7980 = vtanh.f32 %v5169_v7  ;;  %v5762_v21 = vpack.c.bf16 %v7959_v49, %v7955_v31  ;;  %5435 = vmatmul.mubr.bf16.gmra.mrb[168].mxu0 %v4686_v28 }
 0x4cd   :  { %v7963_v56 = vpop.eup %7962  ;;  %7982 = vtanh.f32 %v5171_v15  ;;  %v5763_v14 = vpack.c.bf16 %v7961_v50, %v7957_v62 }
 0x4ce   :  { %v7965_v42 = vpop.eup %7964  ;;  %7984 = vtanh.f32 %v5173_v25  ;;  %v4323_v16 = vpop.f32.mrb[208].mxu1 }
 0x4cf   :  { %v7967_v36 = vpop.eup %7966  ;;  %5918 = vmatprep.subr.bf16.mxu1 %v5763_v14  ;;  %v5176_v8 = vpop.f32.mrb[64].mxu0  ;;  %v4324_v46 = vadd.f32 %v4323_v16, %v9708_v53 }
 0x4d0   :  { %v7969_v39 = vpop.eup %7968  ;;  %5919 = vmatpush1.bf16.xpose.msra.mxu1 %v5762_v21  ;;  %v4325_v9 = vpop.f32.mrb[209].mxu1  ;;  %v5177_v26 = vadd.f32 %v5176_v8, %v11076_v44 }
 0x4d1   :  { %v7971_v4 = vpop.eup %7970  ;;  %v4688_v55 = vpack.c.bf16 %v7969_v39, %v7963_v56  ;;  %v5178_v45 = vpop.f32.mrb[65].mxu0  ;;  %v4326_v47 = vadd.f32 %v4325_v9, %v9705_v51  ;;  %7986 = vtanh.f32 %v4324_v46 }
 0x4d2   :  { %v7973_v35 = vpop.eup %7972  ;;  %v4327_v34 = vpop.f32.mrb[210].mxu1  ;;  %v5179_v24 = vadd.f32 %v5178_v45, %v11079_v20 }
 0x4d3   :  { %v5180_v17 = vpop.f32.mrb[66].mxu0  ;;  %v7975_v3 = vpop.eup %7974  ;;  %v4328_v61 = vadd.f32 %v4327_v34, %v9708_v53  ;;  %v4689_v33 = vpack.c.bf16 %v7973_v35, %v7965_v42  ;;  %7988 = vtanh.f32 %v4326_v47 }
 0x4d4   :  { %v4329_v12 = vpop.f32.mrb[211].mxu1  ;;  %v5182_v18 = vpop.f32.mrb[67].mxu0  ;;  %v5764_v63 = vpack.c.bf16 %v7975_v3, %v7967_v36  ;;  %v5181_v1 = vadd.f32 %v5180_v17, %v11076_v44 }
 0x4d5   :  { %v7977_v30 = vpop.eup %7976  ;;  %v4330_v58 = vadd.f32 %v4329_v12, %v9705_v51  ;;  %7990 = vtanh.f32 %v4328_v61  ;;  %5444 = vmatprep.mubr.bf16.mxu0 %v4689_v33  ;;  %v5183_v59 = vadd.f32 %v5182_v18, %v11079_v20 }
 0x4d6   :  { %v7979_v13 = vpop.eup %7978  ;;  %v5765_v19 = vpack.c.bf16 %v7977_v30, %v7971_v4  ;;  %5445 = vmatmul.mubr.bf16.gmra.mrb[172].mxu0 %v4688_v55  ;;  %v4333_v29 = vpop.f32.mrb[212].mxu1 }
 0x4d7   :  { %v7981_v40 = vpop.eup %7980  ;;  %7992 = vtanh.f32 %v4330_v58  ;;  %v5186_v10 = vpop.f32.mrb[68].mxu0  ;;  %v4334_v22 = vadd.f32 %v4333_v29, %v9708_v53 }
 0x4d8   :  { %v7983_v38 = vpop.eup %7982  ;;  %7994 = vtanh.f32 %v5177_v26  ;;  %5920 = vmatprep.subr.bf16.mxu1 %v5765_v19  ;;  %v4335_v43 = vpop.f32.mrb[213].mxu1  ;;  %v5187_v11 = vadd.f32 %v5186_v10, %v11076_v44 }
 0x4d9   :  { %v7985_v32 = vpop.eup %7984  ;;  %7996 = vtanh.f32 %v5179_v24  ;;  %5921 = vmatpush1.bf16.xpose.msra.mxu1 %v5764_v63  ;;  %v5766_v6 = vpack.c.bf16 %v7983_v38, %v7979_v13  ;;  %v5188_v37 = vpop.f32.mrb[69].mxu0  ;;  %v4336_v28 = vadd.f32 %v4335_v43, %v9705_v51 }
 0x4da   :  { %7998 = vtanh.f32 %v5181_v1  ;;  %v5767_v0 = vpack.c.bf16 %v7985_v32, %v7981_v40  ;;  %v4337_v48 = vpop.f32.mrb[214].mxu1  ;;  %v5190_v31 = vpop.f32.mrb[70].mxu0  ;;  %v5189_v54 = vadd.f32 %v5188_v37, %v11079_v20 }
 0x4db   :  { %8000 = vtanh.f32 %v5183_v59  ;;  %v4338_v60 = vadd.f32 %v4337_v48, %v9708_v53  ;;  %v4339_v52 = vpop.f32.mrb[215].mxu1  ;;  %v5192_v62 = vpop.f32.mrb[71].mxu0  ;;  %v5191_v49 = vadd.f32 %v5190_v31, %v11076_v44 }
 0x4dc   :  { %8002 = vtanh.f32 %v4334_v22  ;;  %5922 = vmatprep.subr.bf16.mxu1 %v5767_v0  ;;  %v4340_v7 = vadd.f32 %v4339_v52, %v9705_v51  ;;  %v7987_v2 = vpop.eup %7986  ;;  %v5193_v27 = vadd.f32 %v5192_v62, %v11079_v20 }
 0x4dd   :  { %8004 = vtanh.f32 %v4336_v28  ;;  %v7989_v15 = vpop.eup %7988 }
 0x4de   :  { %8006 = vtanh.f32 %v5187_v11 }
 0x4df   :  { %8008 = vtanh.f32 %v4338_v60  ;;  %v7991_v50 = vpop.eup %7990  ;;  %v5196_v56 = vpop.f32.mrb[72].mxu0 }
 0x4e0   :  { %8010 = vtanh.f32 %v5189_v54  ;;  %v4690_v21 = vpack.c.bf16 %v7991_v50, %v7987_v2  ;;  %v5197_v42 = vadd.f32 %v5196_v56, %v11076_v44  ;;  %v5198_v39 = vpop.f32.mrb[73].mxu0 }
 0x4e1   :  { %v7993_v25 = vpop.eup %7992  ;;  %8012 = vtanh.f32 %v4340_v7  ;;  %5923 = vmatpush1.bf16.xpose.msra.mxu1 %v5766_v6  ;;  %v5199_v8 = vadd.f32 %v5198_v39, %v11079_v20  ;;  %v5200_v4 = vpop.f32.mrb[74].mxu0 }
 0x4e2   :  { %v7995_v14 = vpop.eup %7994  ;;  %8014 = vtanh.f32 %v5191_v49  ;;  %v4691_v36 = vpack.c.bf16 %v7993_v25, %v7989_v15  ;;  %v5201_v46 = vadd.f32 %v5200_v4, %v11076_v44  ;;  %v5202_v9 = vpop.f32.mrb[75].mxu0 }
 0x4e3   :  { %v7997_v16 = vpop.eup %7996  ;;  %8016 = vtanh.f32 %v5193_v27  ;;  %v5203_v35 = vadd.f32 %v5202_v9, %v11079_v20 }
 0x4e4   :  { %v7999_v55 = vpop.eup %7998  ;;  %8018 = vtanh.f32 %v5197_v42  ;;  %5454 = vmatprep.mubr.bf16.mxu0 %v4691_v36 }
 0x4e5   :  { %v8001_v45 = vpop.eup %8000  ;;  %8020 = vtanh.f32 %v5199_v8  ;;  %5455 = vmatmul.mubr.bf16.gmra.mrb[176].mxu0 %v4690_v21  ;;  %v5768_v47 = vpack.c.bf16 %v7999_v55, %v7995_v14 }
 0x4e6   :  { %v8003_v34 = vpop.eup %8002  ;;  %8022 = vtanh.f32 %v5201_v46  ;;  %v5769_v17 = vpack.c.bf16 %v8001_v45, %v7997_v16  ;;  %v4343_v26 = vpop.f32.mrb[216].mxu1 }
 0x4e7   :  { %v8005_v3 = vpop.eup %8004  ;;  %8024 = vtanh.f32 %v5203_v35  ;;  %v5206_v33 = vpop.f32.mrb[76].mxu0  ;;  %v4344_v58 = vadd.f32 %v4343_v26, %v9708_v53 }
 0x4e8   :  { %v8007_v61 = vpop.eup %8006  ;;  %5924 = vmatprep.subr.bf16.mxu1 %v5769_v17  ;;  %v4345_v24 = vpop.f32.mrb[217].mxu1  ;;  %v5207_v29 = vadd.f32 %v5206_v33, %v11076_v44 }
 0x4e9   :  { %v8009_v12 = vpop.eup %8008  ;;  %5925 = vmatpush1.bf16.xpose.msra.mxu1 %v5768_v47  ;;  %v5208_v63 = vpop.f32.mrb[77].mxu0  ;;  %v4346_v1 = vadd.f32 %v4345_v24, %v9705_v51  ;;  %8026 = vtanh.f32 %v4344_v58 }
 0x4ea   :  { %v8011_v18 = vpop.eup %8010  ;;  %v4692_v30 = vpack.c.bf16 %v8009_v12, %v8003_v34  ;;  %v4347_v19 = vpop.f32.mrb[218].mxu1  ;;  %v5209_v11 = vadd.f32 %v5208_v63, %v11079_v20 }
 0x4eb   :  { %v8013_v13 = vpop.eup %8012  ;;  %v5210_v40 = vpop.f32.mrb[78].mxu0  ;;  %v4348_v38 = vadd.f32 %v4347_v19, %v9708_v53  ;;  %8028 = vtanh.f32 %v4346_v1 }
 0x4ec   :  { %v8015_v59 = vpop.eup %8014  ;;  %v4349_v32 = vpop.f32.mrb[219].mxu1  ;;  %v4693_v10 = vpack.c.bf16 %v8013_v13, %v8005_v3  ;;  %v5211_v28 = vadd.f32 %v5210_v40, %v11076_v44 }
 0x4ed   :  { %v5212_v6 = vpop.f32.mrb[79].mxu0  ;;  %v8017_v22 = vpop.eup %8016  ;;  %v4350_v43 = vadd.f32 %v4349_v32, %v9705_v51  ;;  %v5770_v37 = vpack.c.bf16 %v8015_v59, %v8007_v61  ;;  %8030 = vtanh.f32 %v4348_v38 }
 0x4ee   :  { %v8019_v0 = vpop.eup %8018  ;;  %5464 = vmatprep.mubr.bf16.mxu0 %v4693_v10  ;;  %v5771_v48 = vpack.c.bf16 %v8017_v22, %v8011_v18  ;;  %v5213_v60 = vadd.f32 %v5212_v6, %v11079_v20  ;;  %v4353_v62 = vpop.f32.mrb[220].mxu1 }
 0x4ef   :  { %v8021_v31 = vpop.eup %8020  ;;  %8032 = vtanh.f32 %v4350_v43  ;;  %5465 = vmatmul.mubr.bf16.gmra.mrb[180].mxu0 %v4692_v30  ;;  %v5216_v7 = vpop.f32.mrb[80].mxu0  ;;  %v4354_v49 = vadd.f32 %v4353_v62, %v9708_v53 }
 0x4f0   :  { %v8023_v54 = vpop.eup %8022  ;;  %8034 = vtanh.f32 %v5207_v29  ;;  %5926 = vmatprep.subr.bf16.mxu1 %v5771_v48  ;;  %v4355_v15 = vpop.f32.mrb[221].mxu1  ;;  %v5217_v27 = vadd.f32 %v5216_v7, %v11076_v44 }
 0x4f1   :  { %v8025_v52 = vpop.eup %8024  ;;  %8036 = vtanh.f32 %v5209_v11  ;;  %5927 = vmatpush1.bf16.xpose.msra.mxu1 %v5770_v37  ;;  %v5772_v2 = vpack.c.bf16 %v8023_v54, %v8019_v0  ;;  %v5218_v50 = vpop.f32.mrb[81].mxu0  ;;  %v4356_v21 = vadd.f32 %v4355_v15, %v9705_v51 }
 0x4f2   :  { %8038 = vtanh.f32 %v5211_v28  ;;  %v5773_v25 = vpack.c.bf16 %v8025_v52, %v8021_v31  ;;  %v4357_v56 = vpop.f32.mrb[222].mxu1  ;;  %v5220_v14 = vpop.f32.mrb[82].mxu0  ;;  %v5219_v36 = vadd.f32 %v5218_v50, %v11079_v20 }
 0x4f3   :  { %8040 = vtanh.f32 %v5213_v60  ;;  %v4358_v42 = vadd.f32 %v4357_v56, %v9708_v53  ;;  %v4359_v39 = vpop.f32.mrb[223].mxu1  ;;  %v5222_v16 = vpop.f32.mrb[83].mxu0  ;;  %v5221_v55 = vadd.f32 %v5220_v14, %v11076_v44 }
 0x4f4   :  { %8042 = vtanh.f32 %v4354_v49  ;;  %5928 = vmatprep.subr.bf16.mxu1 %v5773_v25  ;;  %v4360_v8 = vadd.f32 %v4359_v39, %v9705_v51  ;;  %v8027_v4 = vpop.eup %8026  ;;  %v5223_v9 = vadd.f32 %v5222_v16, %v11079_v20 }
 0x4f5   :  { %8044 = vtanh.f32 %v4356_v21  ;;  %v8029_v46 = vpop.eup %8028 }
 0x4f6   :  { %8046 = vtanh.f32 %v5217_v27 }
 0x4f7   :  { %8048 = vtanh.f32 %v4358_v42  ;;  %v8031_v45 = vpop.eup %8030  ;;  %v5226_v47 = vpop.f32.mrb[84].mxu0 }
 0x4f8   :  { %8050 = vtanh.f32 %v5219_v36  ;;  %v4694_v53 = vpack.c.bf16 %v8031_v45, %v8027_v4  ;;  %v5227_v17 = vadd.f32 %v5226_v47, %v11076_v44  ;;  %v5228_v3 = vpop.f32.mrb[85].mxu0 }
 0x4f9   :  { %v8033_v35 = vpop.eup %8032  ;;  %8052 = vtanh.f32 %v4360_v8  ;;  %5929 = vmatpush1.bf16.xpose.msra.mxu1 %v5772_v2  ;;  %v5229_v12 = vadd.f32 %v5228_v3, %v11079_v20  ;;  %v5230_v26 = vpop.f32.mrb[86].mxu0 }
 0x4fa   :  { %v8035_v34 = vpop.eup %8034  ;;  %8054 = vtanh.f32 %v5221_v55  ;;  %v4695_v51 = vpack.c.bf16 %v8033_v35, %v8029_v46  ;;  %v5231_v18 = vadd.f32 %v5230_v26, %v11076_v44  ;;  %v5232_v30 = vpop.f32.mrb[87].mxu0 }
 0x4fb   :  { %v8037_v61 = vpop.eup %8036  ;;  %8056 = vtanh.f32 %v5223_v9  ;;  %v5233_v24 = vadd.f32 %v5232_v30, %v11079_v20 }
 0x4fc   :  { %v8039_v33 = vpop.eup %8038  ;;  %8058 = vtanh.f32 %v5227_v17  ;;  %5474 = vmatprep.mubr.bf16.mxu0 %v4695_v51 }
 0x4fd   :  { %v8041_v58 = vpop.eup %8040  ;;  %8060 = vtanh.f32 %v5229_v12  ;;  %5475 = vmatmul.mubr.bf16.gmra.mrb[184].mxu0 %v4694_v53  ;;  %v5774_v63 = vpack.c.bf16 %v8039_v33, %v8035_v34 }
 0x4fe   :  { %v8043_v13 = vpop.eup %8042  ;;  %8062 = vtanh.f32 %v5231_v18  ;;  %v5775_v1 = vpack.c.bf16 %v8041_v58, %v8037_v61 }
 0x4ff   :  { %v8045_v19 = vpop.eup %8044  ;;  %8064 = vtanh.f32 %v5233_v24  ;;  %v5236_v38 = vpop.f32.mrb[88].mxu0 }
 0x500   :  { %v8047_v40 = vpop.eup %8046  ;;  %5930 = vmatprep.subr.bf16.mxu1 %v5775_v1  ;;  %v5237_v10 = vadd.f32 %v5236_v38, %v11076_v44  ;;  %v5238_v6 = vpop.f32.mrb[89].mxu0 }
 0x501   :  { %v8049_v59 = vpop.eup %8048  ;;  %5931 = vmatpush1.bf16.xpose.msra.mxu1 %v5774_v63  ;;  %v5239_v43 = vadd.f32 %v5238_v6, %v11079_v20  ;;  %v5240_v11 = vpop.f32.mrb[90].mxu0 }
 0x502   :  { %v8051_v32 = vpop.eup %8050  ;;  %v4696_v29 = vpack.c.bf16 %v8049_v59, %v8043_v13  ;;  %8066 = vtanh.f32 %v5237_v10  ;;  %v5241_v0 = vadd.f32 %v5240_v11, %v11076_v44  ;;  %v5242_v48 = vpop.f32.mrb[91].mxu0 }
 0x503   :  { %v8053_v22 = vpop.eup %8052  ;;  %8068 = vtanh.f32 %v5239_v43  ;;  %v5243_v60 = vadd.f32 %v5242_v48, %v11079_v20 }
 0x504   :  { %v8055_v37 = vpop.eup %8054  ;;  %v4697_v28 = vpack.c.bf16 %v8053_v22, %v8045_v19  ;;  %8070 = vtanh.f32 %v5241_v0 }
 0x505   :  { %v8057_v31 = vpop.eup %8056  ;;  %v5776_v54 = vpack.c.bf16 %v8055_v37, %v8047_v40  ;;  %8072 = vtanh.f32 %v5243_v60 }
 0x506   :  { %v8059_v52 = vpop.eup %8058  ;;  %5484 = vmatprep.mubr.bf16.mxu0 %v4697_v28  ;;  %v5777_v62 = vpack.c.bf16 %v8057_v31, %v8051_v32 }
 0x507   :  { %v8061_v7 = vpop.eup %8060  ;;  %5485 = vmatmul.mubr.bf16.gmra.mrb[188].mxu0 %v4696_v29  ;;  %v5246_v15 = vpop.f32.mrb[92].mxu0 }
 0x508   :  { %v8063_v2 = vpop.eup %8062  ;;  %5932 = vmatprep.subr.bf16.mxu1 %v5777_v62  ;;  %v5247_v50 = vadd.f32 %v5246_v15, %v11076_v44  ;;  %v5248_v25 = vpop.f32.mrb[93].mxu0 }
 0x509   :  { %v8065_v49 = vpop.eup %8064  ;;  %5933 = vmatpush1.bf16.xpose.msra.mxu1 %v5776_v54  ;;  %v5778_v27 = vpack.c.bf16 %v8063_v2, %v8059_v52  ;;  %v5249_v56 = vadd.f32 %v5248_v25, %v11079_v20  ;;  %v5250_v14 = vpop.f32.mrb[94].mxu0 }
 0x50a   :  { %v5779_v21 = vpack.c.bf16 %v8065_v49, %v8061_v7  ;;  %8074 = vtanh.f32 %v5247_v50  ;;  %v5251_v42 = vadd.f32 %v5250_v14, %v11076_v44  ;;  %v5252_v36 = vpop.f32.mrb[95].mxu0 }
 0x50b   :  { %8076 = vtanh.f32 %v5249_v56  ;;  %v5253_v39 = vadd.f32 %v5252_v36, %v11079_v20 }
 0x50c   :  { %5934 = vmatprep.subr.bf16.mxu1 %v5779_v21  ;;  %v8067_v16 = vpop.eup %8066  ;;  %8078 = vtanh.f32 %v5251_v42 }
 0x50d   :  { %v8069_v8 = vpop.eup %8068  ;;  %8080 = vtanh.f32 %v5253_v39 }
 0x50e   :  { %v8071_v4 = vpop.eup %8070 }
 0x50f   :  { %v8073_v55 = vpop.eup %8072  ;;  %v5256_v46 = vpop.f32.mrb[96].mxu0  ;;  %v5780_v9 = vpack.c.bf16 %v8071_v4, %v8067_v16 }
 0x510   :  { %v5257_v45 = vadd.f32 %v5256_v46, %v11076_v44  ;;  %v5258_v35 = vpop.f32.mrb[97].mxu0  ;;  %v5781_v53 = vpack.c.bf16 %v8073_v55, %v8069_v8 }
 0x511   :  { %5935 = vmatpush1.bf16.xpose.msra.mxu1 %v5778_v27  ;;  %v5259_v47 = vadd.f32 %v5258_v35, %v11079_v20  ;;  %v5260_v34 = vpop.f32.mrb[98].mxu0 }
 0x512   :  { %8082 = vtanh.f32 %v5257_v45  ;;  %v5261_v17 = vadd.f32 %v5260_v34, %v11076_v44  ;;  %v5262_v51 = vpop.f32.mrb[99].mxu0  ;;  %5936 = vmatprep.subr.bf16.mxu1 %v5781_v53 }
 0x513   :  { %8084 = vtanh.f32 %v5259_v47  ;;  %v5263_v3 = vadd.f32 %v5262_v51, %v11079_v20 }
 0x514   :  { %v8075_v61 = vpop.eup %8074  ;;  %8086 = vtanh.f32 %v5261_v17 }
 0x515   :  { %v8077_v12 = vpop.eup %8076  ;;  %8088 = vtanh.f32 %v5263_v3 }
 0x516   :  { %v8079_v26 = vpop.eup %8078 }
 0x517   :  { %v8081_v33 = vpop.eup %8080  ;;  %v5266_v18 = vpop.f32.mrb[100].mxu0  ;;  %v5782_v30 = vpack.c.bf16 %v8079_v26, %v8075_v61 }
 0x518   :  { %v5267_v58 = vadd.f32 %v5266_v18, %v11076_v44  ;;  %v5268_v24 = vpop.f32.mrb[101].mxu0  ;;  %v5783_v63 = vpack.c.bf16 %v8081_v33, %v8077_v12 }
 0x519   :  { %5937 = vmatpush1.bf16.xpose.msra.mxu1 %v5780_v9  ;;  %v5269_v13 = vadd.f32 %v5268_v24, %v11079_v20  ;;  %v5270_v1 = vpop.f32.mrb[102].mxu0 }
 0x51a   :  { %8090 = vtanh.f32 %v5267_v58  ;;  %v5271_v19 = vadd.f32 %v5270_v1, %v11076_v44  ;;  %v5272_v40 = vpop.f32.mrb[103].mxu0  ;;  %5938 = vmatprep.subr.bf16.mxu1 %v5783_v63 }
 0x51b   :  { %8092 = vtanh.f32 %v5269_v13  ;;  %v5273_v59 = vadd.f32 %v5272_v40, %v11079_v20 }
 0x51c   :  { %v8083_v38 = vpop.eup %8082  ;;  %8094 = vtanh.f32 %v5271_v19 }
 0x51d   :  { %v8085_v32 = vpop.eup %8084  ;;  %8096 = vtanh.f32 %v5273_v59 }
 0x51e   :  { %v8087_v29 = vpop.eup %8086 }
 0x51f   :  { %v8089_v10 = vpop.eup %8088  ;;  %v5276_v6 = vpop.f32.mrb[104].mxu0  ;;  %v5784_v22 = vpack.c.bf16 %v8087_v29, %v8083_v38 }
 0x520   :  { %v5277_v43 = vadd.f32 %v5276_v6, %v11076_v44  ;;  %v5278_v11 = vpop.f32.mrb[105].mxu0  ;;  %v5785_v37 = vpack.c.bf16 %v8089_v10, %v8085_v32 }
 0x521   :  { %5939 = vmatpush1.bf16.xpose.msra.mxu1 %v5782_v30  ;;  %v5279_v0 = vadd.f32 %v5278_v11, %v11079_v20  ;;  %v5280_v28 = vpop.f32.mrb[106].mxu0 }
 0x522   :  { %8098 = vtanh.f32 %v5277_v43  ;;  %v5281_v48 = vadd.f32 %v5280_v28, %v11076_v44  ;;  %v5282_v31 = vpop.f32.mrb[107].mxu0  ;;  %5949 = vmatprep.subr.bf16.mxu1 %v5785_v37 }
 0x523   :  { %8100 = vtanh.f32 %v5279_v0  ;;  %v5283_v60 = vadd.f32 %v5282_v31, %v11079_v20 }
 0x524   :  { %v8091_v54 = vpop.eup %8090  ;;  %8102 = vtanh.f32 %v5281_v48 }
 0x525   :  { %v8093_v52 = vpop.eup %8092  ;;  %8104 = vtanh.f32 %v5283_v60 }
 0x526   :  { %v8095_v62 = vpop.eup %8094 }
 0x527   :  { %v8097_v7 = vpop.eup %8096  ;;  %v5286_v2 = vpop.f32.mrb[108].mxu0  ;;  %v5786_v49 = vpack.c.bf16 %v8095_v62, %v8091_v54 }
 0x528   :  { %5941 = vmatmul.mubr.bf16.vlgmr.msra.gmra.mrb[228].mxu1 %v11480_v23  ;;  %v5287_v15 = vadd.f32 %v5286_v2, %v11076_v44  ;;  %v5288_v27 = vpop.f32.mrb[109].mxu0  ;;  %v5787_v50 = vpack.c.bf16 %v8097_v7, %v8093_v52 }
 0x529   :  { %5950 = vmatpush1.bf16.xpose.msra.mxu1 %v5784_v22  ;;  %5981 = vmatprep.mubr.bf16.mxu1 %v11154_v5  ;;  %v5289_v25 = vadd.f32 %v5288_v27, %v11079_v20  ;;  %v5290_v21 = vpop.f32.mrb[110].mxu0 }
 0x52a   :  { %8106 = vtanh.f32 %v5287_v15  ;;  %v5291_v56 = vadd.f32 %v5290_v21, %v11076_v44  ;;  %v5292_v14 = vpop.f32.mrb[111].mxu0  ;;  %5951 = vmatprep.subr.bf16.mxu1 %v5787_v50 }
 0x52b   :  { %8108 = vtanh.f32 %v5289_v25  ;;  %v5293_v42 = vadd.f32 %v5292_v14, %v11079_v20 }
 0x52c   :  { %v8099_v36 = vpop.eup %8098  ;;  %8110 = vtanh.f32 %v5291_v56 }
 0x52d   :  { %v8101_v39 = vpop.eup %8100  ;;  %8112 = vtanh.f32 %v5293_v42 }
 0x52e   :  { %v8103_v16 = vpop.eup %8102 }
 0x52f   :  { %v8105_v8 = vpop.eup %8104  ;;  %v5296_v4 = vpop.f32.mrb[112].mxu0  ;;  %v5788_v55 = vpack.c.bf16 %v8103_v16, %v8099_v36 }
 0x530   :  { %v5297_v46 = vadd.f32 %v5296_v4, %v11076_v44  ;;  %v5298_v9 = vpop.f32.mrb[113].mxu0  ;;  %v5789_v45 = vpack.c.bf16 %v8105_v8, %v8101_v39 }
 0x531   :  { %5952 = vmatpush1.bf16.xpose.msra.mxu1 %v5786_v49  ;;  %v5299_v35 = vadd.f32 %v5298_v9, %v11079_v20  ;;  %v5300_v53 = vpop.f32.mrb[114].mxu0 }
 0x532   :  { %8114 = vtanh.f32 %v5297_v46  ;;  %v5301_v47 = vadd.f32 %v5300_v53, %v11076_v44  ;;  %v5302_v34 = vpop.f32.mrb[115].mxu0  ;;  %5953 = vmatprep.subr.bf16.mxu1 %v5789_v45 }
 0x533   :  { %8116 = vtanh.f32 %v5299_v35  ;;  %v5303_v17 = vadd.f32 %v5302_v34, %v11079_v20 }
 0x534   :  { %v8107_v51 = vpop.eup %8106  ;;  %8118 = vtanh.f32 %v5301_v47 }
 0x535   :  { %v8109_v3 = vpop.eup %8108  ;;  %8120 = vtanh.f32 %v5303_v17 }
 0x536   :  { %v8111_v61 = vpop.eup %8110 }
 0x537   :  { %v8113_v12 = vpop.eup %8112  ;;  %v5306_v26 = vpop.f32.mrb[116].mxu0  ;;  %v5790_v33 = vpack.c.bf16 %v8111_v61, %v8107_v51 }
 0x538   :  { %v5307_v18 = vadd.f32 %v5306_v26, %v11076_v44  ;;  %v5308_v30 = vpop.f32.mrb[117].mxu0  ;;  %v5791_v58 = vpack.c.bf16 %v8113_v12, %v8109_v3 }
 0x539   :  { %5954 = vmatpush1.bf16.xpose.msra.mxu1 %v5788_v55  ;;  %v5309_v24 = vadd.f32 %v5308_v30, %v11079_v20  ;;  %v5310_v63 = vpop.f32.mrb[118].mxu0 }
 0x53a   :  { %8122 = vtanh.f32 %v5307_v18  ;;  %v5311_v13 = vadd.f32 %v5310_v63, %v11076_v44  ;;  %v5312_v1 = vpop.f32.mrb[119].mxu0  ;;  %5955 = vmatprep.subr.bf16.mxu1 %v5791_v58 }
 0x53b   :  { %8124 = vtanh.f32 %v5309_v24  ;;  %v5313_v19 = vadd.f32 %v5312_v1, %v11079_v20 }
 0x53c   :  { %v8115_v40 = vpop.eup %8114  ;;  %8126 = vtanh.f32 %v5311_v13 }
 0x53d   :  { %v8117_v59 = vpop.eup %8116  ;;  %8128 = vtanh.f32 %v5313_v19 }
 0x53e   :  { %v8119_v38 = vpop.eup %8118 }
 0x53f   :  { %v8121_v32 = vpop.eup %8120  ;;  %v5316_v29 = vpop.f32.mrb[120].mxu0  ;;  %v5792_v10 = vpack.c.bf16 %v8119_v38, %v8115_v40 }
 0x540   :  { %v5317_v6 = vadd.f32 %v5316_v29, %v11076_v44  ;;  %v5318_v22 = vpop.f32.mrb[121].mxu0  ;;  %v5793_v43 = vpack.c.bf16 %v8121_v32, %v8117_v59 }
 0x541   :  { %5956 = vmatpush1.bf16.xpose.msra.mxu1 %v5790_v33  ;;  %v5319_v11 = vadd.f32 %v5318_v22, %v11079_v20  ;;  %v5320_v37 = vpop.f32.mrb[122].mxu0 }
 0x542   :  { %8130 = vtanh.f32 %v5317_v6  ;;  %v5321_v0 = vadd.f32 %v5320_v37, %v11076_v44  ;;  %v5322_v28 = vpop.f32.mrb[123].mxu0  ;;  %5957 = vmatprep.subr.bf16.mxu1 %v5793_v43 }
 0x543   :  { %8132 = vtanh.f32 %v5319_v11  ;;  %v5323_v48 = vadd.f32 %v5322_v28, %v11079_v20 }
 0x544   :  { %v8123_v31 = vpop.eup %8122  ;;  %8134 = vtanh.f32 %v5321_v0 }
 0x545   :  { %v8125_v60 = vpop.eup %8124  ;;  %8136 = vtanh.f32 %v5323_v48 }
 0x546   :  { %v8127_v54 = vpop.eup %8126 }
 0x547   :  { %v8129_v52 = vpop.eup %8128  ;;  %v5326_v62 = vpop.f32.mrb[124].mxu0  ;;  %v5794_v7 = vpack.c.bf16 %v8127_v54, %v8123_v31 }
 0x548   :  { %v5327_v2 = vadd.f32 %v5326_v62, %v11076_v44  ;;  %v5328_v49 = vpop.f32.mrb[125].mxu0  ;;  %v5795_v15 = vpack.c.bf16 %v8129_v52, %v8125_v60 }
 0x549   :  { %5958 = vmatpush1.bf16.xpose.msra.mxu1 %v5792_v10  ;;  %v5329_v27 = vadd.f32 %v5328_v49, %v11079_v20  ;;  %v5330_v50 = vpop.f32.mrb[126].mxu0 }
 0x54a   :  { %8138 = vtanh.f32 %v5327_v2  ;;  %v5331_v25 = vadd.f32 %v5330_v50, %v11076_v44  ;;  %v5332_v21 = vpop.f32.mrb[127].mxu0  ;;  %5959 = vmatprep.subr.bf16.mxu1 %v5795_v15 }
 0x54b   :  { %8140 = vtanh.f32 %v5329_v27  ;;  %v5333_v56 = vadd.f32 %v5332_v21, %v11079_v20 }
 0x54c   :  { %v8131_v14 = vpop.eup %8130  ;;  %8142 = vtanh.f32 %v5331_v25 }
 0x54d   :  { %v8133_v42 = vpop.eup %8132  ;;  %8144 = vtanh.f32 %v5333_v56 }
 0x54e   :  { %v8135_v36 = vpop.eup %8134 }
 0x54f   :  { %v8137_v39 = vpop.eup %8136  ;;  %v5336_v16 = vpop.f32.mrb[128].mxu0  ;;  %v5796_v8 = vpack.c.bf16 %v8135_v36, %v8131_v14 }
 0x550   :  { %v5337_v4 = vadd.f32 %v5336_v16, %v11076_v44  ;;  %v5338_v55 = vpop.f32.mrb[129].mxu0  ;;  %v5797_v46 = vpack.c.bf16 %v8137_v39, %v8133_v42 }
 0x551   :  { %5960 = vmatpush1.bf16.xpose.msra.mxu1 %v5794_v7  ;;  %v5339_v9 = vadd.f32 %v5338_v55, %v11079_v20  ;;  %v5340_v45 = vpop.f32.mrb[130].mxu0 }
 0x552   :  { %8146 = vtanh.f32 %v5337_v4  ;;  %v5341_v35 = vadd.f32 %v5340_v45, %v11076_v44  ;;  %v5342_v53 = vpop.f32.mrb[131].mxu0  ;;  %5961 = vmatprep.subr.bf16.mxu1 %v5797_v46 }
 0x553   :  { %8148 = vtanh.f32 %v5339_v9  ;;  %v5343_v47 = vadd.f32 %v5342_v53, %v11079_v20  ;;  %v5836_v53 = vpop.permute.xlu1 %5835 }
 0x554   :  { %v8139_v34 = vpop.eup %8138  ;;  %8150 = vtanh.f32 %v5341_v35 }
 0x555   :  { %v8141_v17 = vpop.eup %8140  ;;  %8152 = vtanh.f32 %v5343_v47 }
 0x556   :  { %v8143_v51 = vpop.eup %8142 }
 0x557   :  { %v8145_v3 = vpop.eup %8144  ;;  %v5346_v61 = vpop.f32.mrb[132].mxu0  ;;  %v5798_v12 = vpack.c.bf16 %v8143_v51, %v8139_v34  ;;  %v11645_v51 = vrot.slane %v5836_v53, %v11905_v57 }
 0x558   :  { %v5347_v26 = vadd.f32 %v5346_v61, %v11076_v44  ;;  %v5348_v33 = vpop.f32.mrb[133].mxu0  ;;  %v5799_v18 = vpack.c.bf16 %v8145_v3, %v8141_v17 }
 0x559   :  { %5962 = vmatpush1.bf16.xpose.msra.mxu1 %v5796_v8  ;;  %v5349_v30 = vadd.f32 %v5348_v33, %v11079_v20  ;;  %v5350_v58 = vpop.f32.mrb[134].mxu0 }
 0x55a   :  { %8154 = vtanh.f32 %v5347_v26  ;;  %v5351_v24 = vadd.f32 %v5350_v58, %v11076_v44  ;;  %v5352_v63 = vpop.f32.mrb[135].mxu0  ;;  %5963 = vmatprep.subr.bf16.mxu1 %v5799_v18 }
 0x55b   :  { %8156 = vtanh.f32 %v5349_v30  ;;  %v5353_v13 = vadd.f32 %v5352_v63, %v11079_v20 }
 0x55c   :  { %v8147_v1 = vpop.eup %8146  ;;  %8158 = vtanh.f32 %v5351_v24 }
 0x55d   :  { %v8149_v19 = vpop.eup %8148  ;;  %8160 = vtanh.f32 %v5353_v13 }
 0x55e   :  { %v8151_v40 = vpop.eup %8150 }
 0x55f   :  { %v8153_v59 = vpop.eup %8152  ;;  %v5356_v38 = vpop.f32.mrb[136].mxu0  ;;  %v5800_v32 = vpack.c.bf16 %v8151_v40, %v8147_v1 }
 0x560   :  { %v5357_v29 = vadd.f32 %v5356_v38, %v11076_v44  ;;  %v5358_v10 = vpop.f32.mrb[137].mxu0  ;;  %v5801_v6 = vpack.c.bf16 %v8153_v59, %v8149_v19 }
 0x561   :  { %5964 = vmatpush1.bf16.xpose.msra.mxu1 %v5798_v12  ;;  %v5359_v22 = vadd.f32 %v5358_v10, %v11079_v20  ;;  %v5360_v43 = vpop.f32.mrb[138].mxu0 }
 0x562   :  { %8162 = vtanh.f32 %v5357_v29  ;;  %v5361_v11 = vadd.f32 %v5360_v43, %v11076_v44  ;;  %v5362_v37 = vpop.f32.mrb[139].mxu0  ;;  %5965 = vmatprep.subr.bf16.mxu1 %v5801_v6 }
 0x563   :  { %8164 = vtanh.f32 %v5359_v22  ;;  %v5363_v0 = vadd.f32 %v5362_v37, %v11079_v20 }
 0x564   :  { %v8155_v28 = vpop.eup %8154  ;;  %8166 = vtanh.f32 %v5361_v11 }
 0x565   :  { %v8157_v48 = vpop.eup %8156  ;;  %8168 = vtanh.f32 %v5363_v0 }
 0x566   :  { %v8159_v31 = vpop.eup %8158 }
 0x567   :  { %v8161_v60 = vpop.eup %8160  ;;  %v5366_v54 = vpop.f32.mrb[140].mxu0  ;;  %v5802_v52 = vpack.c.bf16 %v8159_v31, %v8155_v28 }
 0x568   :  { %v5367_v62 = vadd.f32 %v5366_v54, %v11076_v44  ;;  %v5368_v7 = vpop.f32.mrb[141].mxu0  ;;  %v5803_v2 = vpack.c.bf16 %v8161_v60, %v8157_v48 }
 0x569   :  { %5966 = vmatpush1.bf16.xpose.msra.mxu1 %v5800_v32  ;;  %v5369_v49 = vadd.f32 %v5368_v7, %v11079_v20  ;;  %v5370_v15 = vpop.f32.mrb[142].mxu0 }
 0x56a   :  { %8170 = vtanh.f32 %v5367_v62  ;;  %v5371_v27 = vadd.f32 %v5370_v15, %v11076_v44  ;;  %v5372_v50 = vpop.f32.mrb[143].mxu0  ;;  %5967 = vmatprep.subr.bf16.mxu1 %v5803_v2 }
 0x56b   :  { %8172 = vtanh.f32 %v5369_v49  ;;  %v5373_v25 = vadd.f32 %v5372_v50, %v11079_v20 }
 0x56c   :  { %v8163_v21 = vpop.eup %8162  ;;  %8174 = vtanh.f32 %v5371_v27 }
 0x56d   :  { %v8165_v56 = vpop.eup %8164  ;;  %8176 = vtanh.f32 %v5373_v25 }
 0x56e   :  { %v8167_v14 = vpop.eup %8166 }
 0x56f   :  { %v8169_v42 = vpop.eup %8168  ;;  %v5376_v36 = vpop.f32.mrb[144].mxu0  ;;  %v5804_v39 = vpack.c.bf16 %v8167_v14, %v8163_v21 }
 0x570   :  { %v5377_v16 = vadd.f32 %v5376_v36, %v11076_v44  ;;  %v5378_v8 = vpop.f32.mrb[145].mxu0  ;;  %v5805_v4 = vpack.c.bf16 %v8169_v42, %v8165_v56 }
 0x571   :  { %5968 = vmatpush1.bf16.xpose.msra.mxu1 %v5802_v52  ;;  %v5379_v55 = vadd.f32 %v5378_v8, %v11079_v20  ;;  %v5380_v46 = vpop.f32.mrb[146].mxu0 }
 0x572   :  { %8178 = vtanh.f32 %v5377_v16  ;;  %v5381_v9 = vadd.f32 %v5380_v46, %v11076_v44  ;;  %v5382_v45 = vpop.f32.mrb[147].mxu0  ;;  %5969 = vmatprep.subr.bf16.mxu1 %v5805_v4 }
 0x573   :  { %8180 = vtanh.f32 %v5379_v55  ;;  %v5383_v35 = vadd.f32 %v5382_v45, %v11079_v20 }
 0x574   :  { %v8171_v47 = vpop.eup %8170  ;;  %8182 = vtanh.f32 %v5381_v9 }
 0x575   :  { %v8173_v34 = vpop.eup %8172  ;;  %8184 = vtanh.f32 %v5383_v35 }
 0x576   :  { %v8175_v17 = vpop.eup %8174 }
 0x577   :  { %v8177_v3 = vpop.eup %8176  ;;  %v5386_v61 = vpop.f32.mrb[148].mxu0  ;;  %v5806_v12 = vpack.c.bf16 %v8175_v17, %v8171_v47 }
 0x578   :  { %v5387_v26 = vadd.f32 %v5386_v61, %v11076_v44  ;;  %v5388_v33 = vpop.f32.mrb[149].mxu0  ;;  %v5807_v18 = vpack.c.bf16 %v8177_v3, %v8173_v34 }
 0x579   :  { %5970 = vmatpush1.bf16.xpose.msra.mxu1 %v5804_v39  ;;  %v5389_v30 = vadd.f32 %v5388_v33, %v11079_v20  ;;  %v5390_v58 = vpop.f32.mrb[150].mxu0  ;;  %v5901_v24 = vpop.f32.mrb[224].mxu1 }
 0x57a   :  { %8186 = vtanh.f32 %v5387_v26  ;;  %v5391_v63 = vadd.f32 %v5390_v58, %v11076_v44  ;;  %v5392_v13 = vpop.f32.mrb[151].mxu0  ;;  %5971 = vmatprep.subr.bf16.mxu1 %v5807_v18  ;;  %v5903_v1 = vpop.f32.mrb[225].mxu1  ;;  %v11651_v57 = vadd.f32 %v5901_v24, %v11645_v51 }
 0x57b   :  { %8188 = vtanh.f32 %v5389_v30  ;;  %v5393_v19 = vadd.f32 %v5392_v13, %v11079_v20  ;;  %v5905_v40 = vpop.f32.mrb[226].mxu1  ;;  %v11655_v59 = vadd.f32 %v5903_v1, %v11645_v51 }
 0x57c   :  { %v8179_v38 = vpop.eup %8178  ;;  %8190 = vtanh.f32 %v5391_v63  ;;  %v5906_v32 = vpop.f32.mrb[227].mxu1 }
 0x57d   :  { %v8181_v29 = vpop.eup %8180  ;;  %8192 = vtanh.f32 %v5393_v19  ;;  %v6037_v10 = vcombine.low %v11651_v57, %v11655_v59 }
 0x57e   :  { %v8183_v6 = vpop.eup %8182 }
 0x57f   :  { %v8185_v22 = vpop.eup %8184  ;;  %v5396_v43 = vpop.f32.mrb[152].mxu0  ;;  %v5808_v11 = vpack.c.bf16 %v8183_v6, %v8179_v38 }
 0x580   :  { %v5397_v37 = vadd.f32 %v5396_v43, %v11076_v44  ;;  %v5398_v0 = vpop.f32.mrb[153].mxu0  ;;  %v5809_v28 = vpack.c.bf16 %v8185_v22, %v8181_v29 }
 0x581   :  { %5972 = vmatpush1.bf16.xpose.msra.mxu1 %v5806_v12  ;;  %v5399_v48 = vadd.f32 %v5398_v0, %v11079_v20  ;;  %v5400_v31 = vpop.f32.mrb[154].mxu0 }
 0x582   :  { %8194 = vtanh.f32 %v5397_v37  ;;  %v5401_v60 = vadd.f32 %v5400_v31, %v11076_v44  ;;  %v5402_v54 = vpop.f32.mrb[155].mxu0  ;;  %5973 = vmatprep.subr.bf16.mxu1 %v5809_v28 }
 0x583   :  { %8196 = vtanh.f32 %v5399_v48  ;;  %v5403_v52 = vadd.f32 %v5402_v54, %v11079_v20 }
 0x584   :  { %v8187_v62 = vpop.eup %8186  ;;  %8198 = vtanh.f32 %v5401_v60 }
 0x585   :  { %v8189_v7 = vpop.eup %8188  ;;  %8200 = vtanh.f32 %v5403_v52 }
 0x586   :  { %v8191_v2 = vpop.eup %8190 }
 0x587   :  { %v8193_v49 = vpop.eup %8192  ;;  %v5406_v15 = vpop.f32.mrb[156].mxu0  ;;  %v5810_v27 = vpack.c.bf16 %v8191_v2, %v8187_v62 }
 0x588   :  { %v5407_v50 = vadd.f32 %v5406_v15, %v11076_v44  ;;  %v5408_v25 = vpop.f32.mrb[157].mxu0  ;;  %v5811_v21 = vpack.c.bf16 %v8193_v49, %v8189_v7 }
 0x589   :  { %5974 = vmatpush1.bf16.xpose.msra.mxu1 %v5808_v11  ;;  %v5409_v56 = vadd.f32 %v5408_v25, %v11079_v20  ;;  %v5410_v14 = vpop.f32.mrb[158].mxu0 }
 0x58a   :  { %8202 = vtanh.f32 %v5407_v50  ;;  %v5411_v42 = vadd.f32 %v5410_v14, %v11076_v44  ;;  %v5412_v36 = vpop.f32.mrb[159].mxu0  ;;  %5975 = vmatprep.subr.bf16.mxu1 %v5811_v21 }
 0x58b   :  { %8204 = vtanh.f32 %v5409_v56  ;;  %v5413_v39 = vadd.f32 %v5412_v36, %v11079_v20 }
 0x58c   :  { %v8195_v16 = vpop.eup %8194  ;;  %8206 = vtanh.f32 %v5411_v42 }
 0x58d   :  { %v8197_v8 = vpop.eup %8196  ;;  %8208 = vtanh.f32 %v5413_v39 }
 0x58e   :  { %v8199_v4 = vpop.eup %8198 }
 0x58f   :  { %v8201_v55 = vpop.eup %8200  ;;  %v5416_v46 = vpop.f32.mrb[160].mxu0  ;;  %v5812_v9 = vpack.c.bf16 %v8199_v4, %v8195_v16 }
 0x590   :  { %v5417_v45 = vadd.f32 %v5416_v46, %v11076_v44  ;;  %v5418_v35 = vpop.f32.mrb[161].mxu0  ;;  %v5813_v53 = vpack.c.bf16 %v8201_v55, %v8197_v8 }
 0x591   :  { %5976 = vmatpush1.bf16.xpose.msra.mxu1 %v5810_v27  ;;  %v5419_v47 = vadd.f32 %v5418_v35, %v11079_v20  ;;  %v5420_v34 = vpop.f32.mrb[162].mxu0 }
 0x592   :  { %8210 = vtanh.f32 %v5417_v45  ;;  %v5421_v17 = vadd.f32 %v5420_v34, %v11076_v44  ;;  %v5422_v3 = vpop.f32.mrb[163].mxu0  ;;  %5977 = vmatprep.subr.bf16.mxu1 %v5813_v53 }
 0x593   :  { %8212 = vtanh.f32 %v5419_v47  ;;  %v5423_v61 = vadd.f32 %v5422_v3, %v11079_v20 }
 0x594   :  { %v8203_v12 = vpop.eup %8202  ;;  %8214 = vtanh.f32 %v5421_v17 }
 0x595   :  { %v8205_v26 = vpop.eup %8204  ;;  %8216 = vtanh.f32 %v5423_v61 }
 0x596   :  { %v8207_v33 = vpop.eup %8206 }
 0x597   :  { %v8209_v18 = vpop.eup %8208  ;;  %v5426_v30 = vpop.f32.mrb[164].mxu0  ;;  %v5814_v58 = vpack.c.bf16 %v8207_v33, %v8203_v12 }
 0x598   :  { %v5427_v24 = vadd.f32 %v5426_v30, %v11076_v44  ;;  %v5428_v63 = vpop.f32.mrb[165].mxu0  ;;  %v5815_v13 = vpack.c.bf16 %v8209_v18, %v8205_v26 }
 0x599   :  { %5978 = vmatpush1.bf16.xpose.msra.mxu1 %v5812_v9  ;;  %v5429_v1 = vadd.f32 %v5428_v63, %v11079_v20  ;;  %v5430_v19 = vpop.f32.mrb[166].mxu0 }
 0x59a   :  { %8218 = vtanh.f32 %v5427_v24  ;;  %v5431_v40 = vadd.f32 %v5430_v19, %v11076_v44  ;;  %v5432_v38 = vpop.f32.mrb[167].mxu0  ;;  %5979 = vmatprep.subr.bf16.mxu1 %v5815_v13 }
 0x59b   :  { %8220 = vtanh.f32 %v5429_v1  ;;  %v5433_v32 = vadd.f32 %v5432_v38, %v11079_v20 }
 0x59c   :  { %v8211_v29 = vpop.eup %8210  ;;  %8222 = vtanh.f32 %v5431_v40 }
 0x59d   :  { %v8213_v6 = vpop.eup %8212  ;;  %8224 = vtanh.f32 %v5433_v32 }
 0x59e   :  { %v8215_v22 = vpop.eup %8214 }
 0x59f   :  { %v8217_v43 = vpop.eup %8216  ;;  %v5436_v11 = vpop.f32.mrb[168].mxu0  ;;  %v5816_v37 = vpack.c.bf16 %v8215_v22, %v8211_v29 }
 0x5a0   :  { %v5437_v0 = vadd.f32 %v5436_v11, %v11076_v44  ;;  %v5438_v28 = vpop.f32.mrb[169].mxu0  ;;  %v5817_v48 = vpack.c.bf16 %v8217_v43, %v8213_v6 }
 0x5a1   :  { %5980 = vmatpush1.bf16.xpose.msra.mxu1 %v5814_v58  ;;  %v5439_v31 = vadd.f32 %v5438_v28, %v11079_v20  ;;  %v5440_v60 = vpop.f32.mrb[170].mxu0 }
 0x5a2   :  { %8226 = vtanh.f32 %v5437_v0  ;;  %v5441_v54 = vadd.f32 %v5440_v60, %v11076_v44  ;;  %v5442_v52 = vpop.f32.mrb[171].mxu0  ;;  %5990 = vmatprep.subr.bf16.mxu1 %v5817_v48 }
 0x5a3   :  { %8228 = vtanh.f32 %v5439_v31  ;;  %v5443_v62 = vadd.f32 %v5442_v52, %v11079_v20 }
 0x5a4   :  { %v8219_v7 = vpop.eup %8218  ;;  %8230 = vtanh.f32 %v5441_v54 }
 0x5a5   :  { %v8221_v2 = vpop.eup %8220  ;;  %8232 = vtanh.f32 %v5443_v62 }
 0x5a6   :  { %v8223_v49 = vpop.eup %8222 }
 0x5a7   :  { %v8225_v15 = vpop.eup %8224  ;;  %v5818_v27 = vpack.c.bf16 %v8223_v49, %v8219_v7 }
 0x5a8   :  { %5982 = vmatmul.mubr.bf16.vlgmr.msra.gmra.mrb[232].mxu1 %v11480_v23  ;;  %v5819_v25 = vpack.c.bf16 %v8225_v15, %v8221_v2 }
 0x5a9   :  { %5991 = vmatpush1.bf16.xpose.msra.mxu1 %v5816_v37  ;;  %6022 = vmatprep.mubr.bf16.mxu1 %v11154_v5  ;;  %v5446_v50 = vpop.f32.mrb[172].mxu0 }
 0x5aa   :  { %v5447_v21 = vadd.f32 %v5446_v50, %v11076_v44  ;;  %v5448_v56 = vpop.f32.mrb[173].mxu0  ;;  %5992 = vmatprep.subr.bf16.mxu1 %v5819_v25 }
 0x5ab   :  { %v5449_v14 = vadd.f32 %v5448_v56, %v11079_v20  ;;  %v5450_v42 = vpop.f32.mrb[174].mxu0 }
 0x5ac   :  { %8234 = vtanh.f32 %v5447_v21  ;;  %v5451_v36 = vadd.f32 %v5450_v42, %v11076_v44  ;;  %v5452_v39 = vpop.f32.mrb[175].mxu0  ;;  %v8227_v16 = vpop.eup %8226 }
 0x5ad   :  { %8236 = vtanh.f32 %v5449_v14  ;;  %v5453_v8 = vadd.f32 %v5452_v39, %v11079_v20  ;;  %v8229_v4 = vpop.eup %8228 }
 0x5ae   :  { %8238 = vtanh.f32 %v5451_v36  ;;  %v8231_v5 = vpop.eup %8230 }
 0x5af   :  { %8240 = vtanh.f32 %v5453_v8  ;;  %v8233_v55 = vpop.eup %8232  ;;  %v5820_v46 = vpack.c.bf16 %v8231_v5, %v8227_v16 }
 0x5b0   :  { %v5821_v9 = vpack.c.bf16 %v8233_v55, %v8229_v4 }
 0x5b1   :  { %5993 = vmatpush1.bf16.xpose.msra.mxu1 %v5818_v27 }
 0x5b2   :  { %5994 = vmatprep.subr.bf16.mxu1 %v5821_v9 }
 0x5b6   :  { %v8235_v45 = vpop.eup %8234 }
 0x5b7   :  { %v8237_v35 = vpop.eup %8236 }
 0x5b8   :  { %v5456_v53 = vpop.f32.mrb[176].mxu0  ;;  %v8239_v47 = vpop.eup %8238 }
 0x5b9   :  { %v5457_v34 = vadd.f32 %v5456_v53, %v11076_v44  ;;  %5995 = vmatpush1.bf16.xpose.msra.mxu1 %v5820_v46  ;;  %v5458_v17 = vpop.f32.mrb[177].mxu0  ;;  %v8241_v3 = vpop.eup %8240  ;;  %v5822_v26 = vpack.c.bf16 %v8239_v47, %v8235_v45 }
 0x5ba   :  { %v5459_v61 = vadd.f32 %v5458_v17, %v11079_v20  ;;  %v5460_v12 = vpop.f32.mrb[178].mxu0  ;;  %v5823_v30 = vpack.c.bf16 %v8241_v3, %v8237_v35 }
 0x5bb   :  { %8242 = vtanh.f32 %v5457_v34  ;;  %v5461_v33 = vadd.f32 %v5460_v12, %v11076_v44  ;;  %v5462_v18 = vpop.f32.mrb[179].mxu0 }
 0x5bc   :  { %8244 = vtanh.f32 %v5459_v61  ;;  %v5463_v58 = vadd.f32 %v5462_v18, %v11079_v20  ;;  %5996 = vmatprep.subr.bf16.mxu1 %v5823_v30  ;;  %v6046_v18 = vrot.slane %v6037_v10, %v11146_v41 }
 0x5bd   :  { %8246 = vtanh.f32 %v5461_v33 }
 0x5be   :  { %8248 = vtanh.f32 %v5463_v58 }
 0x5c1   :  { %5997 = vmatpush1.bf16.xpose.msra.mxu1 %v5822_v26 }
 0x5c2   :  { %v5466_v24 = vpop.f32.mrb[180].mxu0 }
 0x5c3   :  { %v5467_v63 = vadd.f32 %v5466_v24, %v11076_v44  ;;  %v5468_v13 = vpop.f32.mrb[181].mxu0 }
 0x5c4   :  { %v5469_v1 = vadd.f32 %v5468_v13, %v11079_v20  ;;  %v5470_v19 = vpop.f32.mrb[182].mxu0 }
 0x5c5   :  { %v8243_v40 = vpop.eup %8242  ;;  %8250 = vtanh.f32 %v5467_v63  ;;  %v5471_v38 = vadd.f32 %v5470_v19, %v11076_v44  ;;  %v5472_v32 = vpop.f32.mrb[183].mxu0 }
 0x5c6   :  { %v8245_v29 = vpop.eup %8244  ;;  %8252 = vtanh.f32 %v5469_v1  ;;  %v5473_v6 = vadd.f32 %v5472_v32, %v11079_v20 }
 0x5c7   :  { %v8247_v22 = vpop.eup %8246  ;;  %8254 = vtanh.f32 %v5471_v38 }
 0x5c8   :  { %v8249_v43 = vpop.eup %8248  ;;  %8256 = vtanh.f32 %v5473_v6  ;;  %v5824_v11 = vpack.c.bf16 %v8247_v22, %v8243_v40 }
 0x5c9   :  { %v5825_v37 = vpack.c.bf16 %v8249_v43, %v8245_v29 }
 0x5cb   :  { %5998 = vmatprep.subr.bf16.mxu1 %v5825_v37  ;;  %v11916_v37 = vlaneseq }
 0x5cc   :  { %5999 = vmatpush1.bf16.xpose.msra.mxu1 %v5824_v11 }
 0x5cd   :  { %vm6088_vm0 = vcmp.lt.s32.totalorder %v11916_v37, 896 }
 0x5cf   :  { %v8251_v0 = vpop.eup %8250 }
 0x5d0   :  { %v8253_v28 = vpop.eup %8252  ;;  %v5476_v48 = vpop.f32.mrb[184].mxu0 }
 0x5d1   :  { %v8255_v31 = vpop.eup %8254  ;;  %v5477_v60 = vadd.f32 %v5476_v48, %v11076_v44  ;;  %v5478_v54 = vpop.f32.mrb[185].mxu0 }
 0x5d2   :  { %v8257_v52 = vpop.eup %8256  ;;  %v5479_v62 = vadd.f32 %v5478_v54, %v11079_v20  ;;  %v5480_v7 = vpop.f32.mrb[186].mxu0  ;;  %v5826_v2 = vpack.c.bf16 %v8255_v31, %v8251_v0 }
 0x5d3   :  { %8258 = vtanh.f32 %v5477_v60  ;;  %v5481_v49 = vadd.f32 %v5480_v7, %v11076_v44  ;;  %v5482_v15 = vpop.f32.mrb[187].mxu0  ;;  %v5827_v27 = vpack.c.bf16 %v8257_v52, %v8253_v28 }
 0x5d4   :  { %8260 = vtanh.f32 %v5479_v62  ;;  %v5483_v50 = vadd.f32 %v5482_v15, %v11079_v20 }
 0x5d5   :  { %8262 = vtanh.f32 %v5481_v49  ;;  %6000 = vmatprep.subr.bf16.mxu1 %v5827_v27 }
 0x5d6   :  { %8264 = vtanh.f32 %v5483_v50  ;;  %6001 = vmatpush1.bf16.xpose.msra.mxu1 %v5826_v2 }
 0x5da   :  { %v5486_v25 = vpop.f32.mrb[188].mxu0 }
 0x5db   :  { %v5487_v21 = vadd.f32 %v5486_v25, %v11076_v44  ;;  %v5488_v56 = vpop.f32.mrb[189].mxu0 }
 0x5dc   :  { %v5489_v14 = vadd.f32 %v5488_v56, %v11079_v20  ;;  %v5490_v42 = vpop.f32.mrb[190].mxu0 }
 0x5dd   :  { %v8259_v36 = vpop.eup %8258  ;;  %8266 = vtanh.f32 %v5487_v21  ;;  %v5491_v39 = vadd.f32 %v5490_v42, %v11076_v44  ;;  %v5492_v16 = vpop.f32.mrb[191].mxu0 }
 0x5de   :  { %v8261_v8 = vpop.eup %8260  ;;  %8268 = vtanh.f32 %v5489_v14  ;;  %v5493_v4 = vadd.f32 %v5492_v16, %v11079_v20 }
 0x5df   :  { %v8263_v5 = vpop.eup %8262  ;;  %8270 = vtanh.f32 %v5491_v39 }
 0x5e0   :  { %v8265_v55 = vpop.eup %8264  ;;  %8272 = vtanh.f32 %v5493_v4  ;;  %v5828_v46 = vpack.c.bf16 %v8263_v5, %v8259_v36 }
 0x5e1   :  { %v5829_v9 = vpack.c.bf16 %v8265_v55, %v8261_v8 }
 0x5e3   :  { %6002 = vmatprep.subr.bf16.mxu1 %v5829_v9 }
 0x5e4   :  { %6003 = vmatpush1.bf16.xpose.msra.mxu1 %v5828_v46 }
 0x5e7   :  { %v8267_v45 = vpop.eup %8266 }
 0x5e8   :  { %v8269_v35 = vpop.eup %8268 }
 0x5e9   :  { %v8271_v53 = vpop.eup %8270 }
 0x5ea   :  { %v8273_v47 = vpop.eup %8272  ;;  %v5830_v34 = vpack.c.bf16 %v8271_v53, %v8267_v45 }
 0x5eb   :  { %v5831_v17 = vpack.c.bf16 %v8273_v47, %v8269_v35 }
 0x5ed   :  { %6004 = vmatprep.subr.bf16.mxu1 %v5831_v17 }
 0x5ee   :  { %6005 = vmatpush1.bf16.xpose.msra.mxu1 %v5830_v34 }
 0x5f5   :  { %6023 = vmatmul.mubr.bf16.vlgmr.msra.gmra.mrb[236].mxu1 %v11480_v23 }
 0x5fb   :  { %v5942_v44 = vpop.f32.mrb[228].mxu1 }
 0x5fc   :  { %v5943_v20 = vadd.f32 %v5942_v44, %v11645_v51  ;;  %v5944_v3 = vpop.f32.mrb[229].mxu1 }
 0x5fd   :  { %v5945_v61 = vadd.f32 %v5944_v3, %v11645_v51  ;;  %v5946_v12 = vpop.f32.mrb[230].mxu1 }
 0x5fe   :  { %v5947_v26 = vpop.f32.mrb[231].mxu1 }
 0x5ff   :  { %v6038_v33 = vcombine.low %v5943_v20, %v5945_v61 }
 0x601   :  { %v6053_v30 = vrot.slane %v6038_v33, %v11146_v41 }
 0x603   :  { %v6068_v58 = vcombine.low %v6046_v18, %v6053_v30 }
 0x605   :  { %v6076_v43 = vrot.slane %v6068_v58, %v11146_v41 }
 0x67b   :  { %v5983_v24 = vpop.f32.mrb[232].mxu1 }
 0x67c   :  { %v5984_v23 = vadd.f32 %v5983_v24, %v11645_v51  ;;  %v5985_v63 = vpop.f32.mrb[233].mxu1 }
 0x67d   :  { %v5986_v13 = vadd.f32 %v5985_v63, %v11645_v51  ;;  %v5987_v1 = vpop.f32.mrb[234].mxu1 }
 0x67e   :  { %v5988_v19 = vpop.f32.mrb[235].mxu1 }
 0x67f   :  { %v6039_v40 = vcombine.low %v5984_v23, %v5986_v13 }
 0x681   :  { %v6060_v57 = vrot.slane %v6039_v40, %v11146_v41 }
 0x6c8   :  { %v6024_v38 = vpop.f32.mrb[236].mxu1 }
 0x6c9   :  { %v6025_v32 = vadd.f32 %v6024_v38, %v11645_v51  ;;  %v6026_v29 = vpop.f32.mrb[237].mxu1 }
 0x6ca   :  { %v6027_v6 = vpop.f32.mrb[238].mxu1 }
 0x6cb   :  { %v6067_v59 = vrot.slane %v6025_v32, %v11146_v41  ;;  %v6028_v10 = vpop.f32.mrb[239].mxu1 }
 0x6cd   :  { %v6069_v22 = vcombine.low %v6060_v57, %v6067_v59 }
 0x6cf   :  { %v6083_v11 = vrot.slane %v6069_v22, %v11146_v41 }
 0x6d1   :  { %v6084_v0 = vcombine.low %v6076_v43, %v6083_v11 }
 0x6d3   :  { %6090 = vst.msk [vmem:[%s11732_s12] sm:$0x7f] %vm6088_vm0, %v6084_v0 }

</bundles_post_ra>
